<compile_context>
chip_gen: v5e
topology: v5e:2x2
jax: 0.10.0
libtpu: 0.0.40
codegen_flags: <defaults>
</compile_context>

<pallas_src>
import functools

import jax
import jax.numpy as jnp
from jax.experimental import pallas as pl
from jax.experimental.pallas import tpu as pltpu

BN_EPS = 1e-5


# ----------------------------- small helpers -----------------------------

def _lane_pad(c):
    return -(-c // 128) * 128


def _vmem_capacity_bytes():
    try:
        return int(pltpu.get_tpu_info().vmem_capacity_bytes)
    except Exception:
        return 64 * 1024 * 1024        # conservative fallback (v7x per-TC physical VMEM)


_BUFFERED_ONE_OK = None


def _supports_buffered_one():
    """Probe whether pl.Buffered(1) (single-buffered grid-invariant operands) lowers and
    computes correctly on this JAX/TPU build; otherwise fall back to default buffering."""
    global _BUFFERED_ONE_OK
    if _BUFFERED_ONE_OK is None:
        try:
            def probe_kernel(c_ref, x_ref, o_ref):
                o_ref[...] = x_ref[...] + c_ref[...]

            c = jnp.ones((8, 128), jnp.float32)
            x = jnp.arange(16 * 128, dtype=jnp.float32).reshape(16, 128)
            out = pl.pallas_call(
                probe_kernel,
                out_shape=jax.ShapeDtypeStruct((16, 128), jnp.float32),
                grid=(2,),
                in_specs=[pl.BlockSpec((8, 128), lambda i: (0, 0),
                                       pipeline_mode=pl.Buffered(1)),
                          pl.BlockSpec((8, 128), lambda i: (i, 0))],
                out_specs=pl.BlockSpec((8, 128), lambda i: (i, 0)),
            )(c, x)
            _BUFFERED_ONE_OK = bool(jnp.allclose(out, x + 1.0))
        except Exception:
            _BUFFERED_ONE_OK = False
    return _BUFFERED_ONE_OK


def _const_spec(shape):
    """BlockSpec for grid-invariant operands (weights/biases): single-buffer them when
    supported so they are not pointlessly double-buffered (frees VMEM for larger row tiles)."""
    if _supports_buffered_one():
        return pl.BlockSpec(shape, lambda gi: (0, 0), pipeline_mode=pl.Buffered(1))
    return pl.BlockSpec(shape, lambda gi: (0, 0))


def _cost_estimate(flops, bytes_accessed, transcendentals=0):
    try:
        return pl.CostEstimate(flops=int(flops), transcendentals=int(transcendentals),
                               bytes_accessed=int(bytes_accessed))
    except Exception:
        return None


# ----------------------------- Pallas kernels (hot path) -----------------------------

def _make_sa_msg_kernel(layer_counts, kps, couts, ctot_pad):
    """Fused multi-branch SA kernel.

    refs layout (inputs, then the single output):
      for each branch b: x_b [tp*kp_b, C0_b] (bf16), then per layer (w [Cin,Cout] bf16,
      bias [1,Cout] f32); finally o_ref [tp, ctot_pad] f32.
    """
    nb = len(layer_counts)
    offs, off = [], 0
    for c in couts:
        offs.append(off)
        off += c
    ctot = off
    # direct per-branch column-slice stores only when every slice is 128-lane aligned
    aligned = (ctot == ctot_pad and
               all(o % 128 == 0 and c % 128 == 0 for o, c in zip(offs, couts)))

    def kernel(*refs):
        o_ref = refs[-1]
        tp = o_ref.shape[0]
        pooled_list = []
        idx = 0
        for br in range(nb):
            x_ref = refs[idx]
            idx += 1
            h = x_ref[...]                                        # bf16 [tp*kp, C0]
            nl = layer_counts[br]
            pooled = None
            for l in range(nl):
                w = refs[idx][...]                                # bf16 [Cin, Cout]
                bias = refs[idx + 1][...]                         # f32  [1, Cout]
                idx += 2
                acc = jnp.dot(h, w, preferred_element_type=jnp.float32)
                if l + 1 < nl:
                    h = jnp.maximum(acc + bias, 0.0).astype(jnp.bfloat16)
                else:
                    # pool-before-epilogue: max over K on the raw accumulator, then one
                    # bias+ReLU on [tp, Cout] (bias is K-invariant, ReLU is monotone).
                    cout = couts[br]
                    pooled = jnp.max(acc.reshape(tp, kps[br], cout), axis=1)
                    pooled = jnp.maximum(pooled + bias, 0.0)
            if aligned:
                o_ref[:, offs[br]:offs[br] + couts[br]] = pooled  # lane-aligned slice store
            else:
                pooled_list.append(pooled)
        if not aligned:
            if ctot_pad > ctot:                                   # zero-fill padding lanes so
                pooled_list.append(jnp.zeros((tp, ctot_pad - ctot), jnp.float32))
            o_ref[...] = jnp.concatenate(pooled_list, axis=-1)    # single lane-dense store

    return kernel


def _head_kernel(x_ref, w1_ref, b1_ref, w2_ref, b2_ref, w3_ref, b3_ref, o_ref):
    # fc1 + (folded) bn1 + relu   (dropout = identity in eval mode)
    h = jnp.dot(x_ref[...], w1_ref[...], preferred_element_type=jnp.float32)
    h = jnp.maximum(h + b1_ref[...], 0.0).astype(jnp.bfloat16)
    # fc2 + (folded) bn2 + relu
    h = jnp.dot(h, w2_ref[...], preferred_element_type=jnp.float32)
    h = jnp.maximum(h + b2_ref[...], 0.0).astype(jnp.bfloat16)
    # fc3 + log_softmax (f32)
    logits = jnp.dot(h, w3_ref[...], preferred_element_type=jnp.float32) + b3_ref[...]
    mx = jnp.max(logits, axis=-1, keepdims=True)
    lse = jnp.log(jnp.sum(jnp.exp(logits - mx), axis=-1, keepdims=True)) + mx
    o_ref[...] = logits - lse


def classification_head(x, hp):
    b, cin = x.shape
    nc = hp["w3"].shape[1]
    # Row-tile over the batch when B is big enough so the weight DMA overlaps compute
    # and v7x's second TensorCore can be used; tiny batches use one full block.
    if b % 8 == 0 and b >= 16:
        tb = max(8, min(128, (b // 2) // 8 * 8))
        while b % tb:
            tb -= 8
    else:
        tb = b
    grid_n = b // tb

    weights = (hp["w1"], hp["b1"], hp["w2"], hp["b2"], hp["w3"], hp["b3"])
    if grid_n > 1:
        w_spec = _const_spec
    else:
        w_spec = lambda s: pl.BlockSpec(s, lambda i: (0, 0))
    in_specs = [pl.BlockSpec((tb, cin), lambda i: (i, 0))]
    in_specs += [w_spec(w.shape) for w in weights]

    flops = 2 * b * sum(int(hp[k].shape[0]) * int(hp[k].shape[1]) for k in ("w1", "w2", "w3"))
    byts = b * cin * 2 + b * nc * 4
    byts += sum(int(w.size) * (2 if w.dtype == jnp.bfloat16 else 4) for w in weights)

    return pl.pallas_call(
        _head_kernel,
        out_shape=jax.ShapeDtypeStruct((b, nc), jnp.float32),
        grid=(grid_n,),
        in_specs=in_specs,
        out_specs=pl.BlockSpec((tb, nc), lambda i: (i, 0)),
        compiler_params=pltpu.CompilerParams(dimension_semantics=("parallel",)),
        cost_estimate=_cost_estimate(flops, byts, transcendentals=b * nc),
    )(x.astype(jnp.bfloat16), *weights)


def _sa_tile_plan(p, kps, c0s, layer_shapes, ctot_pad, w_buffers):
    """Row tiling over the B*S groups.

    Working-set budget per grid step is ~1/8 of physical VMEM (16 MiB on v5e/v6e,
    8 MiB on v7x's 64 MiB VMEM).  tp is additionally capped at ~p//2 (when p >= 16) so
    the grid length stays >= 2 and the 'parallel' row axis can shard across v7x's two
    TensorCores.  Returns (tp, padded_p, vmem_limit_bytes)."""
    vmem_cap = _vmem_capacity_bytes()
    budget = min(16 << 20, vmem_cap // 8)
    # per-row (per B*S group) working set, lane-padded to the (8,128) vreg layout
    in_row = sum(2 * kp * _lane_pad(c0) * 2 for kp, c0 in zip(kps, c0s))      # 2 bufs, bf16
    inter_row = max(kp * max(_lane_pad(co) for (_, co) in shapes) * 4
                    for kp, shapes in zip(kps, layer_shapes))                 # live f32 act
    out_row = 2 * _lane_pad(ctot_pad) * 4                                     # 2 bufs, f32
    per_row = in_row + 2 * inter_row + out_row
    tp = max(8, min(1024, (budget // max(per_row, 1)) // 8 * 8))
    if p < 16:
        tp, pp = p, p                         # single full-extent block (always legal)
    else:
        tp = min(tp, max(8, (p // 2) // 8 * 8))
        pp = -(-p // tp) * tp                 # pad rows instead of an unbounded tail block
    w_bytes = sum((_lane_pad(co) * max(ci, 8) * 2 + _lane_pad(co) * 4) * w_buffers
                  for shapes in layer_shapes for (ci, co) in shapes)
    footprint = tp * per_row + w_bytes
    vmem_limit = int(min(max(2 * footprint, 32 << 20), vmem_cap * 3 // 4))
    return tp, pp, vmem_limit


# ----------------------------- JAX glue (sampling / grouping) -----------------------------
# TODO(synk): farthest-point-sampling and ball-query are data-dependent gathers with no
# clean rectangular-BlockSpec Pallas equivalent; kept as plain JAX glue.  Moving the
# neighbour gather itself into the kernel (PrefetchScalarGridSpec + per-row DMA from the
# un-expanded source) is a possible further HBM-traffic win but needs benchmarking.

def index_points(points, idx):
    """points: [B, N, C], idx: [B, ...] -> [B, ..., C]"""
    return jax.vmap(lambda p, i: p[i])(points, idx)


def farthest_point_sample(xyz, npoint):
    """xyz: [B, N, 3] -> int32 [B, npoint].
    TODO(synk): deterministic start (index 0); PyTorch reference uses a random start index."""
    b, n, _ = xyz.shape

    def body(i, state):
        centroids, distance, farthest = state
        centroids = centroids.at[:, i].set(farthest)
        centroid = index_points(xyz, farthest[:, None])          # [B,1,3]
        dist = jnp.sum((xyz - centroid) ** 2, axis=-1)           # [B,N]
        distance = jnp.minimum(distance, dist)
        farthest = jnp.argmax(distance, axis=-1).astype(jnp.int32)
        return centroids, distance, farthest

    init = (jnp.zeros((b, npoint), jnp.int32),
            jnp.full((b, n), 1e10, jnp.float32),
            jnp.zeros((b,), jnp.int32))
    centroids, _, _ = jax.lax.fori_loop(0, npoint, body, init)
    return centroids


def query_ball_point(radius, nsample, xyz, new_xyz):
    """xyz: [B,N,3], new_xyz: [B,S,3] -> int32 [B,S,nsample]"""
    b, n, _ = xyz.shape
    s = new_xyz.shape[1]
    sqrdists = jnp.sum((new_xyz[:, :, None, :] - xyz[:, None, :, :]) ** 2, axis=-1)
    group_idx = jnp.broadcast_to(jnp.arange(n, dtype=jnp.int32), (b, s, n))
    group_idx = jnp.where(sqrdists > radius ** 2, jnp.int32(n), group_idx)
    group_idx = jnp.sort(group_idx, axis=-1)[:, :, :nsample]
    group_first = jnp.broadcast_to(group_idx[:, :, :1], group_idx.shape)
    return jnp.where(group_idx == n, group_first, group_idx)


def set_abstraction_msg(xyz, points, sa_cfg, sa_params):
    """PointNetSetAbstractionMsg forward.
    xyz: [B, 3, N] (channel-first), points: [B, D, N] or None.
    Returns new_xyz [B, 3, S], new_points [B, sum(Cout), S]."""
    xyz_t = jnp.transpose(xyz, (0, 2, 1)).astype(jnp.float32)     # f32 for distance math
    points_t = None if points is None else jnp.transpose(points, (0, 2, 1))
    b, n, _ = xyz_t.shape
    s = int(n * sa_cfg["ratio"])

    fps_idx = farthest_point_sample(xyz_t, s)
    new_xyz = index_points(xyz_t, fps_idx)                        # f32 [B,S,3]

    # Cast the *un-expanded* sources to bf16 BEFORE the Kx gather so the grouped slab is
    # written once, already in bf16 (halves HBM traffic on the largest intermediate).
    xyz_bf = xyz_t.astype(jnp.bfloat16)
    new_xyz_bf = new_xyz.astype(jnp.bfloat16)
    points_bf = None if points_t is None else points_t.astype(jnp.bfloat16)

    p = b * s
    branch_inputs, kps, c0s = [], [], []
    for i, radius in enumerate(sa_cfg["radius_list"]):
        k = sa_cfg["max_sample_list"][i]
        kp = -(-k // 8) * 8                                       # K padded to multiple of 8
        group_idx = query_ball_point(radius, k, xyz_t, new_xyz)   # [B,S,K]
        if kp != k:
            # pad with duplicates of the first neighbour: max-pool result unchanged
            pad = jnp.broadcast_to(group_idx[:, :, :1], (b, s, kp - k))
            group_idx = jnp.concatenate([group_idx, pad], axis=-1)
        grouped_xyz = index_points(xyz_bf, group_idx) - new_xyz_bf[:, :, None, :]
        if points_bf is not None:
            grouped_pts = index_points(points_bf, group_idx)      # [B,S,Kp,D] bf16
            grouped = jnp.concatenate([grouped_pts, grouped_xyz], axis=-1)
        else:
            grouped = grouped_xyz                                  # [B,S,Kp,3] bf16
        branch_inputs.append(grouped.reshape(p, kp, grouped.shape[-1]))
        kps.append(kp)
        c0s.append(grouped.shape[-1])

    nb = len(branch_inputs)
    couts = tuple(sa_params[i][-1][0].shape[1] for i in range(nb))
    ctot = sum(couts)
    ctot_pad = _lane_pad(ctot)                                    # lane-dense output slab
    layer_shapes = [[(w.shape[0], w.shape[1]) for (w, _) in sa_params[i]] for i in range(nb)]

    w_buffers = 1 if _supports_buffered_one() else 2
    tp, pp, vmem_limit = _sa_tile_plan(p, kps, c0s, layer_shapes, ctot_pad, w_buffers)

    args, in_specs, layer_counts = [], [], []
    flops = 0
    bytes_acc = pp * ctot_pad * 4
    for i, x in enumerate(branch_inputs):
        kp, c0 = kps[i], c0s[i]
        if pp != p:
            x = jnp.pad(x, ((0, pp - p), (0, 0), (0, 0)))
        x = x.reshape(pp * kp, c0)                                # bf16 channels-last matmul view
        args.append(x)
        in_specs.append(pl.BlockSpec((tp * kp, c0), lambda gi: (gi, 0)))
        layer_counts.append(len(sa_params[i]))
        bytes_acc += pp * kp * c0 * 2
        for (w, bias) in sa_params[i]:
            args.append(w)                                        # bf16, BN scale folded
            in_specs.append(_const_spec(w.shape))
            args.append(bias)                                     # f32 [1, Cout]
            in_specs.append(_const_spec(bias.shape))
            flops += 2 * pp * kp * int(w.shape[0]) * int(w.shape[1])
            bytes_acc += int(w.size) * 2 + int(bias.size) * 4

    kernel = _make_sa_msg_kernel(tuple(layer_counts), tuple(kps), couts, ctot_pad)
    out = pl.pallas_call(
        kernel,
        out_shape=jax.ShapeDtypeStruct((pp, ctot_pad), jnp.float32),
        grid=(pp // tp,),
        in_specs=in_specs,
        out_specs=pl.BlockSpec((tp, ctot_pad), lambda gi: (gi, 0)),
        compiler_params=pltpu.CompilerParams(
            dimension_semantics=("parallel",),                    # megacore rows on v7x
            vmem_limit_bytes=vmem_limit),
        cost_estimate=_cost_estimate(flops, bytes_acc),
    )(*args)

    new_points = out[:p, :ctot].reshape(b, s, ctot)               # drop row/lane padding
    return jnp.transpose(new_xyz, (0, 2, 1)), jnp.transpose(new_points, (0, 2, 1))


# ----------------------------- parameter init (deterministic, BN folded) -----------------------------

def _fold_bn_into(w, conv_bias, gamma, beta, mean, var):
    scale = gamma / jnp.sqrt(var + BN_EPS)
    w_f = (w * scale[None, :]).astype(jnp.bfloat16)
    b_f = ((conv_bias - mean) * scale + beta).astype(jnp.float32)
    return w_f, b_f


def init_sa_params(key, in_channel, mlp_list):
    params = []
    for mlp in mlp_list:
        layers = []
        last = in_channel + 3
        for out_ch in mlp:
            key, kw, kb = jax.random.split(key, 3)
            w = jax.random.normal(kw, (last, out_ch), jnp.float32) * 0.05
            cb = jax.random.normal(kb, (out_ch,), jnp.float32) * 0.01
            gamma = jnp.ones((out_ch,), jnp.float32)
            beta = jnp.zeros((out_ch,), jnp.float32)
            mean = jnp.zeros((out_ch,), jnp.float32)
            var = jnp.ones((out_ch,), jnp.float32)
            w_f, b_f = _fold_bn_into(w, cb, gamma, beta, mean, var)
            layers.append((w_f, b_f.reshape(1, out_ch)))
            last = out_ch
        params.append(layers)
    return params, key


def init_head_params(key, num_class):
    def lin(key, cin, cout, with_bn):
        key, kw, kb = jax.random.split(key, 3)
        w = jax.random.normal(kw, (cin, cout), jnp.float32) * 0.05
        cb = jax.random.normal(kb, (cout,), jnp.float32) * 0.01
        if with_bn:
            w_f, b_f = _fold_bn_into(w, cb, jnp.ones((cout,)), jnp.zeros((cout,)),
                                     jnp.zeros((cout,)), jnp.ones((cout,)))
        else:
            w_f, b_f = w.astype(jnp.bfloat16), cb.astype(jnp.float32)
        return key, w_f, b_f.reshape(1, cout)

    key, w1, b1 = lin(key, 1024, 512, True)
    key, w2, b2 = lin(key, 512, 256, True)
    key, w3, b3 = lin(key, 256, num_class, False)
    return {"w1": w1, "b1": b1, "w2": w2, "b2": b2, "w3": w3, "b3": b3}, key


# ----------------------------- full forward -----------------------------

def pointnetpp_forward(cfg, params, xyz, features):
    b = xyz.shape[0]
    l1_xyz, l1_points = set_abstraction_msg(xyz, features, cfg["sa1"], params["sa1"])
    l2_xyz, l2_points = set_abstraction_msg(l1_xyz, l1_points, cfg["sa2"], params["sa2"])
    l3_xyz, l3_points = set_abstraction_msg(l2_xyz, l2_points, cfg["sa3"], params["sa3"])
    assert l3_points.shape[1] * l3_points.shape[2] == 1024, (
        "classification head expects sa3 to produce 1024 features per cloud, got "
        f"{l3_points.shape}")
    x = l3_points.reshape(b, 1024)
    # dropout (drop1/drop2) identity in eval mode; BN folded into W/bias (eval stats).
    logp = classification_head(x, params["head"])                 # Pallas: fc1/fc2/fc3 + log_softmax
    return logp, l3_points


if __name__ == "__main__":
    B, N, D, NUM_CLASS = 2, 64, 3, 10

    config = {
        "sa1": {"ratio": 0.5,   "radius_list": [0.5, 1.0], "max_sample_list": [8, 16],
                "mlp_list": [[16, 32], [16, 32]]},                # -> 64 channels
        "sa2": {"ratio": 0.25,  "radius_list": [1.0, 2.0], "max_sample_list": [8, 16],
                "mlp_list": [[64, 128], [64, 128]]},              # -> 256 channels
        "sa3": {"ratio": 0.125, "radius_list": [2.0, 4.0], "max_sample_list": [4, 8],
                "mlp_list": [[256, 512], [256, 512]]},            # -> 1024 channels, S=1
    }

    # resolve the Buffered(1) capability probe before tracing the big jit
    _supports_buffered_one()

    key = jax.random.PRNGKey(0)
    key, kx, kf = jax.random.split(key, 3)
    xyz = jax.random.normal(kx, (B, 3, N), jnp.float32)           # channel-first, like PyTorch
    features = jax.random.normal(kf, (B, D, N), jnp.float32)

    sa1_p, key = init_sa_params(key, D, config["sa1"]["mlp_list"])
    sa2_p, key = init_sa_params(key, sum(m[-1] for m in config["sa1"]["mlp_list"]),
                                config["sa2"]["mlp_list"])
    sa3_p, key = init_sa_params(key, sum(m[-1] for m in config["sa2"]["mlp_list"]),
                                config["sa3"]["mlp_list"])
    head_p, key = init_head_params(key, NUM_CLASS)
    params = {"sa1": sa1_p, "sa2": sa2_p, "sa3": sa3_p, "head": head_p}

    fwd = jax.jit(functools.partial(pointnetpp_forward, config))
    logp, l3_points = fwd(params, xyz, features)
    jax.block_until_ready((logp, l3_points))

    assert logp.shape == (B, NUM_CLASS)
    assert l3_points.shape == (B, 1024, 1)
    print("KERNEL_OK")
</pallas_src>

<mosaic_0001>
module attributes {stable_mosaic.version = 11 : i64} {
  func.func @probe_kernel(%arg0: i32, %arg1: memref<8x128xf32, #tpu.memory_space<vmem>>, %arg2: memref<8x128xf32, #tpu.memory_space<vmem>>, %arg3: memref<8x128xf32, #tpu.memory_space<vmem>>) attributes {dimension_semantics = [#tpu.dimension_semantics<arbitrary>], iteration_bounds = array<i64: 2>, scalar_prefetch = 0 : i64, scratch_operands = 0 : i64, tpu.core_type = #tpu.core_type<tc>, window_params = [{pipeline_mode = #tpu.pipeline_mode<synchronous>, transform_indices = @transform_0, window_bounds = array<i64: 8, 128>}, {transform_indices = @transform_1, window_bounds = array<i64: 8, 128>}, {transform_indices = @transform_2, window_bounds = array<i64: 8, 128>}]} {
    %c0 = arith.constant 0 : index
    %c0_0 = arith.constant 0 : index
    %0 = vector.load %arg2[%c0, %c0_0] : memref<8x128xf32, #tpu.memory_space<vmem>>, vector<8x128xf32>
    %c0_1 = arith.constant 0 : index
    %c0_2 = arith.constant 0 : index
    %1 = vector.load %arg1[%c0_1, %c0_2] : memref<8x128xf32, #tpu.memory_space<vmem>>, vector<8x128xf32>
    %2 = arith.addf %0, %1 : vector<8x128xf32>
    %c0_3 = arith.constant 0 : index
    %c0_4 = arith.constant 0 : index
    %3 = vector.load %arg3[%c0_3, %c0_4] : memref<8x128xf32, #tpu.memory_space<vmem>>, vector<8x128xf32>
    tpu.vector_store %arg3[%c0_3, %c0_4], %2 {strides = array<i32>} : memref<8x128xf32, #tpu.memory_space<vmem>>, vector<8x128xf32>,
    return
  }
  func.func @transform_0(%arg0: i32) -> (i32, i32) {
    %c0_i32 = arith.constant 0 : i32
    %c0_i32_0 = arith.constant 0 : i32
    %c0_i32_1 = arith.constant 0 : i32
    return %c0_i32, %c0_i32_0 : i32, i32
  }
  func.func @transform_1(%arg0: i32) -> (i32, i32) {
    %c0_i32 = arith.constant 0 : i32
    %c0_i32_0 = arith.constant 0 : i32
    return %arg0, %c0_i32 : i32, i32
  }
  func.func @transform_2(%arg0: i32) -> (i32, i32) {
    %c0_i32 = arith.constant 0 : i32
    %c0_i32_0 = arith.constant 0 : i32
    return %arg0, %c0_i32 : i32, i32
  }
}

module attributes {stable_mosaic.version = 11 : i64} {
  func.func @kernel(%arg0: i32, %arg1: memref<256x6xbf16, #tpu.memory_space<vmem>>, %arg2: memref<6x16xbf16, #tpu.memory_space<vmem>>, %arg3: memref<1x16xf32, #tpu.memory_space<vmem>>, %arg4: memref<16x32xbf16, #tpu.memory_space<vmem>>, %arg5: memref<1x32xf32, #tpu.memory_space<vmem>>, %arg6: memref<512x6xbf16, #tpu.memory_space<vmem>>, %arg7: memref<6x16xbf16, #tpu.memory_space<vmem>>, %arg8: memref<1x16xf32, #tpu.memory_space<vmem>>, %arg9: memref<16x32xbf16, #tpu.memory_space<vmem>>, %arg10: memref<1x32xf32, #tpu.memory_space<vmem>>, %arg11: memref<32x128xf32, #tpu.memory_space<vmem>>) attributes {dimension_semantics = [#tpu.dimension_semantics<parallel>], iteration_bounds = array<i64: 2>, scalar_prefetch = 0 : i64, scratch_operands = 0 : i64, tpu.core_type = #tpu.core_type<tc>, window_params = [{transform_indices = @transform_0, window_bounds = array<i64: 256, 6>}, {pipeline_mode = #tpu.pipeline_mode<synchronous>, transform_indices = @transform_1, window_bounds = array<i64: 6, 16>}, {pipeline_mode = #tpu.pipeline_mode<synchronous>, transform_indices = @transform_2, window_bounds = array<i64: 1, 16>}, {pipeline_mode = #tpu.pipeline_mode<synchronous>, transform_indices = @transform_3, window_bounds = array<i64: 16, 32>}, {pipeline_mode = #tpu.pipeline_mode<synchronous>, transform_indices = @transform_4, window_bounds = array<i64: 1, 32>}, {transform_indices = @transform_5, window_bounds = array<i64: 512, 6>}, {pipeline_mode = #tpu.pipeline_mode<synchronous>, transform_indices = @transform_6, window_bounds = array<i64: 6, 16>}, {pipeline_mode = #tpu.pipeline_mode<synchronous>, transform_indices = @transform_7, window_bounds = array<i64: 1, 16>}, {pipeline_mode = #tpu.pipeline_mode<synchronous>, transform_indices = @transform_8, window_bounds = array<i64: 16, 32>}, {pipeline_mode = #tpu.pipeline_mode<synchronous>, transform_indices = @transform_9, window_bounds = array<i64: 1, 32>}, {transform_indices = @transform_10, window_bounds = array<i64: 32, 128>}]} {
    %c0 = arith.constant 0 : index
    %c0_0 = arith.constant 0 : index
    %0 = vector.load %arg1[%c0, %c0_0] : memref<256x6xbf16, #tpu.memory_space<vmem>>, vector<256x6xbf16>
    %c0_1 = arith.constant 0 : index
    %c0_2 = arith.constant 0 : index
    %1 = vector.load %arg2[%c0_1, %c0_2] : memref<6x16xbf16, #tpu.memory_space<vmem>>, vector<6x16xbf16>
    %c0_3 = arith.constant 0 : index
    %c0_4 = arith.constant 0 : index
    %2 = vector.load %arg3[%c0_3, %c0_4] : memref<1x16xf32, #tpu.memory_space<vmem>>, vector<1x16xf32>
    %cst = arith.constant dense<0.000000e+00> : vector<256x16xf32>
    %3 = tpu.matmul %0, %1, %cst {dimension_numbers = #tpu.dot_dimension_numbers<[1], [0], [0], [1], [0, 0, 1, 1], [], []>} : vector<256x6xbf16>, vector<6x16xbf16>, vector<256x16xf32> -> vector<256x16xf32>
    %4 = vector.broadcast %2 : vector<1x16xf32> to vector<256x16xf32>
    %5 = arith.addf %3, %4 : vector<256x16xf32>
    %cst_5 = arith.constant 0.000000e+00 : f32
    %6 = vector.broadcast %cst_5 : f32 to vector<256x16xf32>
    %7 = arith.maximumf %5, %6 : vector<256x16xf32>
    %8 = arith.truncf %7 : vector<256x16xf32> to vector<256x16xbf16>
    %c0_6 = arith.constant 0 : index
    %c0_7 = arith.constant 0 : index
    %9 = vector.load %arg4[%c0_6, %c0_7] : memref<16x32xbf16, #tpu.memory_space<vmem>>, vector<16x32xbf16>
    %c0_8 = arith.constant 0 : index
    %c0_9 = arith.constant 0 : index
    %10 = vector.load %arg5[%c0_8, %c0_9] : memref<1x32xf32, #tpu.memory_space<vmem>>, vector<1x32xf32>
    %cst_10 = arith.constant dense<0.000000e+00> : vector<256x32xf32>
    %11 = tpu.matmul %8, %9, %cst_10 {dimension_numbers = #tpu.dot_dimension_numbers<[1], [0], [0], [1], [0, 0, 1, 1], [], []>} : vector<256x16xbf16>, vector<16x32xbf16>, vector<256x32xf32> -> vector<256x32xf32>
    %12 = vector.shape_cast %11 : vector<256x32xf32> to vector<32x8x32xf32>
    %cst_11 = arith.constant dense<0xFF800000> : vector<32x32xf32>
    %13 = vector.multi_reduction <maximumf>, %12, %cst_11 [1] : vector<32x8x32xf32> to vector<32x32xf32>
    %14 = vector.broadcast %10 : vector<1x32xf32> to vector<32x32xf32>
    %15 = arith.addf %13, %14 : vector<32x32xf32>
    %cst_12 = arith.constant 0.000000e+00 : f32
    %16 = vector.broadcast %cst_12 : f32 to vector<32x32xf32>
    %17 = arith.maximumf %15, %16 : vector<32x32xf32>
    %c0_13 = arith.constant 0 : index
    %c0_14 = arith.constant 0 : index
    %18 = vector.load %arg6[%c0_13, %c0_14] : memref<512x6xbf16, #tpu.memory_space<vmem>>, vector<512x6xbf16>
    %c0_15 = arith.constant 0 : index
    %c0_16 = arith.constant 0 : index
    %19 = vector.load %arg7[%c0_15, %c0_16] : memref<6x16xbf16, #tpu.memory_space<vmem>>, vector<6x16xbf16>
    %c0_17 = arith.constant 0 : index
    %c0_18 = arith.constant 0 : index
    %20 = vector.load %arg8[%c0_17, %c0_18] : memref<1x16xf32, #tpu.memory_space<vmem>>, vector<1x16xf32>
    %cst_19 = arith.constant dense<0.000000e+00> : vector<512x16xf32>
    %21 = tpu.matmul %18, %19, %cst_19 {dimension_numbers = #tpu.dot_dimension_numbers<[1], [0], [0], [1], [0, 0, 1, 1], [], []>} : vector<512x6xbf16>, vector<6x16xbf16>, vector<512x16xf32> -> vector<512x16xf32>
    %22 = vector.broadcast %20 : vector<1x16xf32> to vector<512x16xf32>
    %23 = arith.addf %21, %22 : vector<512x16xf32>
    %cst_20 = arith.constant 0.000000e+00 : f32
    %24 = vector.broadcast %cst_20 : f32 to vector<512x16xf32>
    %25 = arith.maximumf %23, %24 : vector<512x16xf32>
    %26 = arith.truncf %25 : vector<512x16xf32> to vector<512x16xbf16>
    %c0_21 = arith.constant 0 : index
    %c0_22 = arith.constant 0 : index
    %27 = vector.load %arg9[%c0_21, %c0_22] : memref<16x32xbf16, #tpu.memory_space<vmem>>, vector<16x32xbf16>
    %c0_23 = arith.constant 0 : index
    %c0_24 = arith.constant 0 : index
    %28 = vector.load %arg10[%c0_23, %c0_24] : memref<1x32xf32, #tpu.memory_space<vmem>>, vector<1x32xf32>
    %cst_25 = arith.constant dense<0.000000e+00> : vector<512x32xf32>
    %29 = tpu.matmul %26, %27, %cst_25 {dimension_numbers = #tpu.dot_dimension_numbers<[1], [0], [0], [1], [0, 0, 1, 1], [], []>} : vector<512x16xbf16>, vector<16x32xbf16>, vector<512x32xf32> -> vector<512x32xf32>
    %30 = vector.shape_cast %29 : vector<512x32xf32> to vector<32x16x32xf32>
    %cst_26 = arith.constant dense<0xFF800000> : vector<32x32xf32>
    %31 = vector.multi_reduction <maximumf>, %30, %cst_26 [1] : vector<32x16x32xf32> to vector<32x32xf32>
    %32 = vector.broadcast %28 : vector<1x32xf32> to vector<32x32xf32>
    %33 = arith.addf %31, %32 : vector<32x32xf32>
    %cst_27 = arith.constant 0.000000e+00 : f32
    %34 = vector.broadcast %cst_27 : f32 to vector<32x32xf32>
    %35 = arith.maximumf %33, %34 : vector<32x32xf32>
    %cst_28 = arith.constant 0.000000e+00 : f32
    %36 = vector.broadcast %cst_28 : f32 to vector<32x64xf32>
    %37 = tpu.concatenate %17, %35, %36 in 1 : vector<32x32xf32>, vector<32x32xf32>, vector<32x64xf32> -> vector<32x128xf32>
    %c0_29 = arith.constant 0 : index
    %c0_30 = arith.constant 0 : index
    %38 = vector.load %arg11[%c0_29, %c0_30] : memref<32x128xf32, #tpu.memory_space<vmem>>, vector<32x128xf32>
    tpu.vector_store %arg11[%c0_29, %c0_30], %37 {strides = array<i32>} : memref<32x128xf32, #tpu.memory_space<vmem>>, vector<32x128xf32>,
    return
  }
  func.func @transform_0(%arg0: i32) -> (i32, i32) {
    %c0_i32 = arith.constant 0 : i32
    %c0_i32_0 = arith.constant 0 : i32
    return %arg0, %c0_i32 : i32, i32
  }
  func.func @transform_1(%arg0: i32) -> (i32, i32) {
    %c0_i32 = arith.constant 0 : i32
    %c0_i32_0 = arith.constant 0 : i32
    %c0_i32_1 = arith.constant 0 : i32
    return %c0_i32, %c0_i32_0 : i32, i32
  }
  func.func @transform_2(%arg0: i32) -> (i32, i32) {
    %c0_i32 = arith.constant 0 : i32
    %c0_i32_0 = arith.constant 0 : i32
    %c0_i32_1 = arith.constant 0 : i32
    return %c0_i32, %c0_i32_0 : i32, i32
  }
  func.func @transform_3(%arg0: i32) -> (i32, i32) {
    %c0_i32 = arith.constant 0 : i32
    %c0_i32_0 = arith.constant 0 : i32
    %c0_i32_1 = arith.constant 0 : i32
    return %c0_i32, %c0_i32_0 : i32, i32
  }
  func.func @transform_4(%arg0: i32) -> (i32, i32) {
    %c0_i32 = arith.constant 0 : i32
    %c0_i32_0 = arith.constant 0 : i32
    %c0_i32_1 = arith.constant 0 : i32
    return %c0_i32, %c0_i32_0 : i32, i32
  }
  func.func @transform_5(%arg0: i32) -> (i32, i32) {
    %c0_i32 = arith.constant 0 : i32
    %c0_i32_0 = arith.constant 0 : i32
    return %arg0, %c0_i32 : i32, i32
  }
  func.func @transform_6(%arg0: i32) -> (i32, i32) {
    %c0_i32 = arith.constant 0 : i32
    %c0_i32_0 = arith.constant 0 : i32
    %c0_i32_1 = arith.constant 0 : i32
    return %c0_i32, %c0_i32_0 : i32, i32
  }
  func.func @transform_7(%arg0: i32) -> (i32, i32) {
    %c0_i32 = arith.constant 0 : i32
    %c0_i32_0 = arith.constant 0 : i32
    %c0_i32_1 = arith.constant 0 : i32
    return %c0_i32, %c0_i32_0 : i32, i32
  }
  func.func @transform_8(%arg0: i32) -> (i32, i32) {
    %c0_i32 = arith.constant 0 : i32
    %c0_i32_0 = arith.constant 0 : i32
    %c0_i32_1 = arith.constant 0 : i32
    return %c0_i32, %c0_i32_0 : i32, i32
  }
  func.func @transform_9(%arg0: i32) -> (i32, i32) {
    %c0_i32 = arith.constant 0 : i32
    %c0_i32_0 = arith.constant 0 : i32
    %c0_i32_1 = arith.constant 0 : i32
    return %c0_i32, %c0_i32_0 : i32, i32
  }
  func.func @transform_10(%arg0: i32) -> (i32, i32) {
    %c0_i32 = arith.constant 0 : i32
    %c0_i32_0 = arith.constant 0 : i32
    return %arg0, %c0_i32 : i32, i32
  }
}

module attributes {stable_mosaic.version = 11 : i64} {
  func.func @kernel(%arg0: i32, %arg1: memref<64x67xbf16, #tpu.memory_space<vmem>>, %arg2: memref<67x64xbf16, #tpu.memory_space<vmem>>, %arg3: memref<1x64xf32, #tpu.memory_space<vmem>>, %arg4: memref<64x128xbf16, #tpu.memory_space<vmem>>, %arg5: memref<1x128xf32, #tpu.memory_space<vmem>>, %arg6: memref<128x67xbf16, #tpu.memory_space<vmem>>, %arg7: memref<67x64xbf16, #tpu.memory_space<vmem>>, %arg8: memref<1x64xf32, #tpu.memory_space<vmem>>, %arg9: memref<64x128xbf16, #tpu.memory_space<vmem>>, %arg10: memref<1x128xf32, #tpu.memory_space<vmem>>, %arg11: memref<8x256xf32, #tpu.memory_space<vmem>>) attributes {dimension_semantics = [#tpu.dimension_semantics<parallel>], iteration_bounds = array<i64: 2>, scalar_prefetch = 0 : i64, scratch_operands = 0 : i64, tpu.core_type = #tpu.core_type<tc>, window_params = [{transform_indices = @transform_0, window_bounds = array<i64: 64, 67>}, {pipeline_mode = #tpu.pipeline_mode<synchronous>, transform_indices = @transform_1, window_bounds = array<i64: 67, 64>}, {pipeline_mode = #tpu.pipeline_mode<synchronous>, transform_indices = @transform_2, window_bounds = array<i64: 1, 64>}, {pipeline_mode = #tpu.pipeline_mode<synchronous>, transform_indices = @transform_3, window_bounds = array<i64: 64, 128>}, {pipeline_mode = #tpu.pipeline_mode<synchronous>, transform_indices = @transform_4, window_bounds = array<i64: 1, 128>}, {transform_indices = @transform_5, window_bounds = array<i64: 128, 67>}, {pipeline_mode = #tpu.pipeline_mode<synchronous>, transform_indices = @transform_6, window_bounds = array<i64: 67, 64>}, {pipeline_mode = #tpu.pipeline_mode<synchronous>, transform_indices = @transform_7, window_bounds = array<i64: 1, 64>}, {pipeline_mode = #tpu.pipeline_mode<synchronous>, transform_indices = @transform_8, window_bounds = array<i64: 64, 128>}, {pipeline_mode = #tpu.pipeline_mode<synchronous>, transform_indices = @transform_9, window_bounds = array<i64: 1, 128>}, {transform_indices = @transform_10, window_bounds = array<i64: 8, 256>}]} {
    %c0 = arith.constant 0 : index
    %c0_0 = arith.constant 0 : index
    %0 = vector.load %arg1[%c0, %c0_0] : memref<64x67xbf16, #tpu.memory_space<vmem>>, vector<64x67xbf16>
    %c0_1 = arith.constant 0 : index
    %c0_2 = arith.constant 0 : index
    %1 = vector.load %arg2[%c0_1, %c0_2] : memref<67x64xbf16, #tpu.memory_space<vmem>>, vector<67x64xbf16>
    %c0_3 = arith.constant 0 : index
    %c0_4 = arith.constant 0 : index
    %2 = vector.load %arg3[%c0_3, %c0_4] : memref<1x64xf32, #tpu.memory_space<vmem>>, vector<1x64xf32>
    %cst = arith.constant dense<0.000000e+00> : vector<64x64xf32>
    %3 = tpu.matmul %0, %1, %cst {dimension_numbers = #tpu.dot_dimension_numbers<[1], [0], [0], [1], [0, 0, 1, 1], [], []>} : vector<64x67xbf16>, vector<67x64xbf16>, vector<64x64xf32> -> vector<64x64xf32>
    %4 = vector.broadcast %2 : vector<1x64xf32> to vector<64x64xf32>
    %5 = arith.addf %3, %4 : vector<64x64xf32>
    %cst_5 = arith.constant 0.000000e+00 : f32
    %6 = vector.broadcast %cst_5 : f32 to vector<64x64xf32>
    %7 = arith.maximumf %5, %6 : vector<64x64xf32>
    %8 = arith.truncf %7 : vector<64x64xf32> to vector<64x64xbf16>
    %c0_6 = arith.constant 0 : index
    %c0_7 = arith.constant 0 : index
    %9 = vector.load %arg4[%c0_6, %c0_7] : memref<64x128xbf16, #tpu.memory_space<vmem>>, vector<64x128xbf16>
    %c0_8 = arith.constant 0 : index
    %c0_9 = arith.constant 0 : index
    %10 = vector.load %arg5[%c0_8, %c0_9] : memref<1x128xf32, #tpu.memory_space<vmem>>, vector<1x128xf32>
    %cst_10 = arith.constant dense<0.000000e+00> : vector<64x128xf32>
    %11 = tpu.matmul %8, %9, %cst_10 {dimension_numbers = #tpu.dot_dimension_numbers<[1], [0], [0], [1], [0, 0, 1, 1], [], []>} : vector<64x64xbf16>, vector<64x128xbf16>, vector<64x128xf32> -> vector<64x128xf32>
    %12 = vector.shape_cast %11 : vector<64x128xf32> to vector<8x8x128xf32>
    %cst_11 = arith.constant dense<0xFF800000> : vector<8x128xf32>
    %13 = vector.multi_reduction <maximumf>, %12, %cst_11 [1] : vector<8x8x128xf32> to vector<8x128xf32>
    %14 = vector.broadcast %10 : vector<1x128xf32> to vector<8x128xf32>
    %15 = arith.addf %13, %14 : vector<8x128xf32>
    %cst_12 = arith.constant 0.000000e+00 : f32
    %16 = vector.broadcast %cst_12 : f32 to vector<8x128xf32>
    %17 = arith.maximumf %15, %16 : vector<8x128xf32>
    %c0_13 = arith.constant 0 : index
    %c0_14 = arith.constant 0 : index
    %18 = vector.load %arg11[%c0_13, %c0_14] : memref<8x256xf32, #tpu.memory_space<vmem>>, vector<8x128xf32>
    tpu.vector_store %arg11[%c0_13, %c0_14], %17 {strides = array<i32>} : memref<8x256xf32, #tpu.memory_space<vmem>>, vector<8x128xf32>,
    %c0_15 = arith.constant 0 : index
    %c0_16 = arith.constant 0 : index
    %19 = vector.load %arg6[%c0_15, %c0_16] : memref<128x67xbf16, #tpu.memory_space<vmem>>, vector<128x67xbf16>
    %c0_17 = arith.constant 0 : index
    %c0_18 = arith.constant 0 : index
    %20 = vector.load %arg7[%c0_17, %c0_18] : memref<67x64xbf16, #tpu.memory_space<vmem>>, vector<67x64xbf16>
    %c0_19 = arith.constant 0 : index
    %c0_20 = arith.constant 0 : index
    %21 = vector.load %arg8[%c0_19, %c0_20] : memref<1x64xf32, #tpu.memory_space<vmem>>, vector<1x64xf32>
    %cst_21 = arith.constant dense<0.000000e+00> : vector<128x64xf32>
    %22 = tpu.matmul %19, %20, %cst_21 {dimension_numbers = #tpu.dot_dimension_numbers<[1], [0], [0], [1], [0, 0, 1, 1], [], []>} : vector<128x67xbf16>, vector<67x64xbf16>, vector<128x64xf32> -> vector<128x64xf32>
    %23 = vector.broadcast %21 : vector<1x64xf32> to vector<128x64xf32>
    %24 = arith.addf %22, %23 : vector<128x64xf32>
    %cst_22 = arith.constant 0.000000e+00 : f32
    %25 = vector.broadcast %cst_22 : f32 to vector<128x64xf32>
    %26 = arith.maximumf %24, %25 : vector<128x64xf32>
    %27 = arith.truncf %26 : vector<128x64xf32> to vector<128x64xbf16>
    %c0_23 = arith.constant 0 : index
    %c0_24 = arith.constant 0 : index
    %28 = vector.load %arg9[%c0_23, %c0_24] : memref<64x128xbf16, #tpu.memory_space<vmem>>, vector<64x128xbf16>
    %c0_25 = arith.constant 0 : index
    %c0_26 = arith.constant 0 : index
    %29 = vector.load %arg10[%c0_25, %c0_26] : memref<1x128xf32, #tpu.memory_space<vmem>>, vector<1x128xf32>
    %cst_27 = arith.constant dense<0.000000e+00> : vector<128x128xf32>
    %30 = tpu.matmul %27, %28, %cst_27 {dimension_numbers = #tpu.dot_dimension_numbers<[1], [0], [0], [1], [0, 0, 1, 1], [], []>} : vector<128x64xbf16>, vector<64x128xbf16>, vector<128x128xf32> -> vector<128x128xf32>
    %31 = vector.shape_cast %30 : vector<128x128xf32> to vector<8x16x128xf32>
    %cst_28 = arith.constant dense<0xFF800000> : vector<8x128xf32>
    %32 = vector.multi_reduction <maximumf>, %31, %cst_28 [1] : vector<8x16x128xf32> to vector<8x128xf32>
    %33 = vector.broadcast %29 : vector<1x128xf32> to vector<8x128xf32>
    %34 = arith.addf %32, %33 : vector<8x128xf32>
    %cst_29 = arith.constant 0.000000e+00 : f32
    %35 = vector.broadcast %cst_29 : f32 to vector<8x128xf32>
    %36 = arith.maximumf %34, %35 : vector<8x128xf32>
    %c0_30 = arith.constant 0 : index
    %c128 = arith.constant 128 : index
    %37 = vector.load %arg11[%c0_30, %c128] : memref<8x256xf32, #tpu.memory_space<vmem>>, vector<8x128xf32>
    tpu.vector_store %arg11[%c0_30, %c128], %36 {strides = array<i32>} : memref<8x256xf32, #tpu.memory_space<vmem>>, vector<8x128xf32>,
    return
  }
  func.func @transform_0(%arg0: i32) -> (i32, i32) {
    %c0_i32 = arith.constant 0 : i32
    %c0_i32_0 = arith.constant 0 : i32
    return %arg0, %c0_i32 : i32, i32
  }
  func.func @transform_1(%arg0: i32) -> (i32, i32) {
    %c0_i32 = arith.constant 0 : i32
    %c0_i32_0 = arith.constant 0 : i32
    %c0_i32_1 = arith.constant 0 : i32
    return %c0_i32, %c0_i32_0 : i32, i32
  }
  func.func @transform_2(%arg0: i32) -> (i32, i32) {
    %c0_i32 = arith.constant 0 : i32
    %c0_i32_0 = arith.constant 0 : i32
    %c0_i32_1 = arith.constant 0 : i32
    return %c0_i32, %c0_i32_0 : i32, i32
  }
  func.func @transform_3(%arg0: i32) -> (i32, i32) {
    %c0_i32 = arith.constant 0 : i32
    %c0_i32_0 = arith.constant 0 : i32
    %c0_i32_1 = arith.constant 0 : i32
    return %c0_i32, %c0_i32_0 : i32, i32
  }
  func.func @transform_4(%arg0: i32) -> (i32, i32) {
    %c0_i32 = arith.constant 0 : i32
    %c0_i32_0 = arith.constant 0 : i32
    %c0_i32_1 = arith.constant 0 : i32
    return %c0_i32, %c0_i32_0 : i32, i32
  }
  func.func @transform_5(%arg0: i32) -> (i32, i32) {
    %c0_i32 = arith.constant 0 : i32
    %c0_i32_0 = arith.constant 0 : i32
    return %arg0, %c0_i32 : i32, i32
  }
  func.func @transform_6(%arg0: i32) -> (i32, i32) {
    %c0_i32 = arith.constant 0 : i32
    %c0_i32_0 = arith.constant 0 : i32
    %c0_i32_1 = arith.constant 0 : i32
    return %c0_i32, %c0_i32_0 : i32, i32
  }
  func.func @transform_7(%arg0: i32) -> (i32, i32) {
    %c0_i32 = arith.constant 0 : i32
    %c0_i32_0 = arith.constant 0 : i32
    %c0_i32_1 = arith.constant 0 : i32
    return %c0_i32, %c0_i32_0 : i32, i32
  }
  func.func @transform_8(%arg0: i32) -> (i32, i32) {
    %c0_i32 = arith.constant 0 : i32
    %c0_i32_0 = arith.constant 0 : i32
    %c0_i32_1 = arith.constant 0 : i32
    return %c0_i32, %c0_i32_0 : i32, i32
  }
  func.func @transform_9(%arg0: i32) -> (i32, i32) {
    %c0_i32 = arith.constant 0 : i32
    %c0_i32_0 = arith.constant 0 : i32
    %c0_i32_1 = arith.constant 0 : i32
    return %c0_i32, %c0_i32_0 : i32, i32
  }
  func.func @transform_10(%arg0: i32) -> (i32, i32) {
    %c0_i32 = arith.constant 0 : i32
    %c0_i32_0 = arith.constant 0 : i32
    return %arg0, %c0_i32 : i32, i32
  }
}

module attributes {stable_mosaic.version = 11 : i64} {
  func.func @_head_kernel(%arg0: i32, %arg1: memref<2x1024xbf16, #tpu.memory_space<vmem>>, %arg2: memref<1024x512xbf16, #tpu.memory_space<vmem>>, %arg3: memref<1x512xf32, #tpu.memory_space<vmem>>, %arg4: memref<512x256xbf16, #tpu.memory_space<vmem>>, %arg5: memref<1x256xf32, #tpu.memory_space<vmem>>, %arg6: memref<256x10xbf16, #tpu.memory_space<vmem>>, %arg7: memref<1x10xf32, #tpu.memory_space<vmem>>, %arg8: memref<2x10xf32, #tpu.memory_space<vmem>>) attributes {dimension_semantics = [#tpu.dimension_semantics<parallel>], iteration_bounds = array<i64: 1>, scalar_prefetch = 0 : i64, scratch_operands = 0 : i64, tpu.core_type = #tpu.core_type<tc>, window_params = [{transform_indices = @transform_0, window_bounds = array<i64: 2, 1024>}, {pipeline_mode = #tpu.pipeline_mode<synchronous>, transform_indices = @transform_1, window_bounds = array<i64: 1024, 512>}, {pipeline_mode = #tpu.pipeline_mode<synchronous>, transform_indices = @transform_2, window_bounds = array<i64: 1, 512>}, {pipeline_mode = #tpu.pipeline_mode<synchronous>, transform_indices = @transform_3, window_bounds = array<i64: 512, 256>}, {pipeline_mode = #tpu.pipeline_mode<synchronous>, transform_indices = @transform_4, window_bounds = array<i64: 1, 256>}, {pipeline_mode = #tpu.pipeline_mode<synchronous>, transform_indices = @transform_5, window_bounds = array<i64: 256, 10>}, {pipeline_mode = #tpu.pipeline_mode<synchronous>, transform_indices = @transform_6, window_bounds = array<i64: 1, 10>}, {transform_indices = @transform_7, window_bounds = array<i64: 2, 10>}]} {
    %c0 = arith.constant 0 : index
    %c0_0 = arith.constant 0 : index
    %0 = vector.load %arg1[%c0, %c0_0] : memref<2x1024xbf16, #tpu.memory_space<vmem>>, vector<2x1024xbf16>
    %c0_1 = arith.constant 0 : index
    %c0_2 = arith.constant 0 : index
    %1 = vector.load %arg2[%c0_1, %c0_2] : memref<1024x512xbf16, #tpu.memory_space<vmem>>, vector<1024x512xbf16>
    %cst = arith.constant dense<0.000000e+00> : vector<2x512xf32>
    %2 = tpu.matmul %0, %1, %cst {dimension_numbers = #tpu.dot_dimension_numbers<[1], [0], [0], [1], [0, 0, 1, 1], [], []>} : vector<2x1024xbf16>, vector<1024x512xbf16>, vector<2x512xf32> -> vector<2x512xf32>
    %c0_3 = arith.constant 0 : index
    %c0_4 = arith.constant 0 : index
    %3 = vector.load %arg3[%c0_3, %c0_4] : memref<1x512xf32, #tpu.memory_space<vmem>>, vector<1x512xf32>
    %4 = vector.broadcast %3 : vector<1x512xf32> to vector<2x512xf32>
    %5 = arith.addf %2, %4 : vector<2x512xf32>
    %cst_5 = arith.constant 0.000000e+00 : f32
    %6 = vector.broadcast %cst_5 : f32 to vector<2x512xf32>
    %7 = arith.maximumf %5, %6 : vector<2x512xf32>
    %8 = arith.truncf %7 : vector<2x512xf32> to vector<2x512xbf16>
    %c0_6 = arith.constant 0 : index
    %c0_7 = arith.constant 0 : index
    %9 = vector.load %arg4[%c0_6, %c0_7] : memref<512x256xbf16, #tpu.memory_space<vmem>>, vector<512x256xbf16>
    %cst_8 = arith.constant dense<0.000000e+00> : vector<2x256xf32>
    %10 = tpu.matmul %8, %9, %cst_8 {dimension_numbers = #tpu.dot_dimension_numbers<[1], [0], [0], [1], [0, 0, 1, 1], [], []>} : vector<2x512xbf16>, vector<512x256xbf16>, vector<2x256xf32> -> vector<2x256xf32>
    %c0_9 = arith.constant 0 : index
    %c0_10 = arith.constant 0 : index
    %11 = vector.load %arg5[%c0_9, %c0_10] : memref<1x256xf32, #tpu.memory_space<vmem>>, vector<1x256xf32>
    %12 = vector.broadcast %11 : vector<1x256xf32> to vector<2x256xf32>
    %13 = arith.addf %10, %12 : vector<2x256xf32>
    %cst_11 = arith.constant 0.000000e+00 : f32
    %14 = vector.broadcast %cst_11 : f32 to vector<2x256xf32>
    %15 = arith.maximumf %13, %14 : vector<2x256xf32>
    %16 = arith.truncf %15 : vector<2x256xf32> to vector<2x256xbf16>
    %c0_12 = arith.constant 0 : index
    %c0_13 = arith.constant 0 : index
    %17 = vector.load %arg6[%c0_12, %c0_13] : memref<256x10xbf16, #tpu.memory_space<vmem>>, vector<256x10xbf16>
    %cst_14 = arith.constant dense<0.000000e+00> : vector<2x10xf32>
    %18 = tpu.matmul %16, %17, %cst_14 {dimension_numbers = #tpu.dot_dimension_numbers<[1], [0], [0], [1], [0, 0, 1, 1], [], []>} : vector<2x256xbf16>, vector<256x10xbf16>, vector<2x10xf32> -> vector<2x10xf32>
    %c0_15 = arith.constant 0 : index
    %c0_16 = arith.constant 0 : index
    %19 = vector.load %arg7[%c0_15, %c0_16] : memref<1x10xf32, #tpu.memory_space<vmem>>, vector<1x10xf32>
    %20 = vector.broadcast %19 : vector<1x10xf32> to vector<2x10xf32>
    %21 = arith.addf %18, %20 : vector<2x10xf32>
    %cst_17 = arith.constant dense<0xFF800000> : vector<2xf32>
    %22 = vector.multi_reduction <maximumf>, %21, %cst_17 [1] : vector<2x10xf32> to vector<2xf32>
    %23 = vector.shape_cast %22 : vector<2xf32> to vector<2x1xf32>
    %24 = vector.broadcast %23 : vector<2x1xf32> to vector<2x10xf32>
    %25 = arith.subf %21, %24 : vector<2x10xf32>
    %26 = math.exp %25 : vector<2x10xf32>
    %cst_18 = arith.constant dense<0.000000e+00> : vector<2xf32>
    %27 = vector.multi_reduction <add>, %26, %cst_18 [1] : vector<2x10xf32> to vector<2xf32>
    %28 = vector.shape_cast %27 : vector<2xf32> to vector<2x1xf32>
    %29 = math.log %28 : vector<2x1xf32>
    %30 = arith.addf %29, %23 : vector<2x1xf32>
    %31 = vector.broadcast %30 : vector<2x1xf32> to vector<2x10xf32>
    %32 = arith.subf %21, %31 : vector<2x10xf32>
    %c0_19 = arith.constant 0 : index
    %c0_20 = arith.constant 0 : index
    %33 = vector.load %arg8[%c0_19, %c0_20] : memref<2x10xf32, #tpu.memory_space<vmem>>, vector<2x10xf32>
    tpu.vector_store %arg8[%c0_19, %c0_20], %32 {strides = array<i32>} : memref<2x10xf32, #tpu.memory_space<vmem>>, vector<2x10xf32>,
    return
  }
  func.func @transform_0(%arg0: i32) -> (i32, i32) {
    %c0_i32 = arith.constant 0 : i32
    %c0_i32_0 = arith.constant 0 : i32
    return %arg0, %c0_i32 : i32, i32
  }
  func.func @transform_1(%arg0: i32) -> (i32, i32) {
    %c0_i32 = arith.constant 0 : i32
    %c0_i32_0 = arith.constant 0 : i32
    %c0_i32_1 = arith.constant 0 : i32
    return %c0_i32, %c0_i32_0 : i32, i32
  }
  func.func @transform_2(%arg0: i32) -> (i32, i32) {
    %c0_i32 = arith.constant 0 : i32
    %c0_i32_0 = arith.constant 0 : i32
    %c0_i32_1 = arith.constant 0 : i32
    return %c0_i32, %c0_i32_0 : i32, i32
  }
  func.func @transform_3(%arg0: i32) -> (i32, i32) {
    %c0_i32 = arith.constant 0 : i32
    %c0_i32_0 = arith.constant 0 : i32
    %c0_i32_1 = arith.constant 0 : i32
    return %c0_i32, %c0_i32_0 : i32, i32
  }
  func.func @transform_4(%arg0: i32) -> (i32, i32) {
    %c0_i32 = arith.constant 0 : i32
    %c0_i32_0 = arith.constant 0 : i32
    %c0_i32_1 = arith.constant 0 : i32
    return %c0_i32, %c0_i32_0 : i32, i32
  }
  func.func @transform_5(%arg0: i32) -> (i32, i32) {
    %c0_i32 = arith.constant 0 : i32
    %c0_i32_0 = arith.constant 0 : i32
    %c0_i32_1 = arith.constant 0 : i32
    return %c0_i32, %c0_i32_0 : i32, i32
  }
  func.func @transform_6(%arg0: i32) -> (i32, i32) {
    %c0_i32 = arith.constant 0 : i32
    %c0_i32_0 = arith.constant 0 : i32
    %c0_i32_1 = arith.constant 0 : i32
    return %c0_i32, %c0_i32_0 : i32, i32
  }
  func.func @transform_7(%arg0: i32) -> (i32, i32) {
    %c0_i32 = arith.constant 0 : i32
    %c0_i32_0 = arith.constant 0 : i32
    return %arg0, %c0_i32 : i32, i32
  }
}

module attributes {stable_mosaic.version = 11 : i64} {
  func.func @kernel(%arg0: i32, %arg1: memref<16x259xbf16, #tpu.memory_space<vmem>>, %arg2: memref<259x256xbf16, #tpu.memory_space<vmem>>, %arg3: memref<1x256xf32, #tpu.memory_space<vmem>>, %arg4: memref<256x512xbf16, #tpu.memory_space<vmem>>, %arg5: memref<1x512xf32, #tpu.memory_space<vmem>>, %arg6: memref<16x259xbf16, #tpu.memory_space<vmem>>, %arg7: memref<259x256xbf16, #tpu.memory_space<vmem>>, %arg8: memref<1x256xf32, #tpu.memory_space<vmem>>, %arg9: memref<256x512xbf16, #tpu.memory_space<vmem>>, %arg10: memref<1x512xf32, #tpu.memory_space<vmem>>, %arg11: memref<2x1024xf32, #tpu.memory_space<vmem>>) attributes {dimension_semantics = [#tpu.dimension_semantics<parallel>], iteration_bounds = array<i64: 1>, scalar_prefetch = 0 : i64, scratch_operands = 0 : i64, tpu.core_type = #tpu.core_type<tc>, window_params = [{transform_indices = @transform_0, window_bounds = array<i64: 16, 259>}, {pipeline_mode = #tpu.pipeline_mode<synchronous>, transform_indices = @transform_1, window_bounds = array<i64: 259, 256>}, {pipeline_mode = #tpu.pipeline_mode<synchronous>, transform_indices = @transform_2, window_bounds = array<i64: 1, 256>}, {pipeline_mode = #tpu.pipeline_mode<synchronous>, transform_indices = @transform_3, window_bounds = array<i64: 256, 512>}, {pipeline_mode = #tpu.pipeline_mode<synchronous>, transform_indices = @transform_4, window_bounds = array<i64: 1, 512>}, {transform_indices = @transform_5, window_bounds = array<i64: 16, 259>}, {pipeline_mode = #tpu.pipeline_mode<synchronous>, transform_indices = @transform_6, window_bounds = array<i64: 259, 256>}, {pipeline_mode = #tpu.pipeline_mode<synchronous>, transform_indices = @transform_7, window_bounds = array<i64: 1, 256>}, {pipeline_mode = #tpu.pipeline_mode<synchronous>, transform_indices = @transform_8, window_bounds = array<i64: 256, 512>}, {pipeline_mode = #tpu.pipeline_mode<synchronous>, transform_indices = @transform_9, window_bounds = array<i64: 1, 512>}, {transform_indices = @transform_10, window_bounds = array<i64: 2, 1024>}]} {
    %c0 = arith.constant 0 : index
    %c0_0 = arith.constant 0 : index
    %0 = vector.load %arg1[%c0, %c0_0] : memref<16x259xbf16, #tpu.memory_space<vmem>>, vector<16x259xbf16>
    %c0_1 = arith.constant 0 : index
    %c0_2 = arith.constant 0 : index
    %1 = vector.load %arg2[%c0_1, %c0_2] : memref<259x256xbf16, #tpu.memory_space<vmem>>, vector<259x256xbf16>
    %c0_3 = arith.constant 0 : index
    %c0_4 = arith.constant 0 : index
    %2 = vector.load %arg3[%c0_3, %c0_4] : memref<1x256xf32, #tpu.memory_space<vmem>>, vector<1x256xf32>
    %cst = arith.constant dense<0.000000e+00> : vector<16x256xf32>
    %3 = tpu.matmul %0, %1, %cst {dimension_numbers = #tpu.dot_dimension_numbers<[1], [0], [0], [1], [0, 0, 1, 1], [], []>} : vector<16x259xbf16>, vector<259x256xbf16>, vector<16x256xf32> -> vector<16x256xf32>
    %4 = vector.broadcast %2 : vector<1x256xf32> to vector<16x256xf32>
    %5 = arith.addf %3, %4 : vector<16x256xf32>
    %cst_5 = arith.constant 0.000000e+00 : f32
    %6 = vector.broadcast %cst_5 : f32 to vector<16x256xf32>
    %7 = arith.maximumf %5, %6 : vector<16x256xf32>
    %8 = arith.truncf %7 : vector<16x256xf32> to vector<16x256xbf16>
    %c0_6 = arith.constant 0 : index
    %c0_7 = arith.constant 0 : index
    %9 = vector.load %arg4[%c0_6, %c0_7] : memref<256x512xbf16, #tpu.memory_space<vmem>>, vector<256x512xbf16>
    %c0_8 = arith.constant 0 : index
    %c0_9 = arith.constant 0 : index
    %10 = vector.load %arg5[%c0_8, %c0_9] : memref<1x512xf32, #tpu.memory_space<vmem>>, vector<1x512xf32>
    %cst_10 = arith.constant dense<0.000000e+00> : vector<16x512xf32>
    %11 = tpu.matmul %8, %9, %cst_10 {dimension_numbers = #tpu.dot_dimension_numbers<[1], [0], [0], [1], [0, 0, 1, 1], [], []>} : vector<16x256xbf16>, vector<256x512xbf16>, vector<16x512xf32> -> vector<16x512xf32>
    %12 = vector.shape_cast %11 : vector<16x512xf32> to vector<2x8x512xf32>
    %cst_11 = arith.constant dense<0xFF800000> : vector<2x512xf32>
    %13 = vector.multi_reduction <maximumf>, %12, %cst_11 [1] : vector<2x8x512xf32> to vector<2x512xf32>
    %14 = vector.broadcast %10 : vector<1x512xf32> to vector<2x512xf32>
    %15 = arith.addf %13, %14 : vector<2x512xf32>
    %cst_12 = arith.constant 0.000000e+00 : f32
    %16 = vector.broadcast %cst_12 : f32 to vector<2x512xf32>
    %17 = arith.maximumf %15, %16 : vector<2x512xf32>
    %c0_13 = arith.constant 0 : index
    %c0_14 = arith.constant 0 : index
    %18 = vector.load %arg11[%c0_13, %c0_14] : memref<2x1024xf32, #tpu.memory_space<vmem>>, vector<2x512xf32>
    tpu.vector_store %arg11[%c0_13, %c0_14], %17 {strides = array<i32>} : memref<2x1024xf32, #tpu.memory_space<vmem>>, vector<2x512xf32>,
    %c0_15 = arith.constant 0 : index
    %c0_16 = arith.constant 0 : index
    %19 = vector.load %arg6[%c0_15, %c0_16] : memref<16x259xbf16, #tpu.memory_space<vmem>>, vector<16x259xbf16>
    %c0_17 = arith.constant 0 : index
    %c0_18 = arith.constant 0 : index
    %20 = vector.load %arg7[%c0_17, %c0_18] : memref<259x256xbf16, #tpu.memory_space<vmem>>, vector<259x256xbf16>
    %c0_19 = arith.constant 0 : index
    %c0_20 = arith.constant 0 : index
    %21 = vector.load %arg8[%c0_19, %c0_20] : memref<1x256xf32, #tpu.memory_space<vmem>>, vector<1x256xf32>
    %cst_21 = arith.constant dense<0.000000e+00> : vector<16x256xf32>
    %22 = tpu.matmul %19, %20, %cst_21 {dimension_numbers = #tpu.dot_dimension_numbers<[1], [0], [0], [1], [0, 0, 1, 1], [], []>} : vector<16x259xbf16>, vector<259x256xbf16>, vector<16x256xf32> -> vector<16x256xf32>
    %23 = vector.broadcast %21 : vector<1x256xf32> to vector<16x256xf32>
    %24 = arith.addf %22, %23 : vector<16x256xf32>
    %cst_22 = arith.constant 0.000000e+00 : f32
    %25 = vector.broadcast %cst_22 : f32 to vector<16x256xf32>
    %26 = arith.maximumf %24, %25 : vector<16x256xf32>
    %27 = arith.truncf %26 : vector<16x256xf32> to vector<16x256xbf16>
    %c0_23 = arith.constant 0 : index
    %c0_24 = arith.constant 0 : index
    %28 = vector.load %arg9[%c0_23, %c0_24] : memref<256x512xbf16, #tpu.memory_space<vmem>>, vector<256x512xbf16>
    %c0_25 = arith.constant 0 : index
    %c0_26 = arith.constant 0 : index
    %29 = vector.load %arg10[%c0_25, %c0_26] : memref<1x512xf32, #tpu.memory_space<vmem>>, vector<1x512xf32>
    %cst_27 = arith.constant dense<0.000000e+00> : vector<16x512xf32>
    %30 = tpu.matmul %27, %28, %cst_27 {dimension_numbers = #tpu.dot_dimension_numbers<[1], [0], [0], [1], [0, 0, 1, 1], [], []>} : vector<16x256xbf16>, vector<256x512xbf16>, vector<16x512xf32> -> vector<16x512xf32>
    %31 = vector.shape_cast %30 : vector<16x512xf32> to vector<2x8x512xf32>
    %cst_28 = arith.constant dense<0xFF800000> : vector<2x512xf32>
    %32 = vector.multi_reduction <maximumf>, %31, %cst_28 [1] : vector<2x8x512xf32> to vector<2x512xf32>
    %33 = vector.broadcast %29 : vector<1x512xf32> to vector<2x512xf32>
    %34 = arith.addf %32, %33 : vector<2x512xf32>
    %cst_29 = arith.constant 0.000000e+00 : f32
    %35 = vector.broadcast %cst_29 : f32 to vector<2x512xf32>
    %36 = arith.maximumf %34, %35 : vector<2x512xf32>
    %c0_30 = arith.constant 0 : index
    %c512 = arith.constant 512 : index
    %37 = vector.load %arg11[%c0_30, %c512] : memref<2x1024xf32, #tpu.memory_space<vmem>>, vector<2x512xf32>
    tpu.vector_store %arg11[%c0_30, %c512], %36 {strides = array<i32>} : memref<2x1024xf32, #tpu.memory_space<vmem>>, vector<2x512xf32>,
    return
  }
  func.func @transform_0(%arg0: i32) -> (i32, i32) {
    %c0_i32 = arith.constant 0 : i32
    %c0_i32_0 = arith.constant 0 : i32
    return %arg0, %c0_i32 : i32, i32
  }
  func.func @transform_1(%arg0: i32) -> (i32, i32) {
    %c0_i32 = arith.constant 0 : i32
    %c0_i32_0 = arith.constant 0 : i32
    %c0_i32_1 = arith.constant 0 : i32
    return %c0_i32, %c0_i32_0 : i32, i32
  }
  func.func @transform_2(%arg0: i32) -> (i32, i32) {
    %c0_i32 = arith.constant 0 : i32
    %c0_i32_0 = arith.constant 0 : i32
    %c0_i32_1 = arith.constant 0 : i32
    return %c0_i32, %c0_i32_0 : i32, i32
  }
  func.func @transform_3(%arg0: i32) -> (i32, i32) {
    %c0_i32 = arith.constant 0 : i32
    %c0_i32_0 = arith.constant 0 : i32
    %c0_i32_1 = arith.constant 0 : i32
    return %c0_i32, %c0_i32_0 : i32, i32
  }
  func.func @transform_4(%arg0: i32) -> (i32, i32) {
    %c0_i32 = arith.constant 0 : i32
    %c0_i32_0 = arith.constant 0 : i32
    %c0_i32_1 = arith.constant 0 : i32
    return %c0_i32, %c0_i32_0 : i32, i32
  }
  func.func @transform_5(%arg0: i32) -> (i32, i32) {
    %c0_i32 = arith.constant 0 : i32
    %c0_i32_0 = arith.constant 0 : i32
    return %arg0, %c0_i32 : i32, i32
  }
  func.func @transform_6(%arg0: i32) -> (i32, i32) {
    %c0_i32 = arith.constant 0 : i32
    %c0_i32_0 = arith.constant 0 : i32
    %c0_i32_1 = arith.constant 0 : i32
    return %c0_i32, %c0_i32_0 : i32, i32
  }
  func.func @transform_7(%arg0: i32) -> (i32, i32) {
    %c0_i32 = arith.constant 0 : i32
    %c0_i32_0 = arith.constant 0 : i32
    %c0_i32_1 = arith.constant 0 : i32
    return %c0_i32, %c0_i32_0 : i32, i32
  }
  func.func @transform_8(%arg0: i32) -> (i32, i32) {
    %c0_i32 = arith.constant 0 : i32
    %c0_i32_0 = arith.constant 0 : i32
    %c0_i32_1 = arith.constant 0 : i32
    return %c0_i32, %c0_i32_0 : i32, i32
  }
  func.func @transform_9(%arg0: i32) -> (i32, i32) {
    %c0_i32 = arith.constant 0 : i32
    %c0_i32_0 = arith.constant 0 : i32
    %c0_i32_1 = arith.constant 0 : i32
    return %c0_i32, %c0_i32_0 : i32, i32
  }
  func.func @transform_10(%arg0: i32) -> (i32, i32) {
    %c0_i32 = arith.constant 0 : i32
    %c0_i32_0 = arith.constant 0 : i32
    return %arg0, %c0_i32 : i32, i32
  }
}

</mosaic_0001>

<bundles_post_ra>
// kernel: tpu_custom_call.1
= control target key start
LH: loop header
LB: loop body
LE: loop exit
PB: predicated region body
PF: predicated region fallthrough
CT: control target
= control target key end

     0   :  { %7 = vsyncpa [#allocation3], 0  ;;  %s635_s0 = inlined_call_operand.hbm [shape: f32[8,128], index: 0, kind: input, shape index: {}]   ;;  %s636_s1 = inlined_call_operand.hbm [shape: f32[16,128], index: 1, kind: input, shape index: {}]   ;;  %s637_s2 = inlined_call_operand.hbm [shape: f32[16,128], index: 2, kind: output, shape index: {}]  }
   0x1   :  { %8 = vsyncpa [#allocation6], 0 }
   0x2   :  { %10 = vsyncpa [#allocation6 + $0x1], 0 }
   0x3   :  { %11 = vsyncpa [#allocation4], 0 }
   0x4   :  { %13 = vsyncpa [#allocation4 + $0x1], 0  ;;  %s497_s9 = smov 0   ;;  %s499_s10 = smov 0  }
   0x5   :  { %s501_s11 = smov 0   ;;  %s503_s12 = smov 0  }
   0x6 LB: > { %s518_s13 = sadd.s32 4294967295, %s479_s12   ;;  %s278_s14 = sadd.s32 4294967294, %s479_s12   ;;  %s479_s12 = sphi %s503_s12, %s647_s12   ;;  %s475_s11 = sphi %s501_s11, %s646_s11   ;;  %s471_s10 = sphi %s499_s10, %s645_s10   ;;  %s467_s9 = sphi %s497_s9, %s644_s9  }
   0x7   : > { %p60_p0 = scmp.ne.s32.totalorder %s471_s10, %s467_s9  ;;  %p61_p1 = scmp.eq.s32.totalorder %s518_s13, 0 }
   0x8   : > { %p84_p2 = scmp.eq.s32.totalorder %s518_s13, 1  ;;  %p90_p3 = scmp.eq.s32.totalorder %s278_s14, 1 }
   0x9   : > { %p527_p4 = por %p61_p1, %p60_p0  ;;  %p279_p5 = scmp.ge.s32.totalorder %s479_s12, 1 }
   0xa   : > { %p532_p6 = por %p90_p3, %p60_p0  ;;  %p97_p7 = scmp.lt.s32.totalorder %s479_s12, 3 }
   0xb   : > { %s109_s19 = sshll.u32 %s635_s0, 4  ;;  %s481_s21 = smov [#allocation2]   ;;  %s110_s19 = int_to_ptr.hbm [resolvable:$true] %s109_s19 }
   0xc   : > { %p540_p8 = pnand %p279_p5, %p97_p7  ;;  %s111_s22 = sshll.u32 %s481_s21, 4  ;;  %s112_s22 = int_to_ptr.vmem [resolvable:$true] %s111_s22 }
   0xd   : > { %s550_s23 = sadd.s32 1, %s479_s12   ;;  %s47_s24 = sadd.s32 1, %s475_s11 }
   0xe   : > { %p300_p10 = pneg %p540_p8  ;;  %s44_s25 = ssub.s32 %s479_s12, %s550_s23 }
   0xf   : > { %p45_p12 = scmp.eq.s32.totalorder %s44_s25, 0  ;;  %p54_p13 = scmp.ne.s32.totalorder %s475_s11, %s471_s10 }
  0x10   : > { %p301_p11 = pnand %p300_p10, %p61_p1  ;;  %p55_p0 = scmp.eq.s32.totalorder %s479_s12, 0 }
  0x11   : > { %s559_s26 = scalar_select %p45_p12, %s475_s11, %s47_s24  }
  0x12   : > { %303 = dma.hbm_to_vmem [thread:$0]  (!%p301_p11), %s110_s19, 128, %s112_s22, [#allocation3]  }
  0x13   : > { %p563_p3 = por %p84_p2, %p54_p13  ;;  %p313_p5 = scmp.lt.s32.totalorder %s479_s12, 2 }
  0x14   : > { %s122_s28 = sand.u32 1, %s475_s11   ;;  %s283_s29 = sshll.u32 %s479_s12, 3 }
  0x15   : > { %p56_p7 = por %p55_p0, %p54_p13  ;;  %s282_s30 = sshll.u32 %s122_s28, 3 }
  0x16   : > { %s130_s5 = scalar_lea.hbm %s636_s1, %s283_s29  ;;  %s126_s7 = scalar_lea.vmem [#allocation5], %s282_s30 }
  0x17   : > { %s132_s6 = sshll.u32 %s130_s5, 4  ;;  %s134_s8 = sshll.u32 %s126_s7, 4  ;;  %s133_s6 = int_to_ptr.hbm [resolvable:$true] %s132_s6  ;;  %s135_s8 = int_to_ptr.vmem [resolvable:$true] %s134_s8 }
  0x18   : > { %p573_p10 = pnand %p313_p5, %p56_p7  ;;  %s123_s17 = scalar_lea.sflag [#allocation6], %s122_s28 }
  0x19   : > { %s379_s18 = sshra.s32 %s133_s6, 4  ;;  %s386_s24 = scalar_lea.hbm %s636_s1, 16  ;;  %s380_s18 = int_to_ptr.hbm [resolvable:$true] %s379_s18 }
  0x1a   : > { %s381_s19 = scalar_lea.hbm %s380_s18, 8  ;;  %p383_p11 = pneg %p573_p10 }
  0x1b   : > { %p382_p2 = scmp.ne.s32.totalorder %s380_s18, %s381_s19  ;;  %p387_p0 = scmp.lt.s32.totalorder %s380_s18, %s636_s1 }
  0x1c   : > { %p388_p5 = scmp.lt.s32.totalorder %s386_s24, %s381_s19 }
  0x1d   : > { %p384_p12 = pnand %p383_p11, %p382_p2 }
  0x1e   : > { %p389_p7 = por %p388_p5, %p387_p0 }
  0x1f   : > { %p385_p13 = pneg %p384_p12 }
  0x21   : > { %p390_p9 = pnand %p389_p7, %p385_p13 }
  0x23   : > { %393 = shalt.err (!%p390_p9)
}
  0x24   : > { %307 = dma.hbm_to_vmem [thread:$0]  (!%p573_p10), %s133_s6, 128, %s135_s8, %s123_s17  }
  0x25   : > { %143 = sbr.rel (%p540_p8) target bundleno = 62 (0x3e), region = 28 }
  0x2a   : > { %454 = dma.done.wait (%p61_p1), [#allocation3], 128  }
  0x2b   : > { %456 = vsyncadd (%p61_p1), [#allocation3], 4294967168  ;;  %s594_s28 = sand.u32 1, %s471_s10  }
  0x2c   : > { %s286_s30 = sshll.u32 %s594_s28, 3  ;;  %s151_s3 = scalar_lea.sflag [#allocation6], %s594_s28 }
  0x2d   : > { %s154_s4 = scalar_lea.vmem [#allocation5], %s286_s30 }
  0x2e   : > { %458 = dma.done.wait (%p527_p4), %s151_s3, 128  }
  0x2f   : > { %460 = vsyncadd (%p527_p4), %s151_s3, 4294967168  ;;  %s289_s20 = sshll.u32 %s518_s13, 3  ;;  %s175_s8 = scalar_lea.vmem [#allocation7], %s286_s30  ;;  %v176_v0 = vld [vmem:[%s154_s4] sm:$0xff]  ;;  %v177_v1 = vld [vmem:[#allocation2] sm:$0xff] }
  0x30   : > { %s191_s7 = scalar_lea.hbm %s637_s2, %s289_s20  ;;  %s193_s14 = sshll.u32 %s175_s8, 4  ;;  %v178_v2 = vadd.f32 %v177_v1, %v176_v0  ;;  %s194_s14 = int_to_ptr.vmem [resolvable:$true] %s193_s14 }
  0x31   : > { %s195_s17 = sshll.u32 %s191_s7, 4  ;;  %s181_s18 = scalar_lea.sflag [#allocation4], %s594_s28  ;;  %s196_s17 = int_to_ptr.hbm [resolvable:$true] %s195_s17 }
  0x32   : > { %179 = vst [vmem:[%s175_s8] sm:$0xff] %v178_v2  ;;  %s423_s15 = sshra.s32 %s196_s17, 4  ;;  %s429_s22 = scalar_lea.hbm %s637_s2, 16  ;;  %s424_s15 = int_to_ptr.hbm [resolvable:$true] %s423_s15 }
  0x33   : > { %s425_s19 = scalar_lea.hbm %s424_s15, 8  ;;  %p430_p9 = scmp.lt.s32.totalorder %s424_s15, %s637_s2 }
  0x34   : > { %p426_p1 = scmp.ne.s32.totalorder %s424_s15, %s425_s19  ;;  %p431_p10 = scmp.lt.s32.totalorder %s429_s22, %s425_s19 }
  0x36   : > { %p427_p4 = pnand %p426_p1, %p563_p3  ;;  %p432_p2 = por %p431_p10, %p430_p9 }
  0x38   : > { %p428_p8 = pneg %p427_p4 }
  0x3a   : > { %p433_p11 = pnand %p432_p2, %p428_p8 }
  0x3c   : > { %436 = shalt.err (!%p433_p11)
}
  0x3d   : > { %298 = dma.vmem_to_hbm [thread:$0]  (%p563_p3), %s194_s14, 128, %s196_s17, %s181_s18  }
  0x3e PF: > { %s207_s29 = sand.u32 1, %s467_s9   ;;  %p643_p12 = scmp.ge.s32.totalorder %s479_s12, 2 }
  0x3f   : > { %s208_s28 = scalar_lea.sflag [#allocation4], %s207_s29 }
  0x40   : > { %p309_p13 = pnand %p643_p12, %p532_p6 }
  0x42   : > { %p310_p0 = pneg %p309_p13 }
  0x44   : > { %462 = dma.done.wait (%p310_p0), %s208_s28, 128  }
  0x45   : > { %464 = vsyncadd (%p310_p0), %s208_s28, 4294967168  ;;  %p16_p5 = scmp.ge.s32.totalorder %s550_s23, 4   ;;  %s644_s9 = smov %s471_s10 }
  0x46   : > { %s645_s10 = smov %s475_s11  ;;  %s646_s11 = smov %s559_s26 }
  0x47   : > { %s647_s12 = smov %s550_s23  ;;  %18 = sbr.rel (!%p16_p5) target bundleno = 6 (0x6), region = 78 }
  0x4c   :  { %214 = vsyncpa [#allocation3], 1 }
  0x4d   :  { %216 = vsyncpa [#allocation3 + $0x1], 1 }
  0x4e   :  { %217 = vsyncpa [#allocation6], 1 }
  0x4f   :  { %219 = vsyncpa [#allocation6 + $0x1], 1 }
  0x50   :  { %220 = vsyncpa [#allocation4], 1 }
  0x51   :  { %222 = vsyncpa [#allocation4 + $0x1], 1 }

// kernel: custom-call.34
= control target key start
LH: loop header
LB: loop body
LE: loop exit
PB: predicated region body
PF: predicated region fallthrough
CT: control target
= control target key end

     0   :  { %s6_s0 = inlined_call_operand.vmem [shape: f32[2,64], index: 0, kind: output, shape index: {}]  }

// kernel: custom-call.35
= control target key start
LH: loop header
LB: loop body
LE: loop exit
PB: predicated region body
PF: predicated region fallthrough
CT: control target
= control target key end

     0   :  { %s6_s0 = inlined_call_operand.vmem [shape: f32[2,32], index: 0, kind: output, shape index: {}]  }

// kernel: pointnetpp_forward.4
= control target key start
LH: loop header
LB: loop body
LE: loop exit
PB: predicated region body
PF: predicated region fallthrough
CT: control target
= control target key end

     0   :  { %s3076_s13 = smov 0   ;;  %s3644_s0 = inlined_call_operand.vmem [shape: bf16[512,6], index: 0, kind: input, shape index: {}]   ;;  %s3645_s1 = inlined_call_operand.vmem [shape: bf16[6,16], index: 1, kind: input, shape index: {}]   ;;  %s3646_s2 = inlined_call_operand.vmem [shape: f32[1,16], index: 2, kind: input, shape index: {}]   ;;  %s3647_s3 = inlined_call_operand.vmem [shape: bf16[16,32], index: 3, kind: input, shape index: {}]   ;;  %s3648_s4 = inlined_call_operand.vmem [shape: f32[1,32], index: 4, kind: input, shape index: {}]   ;;  %s3649_s5 = inlined_call_operand.vmem [shape: bf16[1024,6], index: 5, kind: input, shape index: {}]   ;;  %s3650_s6 = inlined_call_operand.vmem [shape: bf16[6,16], index: 6, kind: input, shape index: {}]   ;;  %s3651_s7 = inlined_call_operand.vmem [shape: f32[1,16], index: 7, kind: input, shape index: {}]   ;;  %s3652_s8 = inlined_call_operand.vmem [shape: bf16[16,32], index: 8, kind: input, shape index: {}]   ;;  %s3653_s9 = inlined_call_operand.vmem [shape: f32[1,32], index: 9, kind: input, shape index: {}]   ;;  %s3654_s10 = inlined_call_operand.vmem [shape: f32[64,128], index: 10, kind: output, shape index: {}]  }
   0x1 LB: > { %s3082_s14 = sadd.s32 4294967295, %s3018_s13   ;;  %p2638_p0 = scmp.ge.s32.totalorder %s3018_s13, 1  ;;  %s3018_s13 = sphi %s3076_s13, %s20_s13  }
   0x2   : > { %p324_p1 = scmp.lt.s32.totalorder %s3018_s13, 3 }
   0x4   : > { %p325_p2 = pnand %p2638_p0, %p324_p1 }
   0x5   : > { %s2639_s19 = sshll.u32 (!%p325_p2), %s3082_s14, 5  ;;  %s2641_s20 = sshll.u32 (!%p325_p2), %s3082_s14, 6 }
   0x6   : > { %328 = sbr.rel (%p325_p2) target bundleno = 811 (0x32b), region = 60  ;;  %p368_p3 = scmp.lt.s32.totalorder (!%p325_p2), %s2639_s19, 63 }
   0x7   : > { %p374_p4 = scmp.lt.s32.totalorder (!%p325_p2), %s2641_s20, 127  ;;  %s3020_s11 = smov (!%p325_p2), 32  }
   0x8   : > { %s2643_s12 = sshll.u32 (!%p325_p2), %s3082_s14, 2 }
   0x9   : > { %p380_p5 = scmp.lt.s32.totalorder (!%p325_p2), %s2643_s12, 7 }
   0xb   : > { %v418_v0 = vld [vmem:[%s3645_s1] sm:$0x7]  ;;  %vm552_vm0 = vcmask 1042432   ;;  %s3656_s19 = smov (!%p368_p3, %s2639_s19), 63  ;;  %s3658_s20 = smov (!%p374_p4, %s2641_s20), 127  ;;  %vm503_vm1 = vcmask 48128  }
   0xc   : > { %v1196_v1 = vld [vmem:[%s3650_s6] sm:$0x7]  ;;  %v554_v2 = vsel %vm552_vm0, %v418_v0, 0  ;;  %s2640_s21 = sshll.u32 %s3656_s19, 2  ;;  %s2642_s25 = sshll.u32 %s3658_s20, 2  ;;  %vm702_vm2 = vcmask 130048  }
   0xd   : > { %v1458_v3 = vsel %vm552_vm0, %v1196_v1, 0  ;;  %563 = vmatpush.bf16.msra.mxu0 %v554_v2  ;;  %s3097_s24 = scalar_lea.vmem %s3644_s0, %s2640_s21  ;;  %s3103_s28 = scalar_lea.vmem %s3649_s5, %s2642_s25  ;;  %v2959_v18 = vld [vmem:[%s3647_s3] sm:$0xff]  ;;  %vm840_vm3 = vcmask 261120   ;;  %vm2387_vm4 = vcmask 1041409   ;;  %vm2390_vm5 = vcmask 1042434  }
   0xe   : > { %2993 = vmatpush.bf16.msra.mxu2 %v1458_v3  ;;  %v2943_v4 = vld [vmem:[%s3097_s24] sm:$0xff]  ;;  %v2944_v6 = vld [vmem:[%s3097_s24 + $0x8] sm:$0xff]  ;;  %v2945_v8 = vld [vmem:[%s3097_s24 + $0x10] sm:$0xff]  ;;  %758 = vmatpush.bf16.msra.mxu1 %v2959_v18  ;;  %vm2393_vm6 = vcmask 1043459   ;;  %vm2396_vm7 = vcmask 1044484   ;;  %vm2399_vm8 = vcmask 1045509  }
   0xf   : > { %v2968_v5 = vld [vmem:[%s3103_s28 + $0x40] sm:$0xff]  ;;  %v2969_v7 = vld [vmem:[%s3103_s28 + $0x48] sm:$0xff]  ;;  %v2970_v9 = vld [vmem:[%s3103_s28 + $0x50] sm:$0xff]  ;;  %vm2402_vm9 = vcmask 1046534   ;;  %vm2405_vm10 = vcmask 1047559   ;;  %s3660_s12 = smov (!%p380_p5, %s2643_s12), 7 }
  0x10   : > { %2709 = vmatmul.msk.bf16.vlgmr.msra.gmra.mxu0 %vm503_vm1, %v2943_v4  ;;  %v2946_v10 = vld [vmem:[%s3097_s24 + $0x18] sm:$0xff]  ;;  %v2947_v12 = vld [vmem:[%s3097_s24 + $0x20] sm:$0xff]  ;;  %v2948_v14 = vld [vmem:[%s3097_s24 + $0x28] sm:$0xff]  ;;  %s2644_s15 = sshll.u32 %s3660_s12, 3  ;;  %vm2557_vm11 = vcmask 523264  }
  0x11   : > { %1467 = vmatpush.bf16.msrb.mxu0 %v1458_v3  ;;  %2881 = vmatmul.msk.bf16.vlgmr.msra.gmra.mxu2 %vm503_vm1, %v2968_v5  ;;  %v2971_v11 = vld [vmem:[%s3103_s28 + $0x58] sm:$0xff]  ;;  %v2972_v13 = vld [vmem:[%s3103_s28 + $0x60] sm:$0xff]  ;;  %v2973_v15 = vld [vmem:[%s3103_s28 + $0x68] sm:$0xff]  ;;  %s383_s18 = scalar_lea.vmem %s3654_s10, %s2644_s15 }
  0x12   : > { %v2949_v16 = vld [vmem:[%s3097_s24 + $0x30] sm:$0xff]  ;;  %v2950_v19 = vld [vmem:[%s3097_s24 + $0x38] sm:$0xff]  ;;  %v2992_v21 = vld [vmem:[%s3652_s8] sm:$0xff] }
  0x13   : > { %v2974_v17 = vld [vmem:[%s3103_s28 + $0x70] sm:$0xff]  ;;  %v2975_v20 = vld [vmem:[%s3103_s28 + $0x78] sm:$0xff]  ;;  %1837 = vmatpush.bf16.msrb.mxu1 %v2992_v21  ;;  %2994 = vmatpush.bf16.msra.mxu3 %v2992_v21  ;;  %v2951_v22 = vld [vmem:[%s3097_s24 + $0x40] sm:$0xff] }
  0x14   : > { %v2976_v24 = vld [vmem:[%s3103_s28 + $0x80] sm:$0xff]  ;;  %v2952_v36 = vld [vmem:[%s3097_s24 + $0x48] sm:$0xff]  ;;  %v2953_v52 = vld [vmem:[%s3097_s24 + $0x50] sm:$0xff] }
  0x15   : > { %v3147_v25 = vld [vmem:[%s3646_s2] ss:$0 sm:$0xff]  ;;  %v2977_v39 = vld [vmem:[%s3103_s28 + $0x88] sm:$0xff]  ;;  %v2978_v55 = vld [vmem:[%s3103_s28 + $0x90] sm:$0xff] }
  0x16   : > { %v3156_v30 = vld [vmem:[%s3651_s7] ss:$0 sm:$0xff]  ;;  %v2954_v4 = vld [vmem:[%s3097_s24 + $0x58] sm:$0xff] }
  0x20   : > { %2710 = vmatmul.msk.bf16.gmra.mxu0 %vm503_vm1, %v2944_v6 }
  0x21   : > { %2882 = vmatmul.msk.bf16.gmra.mxu2 %vm503_vm1, %v2969_v7  ;;  %v2979_v7 = vld [vmem:[%s3103_s28 + $0x98] sm:$0xff] }
  0x30   : > { %2711 = vmatmul.msk.bf16.gmra.mxu0 %vm503_vm1, %v2945_v8 }
  0x31   : > { %2883 = vmatmul.msk.bf16.gmra.mxu2 %vm503_vm1, %v2970_v9 }
  0x40   : > { %2712 = vmatmul.msk.bf16.gmra.mxu0 %vm503_vm1, %v2946_v10 }
  0x41   : > { %2884 = vmatmul.msk.bf16.gmra.mxu2 %vm503_vm1, %v2971_v11 }
  0x50   : > { %2713 = vmatmul.msk.bf16.gmra.mxu0 %vm503_vm1, %v2947_v12 }
  0x51   : > { %2885 = vmatmul.msk.bf16.gmra.mxu2 %vm503_vm1, %v2972_v13 }
  0x60   : > { %2714 = vmatmul.msk.bf16.gmra.mxu0 %vm503_vm1, %v2948_v14 }
  0x61   : > { %2886 = vmatmul.msk.bf16.gmra.mxu2 %vm503_vm1, %v2973_v15 }
  0x70   : > { %2715 = vmatmul.msk.bf16.gmra.mxu0 %vm503_vm1, %v2949_v16 }
  0x71   : > { %2887 = vmatmul.msk.bf16.gmra.mxu2 %vm503_vm1, %v2974_v17 }
  0x80   : > { %2716 = vmatmul.msk.bf16.gmra.mxu0 %vm503_vm1, %v2950_v19 }
  0x81   : > { %2888 = vmatmul.msk.bf16.gmra.mxu2 %vm503_vm1, %v2975_v20  ;;  %v2955_v20 = vld [vmem:[%s3097_s24 + $0x60] sm:$0xff] }
  0x8d   : > { %v565_v23 = vpop.f32.mrf.mxu0 }
  0x8e   : > { %v566_v26 = vadd.f32 %v3147_v25, %v565_v23  ;;  %v2980_v23 = vld [vmem:[%s3103_s28 + $0xa0] sm:$0xff] }
  0x90   : > { %2717 = vmatmul.msk.bf16.gmra.mxu0 %vm503_vm1, %v2951_v22  ;;  %v645_v31 = vmax.f32 %v566_v26, 0.0 }
  0x91   : > { %2889 = vmatmul.msk.bf16.gmra.mxu2 %vm503_vm1, %v2976_v24 }
  0x94   : > { %v1509_v27 = vpop.f32.mrf.mxu2 }
  0x95   : > { %v567_v28 = vpop.f32.mrf.mxu0  ;;  %v1510_v34 = vadd.f32 %v3156_v30, %v1509_v27 }
  0x96   : > { %v568_v29 = vadd.f32 %v3147_v25, %v567_v28 }
  0x97   : > { %v1645_v40 = vmax.f32 %v1510_v34, 0.0 }
  0x98   : > { %v646_v32 = vmax.f32 %v568_v29, 0.0 }
  0x9a   : > { %v677_v33 = vpack.c.bf16 %v646_v32, %v645_v31 }
  0x9c   : > { %v1511_v35 = vpop.f32.mrf.mxu2  ;;  %2729 = vmatmul.msk.bf16.vlgmr.msra.gmra.mxu1 %vm702_vm2, %v677_v33 }
  0x9d   : > { %v1512_v37 = vadd.f32 %v3156_v30, %v1511_v35  ;;  %v570_v38 = vpop.f32.mrf.mxu0 }
  0x9e   : > { %v571_v43 = vadd.f32 %v3147_v25, %v570_v38  ;;  %v2956_v38 = vld [vmem:[%s3097_s24 + $0x68] sm:$0xff] }
  0x9f   : > { %v1646_v41 = vmax.f32 %v1512_v37, 0.0 }
  0xa0   : > { %2718 = vmatmul.msk.bf16.gmra.mxu0 %vm503_vm1, %v2952_v36  ;;  %v647_v47 = vmax.f32 %v571_v43, 0.0 }
  0xa1   : > { %2890 = vmatmul.msk.bf16.gmra.mxu2 %vm503_vm1, %v2977_v39  ;;  %v1701_v42 = vpack.c.bf16 %v1646_v41, %v1645_v40  ;;  %v2981_v41 = vld [vmem:[%s3103_s28 + $0xa8] sm:$0xff] }
  0xa3   : > { %2917 = vmatmul.msk.bf16.vlgmr.msra.gmra.mxu3 %vm702_vm2, %v1701_v42 }
  0xa4   : > { %v1514_v44 = vpop.f32.mrf.mxu2 }
  0xa5   : > { %v572_v45 = vpop.f32.mrf.mxu0  ;;  %v1515_v50 = vadd.f32 %v3156_v30, %v1514_v44 }
  0xa6   : > { %v573_v46 = vadd.f32 %v3147_v25, %v572_v45 }
  0xa7   : > { %v1647_v56 = vmax.f32 %v1515_v50, 0.0 }
  0xa8   : > { %v648_v48 = vmax.f32 %v573_v46, 0.0 }
  0xaa   : > { %v678_v49 = vpack.c.bf16 %v648_v48, %v647_v47 }
  0xac   : > { %v1516_v51 = vpop.f32.mrf.mxu2  ;;  %2730 = vmatmul.msk.bf16.gmra.mxu1 %vm702_vm2, %v678_v49 }
  0xad   : > { %v1517_v53 = vadd.f32 %v3156_v30, %v1516_v51  ;;  %v575_v54 = vpop.f32.mrf.mxu0 }
  0xae   : > { %v576_v59 = vadd.f32 %v3147_v25, %v575_v54  ;;  %v2957_v54 = vld [vmem:[%s3097_s24 + $0x70] sm:$0xff] }
  0xaf   : > { %v1648_v57 = vmax.f32 %v1517_v53, 0.0 }
  0xb0   : > { %2719 = vmatmul.msk.bf16.gmra.mxu0 %vm503_vm1, %v2953_v52  ;;  %v649_v63 = vmax.f32 %v576_v59, 0.0 }
  0xb1   : > { %2891 = vmatmul.msk.bf16.gmra.mxu2 %vm503_vm1, %v2978_v55  ;;  %v1702_v58 = vpack.c.bf16 %v1648_v57, %v1647_v56  ;;  %v2982_v57 = vld [vmem:[%s3103_s28 + $0xb0] sm:$0xff] }
  0xb3   : > { %2918 = vmatmul.msk.bf16.gmra.mxu3 %vm702_vm2, %v1702_v58 }
  0xb4   : > { %v1519_v60 = vpop.f32.mrf.mxu2 }
  0xb5   : > { %v577_v61 = vpop.f32.mrf.mxu0  ;;  %v1520_v2 = vadd.f32 %v3156_v30, %v1519_v60 }
  0xb6   : > { %v578_v62 = vadd.f32 %v3147_v25, %v577_v61 }
  0xb7   : > { %v1649_v8 = vmax.f32 %v1520_v2, 0.0 }
  0xb8   : > { %v650_v0 = vmax.f32 %v578_v62, 0.0 }
  0xba   : > { %v679_v1 = vpack.c.bf16 %v650_v0, %v649_v63 }
  0xbc   : > { %v1521_v3 = vpop.f32.mrf.mxu2  ;;  %2731 = vmatmul.msk.bf16.gmra.mxu1 %vm702_vm2, %v679_v1 }
  0xbd   : > { %v1522_v5 = vadd.f32 %v3156_v30, %v1521_v3  ;;  %v580_v6 = vpop.f32.mrf.mxu0 }
  0xbe   : > { %v581_v11 = vadd.f32 %v3147_v25, %v580_v6  ;;  %v2958_v6 = vld [vmem:[%s3097_s24 + $0x78] sm:$0xff] }
  0xbf   : > { %v1650_v9 = vmax.f32 %v1522_v5, 0.0 }
  0xc0   : > { %2720 = vmatmul.msk.bf16.gmra.mxu0 %vm503_vm1, %v2954_v4  ;;  %v651_v15 = vmax.f32 %v581_v11, 0.0 }
  0xc1   : > { %2892 = vmatmul.msk.bf16.gmra.mxu2 %vm503_vm1, %v2979_v7  ;;  %v1703_v10 = vpack.c.bf16 %v1650_v9, %v1649_v8  ;;  %v2983_v9 = vld [vmem:[%s3103_s28 + $0xb8] sm:$0xff] }
  0xc3   : > { %2919 = vmatmul.msk.bf16.gmra.mxu3 %vm702_vm2, %v1703_v10 }
  0xc4   : > { %v1524_v12 = vpop.f32.mrf.mxu2 }
  0xc5   : > { %v582_v13 = vpop.f32.mrf.mxu0  ;;  %v1525_v18 = vadd.f32 %v3156_v30, %v1524_v12 }
  0xc6   : > { %v583_v14 = vadd.f32 %v3147_v25, %v582_v13 }
  0xc7   : > { %v1651_v24 = vmax.f32 %v1525_v18, 0.0 }
  0xc8   : > { %v652_v16 = vmax.f32 %v583_v14, 0.0 }
  0xca   : > { %v680_v17 = vpack.c.bf16 %v652_v16, %v651_v15 }
  0xcc   : > { %v1526_v19 = vpop.f32.mrf.mxu2  ;;  %2732 = vmatmul.msk.bf16.gmra.mxu1 %vm702_vm2, %v680_v17 }
  0xcd   : > { %v1527_v21 = vadd.f32 %v3156_v30, %v1526_v19  ;;  %v585_v22 = vpop.f32.mrf.mxu0 }
  0xce   : > { %v586_v28 = vadd.f32 %v3147_v25, %v585_v22  ;;  %v2960_v22 = vld [vmem:[%s3103_s28] sm:$0xff] }
  0xcf   : > { %v1652_v26 = vmax.f32 %v1527_v21, 0.0 }
  0xd0   : > { %2721 = vmatmul.msk.bf16.gmra.mxu0 %vm503_vm1, %v2955_v20  ;;  %v653_v33 = vmax.f32 %v586_v28, 0.0 }
  0xd1   : > { %2893 = vmatmul.msk.bf16.gmra.mxu2 %vm503_vm1, %v2980_v23  ;;  %v1704_v27 = vpack.c.bf16 %v1652_v26, %v1651_v24  ;;  %v2984_v26 = vld [vmem:[%s3103_s28 + $0xc0] sm:$0xff] }
  0xd3   : > { %2920 = vmatmul.msk.bf16.gmra.mxu3 %vm702_vm2, %v1704_v27 }
  0xd4   : > { %v1529_v29 = vpop.f32.mrf.mxu2 }
  0xd5   : > { %v587_v31 = vpop.f32.mrf.mxu0  ;;  %v1530_v36 = vadd.f32 %v3156_v30, %v1529_v29 }
  0xd6   : > { %v588_v32 = vadd.f32 %v3147_v25, %v587_v31 }
  0xd7   : > { %v1653_v42 = vmax.f32 %v1530_v36, 0.0 }
  0xd8   : > { %v654_v34 = vmax.f32 %v588_v32, 0.0 }
  0xda   : > { %v681_v35 = vpack.c.bf16 %v654_v34, %v653_v33 }
  0xdc   : > { %v1531_v37 = vpop.f32.mrf.mxu2  ;;  %2733 = vmatmul.msk.bf16.gmra.mxu1 %vm702_vm2, %v681_v35 }
  0xdd   : > { %v1532_v39 = vadd.f32 %v3156_v30, %v1531_v37  ;;  %v590_v40 = vpop.f32.mrf.mxu0 }
  0xde   : > { %v591_v45 = vadd.f32 %v3147_v25, %v590_v40 }
  0xdf   : > { %v1654_v43 = vmax.f32 %v1532_v39, 0.0 }
  0xe0   : > { %2722 = vmatmul.msk.bf16.gmra.mxu0 %vm503_vm1, %v2956_v38  ;;  %v655_v49 = vmax.f32 %v591_v45, 0.0 }
  0xe1   : > { %2894 = vmatmul.msk.bf16.gmra.mxu2 %vm503_vm1, %v2981_v41  ;;  %v1705_v44 = vpack.c.bf16 %v1654_v43, %v1653_v42  ;;  %v2961_v43 = vld [vmem:[%s3103_s28 + $0x8] sm:$0xff] }
  0xe3   : > { %2921 = vmatmul.msk.bf16.gmra.mxu3 %vm702_vm2, %v1705_v44 }
  0xe4   : > { %v1534_v46 = vpop.f32.mrf.mxu2 }
  0xe5   : > { %v592_v47 = vpop.f32.mrf.mxu0  ;;  %v1535_v52 = vadd.f32 %v3156_v30, %v1534_v46 }
  0xe6   : > { %v593_v48 = vadd.f32 %v3147_v25, %v592_v47  ;;  %v2985_v47 = vld [vmem:[%s3103_s28 + $0xc8] sm:$0xff] }
  0xe7   : > { %v1655_v58 = vmax.f32 %v1535_v52, 0.0 }
  0xe8   : > { %v656_v50 = vmax.f32 %v593_v48, 0.0 }
  0xea   : > { %v682_v51 = vpack.c.bf16 %v656_v50, %v655_v49 }
  0xec   : > { %v1536_v53 = vpop.f32.mrf.mxu2  ;;  %2734 = vmatmul.msk.bf16.gmra.mxu1 %vm702_vm2, %v682_v51 }
  0xed   : > { %v1537_v55 = vadd.f32 %v3156_v30, %v1536_v53  ;;  %v595_v56 = vpop.f32.mrf.mxu0 }
  0xee   : > { %v596_v61 = vadd.f32 %v3147_v25, %v595_v56 }
  0xef   : > { %v1656_v59 = vmax.f32 %v1537_v55, 0.0 }
  0xf0   : > { %2723 = vmatmul.msk.bf16.gmra.mxu0 %vm503_vm1, %v2957_v54  ;;  %v657_v1 = vmax.f32 %v596_v61, 0.0 }
  0xf1   : > { %2895 = vmatmul.msk.bf16.gmra.mxu2 %vm503_vm1, %v2982_v57  ;;  %v1706_v60 = vpack.c.bf16 %v1656_v59, %v1655_v58 }
  0xf3   : > { %2922 = vmatmul.msk.bf16.gmra.mxu3 %vm702_vm2, %v1706_v60 }
  0xf4   : > { %v1539_v62 = vpop.f32.mrf.mxu2 }
  0xf5   : > { %v597_v63 = vpop.f32.mrf.mxu0  ;;  %v1540_v4 = vadd.f32 %v3156_v30, %v1539_v62 }
  0xf6   : > { %v598_v0 = vadd.f32 %v3147_v25, %v597_v63 }
  0xf7   : > { %v1657_v10 = vmax.f32 %v1540_v4, 0.0 }
  0xf8   : > { %v658_v2 = vmax.f32 %v598_v0, 0.0 }
  0xfa   : > { %v683_v3 = vpack.c.bf16 %v658_v2, %v657_v1 }
  0xfc   : > { %v1541_v5 = vpop.f32.mrf.mxu2  ;;  %2735 = vmatmul.msk.bf16.gmra.mxu1 %vm702_vm2, %v683_v3 }
  0xfd   : > { %v1542_v7 = vadd.f32 %v3156_v30, %v1541_v5  ;;  %v600_v8 = vpop.f32.mrf.mxu0  ;;  %v3253_v5 = vld [vmem:[%s3648_s4] ss:$0 sm:$0xff] }
  0xfe   : > { %v601_v13 = vadd.f32 %v3147_v25, %v600_v8 }
  0xff   : > { %v1658_v11 = vmax.f32 %v1542_v7, 0.0 }
 0x100   : > { %2724 = vmatmul.msk.bf16.gmra.mxu0 %vm503_vm1, %v2958_v6  ;;  %v659_v17 = vmax.f32 %v601_v13, 0.0 }
 0x101   : > { %2896 = vmatmul.msk.bf16.gmra.mxu2 %vm503_vm1, %v2983_v9  ;;  %v1707_v12 = vpack.c.bf16 %v1658_v11, %v1657_v10 }
 0x103   : > { %2923 = vmatmul.msk.bf16.gmra.mxu3 %vm702_vm2, %v1707_v12  ;;  %v2962_v12 = vld [vmem:[%s3103_s28 + $0x10] sm:$0xff] }
 0x104   : > { %v1544_v14 = vpop.f32.mrf.mxu2 }
 0x105   : > { %v602_v15 = vpop.f32.mrf.mxu0  ;;  %v1545_v20 = vadd.f32 %v3156_v30, %v1544_v14 }
 0x106   : > { %v603_v16 = vadd.f32 %v3147_v25, %v602_v15 }
 0x107   : > { %v1659_v27 = vmax.f32 %v1545_v20, 0.0 }
 0x108   : > { %v660_v18 = vmax.f32 %v603_v16, 0.0 }
 0x10a   : > { %v684_v19 = vpack.c.bf16 %v660_v18, %v659_v17  ;;  %v2986_v17 = vld [vmem:[%s3103_s28 + $0xd0] sm:$0xff] }
 0x10c   : > { %v1546_v21 = vpop.f32.mrf.mxu2  ;;  %2736 = vmatmul.msk.bf16.gmra.mxu1 %vm702_vm2, %v684_v19 }
 0x10d   : > { %v1547_v23 = vadd.f32 %v3156_v30, %v1546_v21  ;;  %v605_v24 = vpop.f32.mrf.mxu0 }
 0x10e   : > { %v606_v31 = vadd.f32 %v3147_v25, %v605_v24 }
 0x10f   : > { %v1660_v28 = vmax.f32 %v1547_v23, 0.0 }
 0x110   : > { %2873 = vmatmul.msk.bf16.vlgmr.msrb.gmra.mxu0 %vm503_vm1, %v2960_v22  ;;  %v661_v35 = vmax.f32 %v606_v31, 0.0 }
 0x111   : > { %2897 = vmatmul.msk.bf16.gmra.mxu2 %vm503_vm1, %v2984_v26  ;;  %v1708_v29 = vpack.c.bf16 %v1660_v28, %v1659_v27 }
 0x113   : > { %2924 = vmatmul.msk.bf16.gmra.mxu3 %vm702_vm2, %v1708_v29 }
 0x114   : > { %v1549_v32 = vpop.f32.mrf.mxu2 }
 0x115   : > { %v607_v33 = vpop.f32.mrf.mxu0  ;;  %v1550_v40 = vadd.f32 %v3156_v30, %v1549_v32 }
 0x116   : > { %v608_v34 = vadd.f32 %v3147_v25, %v607_v33 }
 0x117   : > { %v1661_v48 = vmax.f32 %v1550_v40, 0.0 }
 0x118   : > { %v662_v36 = vmax.f32 %v608_v34, 0.0 }
 0x119   : > { %v760_v37 = vpop.f32.mrf.mxu1 }
 0x11a   : > { %v841_v38 = vsel %vm840_vm3, %v760_v37, -inf  ;;  %v685_v39 = vpack.c.bf16 %v662_v36, %v661_v35 }
 0x11b   : > { %v842_v41 = vrot.slane %v841_v38, 4 }
 0x11c   : > { %v1551_v42 = vpop.f32.mrf.mxu2  ;;  %2737 = vmatmul.msk.bf16.gmra.mxu1 %vm702_vm2, %v685_v39 }
 0x11d   : > { %v843_v44 = vmax.f32 %v841_v38, %v842_v41  ;;  %v1552_v45 = vadd.f32 %v3156_v30, %v1551_v42  ;;  %v610_v46 = vpop.f32.mrf.mxu0 }
 0x11e   : > { %v611_v56 = vadd.f32 %v3147_v25, %v610_v46 }
 0x11f   : > { %v844_v49 = vrot.slane %v843_v44, 2  ;;  %v1662_v50 = vmax.f32 %v1552_v45, 0.0 }
 0x120   : > { %2874 = vmatmul.msk.bf16.gmra.mxu0 %vm503_vm1, %v2961_v43  ;;  %v663_v0 = vmax.f32 %v611_v56, 0.0 }
 0x121   : > { %2898 = vmatmul.msk.bf16.gmra.mxu2 %vm503_vm1, %v2985_v47  ;;  %v762_v51 = vpop.f32.mrf.mxu1  ;;  %v1709_v52 = vpack.c.bf16 %v1662_v50, %v1661_v48  ;;  %v845_v53 = vmax.f32 %v843_v44, %v844_v49 }
 0x122   : > { %v848_v54 = vsel %vm840_vm3, %v762_v51, -inf }
 0x123   : > { %v849_v55 = vrot.slane %v848_v54, 4  ;;  %2925 = vmatmul.msk.bf16.gmra.mxu3 %vm702_vm2, %v1709_v52  ;;  %v846_v60 = vrot.slane %v845_v53, 1 }
 0x124   : > { %v1554_v57 = vpop.f32.mrf.mxu2 }
 0x125   : > { %v850_v58 = vmax.f32 %v848_v54, %v849_v55  ;;  %v612_v59 = vpop.f32.mrf.mxu0  ;;  %v847_v4 = vmax.f32 %v845_v53, %v846_v60  ;;  %v1555_v6 = vadd.f32 %v3156_v30, %v1554_v57 }
 0x126   : > { %v613_v61 = vadd.f32 %v3147_v25, %v612_v59  ;;  %v1879_v62 = vpop.f32.mrf.mxu3 }
 0x127   : > { %v851_v63 = vrot.slane %v850_v58, 2  ;;  %v1068_v18 = vadd.f32 %v3253_v5, %v847_v4  ;;  %v1663_v19 = vmax.f32 %v1555_v6, 0.0  ;;  %v2071_v20 = vsel %vm840_vm3, %v1879_v62, -inf  ;;  %v2987_v6 = vld [vmem:[%s3103_s28 + $0xd8] sm:$0xff] }
 0x128   : > { %v664_v1 = vmax.f32 %v613_v61, 0.0 }
 0x129   : > { %v852_v2 = vmax.f32 %v850_v58, %v851_v63  ;;  %v765_v3 = vpop.f32.mrf.mxu1  ;;  %v1100_v34 = vmax.f32 %v1068_v18, 0.0  ;;  %v2963_v63 = vld [vmem:[%s3103_s28 + $0x18] sm:$0xff] }
 0x12a   : > { %v855_v7 = vsel %vm840_vm3, %v765_v3, -inf  ;;  %v686_v8 = vpack.c.bf16 %v664_v1, %v663_v0 }
 0x12b   : > { %v853_v9 = vrot.slane %v852_v2, 1  ;;  %v856_v10 = vrot.slane %v855_v7, 4 }
 0x12c   : > { %v1556_v11 = vpop.f32.mrf.mxu2  ;;  %2738 = vmatmul.msk.bf16.gmra.mxu1 %vm702_vm2, %v686_v8 }
 0x12d   : > { %v854_v13 = vmax.f32 %v852_v2, %v853_v9  ;;  %v857_v14 = vmax.f32 %v855_v7, %v856_v10  ;;  %v1557_v15 = vadd.f32 %v3156_v30, %v1556_v11  ;;  %v615_v16 = vpop.f32.mrf.mxu0 }
 0x12e   : > { %v1881_v21 = vpop.f32.mrf.mxu3  ;;  %v616_v38 = vadd.f32 %v3147_v25, %v615_v16 }
 0x12f   : > { %v1069_v22 = vadd.f32 %v3253_v5, %v854_v13  ;;  %v858_v23 = vrot.slane %v857_v14, 2  ;;  %v1664_v24 = vmax.f32 %v1557_v15, 0.0  ;;  %v2072_v26 = vsel %vm840_vm3, %v1881_v21, -inf }
 0x130   : > { %v2073_v27 = vmax.f32 %v2071_v20, %v2072_v26  ;;  %2875 = vmatmul.msk.bf16.gmra.mxu0 %vm503_vm1, %v2962_v12  ;;  %v665_v49 = vmax.f32 %v616_v38, 0.0 }
 0x131   : > { %v1101_v28 = vmax.f32 %v1069_v22, 0.0  ;;  %v859_v29 = vmax.f32 %v857_v14, %v858_v23  ;;  %2899 = vmatmul.msk.bf16.gmra.mxu2 %vm503_vm1, %v2986_v17  ;;  %v767_v31 = vpop.f32.mrf.mxu1  ;;  %v1710_v32 = vpack.c.bf16 %v1664_v24, %v1663_v19 }
 0x132   : > { %v862_v33 = vsel %vm840_vm3, %v767_v31, -inf  ;;  %v2074_v39 = vrot.slane %v2073_v27, 4 }
 0x133   : > { %v2386_v35 = vrot.slane %v1101_v28, 7  ;;  %v860_v36 = vrot.slane %v859_v29, 1  ;;  %v863_v37 = vrot.slane %v862_v33, 4  ;;  %2926 = vmatmul.msk.bf16.gmra.mxu3 %vm702_vm2, %v1710_v32 }
 0x134   : > { %v1559_v40 = vpop.f32.mrf.mxu2  ;;  %v2075_v50 = vmax.f32 %v2073_v27, %v2074_v39 }
 0x135   : > { %v2388_v41 = vsel %vm2387_vm4, %v2386_v35, %v1100_v34  ;;  %v861_v42 = vmax.f32 %v859_v29, %v860_v36  ;;  %v864_v43 = vmax.f32 %v862_v33, %v863_v37  ;;  %v617_v44 = vpop.f32.mrf.mxu0  ;;  %v1560_v55 = vadd.f32 %v3156_v30, %v1559_v40 }
 0x136   : > { %v618_v45 = vadd.f32 %v3147_v25, %v617_v44  ;;  %v1884_v46 = vpop.f32.mrf.mxu3  ;;  %v2076_v61 = vrot.slane %v2075_v50, 2 }
 0x137   : > { %v1070_v47 = vadd.f32 %v3253_v5, %v861_v42  ;;  %v865_v48 = vrot.slane %v864_v43, 2  ;;  %v1665_v7 = vmax.f32 %v1560_v55, 0.0  ;;  %v2080_v8 = vsel %vm840_vm3, %v1884_v46, -inf }
 0x138   : > { %v666_v51 = vmax.f32 %v618_v45, 0.0  ;;  %v2077_v15 = vmax.f32 %v2075_v50, %v2076_v61 }
 0x139   : > { %v1102_v52 = vmax.f32 %v1070_v47, 0.0  ;;  %v866_v53 = vmax.f32 %v864_v43, %v865_v48  ;;  %v770_v54 = vpop.f32.mrf.mxu1  ;;  %v3294_v47 = vld [vmem:[%s3653_s9] ss:$0 sm:$0xff] }
 0x13a   : > { %v869_v56 = vsel %vm840_vm3, %v770_v54, -inf  ;;  %v687_v57 = vpack.c.bf16 %v666_v51, %v665_v49  ;;  %v2078_v29 = vrot.slane %v2077_v15, 1 }
 0x13b   : > { %v2389_v58 = vrot.slane %v1102_v52, 6  ;;  %v867_v59 = vrot.slane %v866_v53, 1  ;;  %v870_v60 = vrot.slane %v869_v56, 4 }
 0x13c   : > { %v1561_v62 = vpop.f32.mrf.mxu2  ;;  %2739 = vmatmul.msk.bf16.gmra.mxu1 %vm702_vm2, %v687_v57  ;;  %v2079_v43 = vmax.f32 %v2077_v15, %v2078_v29  ;;  %v2964_v57 = vld [vmem:[%s3103_s28 + $0x20] sm:$0xff] }
 0x13d   : > { %v2391_v0 = vsel %vm2390_vm5, %v2389_v58, %v2388_v41  ;;  %v868_v1 = vmax.f32 %v866_v53, %v867_v59  ;;  %v871_v2 = vmax.f32 %v869_v56, %v870_v60  ;;  %v1562_v3 = vadd.f32 %v3156_v30, %v1561_v62  ;;  %v620_v4 = vpop.f32.mrf.mxu0  ;;  %v2988_v62 = vld [vmem:[%s3103_s28 + $0xe0] sm:$0xff] }
 0x13e   : > { %v1886_v9 = vpop.f32.mrf.mxu3  ;;  %v621_v26 = vadd.f32 %v3147_v25, %v620_v4 }
 0x13f   : > { %v1071_v10 = vadd.f32 %v3253_v5, %v868_v1  ;;  %v872_v11 = vrot.slane %v871_v2, 2  ;;  %v1666_v12 = vmax.f32 %v1562_v3, 0.0  ;;  %v2081_v13 = vsel %vm840_vm3, %v1886_v9, -inf }
 0x140   : > { %v2082_v14 = vmax.f32 %v2080_v8, %v2081_v13  ;;  %2876 = vmatmul.msk.bf16.gmra.mxu0 %vm503_vm1, %v2963_v63  ;;  %v667_v40 = vmax.f32 %v621_v26, 0.0 }
 0x141   : > { %v1103_v16 = vmax.f32 %v1071_v10, 0.0  ;;  %v873_v17 = vmax.f32 %v871_v2, %v872_v11  ;;  %2900 = vmatmul.msk.bf16.gmra.mxu2 %vm503_vm1, %v2987_v6  ;;  %v772_v18 = vpop.f32.mrf.mxu1  ;;  %v1711_v19 = vpack.c.bf16 %v1666_v12, %v1665_v7 }
 0x142   : > { %v2083_v20 = vrot.slane %v2082_v14, 4  ;;  %v876_v21 = vsel %vm840_vm3, %v772_v18, -inf }
 0x143   : > { %v2392_v22 = vrot.slane %v1103_v16, 5  ;;  %v874_v23 = vrot.slane %v873_v17, 1  ;;  %v877_v24 = vrot.slane %v876_v21, 4  ;;  %2927 = vmatmul.msk.bf16.gmra.mxu3 %vm702_vm2, %v1711_v19 }
 0x144   : > { %v2084_v27 = vmax.f32 %v2082_v14, %v2083_v20  ;;  %v1564_v28 = vpop.f32.mrf.mxu2 }
 0x145   : > { %v875_v31 = vmax.f32 %v873_v17, %v874_v23  ;;  %v878_v32 = vmax.f32 %v876_v21, %v877_v24  ;;  %v622_v33 = vpop.f32.mrf.mxu0  ;;  %v2394_v37 = vsel %vm2393_vm6, %v2392_v22, %v2391_v0  ;;  %v1565_v49 = vadd.f32 %v3156_v30, %v1564_v28 }
 0x146   : > { %v2085_v34 = vrot.slane %v2084_v27, 2  ;;  %v623_v35 = vadd.f32 %v3147_v25, %v622_v33  ;;  %v1889_v36 = vpop.f32.mrf.mxu3  ;;  %v2298_v0 = vadd.f32 %v3294_v47, %v2079_v43 }
 0x147   : > { %v1072_v38 = vadd.f32 %v3253_v5, %v875_v31  ;;  %v879_v39 = vrot.slane %v878_v32, 2  ;;  %v1667_v2 = vmax.f32 %v1565_v49, 0.0  ;;  %v2089_v3 = vsel %vm840_vm3, %v1889_v36, -inf }
 0x148   : > { %v2086_v41 = vmax.f32 %v2084_v27, %v2085_v34  ;;  %v668_v42 = vmax.f32 %v623_v35, 0.0  ;;  %v2330_v16 = vmax.f32 %v2298_v0, 0.0 }
 0x149   : > { %v1104_v44 = vmax.f32 %v1072_v38, 0.0  ;;  %v880_v45 = vmax.f32 %v878_v32, %v879_v39  ;;  %v775_v46 = vpop.f32.mrf.mxu1 }
 0x14a   : > { %v2087_v48 = vrot.slane %v2086_v41, 1  ;;  %v883_v50 = vsel %vm840_vm3, %v775_v46, -inf  ;;  %v688_v51 = vpack.c.bf16 %v668_v42, %v667_v40 }
 0x14b   : > { %v2395_v52 = vrot.slane %v1104_v44, 4  ;;  %v881_v53 = vrot.slane %v880_v45, 1  ;;  %v884_v54 = vrot.slane %v883_v50, 4 }
 0x14c   : > { %v2088_v55 = vmax.f32 %v2086_v41, %v2087_v48  ;;  %v1566_v56 = vpop.f32.mrf.mxu2  ;;  %2740 = vmatmul.msk.bf16.gmra.mxu1 %vm702_vm2, %v688_v51 }
 0x14d   : > { %v882_v58 = vmax.f32 %v880_v45, %v881_v53  ;;  %v885_v59 = vmax.f32 %v883_v50, %v884_v54  ;;  %v1567_v60 = vadd.f32 %v3156_v30, %v1566_v56  ;;  %v625_v61 = vpop.f32.mrf.mxu0  ;;  %v2397_v63 = vsel %vm2396_vm7, %v2395_v52, %v2394_v37  ;;  %v2965_v54 = vld [vmem:[%s3103_s28 + $0x28] sm:$0xff] }
 0x14e   : > { %v2299_v1 = vadd.f32 %v3294_v47, %v2088_v55  ;;  %v1891_v4 = vpop.f32.mrf.mxu3  ;;  %v626_v23 = vadd.f32 %v3147_v25, %v625_v61 }
 0x14f   : > { %v1073_v6 = vadd.f32 %v3253_v5, %v882_v58  ;;  %v886_v7 = vrot.slane %v885_v59, 2  ;;  %v1668_v8 = vmax.f32 %v1567_v60, 0.0  ;;  %v2090_v9 = vsel %vm840_vm3, %v1891_v4, -inf }
 0x150   : > { %v2331_v10 = vmax.f32 %v2299_v1, 0.0  ;;  %v2091_v11 = vmax.f32 %v2089_v3, %v2090_v9  ;;  %2877 = vmatmul.msk.bf16.gmra.mxu0 %vm503_vm1, %v2964_v57  ;;  %v669_v38 = vmax.f32 %v626_v23, 0.0 }
 0x151   : > { %v1105_v12 = vmax.f32 %v1073_v6, 0.0  ;;  %v887_v13 = vmax.f32 %v885_v59, %v886_v7  ;;  %2901 = vmatmul.msk.bf16.gmra.mxu2 %vm503_vm1, %v2988_v62  ;;  %v777_v14 = vpop.f32.mrf.mxu1  ;;  %v1712_v15 = vpack.c.bf16 %v1668_v8, %v1667_v2  ;;  %v2989_v59 = vld [vmem:[%s3103_s28 + $0xe8] sm:$0xff] }
 0x152   : > { %v2499_v17 = vrot.slane %v2331_v10, 7  ;;  %v2092_v18 = vrot.slane %v2091_v11, 4  ;;  %v890_v19 = vsel %vm840_vm3, %v777_v14, -inf }
 0x153   : > { %v2398_v20 = vrot.slane %v1105_v12, 3  ;;  %v888_v21 = vrot.slane %v887_v13, 1  ;;  %v891_v22 = vrot.slane %v890_v19, 4  ;;  %2928 = vmatmul.msk.bf16.gmra.mxu3 %vm702_vm2, %v1712_v15 }
 0x154   : > { %v2093_v24 = vmax.f32 %v2091_v11, %v2092_v18  ;;  %v1569_v26 = vpop.f32.mrf.mxu2  ;;  %v2500_v27 = vsel %vm2387_vm4, %v2499_v17, %v2330_v16 }
 0x155   : > { %v889_v28 = vmax.f32 %v887_v13, %v888_v21  ;;  %v892_v29 = vmax.f32 %v890_v19, %v891_v22  ;;  %v627_v31 = vpop.f32.mrf.mxu0  ;;  %v2400_v32 = vsel %vm2399_vm8, %v2398_v20, %v2397_v63  ;;  %v1570_v45 = vadd.f32 %v3156_v30, %v1569_v26 }
 0x156   : > { %v2094_v33 = vrot.slane %v2093_v24, 2  ;;  %v628_v34 = vadd.f32 %v3147_v25, %v627_v31  ;;  %v1894_v35 = vpop.f32.mrf.mxu3 }
 0x157   : > { %v1074_v36 = vadd.f32 %v3253_v5, %v889_v28  ;;  %v893_v37 = vrot.slane %v892_v29, 2  ;;  %v1669_v62 = vmax.f32 %v1570_v45, 0.0  ;;  %v2098_v63 = vsel %vm840_vm3, %v1894_v35, -inf  ;;  %v2966_v45 = vld [vmem:[%s3103_s28 + $0x30] sm:$0xff] }
 0x158   : > { %v2095_v39 = vmax.f32 %v2093_v24, %v2094_v33  ;;  %v670_v40 = vmax.f32 %v628_v34, 0.0 }
 0x159   : > { %v1106_v41 = vmax.f32 %v1074_v36, 0.0  ;;  %v894_v42 = vmax.f32 %v892_v29, %v893_v37  ;;  %v780_v43 = vpop.f32.mrf.mxu1 }
 0x15a   : > { %v2096_v44 = vrot.slane %v2095_v39, 1  ;;  %v689_v46 = vpack.c.bf16 %v670_v40, %v669_v38  ;;  %v897_v48 = vsel %vm840_vm3, %v780_v43, -inf }
 0x15b   : > { %v2401_v49 = vrot.slane %v1106_v41, 2  ;;  %v895_v50 = vrot.slane %v894_v42, 1  ;;  %v898_v51 = vrot.slane %v897_v48, 4 }
 0x15c   : > { %v2097_v52 = vmax.f32 %v2095_v39, %v2096_v44  ;;  %v1571_v53 = vpop.f32.mrf.mxu2  ;;  %2741 = vmatmul.msk.bf16.gmra.mxu1 %vm702_vm2, %v689_v46 }
 0x15d   : > { %v896_v55 = vmax.f32 %v894_v42, %v895_v50  ;;  %v899_v56 = vmax.f32 %v897_v48, %v898_v51  ;;  %v1572_v57 = vadd.f32 %v3156_v30, %v1571_v53  ;;  %v630_v58 = vpop.f32.mrf.mxu0  ;;  %v2403_v60 = vsel %vm2402_vm9, %v2401_v49, %v2400_v32  ;;  %v2990_v51 = vld [vmem:[%s3103_s28 + $0xf0] sm:$0xff] }
 0x15e   : > { %v2300_v61 = vadd.f32 %v3294_v47, %v2097_v52  ;;  %v1896_v0 = vpop.f32.mrf.mxu3  ;;  %v631_v17 = vadd.f32 %v3147_v25, %v630_v58 }
 0x15f   : > { %v1075_v1 = vadd.f32 %v3253_v5, %v896_v55  ;;  %v900_v2 = vrot.slane %v899_v56, 2  ;;  %v1670_v3 = vmax.f32 %v1572_v57, 0.0  ;;  %v2099_v4 = vsel %vm840_vm3, %v1896_v0, -inf }
 0x160   : > { %v2332_v6 = vmax.f32 %v2300_v61, 0.0  ;;  %v2100_v7 = vmax.f32 %v2098_v63, %v2099_v4  ;;  %2878 = vmatmul.msk.bf16.gmra.mxu0 %vm503_vm1, %v2965_v54  ;;  %v671_v32 = vmax.f32 %v631_v17, 0.0 }
 0x161   : > { %v901_v8 = vmax.f32 %v899_v56, %v900_v2  ;;  %v1713_v9 = vpack.c.bf16 %v1670_v3, %v1669_v62  ;;  %2902 = vmatmul.msk.bf16.gmra.mxu2 %vm503_vm1, %v2989_v59  ;;  %v782_v10 = vpop.f32.mrf.mxu1  ;;  %v1107_v11 = vmax.f32 %v1075_v1, 0.0 }
 0x162   : > { %v2501_v12 = vrot.slane %v2332_v6, 6  ;;  %v2101_v13 = vrot.slane %v2100_v7, 4  ;;  %v904_v14 = vsel %vm840_vm3, %v782_v10, -inf }
 0x163   : > { %v905_v15 = vrot.slane %v904_v14, 4  ;;  %2929 = vmatmul.msk.bf16.gmra.mxu3 %vm702_vm2, %v1713_v9  ;;  %v2404_v16 = vrot.slane %v1107_v11, 1  ;;  %v902_v21 = vrot.slane %v901_v8, 1 }
 0x164   : > { %v2102_v18 = vmax.f32 %v2100_v7, %v2101_v13  ;;  %v1574_v19 = vpop.f32.mrf.mxu2  ;;  %v2502_v20 = vsel %vm2390_vm5, %v2501_v12, %v2500_v27 }
 0x165   : > { %v906_v22 = vmax.f32 %v904_v14, %v905_v15  ;;  %v632_v23 = vpop.f32.mrf.mxu0  ;;  %v3335_v24 = vsel %vm2405_vm10, %v2404_v16, %v2403_v60  ;;  %v903_v35 = vmax.f32 %v901_v8, %v902_v21  ;;  %v1575_v38 = vadd.f32 %v3156_v30, %v1574_v19 }
 0x166   : > { %v2103_v26 = vrot.slane %v2102_v18, 2  ;;  %v633_v28 = vadd.f32 %v3147_v25, %v632_v23  ;;  %v1899_v29 = vpop.f32.mrf.mxu3 }
 0x167   : > { %v907_v31 = vrot.slane %v906_v22, 2  ;;  %v1076_v52 = vadd.f32 %v3253_v5, %v903_v35  ;;  %v1671_v54 = vmax.f32 %v1575_v38, 0.0  ;;  %v2107_v55 = vsel %vm840_vm3, %v1899_v29, -inf }
 0x168   : > { %v2104_v33 = vmax.f32 %v2102_v18, %v2103_v26  ;;  %v672_v34 = vmax.f32 %v633_v28, 0.0 }
 0x169   : > { %v908_v36 = vmax.f32 %v906_v22, %v907_v31  ;;  %v785_v37 = vpop.f32.mrf.mxu1  ;;  %v1108_v7 = vmax.f32 %v1076_v52, 0.0 }
 0x16a   : > { %v2105_v27 = vrot.slane %v2104_v33, 1  ;;  %v690_v39 = vpack.c.bf16 %v672_v34, %v671_v32  ;;  %v911_v40 = vsel %vm840_vm3, %v785_v37, -inf }
 0x16b   : > { %v909_v41 = vrot.slane %v908_v36, 1  ;;  %v912_v42 = vrot.slane %v911_v40, 4 }
 0x16c   : > { %v2106_v43 = vmax.f32 %v2104_v33, %v2105_v27  ;;  %v1576_v44 = vpop.f32.mrf.mxu2  ;;  %2742 = vmatmul.msk.bf16.gmra.mxu1 %vm702_vm2, %v690_v39 }
 0x16d   : > { %v910_v46 = vmax.f32 %v908_v36, %v909_v41  ;;  %v913_v48 = vmax.f32 %v911_v40, %v912_v42  ;;  %v1577_v49 = vadd.f32 %v3156_v30, %v1576_v44  ;;  %v635_v50 = vpop.f32.mrf.mxu0  ;;  %v2967_v41 = vld [vmem:[%s3103_s28 + $0x38] sm:$0xff] }
 0x16e   : > { %v2301_v53 = vadd.f32 %v3294_v47, %v2106_v43  ;;  %v1901_v56 = vpop.f32.mrf.mxu3  ;;  %v636_v11 = vadd.f32 %v3147_v25, %v635_v50 }
 0x16f   : > { %v1077_v57 = vadd.f32 %v3253_v5, %v910_v46  ;;  %v914_v58 = vrot.slane %v913_v48, 2  ;;  %v1672_v59 = vmax.f32 %v1577_v49, 0.0  ;;  %v2108_v60 = vsel %vm840_vm3, %v1901_v56, -inf }
 0x170   : > { %v2333_v61 = vmax.f32 %v2301_v53, 0.0  ;;  %v2109_v62 = vmax.f32 %v2107_v55, %v2108_v60  ;;  %2879 = vmatmul.msk.bf16.gmra.mxu0 %vm503_vm1, %v2966_v45  ;;  %v673_v28 = vmax.f32 %v636_v11, 0.0 }
 0x171   : > { %v1109_v63 = vmax.f32 %v1077_v57, 0.0  ;;  %v915_v0 = vmax.f32 %v913_v48, %v914_v58  ;;  %v1714_v1 = vpack.c.bf16 %v1672_v59, %v1671_v54  ;;  %2903 = vmatmul.msk.bf16.gmra.mxu2 %vm503_vm1, %v2990_v51  ;;  %v787_v2 = vpop.f32.mrf.mxu1  ;;  %v2991_v48 = vld [vmem:[%s3103_s28 + $0xf8] sm:$0xff] }
 0x172   : > { %v2503_v3 = vrot.slane %v2333_v61, 5  ;;  %v2110_v4 = vrot.slane %v2109_v62, 4  ;;  %v918_v6 = vsel %vm840_vm3, %v787_v2, -inf }
 0x173   : > { %v2407_v8 = vrot.slane %v1109_v63, 7  ;;  %v916_v9 = vrot.slane %v915_v0, 1  ;;  %v919_v10 = vrot.slane %v918_v6, 4  ;;  %2930 = vmatmul.msk.bf16.gmra.mxu3 %vm702_vm2, %v1714_v1 }
 0x174   : > { %v2111_v12 = vmax.f32 %v2109_v62, %v2110_v4  ;;  %v1579_v13 = vpop.f32.mrf.mxu2  ;;  %v2504_v14 = vsel %vm2393_vm6, %v2503_v3, %v2502_v20  ;;  %v3008_v4 = vld [vmem:[%s3646_s2] ss:$0 sm:$0xff] }
 0x175   : > { %v2408_v15 = vsel %vm2387_vm4, %v2407_v8, %v1108_v7  ;;  %v917_v16 = vmax.f32 %v915_v0, %v916_v9  ;;  %v920_v17 = vmax.f32 %v918_v6, %v919_v10  ;;  %v637_v18 = vpop.f32.mrf.mxu0  ;;  %v1580_v35 = vadd.f32 %v3156_v30, %v1579_v13 }
 0x176   : > { %v2112_v19 = vrot.slane %v2111_v12, 2  ;;  %v638_v21 = vadd.f32 %v3147_v25, %v637_v18  ;;  %v1904_v22 = vpop.f32.mrf.mxu3 }
 0x177   : > { %v1078_v23 = vadd.f32 %v3253_v5, %v917_v16  ;;  %v921_v26 = vrot.slane %v920_v17, 2  ;;  %v1673_v50 = vmax.f32 %v1580_v35, 0.0  ;;  %v2116_v51 = vsel %vm840_vm3, %v1904_v22, -inf }
 0x178   : > { %v2113_v29 = vmax.f32 %v2111_v12, %v2112_v19  ;;  %v674_v31 = vmax.f32 %v638_v21, 0.0 }
 0x179   : > { %v1110_v32 = vmax.f32 %v1078_v23, 0.0  ;;  %v922_v33 = vmax.f32 %v920_v17, %v921_v26  ;;  %v790_v34 = vpop.f32.mrf.mxu1 }
 0x17a   : > { %v2114_v20 = vrot.slane %v2113_v29, 1  ;;  %v691_v36 = vpack.c.bf16 %v674_v31, %v673_v28  ;;  %v925_v37 = vsel %vm840_vm3, %v790_v34, -inf }
 0x17b   : > { %v2409_v27 = vrot.slane %v1110_v32, 6  ;;  %v923_v25 = vrot.slane %v922_v33, 1  ;;  %v926_v38 = vrot.slane %v925_v37, 4 }
 0x17c   : > { %v2115_v39 = vmax.f32 %v2113_v29, %v2114_v20  ;;  %v1581_v40 = vpop.f32.mrf.mxu2  ;;  %2743 = vmatmul.msk.bf16.gmra.mxu1 %vm702_vm2, %v691_v36 }
 0x17d   : > { %v2410_v42 = vsel %vm2390_vm5, %v2409_v27, %v2408_v15  ;;  %v924_v43 = vmax.f32 %v922_v33, %v923_v25  ;;  %v927_v44 = vmax.f32 %v925_v37, %v926_v38  ;;  %v1582_v45 = vadd.f32 %v3156_v30, %v1581_v40  ;;  %v640_v46 = vpop.f32.mrf.mxu0 }
 0x17e   : > { %v2302_v49 = vadd.f32 %v3294_v47, %v2115_v39  ;;  %v1906_v52 = vpop.f32.mrf.mxu3  ;;  %v641_v6 = vadd.f32 %v3008_v4, %v640_v46 }
 0x17f   : > { %v1079_v53 = vadd.f32 %v3253_v5, %v924_v43  ;;  %v928_v54 = vrot.slane %v927_v44, 2  ;;  %v1674_v55 = vmax.f32 %v1582_v45, 0.0  ;;  %v2117_v56 = vsel %vm840_vm3, %v1906_v52, -inf }
 0x180   : > { %v2334_v57 = vmax.f32 %v2302_v49, 0.0  ;;  %v2118_v58 = vmax.f32 %v2116_v51, %v2117_v56  ;;  %2880 = vmatmul.msk.bf16.gmra.mxu0 %vm503_vm1, %v2967_v41  ;;  %v675_v21 = vmax.f32 %v641_v6, 0.0 }
 0x181   : > { %v1111_v59 = vmax.f32 %v1079_v53, 0.0  ;;  %v929_v30 = vmax.f32 %v927_v44, %v928_v54  ;;  %v1715_v60 = vpack.c.bf16 %v1674_v55, %v1673_v50  ;;  %2904 = vmatmul.msk.bf16.gmra.mxu2 %vm503_vm1, %v2991_v48  ;;  %v792_v61 = vpop.f32.mrf.mxu1 }
 0x182   : > { %v2505_v62 = vrot.slane %v2334_v57, 4  ;;  %v2119_v63 = vrot.slane %v2118_v58, 4  ;;  %v932_v0 = vsel %vm840_vm3, %v792_v61, -inf }
 0x183   : > { %v2411_v1 = vrot.slane %v1111_v59, 5  ;;  %v930_v2 = vrot.slane %v929_v30, 1  ;;  %v933_v3 = vrot.slane %v932_v0, 4  ;;  %2931 = vmatmul.msk.bf16.gmra.mxu3 %vm702_vm2, %v1715_v60 }
 0x184   : > { %v2120_v7 = vmax.f32 %v2118_v58, %v2119_v63  ;;  %v1584_v8 = vpop.f32.mrf.mxu2  ;;  %v2506_v9 = vsel %vm2396_vm7, %v2505_v62, %v2504_v14  ;;  %v3382_v14 = vld [vmem:[%s3651_s7] ss:$0 sm:$0xff] }
 0x185   : > { %v931_v10 = vmax.f32 %v929_v30, %v930_v2  ;;  %v934_v11 = vmax.f32 %v932_v0, %v933_v3  ;;  %v642_v12 = vpop.f32.mrf.mxu0  ;;  %v2412_v13 = vsel %vm2393_vm6, %v2411_v1, %v2410_v42  ;;  %v1585_v32 = vadd.f32 %v3382_v14, %v1584_v8 }
 0x186   : > { %v2121_v15 = vrot.slane %v2120_v7, 2  ;;  %v643_v16 = vadd.f32 %v3008_v4, %v642_v12  ;;  %v1909_v17 = vpop.f32.mrf.mxu3 }
 0x187   : > { %v1080_v18 = vadd.f32 %v3253_v5, %v931_v10  ;;  %v935_v19 = vrot.slane %v934_v11, 2  ;;  %v1675_v43 = vmax.f32 %v1585_v32, 0.0  ;;  %v2125_v44 = vsel %vm840_vm3, %v1909_v17, -inf }
 0x188   : > { %v2122_v22 = vmax.f32 %v2120_v7, %v2121_v15  ;;  %v676_v23 = vmax.f32 %v643_v16, 0.0 }
 0x189   : > { %v1112_v26 = vmax.f32 %v1080_v18, 0.0  ;;  %v936_v28 = vmax.f32 %v934_v11, %v935_v19  ;;  %v795_v29 = vpop.f32.mrf.mxu1 }
 0x18a   : > { %v2123_v31 = vrot.slane %v2122_v22, 1  ;;  %v692_v33 = vpack.c.bf16 %v676_v23, %v675_v21  ;;  %v939_v34 = vsel %vm840_vm3, %v795_v29, -inf }
 0x18b   : > { %v2413_v20 = vrot.slane %v1112_v26, 4  ;;  %v937_v35 = vrot.slane %v936_v28, 1  ;;  %v940_v36 = vrot.slane %v939_v34, 4 }
 0x18c   : > { %v2124_v37 = vmax.f32 %v2122_v22, %v2123_v31  ;;  %v1586_v27 = vpop.f32.mrf.mxu2  ;;  %2744 = vmatmul.msk.bf16.gmra.mxu1 %vm702_vm2, %v692_v33 }
 0x18d   : > { %v938_v25 = vmax.f32 %v936_v28, %v937_v35  ;;  %v941_v38 = vmax.f32 %v939_v34, %v940_v36  ;;  %v1587_v39 = vadd.f32 %v3382_v14, %v1586_v27  ;;  %v1469_v40 = vpop.f32.mrf.mxu0  ;;  %v2414_v41 = vsel %vm2396_vm7, %v2413_v20, %v2412_v13 }
 0x18e   : > { %v2303_v42 = vadd.f32 %v3294_v47, %v2124_v37  ;;  %v1911_v45 = vpop.f32.mrf.mxu3  ;;  %v1470_v62 = vadd.f32 %v3382_v14, %v1469_v40 }
 0x18f   : > { %v1081_v46 = vadd.f32 %v3253_v5, %v938_v25  ;;  %v942_v48 = vrot.slane %v941_v38, 2  ;;  %v1676_v49 = vmax.f32 %v1587_v39, 0.0  ;;  %v2126_v50 = vsel %vm840_vm3, %v1911_v45, -inf }
 0x190   : > { %v2127_v51 = vmax.f32 %v2125_v44, %v2126_v50  ;;  %v2335_v52 = vmax.f32 %v2303_v42, 0.0  ;;  %v1629_v13 = vmax.f32 %v1470_v62, 0.0 }
 0x191   : > { %v1113_v53 = vmax.f32 %v1081_v46, 0.0  ;;  %v943_v54 = vmax.f32 %v941_v38, %v942_v48  ;;  %v1716_v55 = vpack.c.bf16 %v1676_v49, %v1675_v43  ;;  %v797_v56 = vpop.f32.mrf.mxu1 }
 0x192   : > { %v2128_v57 = vrot.slane %v2127_v51, 4  ;;  %v946_v58 = vsel %vm840_vm3, %v797_v56, -inf  ;;  %v2507_v59 = vrot.slane %v2335_v52, 3 }
 0x193   : > { %v2415_v30 = vrot.slane %v1113_v53, 3  ;;  %v944_v60 = vrot.slane %v943_v54, 1  ;;  %v947_v61 = vrot.slane %v946_v58, 4  ;;  %2932 = vmatmul.msk.bf16.gmra.mxu3 %vm702_vm2, %v1716_v55 }
 0x194   : > { %v2129_v63 = vmax.f32 %v2127_v51, %v2128_v57  ;;  %v1589_v0 = vpop.f32.mrf.mxu2  ;;  %v2508_v1 = vsel %vm2399_vm8, %v2507_v59, %v2506_v9 }
 0x195   : > { %v945_v2 = vmax.f32 %v943_v54, %v944_v60  ;;  %v948_v3 = vmax.f32 %v946_v58, %v947_v61  ;;  %v1471_v4 = vpop.f32.mrf.mxu0  ;;  %v2416_v6 = vsel %vm2399_vm8, %v2415_v30, %v2414_v41  ;;  %v1590_v9 = vadd.f32 %v3382_v14, %v1589_v0 }
 0x196   : > { %v2130_v7 = vrot.slane %v2129_v63, 2  ;;  %v1472_v8 = vadd.f32 %v3382_v14, %v1471_v4  ;;  %v1914_v10 = vpop.f32.mrf.mxu3 }
 0x197   : > { %v1082_v11 = vadd.f32 %v3253_v5, %v945_v2  ;;  %v949_v12 = vrot.slane %v948_v3, 2  ;;  %v1677_v37 = vmax.f32 %v1590_v9, 0.0  ;;  %v2134_v27 = vsel %vm840_vm3, %v1914_v10, -inf }
 0x198   : > { %v2131_v15 = vmax.f32 %v2129_v63, %v2130_v7  ;;  %v1630_v16 = vmax.f32 %v1472_v8, 0.0 }
 0x199   : > { %v1114_v17 = vmax.f32 %v1082_v11, 0.0  ;;  %v950_v18 = vmax.f32 %v948_v3, %v949_v12  ;;  %v800_v19 = vpop.f32.mrf.mxu1 }
 0x19a   : > { %v2132_v21 = vrot.slane %v2131_v15, 1  ;;  %v1693_v22 = vpack.c.bf16 %v1630_v16, %v1629_v13  ;;  %v953_v23 = vsel %vm840_vm3, %v800_v19, -inf }
 0x19b   : > { %v2417_v26 = vrot.slane %v1114_v17, 2  ;;  %v951_v28 = vrot.slane %v950_v18, 1  ;;  %v954_v29 = vrot.slane %v953_v23, 4 }
 0x19c   : > { %v2133_v31 = vmax.f32 %v2131_v15, %v2132_v21  ;;  %v1591_v32 = vpop.f32.mrf.mxu2  ;;  %2909 = vmatmul.msk.bf16.vlgmr.msrb.gmra.mxu1 %vm702_vm2, %v1693_v22 }
 0x19d   : > { %v952_v33 = vmax.f32 %v950_v18, %v951_v28  ;;  %v955_v34 = vmax.f32 %v953_v23, %v954_v29  ;;  %v1592_v20 = vadd.f32 %v3382_v14, %v1591_v32  ;;  %v1474_v35 = vpop.f32.mrf.mxu0  ;;  %v2418_v36 = vsel %vm2402_vm9, %v2417_v26, %v2416_v6 }
 0x19e   : > { %v1916_v25 = vpop.f32.mrf.mxu3  ;;  %v2304_v38 = vadd.f32 %v3294_v47, %v2133_v31  ;;  %v1475_v55 = vadd.f32 %v3382_v14, %v1474_v35 }
 0x19f   : > { %v1083_v39 = vadd.f32 %v3253_v5, %v952_v33  ;;  %v956_v40 = vrot.slane %v955_v34, 2  ;;  %v1678_v41 = vmax.f32 %v1592_v20, 0.0  ;;  %v2135_v42 = vsel %vm840_vm3, %v1916_v25, -inf }
 0x1a0   : > { %v2136_v43 = vmax.f32 %v2134_v27, %v2135_v42  ;;  %v2336_v44 = vmax.f32 %v2304_v38, 0.0  ;;  %v1631_v3 = vmax.f32 %v1475_v55, 0.0 }
 0x1a1   : > { %v957_v45 = vmax.f32 %v955_v34, %v956_v40  ;;  %v1717_v46 = vpack.c.bf16 %v1678_v41, %v1677_v37  ;;  %v802_v48 = vpop.f32.mrf.mxu1  ;;  %v1115_v49 = vmax.f32 %v1083_v39, 0.0 }
 0x1a2   : > { %v2137_v50 = vrot.slane %v2136_v43, 4  ;;  %v960_v51 = vsel %vm840_vm3, %v802_v48, -inf  ;;  %v2509_v52 = vrot.slane %v2336_v44, 2 }
 0x1a3   : > { %v961_v53 = vrot.slane %v960_v51, 4  ;;  %2933 = vmatmul.msk.bf16.gmra.mxu3 %vm702_vm2, %v1717_v46  ;;  %v2419_v54 = vrot.slane %v1115_v49, 1  ;;  %v958_v59 = vrot.slane %v957_v45, 1 }
 0x1a4   : > { %v2138_v56 = vmax.f32 %v2136_v43, %v2137_v50  ;;  %v1594_v57 = vpop.f32.mrf.mxu2  ;;  %v2510_v58 = vsel %vm2402_vm9, %v2509_v52, %v2508_v1 }
 0x1a5   : > { %v962_v30 = vmax.f32 %v960_v51, %v961_v53  ;;  %v1476_v60 = vpop.f32.mrf.mxu0  ;;  %v3414_v61 = vsel %vm2405_vm10, %v2419_v54, %v2418_v36  ;;  %v959_v7 = vmax.f32 %v957_v45, %v958_v59  ;;  %v1595_v1 = vadd.f32 %v3382_v14, %v1594_v57 }
 0x1a6   : > { %v2139_v62 = vrot.slane %v2138_v56, 2  ;;  %v1477_v63 = vadd.f32 %v3382_v14, %v1476_v60  ;;  %v1919_v0 = vpop.f32.mrf.mxu3 }
 0x1a7   : > { %v963_v2 = vrot.slane %v962_v30, 2  ;;  %v1084_v23 = vadd.f32 %v3253_v5, %v959_v7  ;;  %v1679_v26 = vmax.f32 %v1595_v1, 0.0  ;;  %v2143_v28 = vsel %vm840_vm3, %v1919_v0, -inf }
 0x1a8   : > { %v2140_v4 = vmax.f32 %v2138_v56, %v2139_v62  ;;  %v1632_v6 = vmax.f32 %v1477_v63, 0.0 }
 0x1a9   : > { %v964_v8 = vmax.f32 %v962_v30, %v963_v2  ;;  %v805_v10 = vpop.f32.mrf.mxu1  ;;  %v1116_v41 = vmax.f32 %v1084_v23, 0.0 }
 0x1aa   : > { %v2141_v11 = vrot.slane %v2140_v4, 1  ;;  %v1694_v12 = vpack.c.bf16 %v1632_v6, %v1631_v3  ;;  %v967_v13 = vsel %vm840_vm3, %v805_v10, -inf }
 0x1ab   : > { %v965_v15 = vrot.slane %v964_v8, 1  ;;  %v968_v16 = vrot.slane %v967_v13, 4 }
 0x1ac   : > { %v2142_v17 = vmax.f32 %v2140_v4, %v2141_v11  ;;  %v1596_v18 = vpop.f32.mrf.mxu2  ;;  %2910 = vmatmul.msk.bf16.gmra.mxu1 %vm702_vm2, %v1694_v12 }
 0x1ad   : > { %v966_v19 = vmax.f32 %v964_v8, %v965_v15  ;;  %v969_v21 = vmax.f32 %v967_v13, %v968_v16  ;;  %v1597_v9 = vadd.f32 %v3382_v14, %v1596_v18  ;;  %v1479_v22 = vpop.f32.mrf.mxu0  ;;  %v3444_v18 = vld [vmem:[%s3648_s4] ss:$0 sm:$0xff] }
 0x1ae   : > { %v1921_v29 = vpop.f32.mrf.mxu3  ;;  %v2305_v31 = vadd.f32 %v3294_v47, %v2142_v17  ;;  %v1480_v45 = vadd.f32 %v3382_v14, %v1479_v22 }
 0x1af   : > { %v1085_v32 = vadd.f32 %v3253_v5, %v966_v19  ;;  %v970_v33 = vrot.slane %v969_v21, 2  ;;  %v1680_v34 = vmax.f32 %v1597_v9, 0.0  ;;  %v2144_v20 = vsel %vm840_vm3, %v1921_v29, -inf }
 0x1b0   : > { %v2145_v35 = vmax.f32 %v2143_v28, %v2144_v20  ;;  %v2337_v36 = vmax.f32 %v2305_v31, 0.0  ;;  %v1633_v59 = vmax.f32 %v1480_v45, 0.0 }
 0x1b1   : > { %v1117_v37 = vmax.f32 %v1085_v32, 0.0  ;;  %v971_v27 = vmax.f32 %v969_v21, %v970_v33  ;;  %v1718_v25 = vpack.c.bf16 %v1680_v34, %v1679_v26  ;;  %v807_v38 = vpop.f32.mrf.mxu1 }
 0x1b2   : > { %v974_v39 = vsel %vm840_vm3, %v807_v38, -inf  ;;  %v2511_v40 = vrot.slane %v2337_v36, 1  ;;  %v2146_v46 = vrot.slane %v2145_v35, 4 }
 0x1b3   : > { %v2421_v42 = vrot.slane %v1117_v37, 7  ;;  %v972_v43 = vrot.slane %v971_v27, 1  ;;  %v975_v44 = vrot.slane %v974_v39, 4  ;;  %2934 = vmatmul.msk.bf16.gmra.mxu3 %vm702_vm2, %v1718_v25 }
 0x1b4   : > { %v1599_v48 = vpop.f32.mrf.mxu2  ;;  %v3430_v49 = vsel %vm2405_vm10, %v2511_v40, %v2510_v58  ;;  %v2147_v30 = vmax.f32 %v2145_v35, %v2146_v46 }
 0x1b5   : > { %v2422_v50 = vsel %vm2387_vm4, %v2421_v42, %v1116_v41  ;;  %v973_v51 = vmax.f32 %v971_v27, %v972_v43  ;;  %v976_v52 = vmax.f32 %v974_v39, %v975_v44  ;;  %v1481_v53 = vpop.f32.mrf.mxu0  ;;  %v1600_v58 = vadd.f32 %v3382_v14, %v1599_v48 }
 0x1b6   : > { %v1482_v54 = vadd.f32 %v3382_v14, %v1481_v53  ;;  %v1924_v55 = vpop.f32.mrf.mxu3  ;;  %v2148_v8 = vrot.slane %v2147_v30, 2 }
 0x1b7   : > { %v1086_v56 = vadd.f32 %v3253_v5, %v973_v51  ;;  %v977_v57 = vrot.slane %v976_v52, 2  ;;  %v1681_v15 = vmax.f32 %v1600_v58, 0.0  ;;  %v2152_v16 = vsel %vm840_vm3, %v1924_v55, -inf }
 0x1b8   : > { %v1634_v60 = vmax.f32 %v1482_v54, 0.0  ;;  %v2149_v26 = vmax.f32 %v2147_v30, %v2148_v8 }
 0x1b9   : > { %v1118_v62 = vmax.f32 %v1086_v56, 0.0  ;;  %v978_v63 = vmax.f32 %v976_v52, %v977_v57  ;;  %v810_v0 = vpop.f32.mrf.mxu1 }
 0x1ba   : > { %v1695_v2 = vpack.c.bf16 %v1634_v60, %v1633_v59  ;;  %v981_v3 = vsel %vm840_vm3, %v810_v0, -inf  ;;  %v2150_v38 = vrot.slane %v2149_v26, 1 }
 0x1bb   : > { %v2423_v4 = vrot.slane %v1118_v62, 6  ;;  %v979_v6 = vrot.slane %v978_v63, 1  ;;  %v982_v7 = vrot.slane %v981_v3, 4 }
 0x1bc   : > { %v1601_v10 = vpop.f32.mrf.mxu2  ;;  %2911 = vmatmul.msk.bf16.gmra.mxu1 %vm702_vm2, %v1695_v2  ;;  %v2151_v53 = vmax.f32 %v2149_v26, %v2150_v38 }
 0x1bd   : > { %v2424_v5 = vsel %vm2390_vm5, %v2423_v4, %v2422_v50  ;;  %v980_v11 = vmax.f32 %v978_v63, %v979_v6  ;;  %v983_v1 = vmax.f32 %v981_v3, %v982_v7  ;;  %v1602_v12 = vadd.f32 %v3382_v14, %v1601_v10  ;;  %v1484_v13 = vpop.f32.mrf.mxu0 }
 0x1be   : > { %v1926_v17 = vpop.f32.mrf.mxu3  ;;  %v1485_v37 = vadd.f32 %v3382_v14, %v1484_v13  ;;  %v2306_v10 = vadd.f32 %v3294_v47, %v2151_v53 }
 0x1bf   : > { %v1087_v19 = vadd.f32 %v3444_v18, %v980_v11  ;;  %v984_v21 = vrot.slane %v983_v1, 2  ;;  %v1682_v9 = vmax.f32 %v1602_v12, 0.0  ;;  %v2153_v22 = vsel %vm840_vm3, %v1926_v17, -inf }
 0x1c0   : > { %v2154_v23 = vmax.f32 %v2152_v16, %v2153_v22  ;;  %v1635_v50 = vmax.f32 %v1485_v37, 0.0 }
 0x1c1   : > { %v1119_v28 = vmax.f32 %v1087_v19, 0.0  ;;  %v985_v29 = vmax.f32 %v983_v1, %v984_v21  ;;  %v1719_v31 = vpack.c.bf16 %v1682_v9, %v1681_v15  ;;  %v812_v32 = vpop.f32.mrf.mxu1 }
 0x1c2   : > { %v2155_v33 = vrot.slane %v2154_v23, 4  ;;  %v988_v34 = vsel %vm840_vm3, %v812_v32, -inf }
 0x1c3   : > { %v2425_v20 = vrot.slane %v1119_v28, 5  ;;  %v986_v35 = vrot.slane %v985_v29, 1  ;;  %v989_v36 = vrot.slane %v988_v34, 4  ;;  %2935 = vmatmul.msk.bf16.gmra.mxu3 %vm702_vm2, %v1719_v31  ;;  %v2338_v28 = vmax.f32 %v2306_v10, 0.0 }
 0x1c4   : > { %v2156_v27 = vmax.f32 %v2154_v23, %v2155_v33  ;;  %v1604_v25 = vpop.f32.mrf.mxu2 }
 0x1c5   : > { %v987_v39 = vmax.f32 %v985_v29, %v986_v35  ;;  %v990_v40 = vmax.f32 %v988_v34, %v989_v36  ;;  %v1486_v41 = vpop.f32.mrf.mxu0  ;;  %v2426_v42 = vsel %vm2393_vm6, %v2425_v20, %v2424_v5  ;;  %v1605_v59 = vadd.f32 %v3382_v14, %v1604_v25 }
 0x1c6   : > { %v2157_v43 = vrot.slane %v2156_v27, 2  ;;  %v1487_v44 = vadd.f32 %v3382_v14, %v1486_v41  ;;  %v1929_v45 = vpop.f32.mrf.mxu3 }
 0x1c7   : > { %v1088_v46 = vadd.f32 %v3444_v18, %v987_v39  ;;  %v991_v48 = vrot.slane %v990_v40, 2  ;;  %v1683_v11 = vmax.f32 %v1605_v59, 0.0  ;;  %v2161_v1 = vsel %vm840_vm3, %v1929_v45, -inf }
 0x1c8   : > { %v2158_v51 = vmax.f32 %v2156_v27, %v2157_v43  ;;  %v1636_v52 = vmax.f32 %v1487_v44, 0.0 }
 0x1c9   : > { %v1120_v54 = vmax.f32 %v1088_v46, 0.0  ;;  %v992_v55 = vmax.f32 %v990_v40, %v991_v48  ;;  %v815_v56 = vpop.f32.mrf.mxu1 }
 0x1ca   : > { %v2159_v57 = vrot.slane %v2158_v51, 1  ;;  %v1696_v30 = vpack.c.bf16 %v1636_v52, %v1635_v50  ;;  %v995_v60 = vsel %vm840_vm3, %v815_v56, -inf }
 0x1cb   : > { %v2427_v62 = vrot.slane %v1120_v54, 4  ;;  %v993_v63 = vrot.slane %v992_v55, 1  ;;  %v996_v0 = vrot.slane %v995_v60, 4 }
 0x1cc   : > { %v2160_v58 = vmax.f32 %v2158_v51, %v2159_v57  ;;  %v1606_v2 = vpop.f32.mrf.mxu2  ;;  %2912 = vmatmul.msk.bf16.gmra.mxu1 %vm702_vm2, %v1696_v30 }
 0x1cd   : > { %v994_v3 = vmax.f32 %v992_v55, %v993_v63  ;;  %v997_v4 = vmax.f32 %v995_v60, %v996_v0  ;;  %v1607_v6 = vadd.f32 %v3382_v14, %v1606_v2  ;;  %v1489_v7 = vpop.f32.mrf.mxu0  ;;  %v2428_v8 = vsel %vm2396_vm7, %v2427_v62, %v2426_v42 }
 0x1ce   : > { %v2307_v5 = vadd.f32 %v3294_v47, %v2160_v58  ;;  %v1931_v12 = vpop.f32.mrf.mxu3  ;;  %v1490_v20 = vadd.f32 %v3382_v14, %v1489_v7 }
 0x1cf   : > { %v1089_v13 = vadd.f32 %v3444_v18, %v994_v3  ;;  %v998_v15 = vrot.slane %v997_v4, 2  ;;  %v1684_v16 = vmax.f32 %v1607_v6, 0.0  ;;  %v2162_v17 = vsel %vm840_vm3, %v1931_v12, -inf }
 0x1d0   : > { %v2339_v19 = vmax.f32 %v2307_v5, 0.0  ;;  %v2163_v21 = vmax.f32 %v2161_v1, %v2162_v17  ;;  %v1637_v45 = vmax.f32 %v1490_v20, 0.0 }
 0x1d1   : > { %v1121_v9 = vmax.f32 %v1089_v13, 0.0  ;;  %v999_v22 = vmax.f32 %v997_v4, %v998_v15  ;;  %v1720_v23 = vpack.c.bf16 %v1684_v16, %v1683_v11  ;;  %v817_v26 = vpop.f32.mrf.mxu1  ;;  %v3479_v4 = vld [vmem:[%s3653_s9] ss:$0 sm:$0xff] }
 0x1d2   : > { %v2513_v29 = vrot.slane %v2339_v19, 7  ;;  %v2164_v31 = vrot.slane %v2163_v21, 4  ;;  %v1002_v47 = vsel %vm840_vm3, %v817_v26, -inf }
 0x1d3   : > { %v2429_v32 = vrot.slane %v1121_v9, 3  ;;  %v1000_v33 = vrot.slane %v999_v22, 1  ;;  %v1003_v34 = vrot.slane %v1002_v47, 4  ;;  %2936 = vmatmul.msk.bf16.gmra.mxu3 %vm702_vm2, %v1720_v23 }
 0x1d4   : > { %v2165_v35 = vmax.f32 %v2163_v21, %v2164_v31  ;;  %v1609_v36 = vpop.f32.mrf.mxu2  ;;  %v2514_v37 = vsel %vm2387_vm4, %v2513_v29, %v2338_v28 }
 0x1d5   : > { %v1001_v27 = vmax.f32 %v999_v22, %v1000_v33  ;;  %v1004_v25 = vmax.f32 %v1002_v47, %v1003_v34  ;;  %v1491_v38 = vpop.f32.mrf.mxu0  ;;  %v2430_v39 = vsel %vm2399_vm8, %v2429_v32, %v2428_v8  ;;  %v1610_v54 = vadd.f32 %v3382_v14, %v1609_v36 }
 0x1d6   : > { %v2166_v40 = vrot.slane %v2165_v35, 2  ;;  %v1492_v41 = vadd.f32 %v3382_v14, %v1491_v38  ;;  %v1934_v42 = vpop.f32.mrf.mxu3 }
 0x1d7   : > { %v1090_v43 = vadd.f32 %v3444_v18, %v1001_v27  ;;  %v1005_v44 = vrot.slane %v1004_v25, 2  ;;  %v1685_v7 = vmax.f32 %v1610_v54, 0.0  ;;  %v2170_v8 = vsel %vm840_vm3, %v1934_v42, -inf }
 0x1d8   : > { %v2167_v46 = vmax.f32 %v2165_v35, %v2166_v40  ;;  %v1638_v48 = vmax.f32 %v1492_v41, 0.0 }
 0x1d9   : > { %v1122_v50 = vmax.f32 %v1090_v43, 0.0  ;;  %v1006_v51 = vmax.f32 %v1004_v25, %v1005_v44  ;;  %v820_v52 = vpop.f32.mrf.mxu1 }
 0x1da   : > { %v2168_v53 = vrot.slane %v2167_v46, 1  ;;  %v1697_v55 = vpack.c.bf16 %v1638_v48, %v1637_v45  ;;  %v1009_v56 = vsel %vm840_vm3, %v820_v52, -inf }
 0x1db   : > { %v2431_v57 = vrot.slane %v1122_v50, 2  ;;  %v1007_v59 = vrot.slane %v1006_v51, 1  ;;  %v1010_v30 = vrot.slane %v1009_v56, 4 }
 0x1dc   : > { %v2169_v60 = vmax.f32 %v2167_v46, %v2168_v53  ;;  %v1611_v62 = vpop.f32.mrf.mxu2  ;;  %2913 = vmatmul.msk.bf16.gmra.mxu1 %vm702_vm2, %v1697_v55 }
 0x1dd   : > { %v1008_v63 = vmax.f32 %v1006_v51, %v1007_v59  ;;  %v1011_v0 = vmax.f32 %v1009_v56, %v1010_v30  ;;  %v1612_v58 = vadd.f32 %v3382_v14, %v1611_v62  ;;  %v1494_v2 = vpop.f32.mrf.mxu0  ;;  %v2432_v3 = vsel %vm2402_vm9, %v2431_v57, %v2430_v39 }
 0x1de   : > { %v2308_v6 = vadd.f32 %v3479_v4, %v2169_v60  ;;  %v1936_v10 = vpop.f32.mrf.mxu3  ;;  %v1495_v29 = vadd.f32 %v3382_v14, %v1494_v2 }
 0x1df   : > { %v1091_v5 = vadd.f32 %v3444_v18, %v1008_v63  ;;  %v1012_v11 = vrot.slane %v1011_v0, 2  ;;  %v1686_v1 = vmax.f32 %v1612_v58, 0.0  ;;  %v2171_v12 = vsel %vm840_vm3, %v1936_v10, -inf }
 0x1e0   : > { %v2340_v13 = vmax.f32 %v2308_v6, 0.0  ;;  %v2172_v15 = vmax.f32 %v2170_v8, %v2171_v12  ;;  %v1639_v39 = vmax.f32 %v1495_v29, 0.0 }
 0x1e1   : > { %v1721_v16 = vpack.c.bf16 %v1686_v1, %v1685_v7  ;;  %v822_v17 = vpop.f32.mrf.mxu1  ;;  %v1123_v19 = vmax.f32 %v1091_v5, 0.0  ;;  %v1013_v9 = vmax.f32 %v1011_v0, %v1012_v11 }
 0x1e2   : > { %v2515_v21 = vrot.slane %v2340_v13, 6  ;;  %v2173_v22 = vrot.slane %v2172_v15, 4  ;;  %v1016_v23 = vsel %vm840_vm3, %v822_v17, -inf }
 0x1e3   : > { %v1017_v26 = vrot.slane %v1016_v23, 4  ;;  %2937 = vmatmul.msk.bf16.gmra.mxu3 %vm702_vm2, %v1721_v16  ;;  %v2433_v28 = vrot.slane %v1123_v19, 1  ;;  %v1014_v35 = vrot.slane %v1013_v9, 1 }
 0x1e4   : > { %v2174_v31 = vmax.f32 %v2172_v15, %v2173_v22  ;;  %v1614_v47 = vpop.f32.mrf.mxu2  ;;  %v2516_v32 = vsel %vm2390_vm5, %v2515_v21, %v2514_v37 }
 0x1e5   : > { %v1018_v33 = vmax.f32 %v1016_v23, %v1017_v26  ;;  %v1496_v34 = vpop.f32.mrf.mxu0  ;;  %v3490_v20 = vsel %vm2405_vm10, %v2433_v28, %v2432_v3  ;;  %v1015_v44 = vmax.f32 %v1013_v9, %v1014_v35  ;;  %v1615_v50 = vadd.f32 %v3382_v14, %v1614_v47 }
 0x1e6   : > { %v2175_v36 = vrot.slane %v2174_v31, 2  ;;  %v1497_v27 = vadd.f32 %v3382_v14, %v1496_v34  ;;  %v3493_v25 = vpop.f32.mrf.mxu3 }
 0x1e7   : > { %v1019_v38 = vrot.slane %v1018_v33, 2  ;;  %v1092_v59 = vadd.f32 %v3444_v18, %v1015_v44  ;;  %v1687_v63 = vmax.f32 %v1615_v50, 0.0 }
 0x1e8   : > { %v2176_v40 = vmax.f32 %v2174_v31, %v2175_v36  ;;  %v1640_v41 = vmax.f32 %v1497_v27, 0.0 }
 0x1e9   : > { %v1020_v42 = vmax.f32 %v1018_v33, %v1019_v38  ;;  %v825_v43 = vpop.f32.mrf.mxu1  ;;  %v1124_v11 = vmax.f32 %v1092_v59, 0.0 }
 0x1ea   : > { %v2177_v45 = vrot.slane %v2176_v40, 1  ;;  %v1698_v37 = vpack.c.bf16 %v1640_v41, %v1639_v39  ;;  %v1023_v46 = vsel %vm840_vm3, %v825_v43, -inf }
 0x1eb   : > { %v1021_v48 = vrot.slane %v1020_v42, 1  ;;  %v1024_v51 = vrot.slane %v1023_v46, 4 }
 0x1ec   : > { %v2178_v52 = vmax.f32 %v2176_v40, %v2177_v45  ;;  %v1616_v53 = vpop.f32.mrf.mxu2  ;;  %2914 = vmatmul.msk.bf16.gmra.mxu1 %vm702_vm2, %v1698_v37 }
 0x1ed   : > { %v1022_v54 = vmax.f32 %v1020_v42, %v1021_v48  ;;  %v1025_v55 = vmax.f32 %v1023_v46, %v1024_v51  ;;  %v1617_v56 = vadd.f32 %v3382_v14, %v1616_v53  ;;  %v1499_v57 = vpop.f32.mrf.mxu0 }
 0x1ee   : > { %v2309_v30 = vadd.f32 %v3479_v4, %v2178_v52  ;;  %v1941_v60 = vpop.f32.mrf.mxu3  ;;  %v1500_v15 = vadd.f32 %v3382_v14, %v1499_v57 }
 0x1ef   : > { %v1093_v62 = vadd.f32 %v3444_v18, %v1022_v54  ;;  %v1026_v0 = vrot.slane %v1025_v55, 2  ;;  %v1688_v58 = vmax.f32 %v1617_v56, 0.0 }
 0x1f0   : > { %v2341_v2 = vmax.f32 %v2309_v30, 0.0  ;;  %v1641_v31 = vmax.f32 %v1500_v15, 0.0 }
 0x1f1   : > { %v1125_v3 = vmax.f32 %v1093_v62, 0.0  ;;  %v1027_v6 = vmax.f32 %v1025_v55, %v1026_v0  ;;  %v1722_v7 = vpack.c.bf16 %v1688_v58, %v1687_v63  ;;  %v827_v8 = vpop.f32.mrf.mxu1  ;;  %v2180_v58 = vsel %vm840_vm3, %v1941_v60, -inf }
 0x1f2   : > { %v2517_v10 = vrot.slane %v2341_v2, 5  ;;  %v1030_v5 = vsel %vm840_vm3, %v827_v8, -inf }
 0x1f3   : > { %v2435_v1 = vrot.slane %v1125_v3, 7  ;;  %v1028_v12 = vrot.slane %v1027_v6, 1  ;;  %v1031_v13 = vrot.slane %v1030_v5, 4  ;;  %2938 = vmatmul.msk.bf16.gmra.mxu3 %vm702_vm2, %v1722_v7 }
 0x1f4   : > { %v1619_v16 = vpop.f32.mrf.mxu2  ;;  %v3506_v17 = vsel %vm2393_vm6, %v2517_v10, %v2516_v32 }
 0x1f5   : > { %v2436_v19 = vsel %vm2387_vm4, %v2435_v1, %v1124_v11  ;;  %v1029_v21 = vmax.f32 %v1027_v6, %v1028_v12  ;;  %v1032_v9 = vmax.f32 %v1030_v5, %v1031_v13  ;;  %v1501_v22 = vpop.f32.mrf.mxu0  ;;  %v1620_v39 = vadd.f32 %v3382_v14, %v1619_v16 }
 0x1f6   : > { %v1502_v23 = vadd.f32 %v3382_v14, %v1501_v22  ;;  %v1944_v26 = vpop.f32.mrf.mxu3  ;;  %v2179_v5 = vsel %vm840_vm3, %v3493_v25, -inf }
 0x1f7   : > { %v1094_v28 = vadd.f32 %v3444_v18, %v1029_v21  ;;  %v1033_v29 = vrot.slane %v1032_v9, 2  ;;  %v1689_v50 = vmax.f32 %v1620_v39, 0.0  ;;  %v2181_v13 = vmax.f32 %v2179_v5, %v2180_v58 }
 0x1f8   : > { %v1642_v47 = vmax.f32 %v1502_v23, 0.0  ;;  %v2188_v60 = vsel %vm840_vm3, %v1944_v26, -inf }
 0x1f9   : > { %v1126_v33 = vmax.f32 %v1094_v28, 0.0  ;;  %v1034_v34 = vmax.f32 %v1032_v9, %v1033_v29  ;;  %v830_v35 = vpop.f32.mrf.mxu1 }
 0x1fa   : > { %v1699_v36 = vpack.c.bf16 %v1642_v47, %v1641_v31  ;;  %v1037_v32 = vsel %vm840_vm3, %v830_v35, -inf }
 0x1fb   : > { %v2437_v27 = vrot.slane %v1126_v33, 6  ;;  %v1035_v38 = vrot.slane %v1034_v34, 1  ;;  %v1038_v40 = vrot.slane %v1037_v32, 4  ;;  %v2182_v33 = vrot.slane %v2181_v13, 4 }
 0x1fc   : > { %v1621_v41 = vpop.f32.mrf.mxu2  ;;  %2915 = vmatmul.msk.bf16.gmra.mxu1 %vm702_vm2, %v1699_v36 }
 0x1fd   : > { %v2438_v42 = vsel %vm2390_vm5, %v2437_v27, %v2436_v19  ;;  %v1036_v43 = vmax.f32 %v1034_v34, %v1035_v38  ;;  %v1039_v44 = vmax.f32 %v1037_v32, %v1038_v40  ;;  %v1622_v45 = vadd.f32 %v3382_v14, %v1621_v41  ;;  %v1504_v37 = vpop.f32.mrf.mxu0 }
 0x1fe   : > { %v1946_v46 = vpop.f32.mrf.mxu3  ;;  %v1505_v63 = vadd.f32 %v3382_v14, %v1504_v37  ;;  %v2183_v37 = vmax.f32 %v2181_v13, %v2182_v33 }
 0x1ff   : > { %v1095_v48 = vadd.f32 %v3444_v18, %v1036_v43  ;;  %v1040_v51 = vrot.slane %v1039_v44, 2  ;;  %v1690_v52 = vmax.f32 %v1622_v45, 0.0  ;;  %v2189_v1 = vsel %vm840_vm3, %v1946_v46, -inf }
 0x200   : > { %v1643_v15 = vmax.f32 %v1505_v63, 0.0  ;;  %v2190_v22 = vmax.f32 %v2188_v60, %v2189_v1 }
 0x201   : > { %v1127_v53 = vmax.f32 %v1095_v48, 0.0  ;;  %v1041_v54 = vmax.f32 %v1039_v44, %v1040_v51  ;;  %v1723_v55 = vpack.c.bf16 %v1690_v52, %v1689_v50  ;;  %v832_v56 = vpop.f32.mrf.mxu1 }
 0x202   : > { %v1044_v57 = vsel %vm840_vm3, %v832_v56, -inf  ;;  %v2191_v27 = vrot.slane %v2190_v22, 4 }
 0x203   : > { %v2439_v59 = vrot.slane %v1127_v53, 5  ;;  %v1042_v30 = vrot.slane %v1041_v54, 1  ;;  %v1045_v62 = vrot.slane %v1044_v57, 4  ;;  %2939 = vmatmul.msk.bf16.gmra.mxu3 %vm702_vm2, %v1723_v55 }
 0x204   : > { %v1624_v0 = vpop.f32.mrf.mxu2 }
 0x205   : > { %v1043_v2 = vmax.f32 %v1041_v54, %v1042_v30  ;;  %v1046_v3 = vmax.f32 %v1044_v57, %v1045_v62  ;;  %v1506_v6 = vpop.f32.mrf.mxu0  ;;  %v2440_v7 = vsel %vm2393_vm6, %v2439_v59, %v2438_v42  ;;  %v1625_v23 = vadd.f32 %v3382_v14, %v1624_v0 }
 0x206   : > { %v1507_v8 = vadd.f32 %v3382_v14, %v1506_v6  ;;  %v1949_v10 = vpop.f32.mrf.mxu3  ;;  %v2184_v59 = vrot.slane %v2183_v37, 2 }
 0x207   : > { %v1096_v11 = vadd.f32 %v3444_v18, %v1043_v2  ;;  %v1047_v12 = vrot.slane %v1046_v3, 2  ;;  %v1691_v38 = vmax.f32 %v1625_v23, 0.0  ;;  %v2197_v39 = vsel %vm840_vm3, %v1949_v10, -inf }
 0x208   : > { %v1644_v16 = vmax.f32 %v1507_v8, 0.0 }
 0x209   : > { %v1128_v19 = vmax.f32 %v1096_v11, 0.0  ;;  %v1048_v21 = vmax.f32 %v1046_v3, %v1047_v12  ;;  %v835_v9 = vpop.f32.mrf.mxu1 }
 0x20a   : > { %v1700_v28 = vpack.c.bf16 %v1644_v16, %v1643_v15  ;;  %v1051_v29 = vsel %vm840_vm3, %v835_v9, -inf }
 0x20b   : > { %v2441_v25 = vrot.slane %v1128_v19, 4  ;;  %v1049_v31 = vrot.slane %v1048_v21, 1  ;;  %v1052_v47 = vrot.slane %v1051_v29, 4 }
 0x20c   : > { %v1626_v34 = vpop.f32.mrf.mxu2  ;;  %2916 = vmatmul.msk.bf16.gmra.mxu1 %vm702_vm2, %v1700_v28 }
 0x20d   : > { %v1050_v35 = vmax.f32 %v1048_v21, %v1049_v31  ;;  %v1053_v36 = vmax.f32 %v1051_v29, %v1052_v47  ;;  %v1627_v26 = vadd.f32 %v3382_v14, %v1626_v34  ;;  %v2442_v32 = vsel %vm2396_vm7, %v2441_v25, %v2440_v7 }
 0x20e   : > { %v1951_v40 = vpop.f32.mrf.mxu3  ;;  %v2192_v14 = vmax.f32 %v2190_v22, %v2191_v27  ;;  %v2185_v7 = vmax.f32 %v2183_v37, %v2184_v59 }
 0x20f   : > { %v1097_v41 = vadd.f32 %v3444_v18, %v1050_v35  ;;  %v1054_v42 = vrot.slane %v1053_v36, 2  ;;  %v1692_v43 = vmax.f32 %v1627_v26, 0.0  ;;  %v2198_v44 = vsel %vm840_vm3, %v1951_v40, -inf }
 0x210   : > { %v2199_v45 = vmax.f32 %v2197_v39, %v2198_v44  ;;  %v2193_v0 = vrot.slane %v2192_v14, 2  ;;  %v2186_v15 = vrot.slane %v2185_v7, 1 }
 0x211   : > { %v1129_v46 = vmax.f32 %v1097_v41, 0.0  ;;  %v1055_v48 = vmax.f32 %v1053_v36, %v1054_v42  ;;  %v1724_v50 = vpack.c.bf16 %v1692_v43, %v1691_v38  ;;  %v837_v51 = vpop.f32.mrf.mxu1 }
 0x212   : > { %v2200_v52 = vrot.slane %v2199_v45, 4  ;;  %v1058_v53 = vsel %vm840_vm3, %v837_v51, -inf  ;;  %v2194_v11 = vmax.f32 %v2192_v14, %v2193_v0  ;;  %v2187_v25 = vmax.f32 %v2185_v7, %v2186_v15 }
 0x213   : > { %v2443_v54 = vrot.slane %v1129_v46, 3  ;;  %v1056_v55 = vrot.slane %v1055_v48, 1  ;;  %v1059_v56 = vrot.slane %v1058_v53, 4  ;;  %2940 = vmatmul.msk.bf16.gmra.mxu3 %vm702_vm2, %v1724_v50 }
 0x214   : > { %v2201_v57 = vmax.f32 %v2199_v45, %v2200_v52  ;;  %v2195_v19 = vrot.slane %v2194_v11, 1 }
 0x215   : > { %v1057_v30 = vmax.f32 %v1055_v48, %v1056_v55  ;;  %v1060_v62 = vmax.f32 %v1058_v53, %v1059_v56  ;;  %v2444_v63 = vsel %vm2399_vm8, %v2443_v54, %v2442_v32 }
 0x216   : > { %v1954_v58 = vpop.f32.mrf.mxu3  ;;  %v2202_v3 = vrot.slane %v2201_v57, 2  ;;  %v2196_v33 = vmax.f32 %v2194_v11, %v2195_v19 }
 0x217   : > { %v1098_v2 = vadd.f32 %v3444_v18, %v1057_v30  ;;  %v1061_v6 = vrot.slane %v1060_v62, 2  ;;  %v2206_v23 = vsel %vm840_vm3, %v1954_v58, -inf }
 0x218   : > { %v2203_v12 = vmax.f32 %v2201_v57, %v2202_v3  ;;  %v2311_v40 = vadd.f32 %v3479_v4, %v2196_v33 }
 0x219   : > { %v1130_v8 = vmax.f32 %v1098_v2, 0.0  ;;  %v1062_v10 = vmax.f32 %v1060_v62, %v1061_v6  ;;  %v1839_v5 = vpop.f32.mrf.mxu1 }
 0x21a   : > { %v2204_v9 = vrot.slane %v2203_v12, 1  ;;  %v1999_v34 = vsel %vm840_vm3, %v1839_v5, -inf  ;;  %v2343_v50 = vmax.f32 %v2311_v40, 0.0 }
 0x21b   : > { %v2445_v1 = vrot.slane %v1130_v8, 2  ;;  %v1063_v13 = vrot.slane %v1062_v10, 1 }
 0x21c   : > { %v2205_v26 = vmax.f32 %v2203_v12, %v2204_v9  ;;  %v2521_v56 = vrot.slane %v2343_v50, 3 }
 0x21d   : > { %v1064_v16 = vmax.f32 %v1062_v10, %v1063_v13  ;;  %v2446_v60 = vsel %vm2402_vm9, %v2445_v1, %v2444_v63 }
 0x21e   : > { %v1956_v21 = vpop.f32.mrf.mxu3  ;;  %v2312_v43 = vadd.f32 %v3479_v4, %v2205_v26 }
 0x21f   : > { %v1099_v22 = vadd.f32 %v3444_v18, %v1064_v16  ;;  %v2207_v28 = vsel %vm840_vm3, %v1956_v21, -inf  ;;  %v2310_v18 = vadd.f32 %v3479_v4, %v2187_v25 }
 0x220   : > { %v2208_v29 = vmax.f32 %v2206_v23, %v2207_v28  ;;  %v2344_v51 = vmax.f32 %v2312_v43, 0.0 }
 0x221   : > { %v1131_v31 = vmax.f32 %v1099_v22, 0.0  ;;  %v1841_v47 = vpop.f32.mrf.mxu1  ;;  %v2342_v45 = vmax.f32 %v2310_v18, 0.0 }
 0x222   : > { %v2209_v35 = vrot.slane %v2208_v29, 4  ;;  %v2000_v36 = vsel %vm840_vm3, %v1841_v47, -inf  ;;  %v2523_v30 = vrot.slane %v2344_v51, 2 }
 0x223   : > { %v2001_v32 = vmax.f32 %v1999_v34, %v2000_v36  ;;  %v2447_v27 = vrot.slane %v1131_v31, 1  ;;  %v2519_v52 = vrot.slane %v2342_v45, 4 }
 0x224   : > { %v2210_v38 = vmax.f32 %v2208_v29, %v2209_v35 }
 0x225   : > { %v3548_v39 = vsel %vm2405_vm10, %v2447_v27, %v2446_v60  ;;  %v2002_v37 = vrot.slane %v2001_v32, 4  ;;  %v2520_v2 = vsel %vm2396_vm7, %v2519_v52, %v3506_v17 }
 0x226   : > { %v2211_v41 = vrot.slane %v2210_v38, 2  ;;  %v1959_v42 = vpop.f32.mrf.mxu3  ;;  %v2522_v7 = vsel %vm2399_vm8, %v2521_v56, %v2520_v2 }
 0x227   : > { %v2003_v53 = vmax.f32 %v2001_v32, %v2002_v37  ;;  %v2215_v57 = vsel %vm840_vm3, %v1959_v42, -inf  ;;  %v2524_v5 = vsel %vm2402_vm9, %v2523_v30, %v2522_v7 }
 0x228   : > { %v2212_v44 = vmax.f32 %v2210_v38, %v2211_v41 }
 0x229   : > { %v1844_v46 = vpop.f32.mrf.mxu1  ;;  %v2004_v0 = vrot.slane %v2003_v53, 2 }
 0x22a   : > { %v2213_v48 = vrot.slane %v2212_v44, 1  ;;  %v2008_v3 = vsel %vm840_vm3, %v1844_v46, -inf }
 0x22b   : > { %v2005_v1 = vmax.f32 %v2003_v53, %v2004_v0 }
 0x22c   : > { %v2214_v14 = vmax.f32 %v2212_v44, %v2213_v48 }
 0x22d   : > { %v2006_v16 = vrot.slane %v2005_v1, 1 }
 0x22e   : > { %v1961_v54 = vpop.f32.mrf.mxu3  ;;  %v2313_v55 = vadd.f32 %v3479_v4, %v2214_v14 }
 0x22f   : > { %v2216_v59 = vsel %vm840_vm3, %v1961_v54, -inf  ;;  %v2007_v22 = vmax.f32 %v2005_v1, %v2006_v16 }
 0x230   : > { %v2217_v62 = vmax.f32 %v2215_v57, %v2216_v59  ;;  %v2345_v63 = vmax.f32 %v2313_v55, 0.0 }
 0x231   : > { %v1846_v58 = vpop.f32.mrf.mxu1  ;;  %v2290_v34 = vadd.f32 %v3479_v4, %v2007_v22 }
 0x232   : > { %v2009_v6 = vsel %vm840_vm3, %v1846_v58, -inf  ;;  %v2525_v8 = vrot.slane %v2345_v63, 1  ;;  %v2218_v12 = vrot.slane %v2217_v62, 4 }
 0x233   : > { %v2010_v10 = vmax.f32 %v2008_v3, %v2009_v6  ;;  %v2322_v42 = vmax.f32 %v2290_v34, 0.0 }
 0x234   : > { %v2526_v11 = vsel %vm2405_vm10, %v2525_v8, %v2524_v5  ;;  %v2219_v60 = vmax.f32 %v2217_v62, %v2218_v12 }
 0x235   : > { %v2011_v13 = vrot.slane %v2010_v10, 4  ;;  %2545 = vrot.lane.b32.xlu1 %v2526_v11, %s3020_s11 }
 0x236   : > { %v1964_v15 = vpop.f32.mrf.mxu3  ;;  %v2220_v23 = vrot.slane %v2219_v60, 2 }
 0x237   : > { %v2012_v17 = vmax.f32 %v2010_v10, %v2011_v13  ;;  %v2224_v31 = vsel %vm840_vm3, %v1964_v15, -inf }
 0x238   : > { %v2221_v35 = vmax.f32 %v2219_v60, %v2220_v23 }
 0x239   : > { %v2013_v19 = vrot.slane %v2012_v17, 2  ;;  %v1849_v21 = vpop.f32.mrf.mxu1 }
 0x23a   : > { %v2017_v32 = vsel %vm840_vm3, %v1849_v21, -inf  ;;  %v2222_v43 = vrot.slane %v2221_v35, 1 }
 0x23b   : > { %v2014_v9 = vmax.f32 %v2012_v17, %v2013_v19 }
 0x23c   : > { %v2223_v14 = vmax.f32 %v2221_v35, %v2222_v43 }
 0x23d   : > { %v2015_v28 = vrot.slane %v2014_v9, 1 }
 0x23e   : > { %v1966_v29 = vpop.f32.mrf.mxu3  ;;  %v2314_v57 = vadd.f32 %v3479_v4, %v2223_v14 }
 0x23f   : > { %v2016_v25 = vmax.f32 %v2014_v9, %v2015_v28  ;;  %v2225_v47 = vsel %vm840_vm3, %v1966_v29, -inf }
 0x240   : > { %v2226_v33 = vmax.f32 %v2224_v31, %v2225_v47  ;;  %v2346_v6 = vmax.f32 %v2314_v57, 0.0 }
 0x241   : > { %v2291_v36 = vadd.f32 %v3479_v4, %v2016_v25  ;;  %v1851_v26 = vpop.f32.mrf.mxu1 }
 0x242   : > { %v2227_v27 = vrot.slane %v2226_v33, 4  ;;  %v2018_v38 = vsel %vm840_vm3, %v1851_v26, -inf }
 0x243   : > { %v2323_v18 = vmax.f32 %v2291_v36, 0.0  ;;  %v2019_v40 = vmax.f32 %v2017_v32, %v2018_v38 }
 0x244   : > { %v2228_v41 = vmax.f32 %v2226_v33, %v2227_v27 }
 0x245   : > { %v2485_v44 = vrot.slane %v2323_v18, 7  ;;  %v2020_v45 = vrot.slane %v2019_v40, 4 }
 0x246   : > { %v2229_v37 = vrot.slane %v2228_v41, 2  ;;  %v1969_v46 = vpop.f32.mrf.mxu3 }
 0x247   : > { %v2021_v48 = vmax.f32 %v2019_v40, %v2020_v45  ;;  %v2486_v50 = vsel %vm2387_vm4, %v2485_v44, %v2322_v42  ;;  %v2233_v0 = vsel %vm840_vm3, %v1969_v46, -inf }
 0x248   : > { %v2230_v51 = vmax.f32 %v2228_v41, %v2229_v37 }
 0x249   : > { %v2022_v52 = vrot.slane %v2021_v48, 2  ;;  %v1854_v53 = vpop.f32.mrf.mxu1 }
 0x24a   : > { %v2231_v54 = vrot.slane %v2230_v51, 1  ;;  %v2026_v5 = vsel %vm840_vm3, %v1854_v53, -inf }
 0x24b   : > { %v2023_v55 = vmax.f32 %v2021_v48, %v2022_v52 }
 0x24c   : > { %v2232_v56 = vmax.f32 %v2230_v51, %v2231_v54 }
 0x24d   : > { %v2024_v59 = vrot.slane %v2023_v55, 1 }
 0x24e   : > { %v2315_v30 = vadd.f32 %v3479_v4, %v2232_v56  ;;  %v1971_v62 = vpop.f32.mrf.mxu3 }
 0x24f   : > { %v2025_v63 = vmax.f32 %v2023_v55, %v2024_v59  ;;  %v2234_v58 = vsel %vm840_vm3, %v1971_v62, -inf }
 0x250   : > { %v2347_v2 = vmax.f32 %v2315_v30, 0.0  ;;  %v2235_v3 = vmax.f32 %v2233_v0, %v2234_v58 }
 0x251   : > { %v2292_v7 = vadd.f32 %v3479_v4, %v2025_v63  ;;  %v1856_v8 = vpop.f32.mrf.mxu1 }
 0x252   : > { %v2527_v10 = vrot.slane %v2347_v2, 7  ;;  %v2236_v11 = vrot.slane %v2235_v3, 4  ;;  %v2027_v1 = vsel %vm840_vm3, %v1856_v8, -inf }
 0x253   : > { %v2324_v12 = vmax.f32 %v2292_v7, 0.0  ;;  %v2028_v13 = vmax.f32 %v2026_v5, %v2027_v1 }
 0x254   : > { %v2528_v15 = vsel %vm2387_vm4, %v2527_v10, %v2346_v6  ;;  %v2237_v17 = vmax.f32 %v2235_v3, %v2236_v11 }
 0x255   : > { %v2487_v16 = vrot.slane %v2324_v12, 6  ;;  %v2029_v60 = vrot.slane %v2028_v13, 4 }
 0x256   : > { %v2238_v19 = vrot.slane %v2237_v17, 2  ;;  %v1974_v21 = vpop.f32.mrf.mxu3 }
 0x257   : > { %v2030_v9 = vmax.f32 %v2028_v13, %v2029_v60  ;;  %v2488_v22 = vsel %vm2390_vm5, %v2487_v16, %v2486_v50  ;;  %v2242_v26 = vsel %vm840_vm3, %v1974_v21, -inf }
 0x258   : > { %v2239_v23 = vmax.f32 %v2237_v17, %v2238_v19 }
 0x259   : > { %v2031_v28 = vrot.slane %v2030_v9, 2  ;;  %v1859_v29 = vpop.f32.mrf.mxu1 }
 0x25a   : > { %v2240_v25 = vrot.slane %v2239_v23, 1  ;;  %v2035_v2 = vsel %vm840_vm3, %v1859_v29, -inf }
 0x25b   : > { %v2032_v31 = vmax.f32 %v2030_v9, %v2031_v28 }
 0x25c   : > { %v2241_v47 = vmax.f32 %v2239_v23, %v2240_v25 }
 0x25d   : > { %v2033_v33 = vrot.slane %v2032_v31, 1 }
 0x25e   : > { %v2316_v34 = vadd.f32 %v3479_v4, %v2241_v47  ;;  %v1976_v35 = vpop.f32.mrf.mxu3 }
 0x25f   : > { %v2034_v36 = vmax.f32 %v2032_v31, %v2033_v33  ;;  %v2243_v32 = vsel %vm840_vm3, %v1976_v35, -inf }
 0x260   : > { %v2348_v27 = vmax.f32 %v2316_v34, 0.0  ;;  %v2244_v38 = vmax.f32 %v2242_v26, %v2243_v32 }
 0x261   : > { %v2293_v18 = vadd.f32 %v3479_v4, %v2034_v36  ;;  %v1861_v40 = vpop.f32.mrf.mxu1 }
 0x262   : > { %v2529_v41 = vrot.slane %v2348_v27, 6  ;;  %v2245_v42 = vrot.slane %v2244_v38, 4  ;;  %v2036_v63 = vsel %vm840_vm3, %v1861_v40, -inf }
 0x263   : > { %v2325_v43 = vmax.f32 %v2293_v18, 0.0  ;;  %v2037_v3 = vmax.f32 %v2035_v2, %v2036_v63 }
 0x264   : > { %v2246_v44 = vmax.f32 %v2244_v38, %v2245_v42  ;;  %v2530_v45 = vsel %vm2390_vm5, %v2529_v41, %v2528_v15 }
 0x265   : > { %v2489_v37 = vrot.slane %v2325_v43, 5  ;;  %v2038_v10 = vrot.slane %v2037_v3, 4 }
 0x266   : > { %v2247_v46 = vrot.slane %v2246_v44, 2  ;;  %v1979_v48 = vpop.f32.mrf.mxu3 }
 0x267   : > { %v3585_v50 = vsel %vm2393_vm6, %v2489_v37, %v2488_v22  ;;  %v2039_v15 = vmax.f32 %v2037_v3, %v2038_v10  ;;  %v2251_v23 = vsel %vm840_vm3, %v1979_v48, -inf }
 0x268   : > { %v2248_v51 = vmax.f32 %v2246_v44, %v2247_v46 }
 0x269   : > { %v1864_v14 = vpop.f32.mrf.mxu1  ;;  %v2040_v22 = vrot.slane %v2039_v15, 2 }
 0x26a   : > { %v2249_v52 = vrot.slane %v2248_v51, 1  ;;  %v2044_v6 = vsel %vm840_vm3, %v1864_v14, -inf }
 0x26b   : > { %v2041_v34 = vmax.f32 %v2039_v15, %v2040_v22 }
 0x26c   : > { %v2250_v53 = vmax.f32 %v2248_v51, %v2249_v52 }
 0x26d   : > { %v2042_v40 = vrot.slane %v2041_v34, 1 }
 0x26e   : > { %v2317_v54 = vadd.f32 %v3479_v4, %v2250_v53  ;;  %v1981_v55 = vpop.f32.mrf.mxu3 }
 0x26f   : > { %v2252_v60 = vsel %vm840_vm3, %v1981_v55, -inf  ;;  %v2043_v52 = vmax.f32 %v2041_v34, %v2042_v40 }
 0x270   : > { %v2349_v56 = vmax.f32 %v2317_v54, 0.0  ;;  %v2253_v29 = vmax.f32 %v2251_v23, %v2252_v60 }
 0x271   : > { %v1866_v57 = vpop.f32.mrf.mxu1 }
 0x272   : > { %v2531_v59 = vrot.slane %v2349_v56, 5  ;;  %v2045_v58 = vsel %vm840_vm3, %v1866_v57, -inf  ;;  %v2254_v35 = vrot.slane %v2253_v29, 4 }
 0x273   : > { %v2046_v7 = vmax.f32 %v2044_v6, %v2045_v58  ;;  %v2294_v58 = vadd.f32 %v3479_v4, %v2043_v52 }
 0x274   : > { %v3589_v30 = vsel %vm2393_vm6, %v2531_v59, %v2530_v45  ;;  %v2255_v42 = vmax.f32 %v2253_v29, %v2254_v35 }
 0x275   : > { %v2047_v5 = vrot.slane %v2046_v7, 4 }
 0x276   : > { %v1984_v62 = vpop.f32.mrf.mxu3  ;;  %v2256_v54 = vrot.slane %v2255_v42, 2 }
 0x277   : > { %v2048_v17 = vmax.f32 %v2046_v7, %v2047_v5  ;;  %v2260_v28 = vsel %vm840_vm3, %v1984_v62, -inf }
 0x278   : > { %v2257_v2 = vmax.f32 %v2255_v42, %v2256_v54 }
 0x279   : > { %v1869_v0 = vpop.f32.mrf.mxu1  ;;  %v2049_v25 = vrot.slane %v2048_v17, 2 }
 0x27a   : > { %v2053_v1 = vsel %vm840_vm3, %v1869_v0, -inf }
 0x27b   : > { %v2050_v36 = vmax.f32 %v2048_v17, %v2049_v25 }
 0x27d   : > { %v2051_v43 = vrot.slane %v2050_v36, 1 }
 0x27e   : > { %v1986_v8 = vpop.f32.mrf.mxu3 }
 0x27f   : > { %v2261_v19 = vsel %vm840_vm3, %v1986_v8, -inf  ;;  %v2052_v55 = vmax.f32 %v2050_v36, %v2051_v43 }
 0x280   : > { %v2262_v31 = vmax.f32 %v2260_v28, %v2261_v19 }
 0x281   : > { %v1871_v11 = vpop.f32.mrf.mxu1  ;;  %v2295_v3 = vadd.f32 %v3479_v4, %v2052_v55 }
 0x282   : > { %v2054_v12 = vsel %vm840_vm3, %v1871_v11, -inf  ;;  %v2263_v26 = vrot.slane %v2262_v31, 4  ;;  %v2326_v11 = vmax.f32 %v2294_v58, 0.0 }
 0x283   : > { %v2055_v13 = vmax.f32 %v2053_v1, %v2054_v12  ;;  %v2258_v1 = vrot.slane %v2257_v2, 1 }
 0x284   : > { %v2264_v44 = vmax.f32 %v2262_v31, %v2263_v26  ;;  %v2491_v22 = vrot.slane %v2326_v11, 4 }
 0x285   : > { %v2056_v16 = vrot.slane %v2055_v13, 4  ;;  %v2259_v28 = vmax.f32 %v2257_v2, %v2258_v1 }
 0x286   : > { %v1989_v21 = vpop.f32.mrf.mxu3  ;;  %v2265_v57 = vrot.slane %v2264_v44, 2  ;;  %v2492_v26 = vsel %vm2396_vm7, %v2491_v22, %v3585_v50 }
 0x287   : > { %v2057_v9 = vmax.f32 %v2055_v13, %v2056_v16  ;;  %v2269_v38 = vsel %vm840_vm3, %v1989_v21, -inf  ;;  %v2327_v13 = vmax.f32 %v2295_v3, 0.0 }
 0x288   : > { %v2266_v7 = vmax.f32 %v2264_v44, %v2265_v57 }
 0x289   : > { %v1874_v47 = vpop.f32.mrf.mxu1  ;;  %v2058_v33 = vrot.slane %v2057_v9, 2  ;;  %v2493_v25 = vrot.slane %v2327_v13, 3 }
 0x28a   : > { %v2062_v46 = vsel %vm840_vm3, %v1874_v47, -inf  ;;  %v2267_v15 = vrot.slane %v2266_v7, 1 }
 0x28b   : > { %v2059_v32 = vmax.f32 %v2057_v9, %v2058_v33 }
 0x28c   : > { %v2268_v31 = vmax.f32 %v2266_v7, %v2267_v15 }
 0x28d   : > { %v2060_v37 = vrot.slane %v2059_v32, 1 }
 0x28e   : > { %v1991_v27 = vpop.f32.mrf.mxu3 }
 0x28f   : > { %v2270_v18 = vsel %vm840_vm3, %v1991_v27, -inf  ;;  %v2061_v59 = vmax.f32 %v2059_v32, %v2060_v37  ;;  %v2318_v32 = vadd.f32 %v3479_v4, %v2259_v28  ;;  %v2494_v27 = vsel %vm2399_vm8, %v2493_v25, %v2492_v26 }
 0x290   : > { %v2271_v41 = vmax.f32 %v2269_v38, %v2270_v18  ;;  %v2319_v18 = vadd.f32 %v3479_v4, %v2268_v31 }
 0x291   : > { %v1876_v45 = vpop.f32.mrf.mxu1  ;;  %v2296_v8 = vadd.f32 %v3479_v4, %v2061_v59 }
 0x292   : > { %v2272_v48 = vrot.slane %v2271_v41, 4  ;;  %v2063_v51 = vsel %vm840_vm3, %v1876_v45, -inf  ;;  %v2350_v45 = vmax.f32 %v2318_v32, 0.0  ;;  %v2351_v37 = vmax.f32 %v2319_v18, 0.0 }
 0x293   : > { %v2064_v14 = vmax.f32 %v2062_v46, %v2063_v51  ;;  %v2328_v16 = vmax.f32 %v2296_v8, 0.0 }
 0x294   : > { %v2273_v53 = vmax.f32 %v2271_v41, %v2272_v48  ;;  %v2533_v51 = vrot.slane %v2350_v45, 4 }
 0x295   : > { %v2065_v56 = vrot.slane %v2064_v14, 4  ;;  %v2495_v33 = vrot.slane %v2328_v16, 2 }
 0x296   : > { %v1994_v62 = vpop.f32.mrf.mxu3  ;;  %v2274_v63 = vrot.slane %v2273_v53, 2  ;;  %v2534_v55 = vsel %vm2396_vm7, %v2533_v51, %v3589_v30 }
 0x297   : > { %v2066_v0 = vmax.f32 %v2064_v14, %v2065_v56  ;;  %v2278_v21 = vsel %vm840_vm3, %v1994_v62, -inf  ;;  %v2496_v41 = vsel %vm2402_vm9, %v2495_v33, %v2494_v27  ;;  %v2535_v14 = vrot.slane %v2351_v37, 3 }
 0x298   : > { %v2275_v10 = vmax.f32 %v2273_v53, %v2274_v63 }
 0x299   : > { %v2067_v6 = vrot.slane %v2066_v0, 2  ;;  %v2536_v56 = vsel %vm2399_vm8, %v2535_v14, %v2534_v55 }
 0x29a   : > { %v2276_v60 = vrot.slane %v2275_v10, 1 }
 0x29b   : > { %v2068_v5 = vmax.f32 %v2066_v0, %v2067_v6 }
 0x29c   : > { %v2277_v34 = vmax.f32 %v2275_v10, %v2276_v60 }
 0x29d   : > { %v2069_v12 = vrot.slane %v2068_v5, 1 }
 0x29e   : > { %v1996_v17 = vpop.f32.mrf.mxu3  ;;  %v2320_v43 = vadd.f32 %v3479_v4, %v2277_v34 }
 0x29f   : > { %v2070_v19 = vmax.f32 %v2068_v5, %v2069_v12  ;;  %v2279_v9 = vsel %vm840_vm3, %v1996_v17, -inf }
 0x2a0   : > { %v2280_v23 = vmax.f32 %v2278_v21, %v2279_v9  ;;  %v2352_v46 = vmax.f32 %v2320_v43, 0.0 }
 0x2a1   : > { %v2297_v29 = vadd.f32 %v3479_v4, %v2070_v19 }
 0x2a2   : > { %v2281_v47 = vrot.slane %v2280_v23, 4  ;;  %v2537_v53 = vrot.slane %v2352_v46, 2 }
 0x2a3   : > { %v2329_v35 = vmax.f32 %v2297_v29, 0.0 }
 0x2a4   : > { %v2282_v36 = vmax.f32 %v2280_v23, %v2281_v47  ;;  %v2538_v59 = vsel %vm2402_vm9, %v2537_v53, %v2536_v56 }
 0x2a5   : > { %v2497_v38 = vrot.slane %v2329_v35, 1 }
 0x2a6   : > { %v2283_v40 = vrot.slane %v2282_v36, 2 }
 0x2a7   : > { %v2498_v42 = vsel %vm2405_vm10, %v2497_v38, %v2496_v41  ;;  %v2546_v63 = vpop.permute.xlu1 %2545 }
 0x2a8   : > { %v2284_v44 = vmax.f32 %v2282_v36, %v2283_v40  ;;  %2541 = vrot.lane.b32.xlu0 %v2498_v42, %s3020_s11  ;;  %v2555_v0 = vsel %vm840_vm3, %v3490_v20, %v2546_v63 }
 0x2a9   : > { %v2560_v6 = vsel %vm2557_vm11, %v2555_v0, 0.0 }
 0x2aa   : > { %v2285_v50 = vrot.slane %v2284_v44, 1  ;;  %2564 = vst [vmem:[%s383_s18 + $0x10] sm:$0xff] %v2560_v6 }
 0x2ac   : > { %v2286_v48 = vmax.f32 %v2284_v44, %v2285_v50 }
 0x2ae   : > { %v2321_v52 = vadd.f32 %v3479_v4, %v2286_v48 }
 0x2b0   : > { %2543 = vrot.lane.b32.xlu0 %v3430_v49, %s3020_s11  ;;  %v2353_v54 = vmax.f32 %v2321_v52, 0.0 }
 0x2b2   : > { %v2539_v57 = vrot.slane %v2353_v54, 1 }
 0x2b4   : > { %v2540_v62 = vsel %vm2405_vm10, %v2539_v57, %v2538_v59 }
 0x2b5   : > { %2547 = vrot.lane.b32.xlu1 %v2540_v62, %s3020_s11 }
 0x31a   : > { %v2542_v49 = vpop.permute.xlu0 %2541 }
 0x31b   : > { %v2553_v4 = vsel %vm840_vm3, %v3335_v24, %v2542_v49 }
 0x31c   : > { %v2558_v30 = vsel %vm2557_vm11, %v2553_v4, 0.0 }
 0x31d   : > { %2562 = vst [vmem:[%s383_s18] sm:$0xff] %v2558_v30 }
 0x322   : > { %v2544_v58 = vpop.permute.xlu0 %2543 }
 0x323   : > { %v2554_v2 = vsel %vm840_vm3, %v3414_v61, %v2544_v58 }
 0x324   : > { %v2559_v3 = vsel %vm2557_vm11, %v2554_v2, 0.0 }
 0x325   : > { %2563 = vst [vmem:[%s383_s18 + $0x8] sm:$0xff] %v2559_v3 }
 0x327   : > { %v2548_v7 = vpop.permute.xlu1 %2547 }
 0x328   : > { %v2556_v8 = vsel %vm840_vm3, %v3548_v39, %v2548_v7 }
 0x329   : > { %v2561_v10 = vsel %vm2557_vm11, %v2556_v8, 0.0 }
 0x32a   : > { %2565 = vst [vmem:[%s383_s18 + $0x18] sm:$0xff] %v2561_v10 }
 0x32b PF: > { %s20_s13 = sadd.s32 1, %s3018_s13  }
 0x32c   : > { %p17_p6 = scmp.ge.s32.totalorder %s20_s13, 4  }
 0x32e   :  { %19 = sbr.rel (!%p17_p6) target bundleno = 1 (0x1), region = 93 }

// kernel: pointnetpp_forward.5
= control target key start
LH: loop header
LB: loop body
LE: loop exit
PB: predicated region body
PF: predicated region fallthrough
CT: control target
= control target key end

     0   :  { %s1419_s13 = smov 0   ;;  %s1581_s0 = inlined_call_operand.vmem [shape: bf16[128,67], index: 0, kind: input, shape index: {}]   ;;  %s1582_s1 = inlined_call_operand.vmem [shape: bf16[67,64], index: 1, kind: input, shape index: {}]   ;;  %s1583_s2 = inlined_call_operand.vmem [shape: f32[1,64], index: 2, kind: input, shape index: {}]   ;;  %s1584_s3 = inlined_call_operand.vmem [shape: bf16[64,128], index: 3, kind: input, shape index: {}]   ;;  %s1585_s4 = inlined_call_operand.vmem [shape: f32[1,128], index: 4, kind: input, shape index: {}]   ;;  %s1586_s5 = inlined_call_operand.vmem [shape: bf16[256,67], index: 5, kind: input, shape index: {}]   ;;  %s1587_s6 = inlined_call_operand.vmem [shape: bf16[67,64], index: 6, kind: input, shape index: {}]   ;;  %s1588_s7 = inlined_call_operand.vmem [shape: f32[1,64], index: 7, kind: input, shape index: {}]   ;;  %s1589_s8 = inlined_call_operand.vmem [shape: bf16[64,128], index: 8, kind: input, shape index: {}]   ;;  %s1590_s9 = inlined_call_operand.vmem [shape: f32[1,128], index: 9, kind: input, shape index: {}]   ;;  %s1591_s10 = inlined_call_operand.vmem [shape: f32[16,256], index: 10, kind: output, shape index: {}]  }
   0x1 LB: > { %s1425_s14 = sadd.s32 4294967295, %s1361_s13   ;;  %p1159_p0 = scmp.ge.s32.totalorder %s1361_s13, 1  ;;  %s1361_s13 = sphi %s1419_s13, %s20_s13  }
   0x2   : > { %p324_p1 = scmp.lt.s32.totalorder %s1361_s13, 3 }
   0x4   : > { %p325_p2 = pnand %p1159_p0, %p324_p1 }
   0x5   : > { %s1160_s17 = sshll.u32 (!%p325_p2), %s1425_s14, 3  ;;  %s1162_s12 = sshll.u32 (!%p325_p2), %s1425_s14, 4 }
   0x6   : > { %328 = sbr.rel (%p325_p2) target bundleno = 655 (0x28f), region = 60  ;;  %p368_p3 = scmp.lt.s32.totalorder (!%p325_p2), %s1160_s17, 15 }
   0x7   : > { %p374_p4 = scmp.lt.s32.totalorder (!%p325_p2), %s1162_s12, 31  ;;  %p379_p5 = scmp.lt.s32.totalorder (!%p325_p2), %s1425_s14, 1 }
   0xb   : > { %v401_v0 = vld [vmem:[%s1582_s1 + $0x20] sm:$0x3]  ;;  %vm466_vm0 = vcmask 1040384   ;;  %vm467_vm1 = vcmask 1041408   ;;  %v1363_v2 = vmov 65535   ;;  %v1312_v7 = vld [vmem:[%s1582_s1 + $0x18] sm:$0xff] }
   0xc   : > { %v443_v1 = vunpack.c.l.b16 %v401_v0  ;;  %v468_v3 = vsel %vm466_vm0, 4294967295, %v1363_v2  ;;  %v1311_v8 = vld [vmem:[%s1582_s1 + $0x10] sm:$0xff]  ;;  %s1593_s17 = smov (!%p368_p3, %s1160_s17), 15  ;;  %v1310_v9 = vld [vmem:[%s1582_s1 + $0x8] sm:$0xff]  ;;  %v1309_v10 = vld [vmem:[%s1582_s1] sm:$0xff]  ;;  %vm453_vm2 = vcmask 547840  }
   0xd   : > { %v469_v4 = vsel %vm467_vm1, %v468_v3, 0  ;;  %s1161_s24 = sshll.u32 %s1593_s17, 2  ;;  %v1316_v15 = vld [vmem:[%s1584_s3 + $0x18] sm:$0xff]  ;;  %v1315_v16 = vld [vmem:[%s1584_s3 + $0x10] sm:$0xff]  ;;  %v1314_v17 = vld [vmem:[%s1584_s3 + $0x8] sm:$0xff]  ;;  %vm547_vm3 = vcmask 523264  }
   0xe   : > { %v448_v5 = vpack.c.b16 %v443_v1, %v443_v1  ;;  %s371_s29 = scalar_lea.vmem %s1581_s0, %s1161_s24  ;;  %564 = vmatpush.bf16.msra.mxu1 %v1316_v15  ;;  %v1313_v18 = vld [vmem:[%s1584_s3] sm:$0xff]  ;;  %v1328_v23 = vld [vmem:[%s1587_s6 + $0x18] sm:$0xff]  ;;  %v1327_v32 = vld [vmem:[%s1587_s6 + $0x10] sm:$0xff]  ;;  %s1595_s12 = smov (!%p374_p4, %s1162_s12), 31  ;;  %vm665_vm4 = vcmask 1041409   ;;  %vm668_vm5 = vcmask 1042434  }
   0xf   : > { %v1305_v11 = vld [vmem:[%s371_s29] sm:$0xff]  ;;  %v1306_v12 = vld [vmem:[%s371_s29 + $0x8] sm:$0xff]  ;;  %v1307_v13 = vld [vmem:[%s371_s29 + $0x10] sm:$0xff]  ;;  %s1163_s15 = sshll.u32 %s1595_s12, 2  ;;  %s1597_s14 = smov (!%p379_p5, %s1425_s14), 1  ;;  %vm671_vm6 = vcmask 1043459  }
  0x10   : > { %v471_v6 = vand.u32 %v469_v4, %v448_v5  ;;  %v1308_v14 = vld [vmem:[%s371_s29 + $0x18] sm:$0xff]  ;;  %v711_v19 = vld [vmem:[%s1587_s6 + $0x20] sm:$0x3]  ;;  %v1326_v34 = vld [vmem:[%s1587_s6 + $0x8] sm:$0xff]  ;;  %s377_s18 = scalar_lea.vmem %s1586_s5, %s1163_s15  ;;  %vm674_vm7 = vcmask 1044484   ;;  %vm677_vm8 = vcmask 1045509  }
  0x11   : > { %v773_v20 = vunpack.c.l.b16 %v711_v19  ;;  %v1351_v25 = vld [vmem:[%s1583_s2] ss:$0 sm:$0xff]  ;;  %v1319_v56 = vld [vmem:[%s377_s18 + $0x10] sm:$0xff]  ;;  %v1320_v58 = vld [vmem:[%s377_s18 + $0x18] sm:$0xff]  ;;  %s1304_s11 = sshll.u32 %s1597_s14, 4  ;;  %vm680_vm9 = vcmask 1046534  }
  0x12   : > { %476 = vmatpush.bf16.msra.mxu0 %v471_v6  ;;  %565 = vmatpush.bf16.msra.mxu1 %v1315_v16  ;;  %v1325_v41 = vld [vmem:[%s1587_s6] sm:$0xff]  ;;  %v1318_v59 = vld [vmem:[%s377_s18 + $0x8] sm:$0xff]  ;;  %v1323_v62 = vld [vmem:[%s377_s18 + $0x30] sm:$0xff]  ;;  %vm683_vm10 = vcmask 1047559   ;;  %s1529_s16 = scalar_lea.vmem %s1591_s10, %s1304_s11 }
  0x13   : > { %v778_v21 = vpack.c.b16 %v773_v20, %v773_v20  ;;  %v1317_v57 = vld [vmem:[%s377_s18] sm:$0xff]  ;;  %v1322_v61 = vld [vmem:[%s377_s18 + $0x28] sm:$0xff]  ;;  %v1324_v0 = vld [vmem:[%s377_s18 + $0x38] sm:$0xff] }
  0x14   : > { %v1321_v60 = vld [vmem:[%s377_s18 + $0x20] sm:$0xff] }
  0x15   : > { %v808_v22 = vand.u32 %v778_v21, %v469_v4  ;;  %v1332_v4 = vld [vmem:[%s1589_s8 + $0x18] sm:$0xff]  ;;  %v1329_v21 = vld [vmem:[%s1589_s8] sm:$0xff] }
  0x16   : > { %477 = vmatpush.bf16.msra.mxu0 %v1312_v7  ;;  %566 = vmatpush.bf16.msra.mxu1 %v1314_v17 }
  0x17   : > { %1333 = vmatpush.bf16.msra.mxu2 %v808_v22  ;;  %1338 = vmatpush.bf16.msra.mxu3 %v1332_v4 }
  0x1a   : > { %478 = vmatpush.bf16.msra.mxu0 %v1311_v8  ;;  %567 = vmatpush.bf16.msra.mxu1 %v1313_v18  ;;  %v1331_v8 = vld [vmem:[%s1589_s8 + $0x10] sm:$0xff] }
  0x1b   : > { %1334 = vmatpush.bf16.msra.mxu2 %v1328_v23  ;;  %1339 = vmatpush.bf16.msra.mxu3 %v1331_v8 }
  0x1e   : > { %479 = vmatpush.bf16.msra.mxu0 %v1310_v9  ;;  %813 = vmatpush.bf16.msrb.mxu1 %v808_v22 }
  0x1f   : > { %1335 = vmatpush.bf16.msra.mxu2 %v1327_v32 }
  0x22   : > { %480 = vmatpush.bf16.msra.mxu0 %v1309_v10  ;;  %814 = vmatpush.bf16.msrb.mxu1 %v1328_v23 }
  0x23   : > { %1336 = vmatpush.bf16.msra.mxu2 %v1326_v34 }
  0x25   : > { %1198 = vmatmul.msk.bf16.vlgmr.msra.gmra.mxu0 %vm453_vm2, %v1305_v11 }
  0x26   : > { %815 = vmatpush.bf16.msrb.mxu1 %v1327_v32  ;;  %944 = vmatpush.bf16.msrb.mxu0 %v1332_v4 }
  0x27   : > { %1337 = vmatpush.bf16.msra.mxu2 %v1325_v41 }
  0x2a   : > { %816 = vmatpush.bf16.msrb.mxu1 %v1326_v34  ;;  %1272 = vmatmul.msk.bf16.vlgmr.msra.gmra.mxu2 %vm453_vm2, %v1319_v56 }
  0x2b   : > { %945 = vmatpush.bf16.msrb.mxu0 %v1331_v8 }
  0x2e   : > { %817 = vmatpush.bf16.msrb.mxu1 %v1325_v41 }
  0x35   : > { %1199 = vmatmul.msk.bf16.gmra.mxu0 %vm453_vm2, %v1306_v12 }
  0x3a   : > { %1273 = vmatmul.msk.bf16.gmra.mxu2 %vm453_vm2, %v1320_v58 }
  0x45   : > { %1200 = vmatmul.msk.bf16.gmra.mxu0 %vm453_vm2, %v1307_v13  ;;  %v1330_v13 = vld [vmem:[%s1589_s8 + $0x8] sm:$0xff] }
  0x46   : > { %946 = vmatpush.bf16.msrb.mxu0 %v1330_v13  ;;  %1340 = vmatpush.bf16.msra.mxu3 %v1330_v13 }
  0x4a   : > { %1274 = vmatmul.msk.bf16.gmra.mxu2 %vm453_vm2, %v1321_v60  ;;  %947 = vmatpush.bf16.msrb.mxu0 %v1329_v21 }
  0x4b   : > { %1341 = vmatpush.bf16.msra.mxu3 %v1329_v21 }
  0x55   : > { %1201 = vmatmul.msk.bf16.gmra.mxu0 %vm453_vm2, %v1308_v14 }
  0x5a   : > { %1275 = vmatmul.msk.bf16.gmra.mxu2 %vm453_vm2, %v1322_v61 }
  0x6a   : > { %1276 = vmatmul.msk.bf16.gmra.mxu2 %vm453_vm2, %v1323_v62 }
  0x7a   : > { %1277 = vmatmul.msk.bf16.gmra.mxu2 %vm453_vm2, %v1324_v0 }
  0xa2   : > { %v482_v24 = vpop.f32.mrf.mxu0 }
  0xa3   : > { %v483_v26 = vadd.f32 %v1351_v25, %v482_v24 }
  0xa5   : > { %v502_v29 = vmax.f32 %v483_v26, 0.0 }
  0xaa   : > { %v484_v27 = vpop.f32.mrf.mxu0 }
  0xab   : > { %v485_v28 = vadd.f32 %v1351_v25, %v484_v27 }
  0xad   : > { %v503_v30 = vmax.f32 %v485_v28, 0.0 }
  0xaf   : > { %v510_v31 = vpack.c.bf16 %v503_v30, %v502_v29 }
  0xb1   : > { %1218 = vmatmul.msk.bf16.vlgmr.msra.gmra.mxu1 %vm547_vm3, %v510_v31 }
  0xb2   : > { %v487_v33 = vpop.f32.mrf.mxu0 }
  0xb3   : > { %v488_v35 = vadd.f32 %v1351_v25, %v487_v33 }
  0xb5   : > { %v504_v38 = vmax.f32 %v488_v35, 0.0 }
  0xba   : > { %v489_v36 = vpop.f32.mrf.mxu0 }
  0xbb   : > { %v490_v37 = vadd.f32 %v1351_v25, %v489_v36 }
  0xbd   : > { %v505_v39 = vmax.f32 %v490_v37, 0.0 }
  0xbf   : > { %v511_v40 = vpack.c.bf16 %v505_v39, %v504_v38 }
  0xc1   : > { %1219 = vmatmul.msk.bf16.gmra.mxu1 %vm547_vm3, %v511_v40 }
  0xc2   : > { %v492_v42 = vpop.f32.mrf.mxu0 }
  0xc3   : > { %v493_v43 = vadd.f32 %v1351_v25, %v492_v42 }
  0xc5   : > { %v506_v46 = vmax.f32 %v493_v43, 0.0 }
  0xca   : > { %v494_v44 = vpop.f32.mrf.mxu0 }
  0xcb   : > { %v495_v45 = vadd.f32 %v1351_v25, %v494_v44 }
  0xcd   : > { %v507_v47 = vmax.f32 %v495_v45, 0.0 }
  0xcf   : > { %v512_v48 = vpack.c.bf16 %v507_v47, %v506_v46  ;;  %v1352_v46 = vld [vmem:[%s1585_s4] ss:$0 sm:$0xff] }
  0xd1   : > { %1220 = vmatmul.msk.bf16.gmra.mxu1 %vm547_vm3, %v512_v48 }
  0xd2   : > { %v497_v49 = vpop.f32.mrf.mxu0 }
  0xd3   : > { %v498_v50 = vadd.f32 %v1351_v25, %v497_v49 }
  0xd5   : > { %v508_v53 = vmax.f32 %v498_v50, 0.0 }
  0xda   : > { %v499_v51 = vpop.f32.mrf.mxu0 }
  0xdb   : > { %v500_v52 = vadd.f32 %v1351_v25, %v499_v51 }
  0xdd   : > { %v509_v54 = vmax.f32 %v500_v52, 0.0 }
  0xdf   : > { %v513_v55 = vpack.c.bf16 %v509_v54, %v508_v53 }
  0xe1   : > { %1221 = vmatmul.msk.bf16.gmra.mxu1 %vm547_vm3, %v513_v55 }
  0xf1   : > { %1270 = vmatmul.msk.bf16.vlgmr.msrb.gmra.mxu1 %vm453_vm2, %v1317_v57 }
 0x101   : > { %1271 = vmatmul.msk.bf16.gmra.mxu1 %vm453_vm2, %v1318_v59 }
 0x12e   : > { %v569_v63 = vpop.f32.mrf.mxu1 }
 0x12f   : > { %v589_v14 = vrot.slane %v569_v63, 4 }
 0x131   : > { %v590_v22 = vmax.f32 %v569_v63, %v589_v14 }
 0x133   : > { %v591_v29 = vrot.slane %v590_v22, 2 }
 0x135   : > { %v592_v37 = vmax.f32 %v590_v22, %v591_v29 }
 0x136   : > { %v571_v1 = vpop.f32.mrf.mxu1 }
 0x137   : > { %v595_v6 = vrot.slane %v571_v1, 4  ;;  %v593_v45 = vrot.slane %v592_v37, 1 }
 0x139   : > { %v596_v11 = vmax.f32 %v571_v1, %v595_v6  ;;  %v594_v56 = vmax.f32 %v592_v37, %v593_v45 }
 0x13b   : > { %v597_v18 = vrot.slane %v596_v11, 2 }
 0x13d   : > { %v598_v26 = vmax.f32 %v596_v11, %v597_v18 }
 0x13e   : > { %v574_v2 = vpop.f32.mrf.mxu1 }
 0x13f   : > { %v601_v7 = vrot.slane %v574_v2, 4  ;;  %v599_v33 = vrot.slane %v598_v26, 1 }
 0x141   : > { %v602_v12 = vmax.f32 %v574_v2, %v601_v7  ;;  %v600_v41 = vmax.f32 %v598_v26, %v599_v33  ;;  %v640_v2 = vadd.f32 %v1352_v46, %v594_v56 }
 0x143   : > { %v603_v20 = vrot.slane %v602_v12, 2  ;;  %v641_v51 = vadd.f32 %v1352_v46, %v600_v41 }
 0x145   : > { %v604_v28 = vmax.f32 %v602_v12, %v603_v20  ;;  %v649_v61 = vmax.f32 %v641_v51, 0.0  ;;  %v648_v12 = vmax.f32 %v640_v2, 0.0 }
 0x146   : > { %v576_v3 = vpop.f32.mrf.mxu1 }
 0x147   : > { %v607_v9 = vrot.slane %v576_v3, 4  ;;  %v605_v36 = vrot.slane %v604_v28, 1  ;;  %v664_v7 = vrot.slane %v649_v61, 7 }
 0x149   : > { %v608_v15 = vmax.f32 %v576_v3, %v607_v9  ;;  %v606_v44 = vmax.f32 %v604_v28, %v605_v36  ;;  %v666_v18 = vsel %vm665_vm4, %v664_v7, %v648_v12 }
 0x14b   : > { %v609_v23 = vrot.slane %v608_v15, 2  ;;  %v642_v55 = vadd.f32 %v1352_v46, %v606_v44 }
 0x14d   : > { %v610_v30 = vmax.f32 %v608_v15, %v609_v23  ;;  %v650_v0 = vmax.f32 %v642_v55, 0.0  ;;  %v1518_v15 = vld [vmem:[%s1588_s7] ss:$0 sm:$0xff] }
 0x14e   : > { %v579_v5 = vpop.f32.mrf.mxu1 }
 0x14f   : > { %v613_v10 = vrot.slane %v579_v5, 4  ;;  %v611_v38 = vrot.slane %v610_v30, 1 }
 0x151   : > { %v614_v16 = vmax.f32 %v579_v5, %v613_v10  ;;  %v612_v47 = vmax.f32 %v610_v30, %v611_v38  ;;  %v667_v10 = vrot.slane %v650_v0, 6 }
 0x153   : > { %v615_v25 = vrot.slane %v614_v16, 2  ;;  %v643_v57 = vadd.f32 %v1352_v46, %v612_v47  ;;  %v669_v21 = vsel %vm668_vm5, %v667_v10, %v666_v18 }
 0x155   : > { %v616_v31 = vmax.f32 %v614_v16, %v615_v25  ;;  %v651_v3 = vmax.f32 %v643_v57, 0.0 }
 0x156   : > { %v581_v17 = vpop.f32.mrf.mxu1 }
 0x157   : > { %v619_v19 = vrot.slane %v581_v17, 4  ;;  %v617_v40 = vrot.slane %v616_v31, 1  ;;  %v670_v13 = vrot.slane %v651_v3, 5 }
 0x159   : > { %v620_v24 = vmax.f32 %v581_v17, %v619_v19  ;;  %v618_v49 = vmax.f32 %v616_v31, %v617_v40  ;;  %v829_v17 = vpop.f32.mrf.mxu2  ;;  %v672_v23 = vsel %vm671_vm6, %v670_v13, %v669_v21 }
 0x15b   : > { %v621_v27 = vrot.slane %v620_v24, 2  ;;  %v644_v60 = vadd.f32 %v1352_v46, %v618_v49 }
 0x15d   : > { %v622_v34 = vmax.f32 %v620_v24, %v621_v27  ;;  %v652_v5 = vmax.f32 %v644_v60, 0.0 }
 0x15e   : > { %v584_v32 = vpop.f32.mrf.mxu1 }
 0x15f   : > { %v625_v35 = vrot.slane %v584_v32, 4  ;;  %v623_v42 = vrot.slane %v622_v34, 1  ;;  %v673_v16 = vrot.slane %v652_v5, 4 }
 0x161   : > { %v626_v39 = vmax.f32 %v584_v32, %v625_v35  ;;  %v624_v52 = vmax.f32 %v622_v34, %v623_v42  ;;  %v675_v26 = vsel %vm674_vm7, %v673_v16, %v672_v23  ;;  %v831_v36 = vpop.f32.mrf.mxu2 }
 0x162   : > { %v832_v47 = vadd.f32 %v1518_v15, %v831_v36 }
 0x163   : > { %v627_v43 = vrot.slane %v626_v39, 2  ;;  %v645_v62 = vadd.f32 %v1352_v46, %v624_v52 }
 0x164   : > { %v864_v49 = vmax.f32 %v832_v47, 0.0 }
 0x165   : > { %v628_v48 = vmax.f32 %v626_v39, %v627_v43  ;;  %v653_v8 = vmax.f32 %v645_v62, 0.0 }
 0x166   : > { %v586_v50 = vpop.f32.mrf.mxu1 }
 0x167   : > { %v629_v53 = vrot.slane %v628_v48, 1  ;;  %v631_v54 = vrot.slane %v586_v50, 4  ;;  %v676_v19 = vrot.slane %v653_v8, 3 }
 0x169   : > { %v630_v58 = vmax.f32 %v628_v48, %v629_v53  ;;  %v632_v59 = vmax.f32 %v586_v50, %v631_v54  ;;  %v678_v28 = vsel %vm677_vm8, %v676_v19, %v675_v26  ;;  %v834_v40 = vpop.f32.mrf.mxu2 }
 0x16a   : > { %v835_v52 = vadd.f32 %v1518_v15, %v834_v40 }
 0x16b   : > { %v633_v63 = vrot.slane %v632_v59, 2  ;;  %v646_v1 = vadd.f32 %v1352_v46, %v630_v58 }
 0x16c   : > { %v865_v55 = vmax.f32 %v835_v52, 0.0 }
 0x16d   : > { %v634_v4 = vmax.f32 %v632_v59, %v633_v63  ;;  %v654_v11 = vmax.f32 %v646_v1, 0.0 }
 0x16e   : > { %v819_v6 = vpop.f32.mrf.mxu1 }
 0x16f   : > { %v635_v9 = vrot.slane %v634_v4, 1  ;;  %v679_v22 = vrot.slane %v654_v11, 2  ;;  %v820_v25 = vadd.f32 %v1518_v15, %v819_v6 }
 0x171   : > { %v636_v14 = vmax.f32 %v634_v4, %v635_v9  ;;  %v681_v31 = vsel %vm680_vm9, %v679_v22, %v678_v28  ;;  %v859_v33 = vmax.f32 %v820_v25, 0.0  ;;  %v836_v45 = vpop.f32.mrf.mxu2 }
 0x172   : > { %v837_v53 = vadd.f32 %v1518_v15, %v836_v45 }
 0x173   : > { %v647_v20 = vadd.f32 %v1352_v46, %v636_v14  ;;  %v830_v46 = vadd.f32 %v1518_v15, %v829_v17 }
 0x174   : > { %v866_v56 = vmax.f32 %v837_v53, 0.0 }
 0x175   : > { %v655_v24 = vmax.f32 %v647_v20, 0.0  ;;  %v863_v48 = vmax.f32 %v830_v46, 0.0 }
 0x176   : > { %v821_v27 = vpop.f32.mrf.mxu1  ;;  %v878_v57 = vpack.c.bf16 %v866_v56, %v865_v55 }
 0x177   : > { %v682_v29 = vrot.slane %v655_v24, 1  ;;  %v822_v30 = vadd.f32 %v1518_v15, %v821_v27  ;;  %v877_v51 = vpack.c.bf16 %v864_v49, %v863_v48 }
 0x179   : > { %v684_v32 = vsel %vm683_vm10, %v682_v29, %v681_v31  ;;  %v860_v34 = vmax.f32 %v822_v30, 0.0  ;;  %v839_v50 = vpop.f32.mrf.mxu2 }
 0x17a   : > { %686 = vst [vmem:[%s1529_s16] sm:$0xff] %v684_v32  ;;  %v840_v59 = vadd.f32 %v1518_v15, %v839_v50 }
 0x17b   : > { %v875_v35 = vpack.c.bf16 %v860_v34, %v859_v33 }
 0x17c   : > { %v867_v61 = vmax.f32 %v840_v59, 0.0 }
 0x17d   : > { %1294 = vmatmul.msk.bf16.vlgmr.msrb.gmra.mxu0 %vm547_vm3, %v875_v35 }
 0x17e   : > { %v824_v37 = vpop.f32.mrf.mxu1 }
 0x17f   : > { %v825_v38 = vadd.f32 %v1518_v15, %v824_v37 }
 0x181   : > { %v861_v42 = vmax.f32 %v825_v38, 0.0  ;;  %v841_v54 = vpop.f32.mrf.mxu2 }
 0x182   : > { %v842_v60 = vadd.f32 %v1518_v15, %v841_v54 }
 0x184   : > { %v868_v62 = vmax.f32 %v842_v60, 0.0 }
 0x186   : > { %v826_v39 = vpop.f32.mrf.mxu1  ;;  %v879_v0 = vpack.c.bf16 %v868_v62, %v867_v61 }
 0x187   : > { %v827_v41 = vadd.f32 %v1518_v15, %v826_v39 }
 0x189   : > { %v862_v43 = vmax.f32 %v827_v41, 0.0  ;;  %v844_v58 = vpop.f32.mrf.mxu2 }
 0x18a   : > { %v845_v2 = vadd.f32 %v1518_v15, %v844_v58 }
 0x18b   : > { %v876_v44 = vpack.c.bf16 %v862_v43, %v861_v42  ;;  %v1560_v42 = vld [vmem:[%s1590_s9] ss:$0 sm:$0xff] }
 0x18c   : > { %v869_v4 = vmax.f32 %v845_v2, 0.0 }
 0x18d   : > { %1295 = vmatmul.msk.bf16.vlgmr.msra.gmra.mxu3 %vm547_vm3, %v876_v44 }
 0x191   : > { %v846_v63 = vpop.f32.mrf.mxu2 }
 0x192   : > { %v847_v3 = vadd.f32 %v1518_v15, %v846_v63 }
 0x194   : > { %v870_v5 = vmax.f32 %v847_v3, 0.0 }
 0x196   : > { %v880_v6 = vpack.c.bf16 %v870_v5, %v869_v4 }
 0x199   : > { %v849_v1 = vpop.f32.mrf.mxu2 }
 0x19a   : > { %v850_v8 = vadd.f32 %v1518_v15, %v849_v1 }
 0x19c   : > { %v871_v11 = vmax.f32 %v850_v8, 0.0 }
 0x19d   : > { %1296 = vmatmul.msk.bf16.gmra.mxu3 %vm547_vm3, %v877_v51 }
 0x1a1   : > { %v851_v7 = vpop.f32.mrf.mxu2 }
 0x1a2   : > { %v852_v9 = vadd.f32 %v1518_v15, %v851_v7 }
 0x1a4   : > { %v872_v12 = vmax.f32 %v852_v9, 0.0 }
 0x1a6   : > { %v881_v13 = vpack.c.bf16 %v872_v12, %v871_v11 }
 0x1a9   : > { %v854_v10 = vpop.f32.mrf.mxu2 }
 0x1aa   : > { %v855_v16 = vadd.f32 %v1518_v15, %v854_v10 }
 0x1ac   : > { %v873_v18 = vmax.f32 %v855_v16, 0.0 }
 0x1ad   : > { %1297 = vmatmul.msk.bf16.gmra.mxu3 %vm547_vm3, %v878_v57 }
 0x1b1   : > { %v856_v14 = vpop.f32.mrf.mxu2 }
 0x1b2   : > { %v857_v17 = vadd.f32 %v1518_v15, %v856_v14 }
 0x1b4   : > { %v874_v19 = vmax.f32 %v857_v17, 0.0 }
 0x1b6   : > { %v882_v20 = vpack.c.bf16 %v874_v19, %v873_v18 }
 0x1bd   : > { %1298 = vmatmul.msk.bf16.gmra.mxu3 %vm547_vm3, %v879_v0 }
 0x1cd   : > { %1299 = vmatmul.msk.bf16.gmra.mxu3 %vm547_vm3, %v880_v6 }
 0x1dd   : > { %1300 = vmatmul.msk.bf16.gmra.mxu3 %vm547_vm3, %v881_v13 }
 0x1ed   : > { %1301 = vmatmul.msk.bf16.gmra.mxu3 %vm547_vm3, %v882_v20 }
 0x1fa   : > { %v949_v21 = vpop.f32.mrf.mxu0 }
 0x202   : > { %v951_v23 = vpop.f32.mrf.mxu0 }
 0x203   : > { %v989_v26 = vmax.f32 %v949_v21, %v951_v23 }
 0x205   : > { %v990_v29 = vrot.slane %v989_v26, 4 }
 0x207   : > { %v991_v32 = vmax.f32 %v989_v26, %v990_v29 }
 0x209   : > { %v992_v34 = vrot.slane %v991_v32, 2 }
 0x20b   : > { %v993_v37 = vmax.f32 %v991_v32, %v992_v34 }
 0x20d   : > { %v994_v41 = vrot.slane %v993_v37, 1 }
 0x20f   : > { %v995_v47 = vmax.f32 %v993_v37, %v994_v41 }
 0x210   : > { %v954_v22 = vpop.f32.mrf.mxu3 }
 0x211   : > { %v1048_v51 = vadd.f32 %v1560_v42, %v995_v47 }
 0x213   : > { %v1056_v57 = vmax.f32 %v1048_v51, 0.0 }
 0x218   : > { %v956_v24 = vpop.f32.mrf.mxu3 }
 0x219   : > { %v996_v25 = vmax.f32 %v954_v22, %v956_v24 }
 0x21b   : > { %v997_v27 = vrot.slane %v996_v25, 4 }
 0x21d   : > { %v998_v28 = vmax.f32 %v996_v25, %v997_v27 }
 0x21f   : > { %v999_v30 = vrot.slane %v998_v28, 2 }
 0x220   : > { %v959_v31 = vpop.f32.mrf.mxu3 }
 0x221   : > { %v1000_v33 = vmax.f32 %v998_v28, %v999_v30 }
 0x223   : > { %v1001_v15 = vrot.slane %v1000_v33, 1 }
 0x225   : > { %v1002_v39 = vmax.f32 %v1000_v33, %v1001_v15 }
 0x227   : > { %v1049_v44 = vadd.f32 %v1560_v42, %v1002_v39 }
 0x228   : > { %v961_v35 = vpop.f32.mrf.mxu3 }
 0x229   : > { %v1003_v36 = vmax.f32 %v959_v31, %v961_v35  ;;  %v1057_v49 = vmax.f32 %v1049_v44, 0.0 }
 0x22b   : > { %v1004_v38 = vrot.slane %v1003_v36, 4  ;;  %v1072_v53 = vrot.slane %v1057_v49, 7 }
 0x22d   : > { %v1005_v40 = vmax.f32 %v1003_v36, %v1004_v38  ;;  %v1073_v60 = vsel %vm665_vm4, %v1072_v53, %v1056_v57 }
 0x22f   : > { %v1006_v43 = vrot.slane %v1005_v40, 2 }
 0x230   : > { %v964_v45 = vpop.f32.mrf.mxu3 }
 0x231   : > { %v1007_v46 = vmax.f32 %v1005_v40, %v1006_v43 }
 0x233   : > { %v1008_v48 = vrot.slane %v1007_v46, 1 }
 0x235   : > { %v1009_v50 = vmax.f32 %v1007_v46, %v1008_v48 }
 0x237   : > { %v1050_v52 = vadd.f32 %v1560_v42, %v1009_v50 }
 0x238   : > { %v966_v54 = vpop.f32.mrf.mxu3 }
 0x239   : > { %v1058_v55 = vmax.f32 %v1050_v52, 0.0  ;;  %v1010_v56 = vmax.f32 %v964_v45, %v966_v54 }
 0x23b   : > { %v1074_v58 = vrot.slane %v1058_v55, 6  ;;  %v1011_v59 = vrot.slane %v1010_v56, 4 }
 0x23d   : > { %v1075_v61 = vsel %vm668_vm5, %v1074_v58, %v1073_v60  ;;  %v1012_v62 = vmax.f32 %v1010_v56, %v1011_v59 }
 0x23f   : > { %v1013_v63 = vrot.slane %v1012_v62, 2 }
 0x240   : > { %v969_v0 = vpop.f32.mrf.mxu3 }
 0x241   : > { %v1014_v1 = vmax.f32 %v1012_v62, %v1013_v63 }
 0x243   : > { %v1015_v2 = vrot.slane %v1014_v1, 1 }
 0x245   : > { %v1016_v3 = vmax.f32 %v1014_v1, %v1015_v2 }
 0x247   : > { %v1051_v4 = vadd.f32 %v1560_v42, %v1016_v3 }
 0x248   : > { %v971_v5 = vpop.f32.mrf.mxu3 }
 0x249   : > { %v1059_v6 = vmax.f32 %v1051_v4, 0.0  ;;  %v1017_v12 = vmax.f32 %v969_v0, %v971_v5 }
 0x24b   : > { %v1076_v7 = vrot.slane %v1059_v6, 5  ;;  %v1018_v14 = vrot.slane %v1017_v12, 4 }
 0x24d   : > { %v1077_v8 = vsel %vm671_vm6, %v1076_v7, %v1075_v61  ;;  %v1019_v19 = vmax.f32 %v1017_v12, %v1018_v14 }
 0x24f   : > { %v1020_v23 = vrot.slane %v1019_v19, 2 }
 0x250   : > { %v974_v9 = vpop.f32.mrf.mxu3 }
 0x251   : > { %v1021_v27 = vmax.f32 %v1019_v19, %v1020_v23 }
 0x253   : > { %v1022_v30 = vrot.slane %v1021_v27, 1 }
 0x255   : > { %v1023_v15 = vmax.f32 %v1021_v27, %v1022_v30 }
 0x257   : > { %v1052_v39 = vadd.f32 %v1560_v42, %v1023_v15 }
 0x258   : > { %v976_v10 = vpop.f32.mrf.mxu3 }
 0x259   : > { %v1024_v13 = vmax.f32 %v974_v9, %v976_v10  ;;  %v1060_v45 = vmax.f32 %v1052_v39, 0.0 }
 0x25b   : > { %v1025_v16 = vrot.slane %v1024_v13, 4  ;;  %v1078_v50 = vrot.slane %v1060_v45, 4 }
 0x25d   : > { %v1026_v20 = vmax.f32 %v1024_v13, %v1025_v16  ;;  %v1079_v55 = vsel %vm674_vm7, %v1078_v50, %v1077_v8 }
 0x25f   : > { %v1027_v24 = vrot.slane %v1026_v20, 2 }
 0x260   : > { %v979_v11 = vpop.f32.mrf.mxu3 }
 0x261   : > { %v1028_v28 = vmax.f32 %v1026_v20, %v1027_v24 }
 0x263   : > { %v1029_v31 = vrot.slane %v1028_v28, 1 }
 0x265   : > { %v1030_v35 = vmax.f32 %v1028_v28, %v1029_v31 }
 0x267   : > { %v1053_v40 = vadd.f32 %v1560_v42, %v1030_v35 }
 0x268   : > { %v981_v17 = vpop.f32.mrf.mxu3 }
 0x269   : > { %v1031_v18 = vmax.f32 %v979_v11, %v981_v17  ;;  %v1061_v46 = vmax.f32 %v1053_v40, 0.0 }
 0x26b   : > { %v1032_v21 = vrot.slane %v1031_v18, 4  ;;  %v1080_v51 = vrot.slane %v1061_v46, 3 }
 0x26d   : > { %v1033_v22 = vmax.f32 %v1031_v18, %v1032_v21  ;;  %v1081_v56 = vsel %vm677_vm8, %v1080_v51, %v1079_v55 }
 0x26f   : > { %v1034_v25 = vrot.slane %v1033_v22, 2 }
 0x270   : > { %v984_v26 = vpop.f32.mrf.mxu3 }
 0x271   : > { %v1035_v29 = vmax.f32 %v1033_v22, %v1034_v25 }
 0x273   : > { %v1036_v32 = vrot.slane %v1035_v29, 1 }
 0x275   : > { %v1037_v37 = vmax.f32 %v1035_v29, %v1036_v32 }
 0x277   : > { %v1054_v43 = vadd.f32 %v1560_v42, %v1037_v37 }
 0x278   : > { %v986_v33 = vpop.f32.mrf.mxu3 }
 0x279   : > { %v1038_v34 = vmax.f32 %v984_v26, %v986_v33  ;;  %v1062_v48 = vmax.f32 %v1054_v43, 0.0 }
 0x27b   : > { %v1039_v36 = vrot.slane %v1038_v34, 4  ;;  %v1082_v53 = vrot.slane %v1062_v48, 2 }
 0x27d   : > { %v1040_v38 = vmax.f32 %v1038_v34, %v1039_v36  ;;  %v1083_v58 = vsel %vm680_vm9, %v1082_v53, %v1081_v56 }
 0x27f   : > { %v1041_v41 = vrot.slane %v1040_v38, 2 }
 0x281   : > { %v1042_v44 = vmax.f32 %v1040_v38, %v1041_v41 }
 0x283   : > { %v1043_v47 = vrot.slane %v1042_v44, 1 }
 0x285   : > { %v1044_v49 = vmax.f32 %v1042_v44, %v1043_v47 }
 0x287   : > { %v1055_v52 = vadd.f32 %v1560_v42, %v1044_v49 }
 0x289   : > { %v1063_v54 = vmax.f32 %v1055_v52, 0.0 }
 0x28b   : > { %v1084_v57 = vrot.slane %v1063_v54, 1 }
 0x28d   : > { %v1085_v59 = vsel %vm683_vm10, %v1084_v57, %v1083_v58 }
 0x28e   : > { %1087 = vst [vmem:[%s1529_s16 + $0x8] sm:$0xff] %v1085_v59 }
 0x28f PF: > { %s20_s13 = sadd.s32 1, %s1361_s13  }
 0x290   : > { %p17_p6 = scmp.ge.s32.totalorder %s20_s13, 4  }
 0x292   :  { %19 = sbr.rel (!%p17_p6) target bundleno = 1 (0x1), region = 93 }

// kernel: pointnetpp_forward.6
= control target key start
LH: loop header
LB: loop body
LE: loop exit
PB: predicated region body
PF: predicated region fallthrough
CT: control target
= control target key end

     0   :  { %vm263_vm0 = vcmask 1040384   ;;  %vm264_vm1 = vcmask 1041408   ;;  %v2890_v13 = vmov 65535   ;;  %vm259_vm2 = vcmask 23552   ;;  %s4281_s1 = inlined_call_operand.vmem [shape: bf16[259,256], index: 1, kind: input, shape index: {}]   ;;  %s4282_s0 = inlined_call_operand.vmem [shape: bf16[16,259], index: 0, kind: input, shape index: {}]   ;;  %s4283_s3 = inlined_call_operand.vmem [shape: bf16[256,512], index: 3, kind: input, shape index: {}]   ;;  %s4284_s2 = inlined_call_operand.vmem [shape: f32[1,256], index: 2, kind: input, shape index: {}]   ;;  %s4285_s6 = inlined_call_operand.vmem [shape: bf16[259,256], index: 6, kind: input, shape index: {}]   ;;  %s4286_s5 = inlined_call_operand.vmem [shape: bf16[16,259], index: 5, kind: input, shape index: {}]   ;;  %s4287_s8 = inlined_call_operand.vmem [shape: bf16[256,512], index: 8, kind: input, shape index: {}]   ;;  %s4288_s4 = inlined_call_operand.vmem [shape: f32[1,512], index: 4, kind: input, shape index: {}]   ;;  %s4289_s7 = inlined_call_operand.vmem [shape: f32[1,256], index: 7, kind: input, shape index: {}]   ;;  %s4290_s10 = inlined_call_operand.vmem [shape: f32[2,1024], index: 10, kind: output, shape index: {}]   ;;  %s4291_s9 = inlined_call_operand.vmem [shape: f32[1,512], index: 9, kind: input, shape index: {}]  }
   0x1   :  { %v1965_v0 = vld [vmem:[%s4281_s1 + $0x70] sm:$0xf]  ;;  %v2709_v1 = vld [vmem:[%s4281_s1 + $0x74] sm:$0xf0]  ;;  %v1957_v5 = vld [vmem:[%s4281_s1 + $0x60] sm:$0xf] }
   0x2   :  { %v2029_v2 = vld [vmem:[%s4281_s1 + $0xf0] sm:$0xf]  ;;  %v1966_v3 = vor.u32 %v2709_v1, %v1965_v0  ;;  %v2725_v4 = vld [vmem:[%s4281_s1 + $0xf4] sm:$0xf0]  ;;  %v2707_v6 = vld [vmem:[%s4281_s1 + $0x64] sm:$0xf0] }
   0x3   :  { %v2030_v7 = vor.u32 %v2725_v4, %v2029_v2  ;;  %v2021_v8 = vld [vmem:[%s4281_s1 + $0xe0] sm:$0xf]  ;;  %v2723_v9 = vld [vmem:[%s4281_s1 + $0xe4] sm:$0xf0]  ;;  %v1958_v11 = vor.u32 %v2707_v6, %v1957_v5  ;;  %v265_v14 = vsel %vm263_vm0, 4294967295, %v2890_v13  ;;  %vm948_vm3 = vcmask 1045508  }
   0x4   :  { %v2973_v10 = vld [vmem:[%s4281_s1 + $0x100] sm:$0x33]  ;;  %273 = vmatpush.bf16.msra.mxu0 %v1966_v3  ;;  %v2724_v15 = vld [vmem:[%s4281_s1 + $0xf4] sm:$0xf]  ;;  %v2031_v16 = vld [vmem:[%s4281_s1 + $0xf8] sm:$0xf0]  ;;  %v2022_v17 = vor.u32 %v2723_v9, %v2021_v8 }
   0x5   :  { %v191_v12 = vunpack.c.l.b16 %v2973_v10  ;;  %287 = vmatpush.bf16.msra.mxu1 %v2030_v7  ;;  %v2984_v18 = vsel %vm264_vm1, %v265_v14, 0  ;;  %v2034_v19 = vor.u32 %v2724_v15, %v2031_v16  ;;  %v2708_v20 = vld [vmem:[%s4281_s1 + $0x74] sm:$0xf]  ;;  %v1967_v21 = vld [vmem:[%s4281_s1 + $0x78] sm:$0xf0]  ;;  %v192_v16 = vunpack.c.h.b16 %v2973_v10 }
   0x6   :  { %v1949_v23 = vld [vmem:[%s4281_s1 + $0x50] sm:$0xf]  ;;  %v2705_v24 = vld [vmem:[%s4281_s1 + $0x54] sm:$0xf0]  ;;  %v1970_v26 = vor.u32 %v2708_v20, %v1967_v21  ;;  %v2722_v28 = vld [vmem:[%s4281_s1 + $0xe4] sm:$0xf] }
   0x7   :  { %v225_v22 = vpack.c.b16 %v191_v12, %v191_v12  ;;  %v2013_v25 = vld [vmem:[%s4281_s1 + $0xd0] sm:$0xf]  ;;  %329 = vmatpush.bf16.msra.mxu2 %v2034_v19  ;;  %v2721_v27 = vld [vmem:[%s4281_s1 + $0xd4] sm:$0xf0]  ;;  %v2023_v29 = vld [vmem:[%s4281_s1 + $0xe8] sm:$0xf0]  ;;  %v1950_v31 = vor.u32 %v2705_v24, %v1949_v23 }
   0x8   :  { %274 = vmatpush.bf16.msra.mxu0 %v1958_v11  ;;  %v2026_v32 = vor.u32 %v2722_v28, %v2023_v29  ;;  %v2706_v33 = vld [vmem:[%s4281_s1 + $0x64] sm:$0xf]  ;;  %v1959_v34 = vld [vmem:[%s4281_s1 + $0x68] sm:$0xf0]  ;;  %v2014_v35 = vor.u32 %v2721_v27, %v2013_v25  ;;  %v1941_v36 = vld [vmem:[%s4281_s1 + $0x40] sm:$0xf] }
   0x9   :  { %v268_v30 = vand.u32 %v2984_v18, %v225_v22  ;;  %288 = vmatpush.bf16.msra.mxu1 %v2022_v17  ;;  %v2703_v37 = vld [vmem:[%s4281_s1 + $0x44] sm:$0xf0]  ;;  %v2005_v38 = vld [vmem:[%s4281_s1 + $0xc0] sm:$0xf]  ;;  %v2720_v40 = vld [vmem:[%s4281_s1 + $0xd4] sm:$0xf]  ;;  %v1962_v42 = vor.u32 %v2706_v33, %v1959_v34 }
   0xa   :  { %v2719_v39 = vld [vmem:[%s4281_s1 + $0xc4] sm:$0xf0]  ;;  %v2015_v41 = vld [vmem:[%s4281_s1 + $0xd8] sm:$0xf0]  ;;  %v2704_v44 = vld [vmem:[%s4281_s1 + $0x54] sm:$0xf]  ;;  %v1942_v46 = vor.u32 %v2703_v37, %v1941_v36 }
   0xb   :  { %308 = vmatpush.bf16.msra.mxu3 %v268_v30  ;;  %330 = vmatpush.bf16.msra.mxu2 %v2026_v32  ;;  %v2018_v43 = vor.u32 %v2720_v40, %v2015_v41  ;;  %v1951_v45 = vld [vmem:[%s4281_s1 + $0x58] sm:$0xf0]  ;;  %v1933_v47 = vld [vmem:[%s4281_s1 + $0x30] sm:$0xf]  ;;  %v2701_v48 = vld [vmem:[%s4281_s1 + $0x34] sm:$0xf0]  ;;  %v2006_v50 = vor.u32 %v2719_v39, %v2005_v38  ;;  %v226_v30 = vpack.c.b16 %v192_v16, %v192_v16 }
   0xc   :  { %275 = vmatpush.bf16.msra.mxu0 %v1950_v31  ;;  %v2718_v49 = vld [vmem:[%s4281_s1 + $0xc4] sm:$0xf]  ;;  %v2007_v51 = vld [vmem:[%s4281_s1 + $0xc8] sm:$0xf0]  ;;  %v1905_v52 = vld [vmem:[%s4282_s0 + $0x8] sm:$0xf]  ;;  %v1954_v57 = vor.u32 %v2704_v44, %v1951_v45  ;;  %v1934_v60 = vor.u32 %v2701_v48, %v1933_v47 }
   0xd   :  { %289 = vmatpush.bf16.msra.mxu1 %v2014_v35  ;;  %v2693_v53 = vld [vmem:[%s4282_s0 + $0x10] sm:$0xf0]  ;;  %v1997_v54 = vld [vmem:[%s4281_s1 + $0xb0] sm:$0xf]  ;;  %v2717_v55 = vld [vmem:[%s4281_s1 + $0xb4] sm:$0xf0]  ;;  %v2010_v58 = vor.u32 %v2718_v49, %v2007_v51 }
   0xe   :  { %v3065_v56 = vor.u32 %v2693_v53, %v1905_v52  ;;  %v2702_v59 = vld [vmem:[%s4281_s1 + $0x44] sm:$0xf]  ;;  %v1943_v61 = vld [vmem:[%s4281_s1 + $0x48] sm:$0xf0]  ;;  %v2716_v62 = vld [vmem:[%s4281_s1 + $0xb4] sm:$0xf]  ;;  %v1998_v0 = vor.u32 %v2717_v55, %v1997_v54 }
   0xf   :  { %315 = vmatpush.bf16.msrb.mxu3 %v1970_v26  ;;  %331 = vmatpush.bf16.msra.mxu2 %v2018_v43  ;;  %v1999_v63 = vld [vmem:[%s4281_s1 + $0xb8] sm:$0xf0]  ;;  %v1925_v1 = vld [vmem:[%s4281_s1 + $0x20] sm:$0xf]  ;;  %v2699_v2 = vld [vmem:[%s4281_s1 + $0x24] sm:$0xf0]  ;;  %v1946_v5 = vor.u32 %v2702_v59, %v1943_v61 }
  0x10   :  { %276 = vmatpush.bf16.msra.mxu0 %v1942_v46  ;;  %2035 = vmatmul.msk.bf16.vlgmr.msra.gmra.mxu3 %vm259_vm2, %v3065_v56  ;;  %v1989_v3 = vld [vmem:[%s4281_s1 + $0xa0] sm:$0xf]  ;;  %v2715_v4 = vld [vmem:[%s4281_s1 + $0xa4] sm:$0xf0]  ;;  %v2002_v6 = vor.u32 %v2716_v62, %v1999_v63  ;;  %v2700_v7 = vld [vmem:[%s4281_s1 + $0x34] sm:$0xf]  ;;  %v1926_v8 = vor.u32 %v2699_v2, %v1925_v1  ;;  %v271_v46 = vand.u32 %v2984_v18, %v226_v30 }
  0x11   :  { %290 = vmatpush.bf16.msra.mxu1 %v2006_v50  ;;  %v1935_v9 = vld [vmem:[%s4281_s1 + $0x38] sm:$0xf0]  ;;  %v2714_v11 = vld [vmem:[%s4281_s1 + $0xa4] sm:$0xf]  ;;  %v1991_v12 = vld [vmem:[%s4281_s1 + $0xa8] sm:$0xf0]  ;;  %v1990_v13 = vor.u32 %v2715_v4, %v1989_v3 }
  0x12   :  { %v1917_v14 = vld [vmem:[%s4281_s1 + $0x10] sm:$0xf]  ;;  %v2697_v15 = vld [vmem:[%s4281_s1 + $0x14] sm:$0xf0]  ;;  %v1938_v20 = vor.u32 %v2700_v7, %v1935_v9  ;;  %v1994_v21 = vor.u32 %v2714_v11, %v1991_v12  ;;  %v2698_v22 = vld [vmem:[%s4281_s1 + $0x24] sm:$0xf] }
  0x13   :  { %316 = vmatpush.bf16.msrb.mxu3 %v1962_v42  ;;  %332 = vmatpush.bf16.msra.mxu2 %v2010_v58  ;;  %v1981_v17 = vld [vmem:[%s4281_s1 + $0x90] sm:$0xf]  ;;  %v2713_v19 = vld [vmem:[%s4281_s1 + $0x94] sm:$0xf0]  ;;  %v1918_v23 = vor.u32 %v2697_v15, %v1917_v14  ;;  %v1927_v10 = vld [vmem:[%s4281_s1 + $0x28] sm:$0xf0] }
  0x14   :  { %277 = vmatpush.bf16.msra.mxu0 %v1934_v60  ;;  %v2712_v24 = vld [vmem:[%s4281_s1 + $0x94] sm:$0xf]  ;;  %v1983_v25 = vld [vmem:[%s4281_s1 + $0x98] sm:$0xf0]  ;;  %v1982_v26 = vor.u32 %v2713_v19, %v1981_v17  ;;  %v1909_v27 = vld [vmem:[%s4281_s1] sm:$0xf]  ;;  %v1930_v34 = vor.u32 %v2698_v22, %v1927_v10 }
  0x15   :  { %291 = vmatpush.bf16.msra.mxu1 %v1998_v0  ;;  %v2695_v28 = vld [vmem:[%s4281_s1 + $0x4] sm:$0xf0]  ;;  %v1973_v29 = vld [vmem:[%s4281_s1 + $0x80] sm:$0xf]  ;;  %v2696_v32 = vld [vmem:[%s4281_s1 + $0x14] sm:$0xf]  ;;  %v1986_v35 = vor.u32 %v2712_v24, %v1983_v25 }
  0x16   :  { %v2711_v31 = vld [vmem:[%s4281_s1 + $0x84] sm:$0xf0]  ;;  %v1919_v33 = vld [vmem:[%s4281_s1 + $0x18] sm:$0xf0]  ;;  %v1897_v36 = vld [vmem:[%s4282_s0] sm:$0xf]  ;;  %v1910_v39 = vor.u32 %v2695_v28, %v1909_v27 }
  0x17   :  { %317 = vmatpush.bf16.msrb.mxu3 %v1954_v57  ;;  %333 = vmatpush.bf16.msra.mxu2 %v2002_v6  ;;  %v2151_v37 = vld [vmem:[%s4283_s3 + $0xe0] sm:$0xf]  ;;  %v2756_v38 = vld [vmem:[%s4283_s3 + $0xec] sm:$0xf0]  ;;  %v2692_v40 = vld [vmem:[%s4282_s0 + $0x8] sm:$0xf0]  ;;  %v1974_v43 = vor.u32 %v2711_v31, %v1973_v29  ;;  %v1922_v52 = vor.u32 %v2696_v32, %v1919_v33 }
  0x18   :  { %278 = vmatpush.bf16.msra.mxu0 %v1926_v8  ;;  %v2691_v41 = vld [vmem:[%s4282_s0 + $0x4] sm:$0xf]  ;;  %v1899_v42 = vld [vmem:[%s4282_s0 + $0xc] sm:$0xf0]  ;;  %v1975_v45 = vld [vmem:[%s4281_s1 + $0x88] sm:$0xf0]  ;;  %v2152_v48 = vor.u32 %v2756_v38, %v2151_v37  ;;  %v1898_v53 = vor.u32 %v2692_v40, %v1897_v36 }
  0x19   :  { %292 = vmatpush.bf16.msra.mxu1 %v1990_v13  ;;  %v2710_v44 = vld [vmem:[%s4281_s1 + $0x84] sm:$0xf]  ;;  %v2281_v49 = vld [vmem:[%s4283_s3 + $0x1f0] sm:$0xf0]  ;;  %v2135_v54 = vld [vmem:[%s4283_s3 + $0xc0] sm:$0xf]  ;;  %v1902_v57 = vor.u32 %v2691_v41, %v1899_v42 }
  0x1a   :  { %v2786_v47 = vld [vmem:[%s4283_s3 + $0x1e4] sm:$0xf]  ;;  %v2153_v51 = vld [vmem:[%s4283_s3 + $0xf0] sm:$0xf0]  ;;  %v2752_v55 = vld [vmem:[%s4283_s3 + $0xcc] sm:$0xf0]  ;;  %v1978_v58 = vor.u32 %v2710_v44, %v1975_v45 }
  0x1b   :  { %318 = vmatpush.bf16.msrb.mxu3 %v1946_v5  ;;  %334 = vmatpush.bf16.msra.mxu2 %v1994_v21  ;;  %v2754_v50 = vld [vmem:[%s4283_s3 + $0xe4] sm:$0xf]  ;;  %v1911_v60 = vld [vmem:[%s4281_s1 + $0x8] sm:$0xf0]  ;;  %v2279_v61 = vld [vmem:[%s4283_s3 + $0x1e0] sm:$0xf]  ;;  %v2284_v63 = vor.u32 %v2786_v47, %v2281_v49  ;;  %v2136_v2 = vor.u32 %v2752_v55, %v2135_v54 }
  0x1c   :  { %279 = vmatpush.bf16.msra.mxu0 %v1918_v23  ;;  %v2694_v59 = vld [vmem:[%s4281_s1 + $0x4] sm:$0xf]  ;;  %v2788_v62 = vld [vmem:[%s4283_s3 + $0x1ec] sm:$0xf0]  ;;  %v2156_v0 = vor.u32 %v2754_v50, %v2153_v51  ;;  %v2265_v3 = vld [vmem:[%s4283_s3 + $0x1d0] sm:$0xf0] }
  0x1d   :  { %293 = vmatpush.bf16.msra.mxu1 %v1982_v26  ;;  %v2782_v1 = vld [vmem:[%s4283_s3 + $0x1c4] sm:$0xf]  ;;  %v2137_v5 = vld [vmem:[%s4283_s3 + $0xd0] sm:$0xf0]  ;;  %v1914_v6 = vor.u32 %v2694_v59, %v1911_v60  ;;  %v2119_v7 = vld [vmem:[%s4283_s3 + $0xa0] sm:$0xf]  ;;  %v2280_v9 = vor.u32 %v2788_v62, %v2279_v61 }
  0x1e   :  { %v2750_v4 = vld [vmem:[%s4283_s3 + $0xc4] sm:$0xf]  ;;  %v2748_v8 = vld [vmem:[%s4283_s3 + $0xac] sm:$0xf0]  ;;  %v2263_v11 = vld [vmem:[%s4283_s3 + $0x1c0] sm:$0xf]  ;;  %v2268_v13 = vor.u32 %v2782_v1, %v2265_v3 }
  0x1f   :  { %319 = vmatpush.bf16.msrb.mxu3 %v1938_v20  ;;  %335 = vmatpush.bf16.msra.mxu2 %v1986_v35  ;;  %v2784_v12 = vld [vmem:[%s4283_s3 + $0x1cc] sm:$0xf0]  ;;  %v2140_v14 = vor.u32 %v2750_v4, %v2137_v5  ;;  %v2778_v15 = vld [vmem:[%s4283_s3 + $0x1a4] sm:$0xf]  ;;  %v2120_v16 = vor.u32 %v2748_v8, %v2119_v7  ;;  %v2249_v17 = vld [vmem:[%s4283_s3 + $0x1b0] sm:$0xf0] }
  0x20   :  { %280 = vmatpush.bf16.msra.mxu0 %v1910_v39  ;;  %v2746_v19 = vld [vmem:[%s4283_s3 + $0xa4] sm:$0xf]  ;;  %v2121_v20 = vld [vmem:[%s4283_s3 + $0xb0] sm:$0xf0]  ;;  %v2103_v21 = vld [vmem:[%s4283_s3 + $0x80] sm:$0xf]  ;;  %v2264_v23 = vor.u32 %v2784_v12, %v2263_v11  ;;  %v2252_v25 = vor.u32 %v2778_v15, %v2249_v17 }
  0x21   :  { %294 = vmatpush.bf16.msra.mxu1 %v1974_v43  ;;  %v2744_v22 = vld [vmem:[%s4283_s3 + $0x8c] sm:$0xf0]  ;;  %v2247_v10 = vld [vmem:[%s4283_s3 + $0x1a0] sm:$0xf]  ;;  %v2124_v26 = vor.u32 %v2746_v19, %v2121_v20  ;;  %v2774_v27 = vld [vmem:[%s4283_s3 + $0x184] sm:$0xf] }
  0x22   :  { %v2780_v24 = vld [vmem:[%s4283_s3 + $0x1ac] sm:$0xf0]  ;;  %v2104_v28 = vor.u32 %v2744_v22, %v2103_v21  ;;  %v2233_v29 = vld [vmem:[%s4283_s3 + $0x190] sm:$0xf0]  ;;  %v2742_v30 = vld [vmem:[%s4283_s3 + $0x84] sm:$0xf] }
  0x23   :  { %320 = vmatpush.bf16.msrb.mxu3 %v1930_v34  ;;  %281 = vmatmul.bf16.vlgmr.msra.gmra.mxu0 %v1898_v53  ;;  %v2105_v31 = vld [vmem:[%s4283_s3 + $0x90] sm:$0xf0]  ;;  %v2087_v32 = vld [vmem:[%s4283_s3 + $0x60] sm:$0xf]  ;;  %v2740_v33 = vld [vmem:[%s4283_s3 + $0x6c] sm:$0xf0]  ;;  %v2248_v34 = vor.u32 %v2780_v24, %v2247_v10  ;;  %v2236_v37 = vor.u32 %v2774_v27, %v2233_v29 }
  0x24   :  { %350 = vmatpush.bf16.msrb.mxu0 %v271_v46  ;;  %295 = vmatmul.bf16.vlgmr.msra.gmra.mxu1 %v1902_v57  ;;  %v2231_v35 = vld [vmem:[%s4283_s3 + $0x180] sm:$0xf]  ;;  %v2776_v36 = vld [vmem:[%s4283_s3 + $0x18c] sm:$0xf0]  ;;  %v2108_v38 = vor.u32 %v2742_v30, %v2105_v31  ;;  %v2770_v39 = vld [vmem:[%s4283_s3 + $0x164] sm:$0xf]  ;;  %v2088_v40 = vor.u32 %v2740_v33, %v2087_v32 }
  0x25   :  { %748 = vmatpush.bf16.msrb.mxu1 %v2152_v48  ;;  %336 = vmatpush.bf16.msra.mxu2 %v1978_v58  ;;  %v2217_v41 = vld [vmem:[%s4283_s3 + $0x170] sm:$0xf0]  ;;  %v2738_v42 = vld [vmem:[%s4283_s3 + $0x64] sm:$0xf]  ;;  %v2071_v44 = vld [vmem:[%s4283_s3 + $0x40] sm:$0xf]  ;;  %v2232_v46 = vor.u32 %v2776_v36, %v2231_v35 }
  0x26   :  { %v2089_v43 = vld [vmem:[%s4283_s3 + $0x70] sm:$0xf0]  ;;  %v2736_v45 = vld [vmem:[%s4283_s3 + $0x4c] sm:$0xf0]  ;;  %v2215_v47 = vld [vmem:[%s4283_s3 + $0x160] sm:$0xf]  ;;  %v2220_v49 = vor.u32 %v2770_v39, %v2217_v41 }
  0x27   :  { %321 = vmatpush.bf16.msrb.mxu3 %v1922_v52  ;;  %v2772_v48 = vld [vmem:[%s4283_s3 + $0x16c] sm:$0xf0]  ;;  %v2092_v50 = vor.u32 %v2738_v42, %v2089_v43  ;;  %v2072_v51 = vor.u32 %v2736_v45, %v2071_v44  ;;  %v2055_v52 = vld [vmem:[%s4283_s3 + $0x20] sm:$0xf]  ;;  %v2159_v58 = vld [vmem:[%s4283_s3 + $0xe8] sm:$0xf] }
  0x28   :  { %790 = vmatpush.bf16.msra.mxu0 %v2284_v63  ;;  %337 = vmatmul.bf16.vlgmr.msra.gmra.mxu2 %v1902_v57  ;;  %v2216_v54 = vor.u32 %v2772_v48, %v2215_v47  ;;  %v2039_v57 = vld [vmem:[%s4283_s3] sm:$0xf]  ;;  %v2757_v59 = vld [vmem:[%s4283_s3 + $0xf4] sm:$0xf0]  ;;  %v2768_v63 = vld [vmem:[%s4283_s3 + $0x14c] sm:$0xf0] }
  0x29   :  { %776 = vmatpush.bf16.msrb.mxu2 %v2156_v0  ;;  %749 = vmatpush.bf16.msrb.mxu1 %v2136_v2  ;;  %v2160_v61 = vor.u32 %v2757_v59, %v2159_v58  ;;  %v2199_v62 = vld [vmem:[%s4283_s3 + $0x140] sm:$0xf]  ;;  %v2766_v0 = vld [vmem:[%s4283_s3 + $0x144] sm:$0xf]  ;;  %v2201_v2 = vld [vmem:[%s4283_s3 + $0x150] sm:$0xf0] }
  0x2a   :  { %v2200_v1 = vor.u32 %v2768_v63, %v2199_v62  ;;  %v2734_v3 = vld [vmem:[%s4283_s3 + $0x44] sm:$0xf]  ;;  %v2073_v4 = vld [vmem:[%s4283_s3 + $0x50] sm:$0xf0]  ;;  %v2204_v5 = vor.u32 %v2766_v0, %v2201_v2  ;;  %v2143_v7 = vld [vmem:[%s4283_s3 + $0xc8] sm:$0xf] }
  0x2b   :  { %322 = vmatpush.bf16.msrb.mxu3 %v1914_v6  ;;  %v2076_v6 = vor.u32 %v2734_v3, %v2073_v4  ;;  %v2753_v8 = vld [vmem:[%s4283_s3 + $0xd4] sm:$0xf0]  ;;  %v2764_v12 = vld [vmem:[%s4283_s3 + $0x12c] sm:$0xf0]  ;;  %v2730_v17 = vld [vmem:[%s4283_s3 + $0x24] sm:$0xf] }
  0x2c   :  { %791 = vmatpush.bf16.msra.mxu0 %v2268_v13  ;;  %v2144_v11 = vor.u32 %v2753_v8, %v2143_v7  ;;  %v2762_v13 = vld [vmem:[%s4283_s3 + $0x124] sm:$0xf]  ;;  %v2057_v19 = vld [vmem:[%s4283_s3 + $0x30] sm:$0xf0]  ;;  %v2127_v20 = vld [vmem:[%s4283_s3 + $0xa8] sm:$0xf] }
  0x2d   :  { %777 = vmatpush.bf16.msrb.mxu2 %v2140_v14  ;;  %750 = vmatpush.bf16.msrb.mxu1 %v2120_v16  ;;  %v2185_v14 = vld [vmem:[%s4283_s3 + $0x130] sm:$0xf0]  ;;  %v2060_v21 = vor.u32 %v2730_v17, %v2057_v19  ;;  %v2749_v22 = vld [vmem:[%s4283_s3 + $0xb4] sm:$0xf0]  ;;  %v2167_v10 = vld [vmem:[%s4283_s3 + $0x100] sm:$0xf] }
  0x2e   :  { %323 = vmatmul.bf16.vlgmr.msrb.gmra.mxu3 %v1898_v53  ;;  %v2732_v53 = vld [vmem:[%s4283_s3 + $0x2c] sm:$0xf0]  ;;  %v2188_v16 = vor.u32 %v2762_v13, %v2185_v14  ;;  %v2169_v27 = vld [vmem:[%s4283_s3 + $0x110] sm:$0xf0]  ;;  %v2111_v32 = vld [vmem:[%s4283_s3 + $0x88] sm:$0xf] }
  0x2f   :  { %762 = vmatpush.bf16.msra.mxu3 %v2280_v9  ;;  %v2056_v55 = vor.u32 %v2732_v53, %v2055_v52  ;;  %v2183_v9 = vld [vmem:[%s4283_s3 + $0x120] sm:$0xf]  ;;  %v2760_v24 = vld [vmem:[%s4283_s3 + $0x10c] sm:$0xf0]  ;;  %v2041_v29 = vld [vmem:[%s4283_s3 + $0x10] sm:$0xf0] }
  0x30   :  { %792 = vmatpush.bf16.msra.mxu0 %v2252_v25  ;;  %v2184_v15 = vor.u32 %v2764_v12, %v2183_v9  ;;  %v2758_v25 = vld [vmem:[%s4283_s3 + $0x104] sm:$0xf]  ;;  %v2745_v33 = vld [vmem:[%s4283_s3 + $0x94] sm:$0xf0]  ;;  %v2755_v41 = vld [vmem:[%s4283_s3 + $0xec] sm:$0xf] }
  0x31   :  { %778 = vmatpush.bf16.msrb.mxu2 %v2124_v26  ;;  %751 = vmatpush.bf16.msrb.mxu1 %v2104_v28  ;;  %v2168_v26 = vor.u32 %v2760_v24, %v2167_v10  ;;  %v2726_v28 = vld [vmem:[%s4283_s3 + $0x4] sm:$0xf]  ;;  %v2172_v30 = vor.u32 %v2758_v25, %v2169_v27  ;;  %v2112_v35 = vor.u32 %v2745_v33, %v2111_v32  ;;  %v2789_v36 = vld [vmem:[%s4283_s3 + $0x1f4] sm:$0xf0]  ;;  %v2161_v42 = vld [vmem:[%s4283_s3 + $0xf8] sm:$0xf0] }
  0x32   :  { %v2044_v31 = vor.u32 %v2726_v28, %v2041_v29  ;;  %v2164_v43 = vor.u32 %v2755_v41, %v2161_v42  ;;  %v2095_v44 = vld [vmem:[%s4283_s3 + $0x68] sm:$0xf]  ;;  %v2741_v45 = vld [vmem:[%s4283_s3 + $0x74] sm:$0xf0]  ;;  %v2751_v53 = vld [vmem:[%s4283_s3 + $0xcc] sm:$0xf] }
  0x33   :  { %763 = vmatpush.bf16.msra.mxu3 %v2264_v23  ;;  %2036 = vmatmul.msk.bf16.vlgmr.msrb.gmra.mxu0 %vm259_vm2, %v3065_v56  ;;  %v2728_v56 = vld [vmem:[%s4283_s3 + $0xc] sm:$0xf0]  ;;  %v2128_v23 = vor.u32 %v2749_v22, %v2127_v20  ;;  %v2096_v47 = vor.u32 %v2741_v45, %v2095_v44  ;;  %v2785_v48 = vld [vmem:[%s4283_s3 + $0x1d4] sm:$0xf0]  ;;  %v2255_v58 = vld [vmem:[%s4283_s3 + $0x1a8] sm:$0xf] }
  0x34   :  { %793 = vmatpush.bf16.msra.mxu0 %v2236_v37  ;;  %v2040_v60 = vor.u32 %v2728_v56, %v2039_v57  ;;  %v2787_v37 = vld [vmem:[%s4283_s3 + $0x1ec] sm:$0xf]  ;;  %v2079_v57 = vld [vmem:[%s4283_s3 + $0x48] sm:$0xf]  ;;  %v2737_v56 = vld [vmem:[%s4283_s3 + $0x54] sm:$0xf0] }
  0x35   :  { %779 = vmatpush.bf16.msrb.mxu2 %v2108_v38  ;;  %752 = vmatpush.bf16.msrb.mxu1 %v2088_v40  ;;  %v2289_v38 = vld [vmem:[%s4283_s3 + $0x1f8] sm:$0xf0]  ;;  %v2080_v59 = vor.u32 %v2737_v56, %v2079_v57  ;;  %v2063_v4 = vld [vmem:[%s4283_s3 + $0x28] sm:$0xf]  ;;  %v2777_v8 = vld [vmem:[%s4283_s3 + $0x194] sm:$0xf0] }
  0x36   :  { %v2292_v40 = vor.u32 %v2787_v37, %v2289_v38  ;;  %v2257_v62 = vld [vmem:[%s4283_s3 + $0x1b8] sm:$0xf0]  ;;  %v2775_v9 = vld [vmem:[%s4283_s3 + $0x18c] sm:$0xf]  ;;  %v2047_v17 = vld [vmem:[%s4283_s3 + $0x8] sm:$0xf] }
  0x37   :  { %764 = vmatpush.bf16.msra.mxu3 %v2248_v34  ;;  %v2287_v34 = vld [vmem:[%s4283_s3 + $0x1e8] sm:$0xf]  ;;  %v2129_v2 = vld [vmem:[%s4283_s3 + $0xb8] sm:$0xf0]  ;;  %v2743_v14 = vld [vmem:[%s4283_s3 + $0x8c] sm:$0xf] }
  0x38   :  { %794 = vmatpush.bf16.msra.mxu0 %v2220_v49  ;;  %v2288_v39 = vor.u32 %v2789_v36, %v2287_v34  ;;  %v2783_v49 = vld [vmem:[%s4283_s3 + $0x1cc] sm:$0xf]  ;;  %v2729_v19 = vld [vmem:[%s4283_s3 + $0x14] sm:$0xf0]  ;;  %v2223_v20 = vld [vmem:[%s4283_s3 + $0x168] sm:$0xf] }
  0x39   :  { %780 = vmatpush.bf16.msrb.mxu2 %v2092_v50  ;;  %753 = vmatpush.bf16.msrb.mxu1 %v2072_v51  ;;  %v2273_v50 = vld [vmem:[%s4283_s3 + $0x1d8] sm:$0xf0]  ;;  %v2773_v22 = vld [vmem:[%s4283_s3 + $0x174] sm:$0xf0]  ;;  %v2207_v29 = vld [vmem:[%s4283_s3 + $0x148] sm:$0xf] }
  0x3a   :  { %v2276_v52 = vor.u32 %v2783_v49, %v2273_v50  ;;  %v2225_v10 = vld [vmem:[%s4283_s3 + $0x178] sm:$0xf0]  ;;  %v2224_v24 = vor.u32 %v2773_v22, %v2223_v20  ;;  %v2735_v34 = vld [vmem:[%s4283_s3 + $0x4c] sm:$0xf]  ;;  %v3526_v38 = vld [vmem:[%s4284_s2] sm:$0x3] }
  0x3b   :  { %765 = vmatpush.bf16.msra.mxu3 %v2232_v46  ;;  %v2271_v46 = vld [vmem:[%s4283_s3 + $0x1c8] sm:$0xf]  ;;  %v2097_v27 = vld [vmem:[%s4283_s3 + $0x78] sm:$0xf0]  ;;  %v2763_v41 = vld [vmem:[%s4283_s3 + $0x12c] sm:$0xf] }
  0x3c   :  { %795 = vmatpush.bf16.msra.mxu0 %v2204_v5  ;;  %v2272_v51 = vor.u32 %v2785_v48, %v2271_v46  ;;  %v2733_v5 = vld [vmem:[%s4283_s3 + $0x34] sm:$0xf0]  ;;  %v2209_v33 = vld [vmem:[%s4283_s3 + $0x158] sm:$0xf0]  ;;  %v2731_v45 = vld [vmem:[%s4283_s3 + $0x2c] sm:$0xf] }
  0x3d   :  { %754 = vmatpush.bf16.msrb.mxu1 %v2056_v55  ;;  %781 = vmatpush.bf16.msrb.mxu2 %v2076_v6  ;;  %v2239_v6 = vld [vmem:[%s4283_s3 + $0x188] sm:$0xf]  ;;  %v2064_v7 = vor.u32 %v2733_v5, %v2063_v4  ;;  %v2193_v44 = vld [vmem:[%s4283_s3 + $0x138] sm:$0xf0]  ;;  %v75_v49 = vperm.slane %v3526_v38, 0  ;;  %vm950_vm4 = vcmask 1043456  }
  0x3e   :  { %v2240_v12 = vor.u32 %v2777_v8, %v2239_v6  ;;  %v2065_v46 = vld [vmem:[%s4283_s3 + $0x38] sm:$0xf0]  ;;  %v2175_v50 = vld [vmem:[%s4283_s3 + $0x108] sm:$0xf]  ;;  %vm960_vm5 = vcmask 1041409   ;;  %vm962_vm6 = vcmask 1043459  }
  0x3f   :  { %766 = vmatpush.bf16.msra.mxu3 %v2216_v54  ;;  %v2145_v54 = vld [vmem:[%s4283_s3 + $0xd8] sm:$0xf0]  ;;  %v2068_v48 = vor.u32 %v2731_v45, %v2065_v46  ;;  %v2331_v46 = vld [vmem:[%s4285_s6 + $0x30] sm:$0xf]  ;;  %vm964_vm7 = vcmask 1045509   ;;  %vm966_vm8 = vcmask 1047559  }
  0x40   :  { %796 = vmatpush.bf16.msra.mxu0 %v2188_v16  ;;  %v2148_v55 = vor.u32 %v2751_v53, %v2145_v54  ;;  %v2177_v54 = vld [vmem:[%s4283_s3 + $0x118] sm:$0xf0] }
  0x41   :  { %755 = vmatpush.bf16.msrb.mxu1 %v2040_v60  ;;  %782 = vmatpush.bf16.msrb.mxu2 %v2060_v21  ;;  %v2781_v60 = vld [vmem:[%s4283_s3 + $0x1b4] sm:$0xf0]  ;;  %v2048_v21 = vor.u32 %v2729_v19, %v2047_v17  ;;  %v2049_v57 = vld [vmem:[%s4283_s3 + $0x18] sm:$0xf0] }
  0x42   :  { %v2256_v63 = vor.u32 %v2781_v60, %v2255_v58 }
  0x43   :  { %767 = vmatpush.bf16.msra.mxu3 %v2200_v1  ;;  %v2747_v1 = vld [vmem:[%s4283_s3 + $0xac] sm:$0xf] }
  0x44   :  { %797 = vmatpush.bf16.msra.mxu0 %v2172_v30  ;;  %v2132_v3 = vor.u32 %v2747_v1, %v2129_v2  ;;  %v2769_v30 = vld [vmem:[%s4283_s3 + $0x154] sm:$0xf0] }
  0x45   :  { %804 = vmatpush.bf16.msra.mxu1 %v2160_v61  ;;  %783 = vmatpush.bf16.msrb.mxu2 %v2044_v31  ;;  %v2779_v61 = vld [vmem:[%s4283_s3 + $0x1ac] sm:$0xf]  ;;  %v2208_v32 = vor.u32 %v2769_v30, %v2207_v29 }
  0x46   :  { %v2260_v0 = vor.u32 %v2779_v61, %v2257_v62  ;;  %v2767_v31 = vld [vmem:[%s4283_s3 + $0x14c] sm:$0xf] }
  0x47   :  { %768 = vmatpush.bf16.msra.mxu3 %v2184_v15  ;;  %v2113_v15 = vld [vmem:[%s4283_s3 + $0x98] sm:$0xf0]  ;;  %v2212_v36 = vor.u32 %v2767_v31, %v2209_v33 }
  0x48   :  { %846 = vmatpush.bf16.msrb.mxu0 %v2292_v40  ;;  %v2116_v16 = vor.u32 %v2743_v14, %v2113_v15  ;;  %v2765_v40 = vld [vmem:[%s4283_s3 + $0x134] sm:$0xf0] }
  0x49   :  { %805 = vmatpush.bf16.msra.mxu1 %v2144_v11  ;;  %832 = vmatpush.bf16.msra.mxu2 %v2164_v43  ;;  %v2241_v11 = vld [vmem:[%s4283_s3 + $0x198] sm:$0xf0]  ;;  %v2808_v14 = vld [vmem:[%s4285_s6 + $0x74] sm:$0xf0] }
  0x4a   :  { %v2244_v13 = vor.u32 %v2775_v9, %v2241_v11 }
  0x4b   :  { %769 = vmatpush.bf16.msra.mxu3 %v2168_v26  ;;  %v2739_v26 = vld [vmem:[%s4283_s3 + $0x6c] sm:$0xf] }
  0x4c   :  { %847 = vmatpush.bf16.msrb.mxu0 %v2276_v52  ;;  %v2100_v28 = vor.u32 %v2739_v26, %v2097_v27  ;;  %v2759_v52 = vld [vmem:[%s4283_s3 + $0x10c] sm:$0xf]  ;;  %v2347_v27 = vld [vmem:[%s4285_s6 + $0x50] sm:$0xf] }
  0x4d   :  { %806 = vmatpush.bf16.msra.mxu1 %v2128_v23  ;;  %833 = vmatpush.bf16.msra.mxu2 %v2148_v55  ;;  %v2771_v23 = vld [vmem:[%s4283_s3 + $0x16c] sm:$0xf]  ;;  %v2180_v58 = vor.u32 %v2759_v52, %v2177_v54  ;;  %v2419_v52 = vld [vmem:[%s4285_s6 + $0xe0] sm:$0xf]  ;;  %v2805_v54 = vld [vmem:[%s4285_s6 + $0x64] sm:$0xf] }
  0x4e   :  { %v2228_v25 = vor.u32 %v2771_v23, %v2225_v10  ;;  %v2727_v55 = vld [vmem:[%s4283_s3 + $0xc] sm:$0xf]  ;;  %v2355_v23 = vld [vmem:[%s4285_s6 + $0x60] sm:$0xf]  ;;  %v2806_v10 = vld [vmem:[%s4285_s6 + $0x64] sm:$0xf0] }
  0x4f   :  { %818 = vmatpush.bf16.msrb.mxu3 %v2288_v39  ;;  %v2191_v39 = vld [vmem:[%s4283_s3 + $0x128] sm:$0xf] }
  0x50   :  { %848 = vmatpush.bf16.msrb.mxu0 %v2260_v0  ;;  %v2192_v43 = vor.u32 %v2765_v40, %v2191_v39  ;;  %v2824_v39 = vld [vmem:[%s4285_s6 + $0xf4] sm:$0xf0]  ;;  %v2807_v40 = vld [vmem:[%s4285_s6 + $0x74] sm:$0xf] }
  0x51   :  { %807 = vmatpush.bf16.msra.mxu1 %v2112_v35  ;;  %834 = vmatpush.bf16.msra.mxu2 %v2132_v3  ;;  %v2081_v35 = vld [vmem:[%s4283_s3 + $0x58] sm:$0xf0] }
  0x52   :  { %v2084_v37 = vor.u32 %v2735_v34, %v2081_v35  ;;  %v2339_v35 = vld [vmem:[%s4285_s6 + $0x40] sm:$0xf] }
  0x53   :  { %819 = vmatpush.bf16.msrb.mxu3 %v2272_v51  ;;  %v2761_v51 = vld [vmem:[%s4283_s3 + $0x114] sm:$0xf0] }
  0x54   :  { %849 = vmatpush.bf16.msrb.mxu0 %v2244_v13  ;;  %v2176_v53 = vor.u32 %v2761_v51, %v2175_v50  ;;  %v2363_v13 = vld [vmem:[%s4285_s6 + $0x70] sm:$0xf]  ;;  %v2800_v51 = vld [vmem:[%s4285_s6 + $0x34] sm:$0xf0] }
  0x55   :  { %808 = vmatpush.bf16.msra.mxu1 %v2096_v47  ;;  %835 = vmatpush.bf16.msra.mxu2 %v2116_v16  ;;  %v2196_v47 = vor.u32 %v2763_v41, %v2193_v44  ;;  %v2364_v20 = vor.u32 %v2808_v14, %v2363_v13  ;;  %v2365_v41 = vld [vmem:[%s4285_s6 + $0x78] sm:$0xf0]  ;;  %v2796_v13 = vld [vmem:[%s4285_s6 + $0x14] sm:$0xf0]  ;;  %v2403_v14 = vld [vmem:[%s4285_s6 + $0xc0] sm:$0xf] }
  0x56   :  { %v2368_v50 = vor.u32 %v2807_v40, %v2365_v41  ;;  %v2814_v40 = vld [vmem:[%s4285_s6 + $0xa4] sm:$0xf0]  ;;  %v2797_v41 = vld [vmem:[%s4285_s6 + $0x24] sm:$0xf] }
  0x57   :  { %820 = vmatpush.bf16.msrb.mxu3 %v2256_v63  ;;  %v3568_v63 = vld [vmem:[%s4285_s6 + $0x100] sm:$0x33] }
  0x58   :  { %850 = vmatpush.bf16.msrb.mxu0 %v2228_v25  ;;  %v1125_v2 = vunpack.c.l.b16 %v3568_v63  ;;  %v2356_v25 = vor.u32 %v2806_v10, %v2355_v23  ;;  %v2307_v23 = vld [vmem:[%s4285_s6] sm:$0xf]  ;;  %v2794_v10 = vld [vmem:[%s4285_s6 + $0x4] sm:$0xf0] }
  0x59   :  { %809 = vmatpush.bf16.msra.mxu1 %v2080_v59  ;;  %836 = vmatpush.bf16.msra.mxu2 %v2100_v28  ;;  %v2052_v59 = vor.u32 %v2727_v55, %v2049_v57  ;;  %v2804_v28 = vld [vmem:[%s4285_s6 + $0x54] sm:$0xf0]  ;;  %v2357_v55 = vld [vmem:[%s4285_s6 + $0x68] sm:$0xf0] }
  0x5a   :  { %v1159_v8 = vpack.c.b16 %v1125_v2, %v1125_v2  ;;  %v2348_v34 = vor.u32 %v2804_v28, %v2347_v27  ;;  %v2820_v2 = vld [vmem:[%s4285_s6 + $0xd4] sm:$0xf0]  ;;  %v2333_v27 = vld [vmem:[%s4285_s6 + $0x38] sm:$0xf0]  ;;  %v2817_v28 = vld [vmem:[%s4285_s6 + $0xc4] sm:$0xf] }
  0x5b   :  { %821 = vmatpush.bf16.msrb.mxu3 %v2240_v12 }
  0x5c   :  { %851 = vmatpush.bf16.msrb.mxu0 %v2212_v36 }
  0x5d   :  { %810 = vmatpush.bf16.msra.mxu1 %v2064_v7  ;;  %837 = vmatpush.bf16.msra.mxu2 %v2084_v37  ;;  %v76_v7 = vperm.slane %v3526_v38, 1  ;;  %v2802_v37 = vld [vmem:[%s4285_s6 + $0x44] sm:$0xf0]  ;;  %v2427_v38 = vld [vmem:[%s4285_s6 + $0xf0] sm:$0xf] }
  0x5e   :  { %v2340_v44 = vor.u32 %v2802_v37, %v2339_v35  ;;  %v2428_v45 = vor.u32 %v2824_v39, %v2427_v38  ;;  %v2295_v35 = vld [vmem:[%s4286_s5] sm:$0xf] }
  0x5f   :  { %822 = vmatpush.bf16.msrb.mxu3 %v2224_v24  ;;  %v2387_v39 = vld [vmem:[%s4285_s6 + $0xa0] sm:$0xf] }
  0x60   :  { %852 = vmatpush.bf16.msrb.mxu0 %v2196_v47  ;;  %v2823_v47 = vld [vmem:[%s4285_s6 + $0xf4] sm:$0xf] }
  0x61   :  { %811 = vmatpush.bf16.msra.mxu1 %v2048_v21  ;;  %838 = vmatpush.bf16.msra.mxu2 %v2068_v48  ;;  %v1197_v21 = vand.u32 %v1159_v8, %v2984_v18  ;;  %v2429_v48 = vld [vmem:[%s4285_s6 + $0xf8] sm:$0xf0]  ;;  %v2315_v8 = vld [vmem:[%s4285_s6 + $0x10] sm:$0xf] }
  0x62   :  { %v2432_v57 = vor.u32 %v2823_v47, %v2429_v48  ;;  %v2388_v48 = vor.u32 %v2814_v40, %v2387_v39  ;;  %v2881_v39 = vld [vmem:[%s4287_s8 + $0x1c4] sm:$0xf]  ;;  %v2663_v40 = vld [vmem:[%s4287_s8 + $0x1d0] sm:$0xf0] }
  0x63   :  { %823 = vmatpush.bf16.msrb.mxu3 %v2208_v32 }
  0x64   :  { %853 = vmatpush.bf16.msrb.mxu0 %v2180_v58 }
  0x65   :  { %839 = vmatpush.bf16.msra.mxu2 %v2052_v59  ;;  %v2323_v59 = vld [vmem:[%s4285_s6 + $0x20] sm:$0xf] }
  0x67   :  { %824 = vmatpush.bf16.msrb.mxu3 %v2192_v43 }
  0x6b   :  { %825 = vmatpush.bf16.msrb.mxu3 %v2176_v53  ;;  %v2822_v53 = vld [vmem:[%s4285_s6 + $0xe4] sm:$0xf0] }
  0x6c   :  { %v2420_v58 = vor.u32 %v2822_v53, %v2419_v52  ;;  %v2379_v52 = vld [vmem:[%s4285_s6 + $0x90] sm:$0xf]  ;;  %v2317_v53 = vld [vmem:[%s4285_s6 + $0x18] sm:$0xf0] }
  0x93   :  { %v310_v42 = vpop.f32.mrf.mxu3 }
  0x9b   :  { %v312_v62 = vpop.f32.mrf.mxu3 }
  0xa0   :  { %v282_v56 = vpop.f32.mrf.mxu0 }
  0xa1   :  { %v296_v60 = vpop.f32.mrf.mxu1  ;;  %v283_v61 = vadd.f32 %v282_v56, %v75_v49  ;;  %v2332_v56 = vor.u32 %v2800_v51, %v2331_v46 }
  0xa3   :  { %v297_v0 = vadd.f32 %v296_v60, %v283_v61  ;;  %v2821_v60 = vld [vmem:[%s4285_s6 + $0xe4] sm:$0xf]  ;;  %v2421_v61 = vld [vmem:[%s4285_s6 + $0xe8] sm:$0xf0] }
  0xa5   :  { %v311_v5 = vadd.f32 %v310_v42, %v297_v0  ;;  %v2798_v0 = vld [vmem:[%s4285_s6 + $0x24] sm:$0xf0] }
  0xa7   :  { %v357_v15 = vmax.f32 %v311_v5, 0.0  ;;  %v2424_v5 = vor.u32 %v2821_v60, %v2421_v61  ;;  %v2810_v60 = vld [vmem:[%s4285_s6 + $0x84] sm:$0xf0]  ;;  %v2793_v61 = vld [vmem:[%s4285_s6 + $0x4] sm:$0xf] }
  0xa8   :  { %v284_v1 = vpop.f32.mrf.mxu0 }
  0xa9   :  { %v285_v3 = vadd.f32 %v284_v1, %v75_v49  ;;  %v298_v4 = vpop.f32.mrf.mxu1  ;;  %v2411_v1 = vld [vmem:[%s4285_s6 + $0xd0] sm:$0xf] }
  0xab   :  { %v299_v6 = vadd.f32 %v298_v4, %v285_v3  ;;  %v338_v11 = vpop.f32.mrf.mxu2  ;;  %v2803_v3 = vld [vmem:[%s4285_s6 + $0x54] sm:$0xf]  ;;  %v2349_v4 = vld [vmem:[%s4285_s6 + $0x58] sm:$0xf0] }
  0xad   :  { %v313_v9 = vadd.f32 %v312_v62, %v299_v6  ;;  %v2360_v62 = vor.u32 %v2805_v54, %v2357_v55  ;;  %v2324_v6 = vor.u32 %v2798_v0, %v2323_v59  ;;  %v2813_v54 = vld [vmem:[%s4285_s6 + $0xa4] sm:$0xf]  ;;  %v2389_v55 = vld [vmem:[%s4285_s6 + $0xa8] sm:$0xf0]  ;;  %v2371_v59 = vld [vmem:[%s4285_s6 + $0x80] sm:$0xf] }
  0xae   :  { %v2811_v0 = vld [vmem:[%s4285_s6 + $0x94] sm:$0xf] }
  0xaf   :  { %v359_v16 = vmax.f32 %v313_v9, 0.0  ;;  %v2819_v9 = vld [vmem:[%s4285_s6 + $0xd4] sm:$0xf] }
  0xb0   :  { %v352_v19 = vpop.f32.mrf.mxu0 }
  0xb1   :  { %v324_v12 = vpop.f32.mrf.mxu3  ;;  %v361_v22 = vpack.c.bf16 %v359_v16, %v357_v15  ;;  %v2818_v15 = vld [vmem:[%s4285_s6 + $0xc4] sm:$0xf0]  ;;  %v2801_v16 = vld [vmem:[%s4285_s6 + $0x44] sm:$0xf] }
  0xb2   :  { %v325_v17 = vadd.f32 %v324_v12, %v76_v7  ;;  %v2352_v12 = vor.u32 %v2803_v3, %v2349_v4  ;;  %v2790_v3 = vld [vmem:[%s4286_s5 + $0x4] sm:$0xf]  ;;  %v2297_v4 = vld [vmem:[%s4286_s5 + $0xc] sm:$0xf0] }
  0xb3   :  { %756 = vmatmul.bf16.vlgmr.msrb.gmra.mxu1 %v361_v22  ;;  %784 = vmatmul.bf16.vlgmr.msrb.gmra.mxu2 %v361_v22  ;;  %v340_v30 = vpop.f32.mrf.mxu2 }
  0xb4   :  { %v339_v24 = vadd.f32 %v338_v11, %v325_v17  ;;  %1202 = vmatpush.bf16.msrb.mxu1 %v2364_v20  ;;  %1237 = vmatpush.bf16.msrb.mxu2 %v1197_v21  ;;  %v2413_v11 = vld [vmem:[%s4285_s6 + $0xd8] sm:$0xf0]  ;;  %v2341_v17 = vld [vmem:[%s4285_s6 + $0x48] sm:$0xf0]  ;;  %v2316_v21 = vor.u32 %v2796_v13, %v2315_v8  ;;  %v2855_v13 = vld [vmem:[%s4287_s8 + $0xec] sm:$0xf0] }
  0xb5   :  { %v2416_v20 = vor.u32 %v2819_v9, %v2413_v11  ;;  %v2373_v8 = vld [vmem:[%s4285_s6 + $0x88] sm:$0xf0]  ;;  %v2300_v9 = vor.u32 %v2790_v3, %v2297_v4  ;;  %v2469_v4 = vld [vmem:[%s4287_s8 + $0x40] sm:$0xf] }
  0xb6   :  { %v353_v31 = vadd.f32 %v352_v19, %v339_v24  ;;  %v1126_v19 = vunpack.c.h.b16 %v3568_v63  ;;  %v2344_v24 = vor.u32 %v2801_v16, %v2341_v17  ;;  %v2395_v63 = vld [vmem:[%s4285_s6 + $0xb0] sm:$0xf]  ;;  %v2551_v16 = vld [vmem:[%s4287_s8 + $0xf0] sm:$0xf0] }
  0xb8   :  { %v354_v33 = vpop.f32.mrf.mxu0  ;;  %1203 = vmatpush.bf16.msrb.mxu1 %v2356_v25  ;;  %v358_v42 = vmax.f32 %v353_v31, 0.0  ;;  %v2816_v25 = vld [vmem:[%s4285_s6 + $0xb4] sm:$0xf0]  ;;  %v2303_v31 = vld [vmem:[%s4286_s5 + $0x8] sm:$0xf] }
  0xb9   :  { %v326_v26 = vpop.f32.mrf.mxu3 }
  0xba   :  { %v327_v29 = vadd.f32 %v326_v26, %v76_v7  ;;  %v2412_v7 = vor.u32 %v2820_v2, %v2411_v1  ;;  %v2799_v26 = vld [vmem:[%s4285_s6 + $0x34] sm:$0xf]  ;;  %v2381_v1 = vld [vmem:[%s4285_s6 + $0x98] sm:$0xf0]  ;;  %v2372_v2 = vor.u32 %v2810_v60, %v2371_v59  ;;  %v2837_v59 = vld [vmem:[%s4287_s8 + $0x64] sm:$0xf] }
  0xbb   :  { %v2336_v37 = vor.u32 %v2799_v26, %v2333_v27  ;;  %v2679_v26 = vld [vmem:[%s4287_s8 + $0x1f0] sm:$0xf0] }
  0xbc   :  { %v341_v32 = vadd.f32 %v340_v30, %v327_v29  ;;  %1204 = vmatpush.bf16.msrb.mxu1 %v2348_v34  ;;  %v2405_v29 = vld [vmem:[%s4285_s6 + $0xc8] sm:$0xf0]  ;;  %v1160_v30 = vpack.c.b16 %v1126_v19, %v1126_v19  ;;  %v2396_v34 = vor.u32 %v2816_v25, %v2395_v63  ;;  %v2533_v19 = vld [vmem:[%s4287_s8 + $0xc0] sm:$0xf]  ;;  %v2535_v63 = vld [vmem:[%s4287_s8 + $0xd0] sm:$0xf0] }
  0xbd   :  { %v2408_v38 = vor.u32 %v2817_v28, %v2405_v29  ;;  %v2885_v25 = vld [vmem:[%s4287_s8 + $0x1e4] sm:$0xf]  ;;  %v2517_v29 = vld [vmem:[%s4287_s8 + $0xa0] sm:$0xf]  ;;  %v2487_v60 = vld [vmem:[%s4287_s8 + $0x70] sm:$0xf0] }
  0xbe   :  { %v355_v36 = vadd.f32 %v354_v33, %v341_v32  ;;  %v2792_v32 = vld [vmem:[%s4286_s5 + $0x10] sm:$0xf0]  ;;  %v2308_v33 = vor.u32 %v2794_v10, %v2307_v23  ;;  %v1200_v46 = vand.u32 %v1160_v30, %v2984_v18  ;;  %v2812_v18 = vld [vmem:[%s4285_s6 + $0x94] sm:$0xf0]  ;;  %v2887_v23 = vld [vmem:[%s4287_s8 + $0x1ec] sm:$0xf0]  ;;  %v2682_v28 = vor.u32 %v2885_v25, %v2679_v26 }
  0xbf   :  { %v2849_v10 = vld [vmem:[%s4287_s8 + $0xc4] sm:$0xf]  ;;  %v2847_v30 = vld [vmem:[%s4287_s8 + $0xac] sm:$0xf0] }
  0xc0   :  { %v360_v43 = vmax.f32 %v355_v36, 0.0  ;;  %1205 = vmatpush.bf16.msrb.mxu1 %v2340_v44  ;;  %v2791_v36 = vld [vmem:[%s4286_s5 + $0x8] sm:$0xf0]  ;;  %v2815_v44 = vld [vmem:[%s4285_s6 + $0xb4] sm:$0xf]  ;;  %v2538_v27 = vor.u32 %v2849_v10, %v2535_v63 }
  0xc1   :  { %v2296_v47 = vor.u32 %v2791_v36, %v2295_v35  ;;  %v2519_v35 = vld [vmem:[%s4287_s8 + $0xb0] sm:$0xf0]  ;;  %v2867_v10 = vld [vmem:[%s4287_s8 + $0x14c] sm:$0xf0] }
  0xc2   :  { %v3618_v49 = vpack.c.bf16 %v360_v43, %v358_v42  ;;  %v2304_v42 = vor.u32 %v2792_v32, %v2303_v31  ;;  %v2325_v43 = vld [vmem:[%s4285_s6 + $0x28] sm:$0xf0]  ;;  %v2661_v31 = vld [vmem:[%s4287_s8 + $0x1c0] sm:$0xf]  ;;  %v2518_v32 = vor.u32 %v2847_v30, %v2517_v29  ;;  %v2455_v63 = vld [vmem:[%s4287_s8 + $0x30] sm:$0xf0] }
  0xc3   :  { %812 = vmatmul.bf16.vlgmr.msra.gmra.mxu1 %v361_v22  ;;  %840 = vmatmul.bf16.vlgmr.msra.gmra.mxu2 %v361_v22  ;;  %v2404_v22 = vor.u32 %v2818_v15, %v2403_v14  ;;  %v2853_v14 = vld [vmem:[%s4287_s8 + $0xe4] sm:$0xf]  ;;  %v2599_v29 = vld [vmem:[%s4287_s8 + $0x150] sm:$0xf0] }
  0xc4   :  { %770 = vmatmul.bf16.vlgmr.msra.gmra.mxu3 %v3618_v49  ;;  %798 = vmatmul.bf16.vlgmr.msra.gmra.mxu0 %v3618_v49  ;;  %v2554_v17 = vor.u32 %v2853_v14, %v2551_v16  ;;  %v2615_v14 = vld [vmem:[%s4287_s8 + $0x170] sm:$0xf0] }
  0xc5   :  { %1216 = vmatpush.bf16.msra.mxu3 %v2428_v45  ;;  %1244 = vmatpush.bf16.msra.mxu0 %v2368_v50  ;;  %v2397_v45 = vld [vmem:[%s4285_s6 + $0xb8] sm:$0xf0]  ;;  %v2328_v50 = vor.u32 %v2797_v41, %v2325_v43  ;;  %v2666_v41 = vor.u32 %v2881_v39, %v2663_v40  ;;  %v2843_v43 = vld [vmem:[%s4287_s8 + $0x8c] sm:$0xf0]  ;;  %v2439_v39 = vld [vmem:[%s4287_s8 + $0x10] sm:$0xf0] }
  0xc6   :  { %1258 = vmatpush.bf16.msra.mxu2 %v2432_v57  ;;  %1206 = vmatpush.bf16.msrb.mxu1 %v2332_v56  ;;  %v2400_v51 = vor.u32 %v2815_v44, %v2397_v45  ;;  %v2380_v57 = vor.u32 %v2812_v18, %v2379_v52  ;;  %v2645_v44 = vld [vmem:[%s4287_s8 + $0x1a0] sm:$0xf]  ;;  %v2877_v52 = vld [vmem:[%s4287_s8 + $0x1a4] sm:$0xf]  ;;  %v2647_v18 = vld [vmem:[%s4287_s8 + $0x1b0] sm:$0xf0] }
  0xc9   :  { %1217 = vmatpush.bf16.msra.mxu3 %v2420_v58  ;;  %1245 = vmatpush.bf16.msra.mxu0 %v2360_v62  ;;  %v2392_v58 = vor.u32 %v2813_v54, %v2389_v55  ;;  %v2309_v62 = vld [vmem:[%s4285_s6 + $0x8] sm:$0xf0]  ;;  %v2485_v54 = vld [vmem:[%s4287_s8 + $0x60] sm:$0xf]  ;;  %v2839_v55 = vld [vmem:[%s4287_s8 + $0x6c] sm:$0xf0] }
  0xca   :  { %1259 = vmatpush.bf16.msra.mxu2 %v2424_v5  ;;  %1207 = vmatpush.bf16.msrb.mxu1 %v2324_v6  ;;  %v2312_v5 = vor.u32 %v2793_v61, %v2309_v62  ;;  %v2384_v6 = vor.u32 %v2811_v0, %v2381_v1  ;;  %v2490_v0 = vor.u32 %v2837_v59, %v2487_v60  ;;  %v2873_v1 = vld [vmem:[%s4287_s8 + $0x184] sm:$0xf]  ;;  %v2541_v60 = vld [vmem:[%s4287_s8 + $0xc8] sm:$0xf] }
  0xcd   :  { %1218 = vmatpush.bf16.msra.mxu3 %v2412_v7  ;;  %1246 = vmatpush.bf16.msra.mxu0 %v2352_v12  ;;  %v2809_v7 = vld [vmem:[%s4285_s6 + $0x84] sm:$0xf]  ;;  %v2549_v12 = vld [vmem:[%s4287_s8 + $0xe0] sm:$0xf] }
  0xce   :  { %1260 = vmatpush.bf16.msra.mxu2 %v2416_v20  ;;  %1208 = vmatpush.bf16.msrb.mxu1 %v2316_v21  ;;  %v2376_v11 = vor.u32 %v2809_v7, %v2373_v8  ;;  %v2550_v15 = vor.u32 %v2855_v13, %v2549_v12  ;;  %v2851_v20 = vld [vmem:[%s4287_s8 + $0xcc] sm:$0xf0]  ;;  %v2471_v12 = vld [vmem:[%s4287_s8 + $0x50] sm:$0xf0]  ;;  %v2869_v13 = vld [vmem:[%s4287_s8 + $0x164] sm:$0xf] }
  0xcf   :  { %v2534_v21 = vor.u32 %v2851_v20, %v2533_v19  ;;  %v2871_v8 = vld [vmem:[%s4287_s8 + $0x16c] sm:$0xf0]  ;;  %v2453_v20 = vld [vmem:[%s4287_s8 + $0x20] sm:$0xf] }
  0xd1   :  { %1219 = vmatpush.bf16.msra.mxu3 %v2404_v22  ;;  %1247 = vmatpush.bf16.msra.mxu0 %v2344_v24  ;;  %v2677_v22 = vld [vmem:[%s4287_s8 + $0x1e0] sm:$0xf] }
  0xd2   :  { %1209 = vmatpush.bf16.msrb.mxu1 %v2308_v33  ;;  %1261 = vmatpush.bf16.msra.mxu2 %v2408_v38  ;;  %v2678_v24 = vor.u32 %v2887_v23, %v2677_v22  ;;  %v2883_v33 = vld [vmem:[%s4287_s8 + $0x1cc] sm:$0xf0]  ;;  %v2597_v22 = vld [vmem:[%s4287_s8 + $0x140] sm:$0xf] }
  0xd3   :  { %2433 = vmatmul.msk.bf16.vlgmr.msrb.gmra.mxu2 %vm259_vm2, %v2304_v42  ;;  %v2598_v26 = vor.u32 %v2867_v10, %v2597_v22  ;;  %v2846_v22 = vld [vmem:[%s4287_s8 + $0xac] sm:$0xf] }
  0xd4   :  { %826 = vmatmul.bf16.vlgmr.msrb.gmra.mxu3 %v3618_v49  ;;  %854 = vmatmul.bf16.vlgmr.msrb.gmra.mxu0 %v3618_v49  ;;  %v2795_v49 = vld [vmem:[%s4285_s6 + $0x14] sm:$0xf] }
  0xd5   :  { %1220 = vmatpush.bf16.msra.mxu3 %v2396_v34  ;;  %1248 = vmatpush.bf16.msra.mxu0 %v2336_v37  ;;  %v2320_v56 = vor.u32 %v2795_v49, %v2317_v53  ;;  %v2845_v34 = vld [vmem:[%s4287_s8 + $0xa4] sm:$0xf]  ;;  %v2662_v37 = vor.u32 %v2883_v33, %v2661_v31  ;;  %v2650_v49 = vor.u32 %v2877_v52, %v2647_v18  ;;  %v2437_v31 = vld [vmem:[%s4287_s8] sm:$0xf]  ;;  %v2559_v52 = vld [vmem:[%s4287_s8 + $0xf8] sm:$0xf0] }
  0xd6   :  { %1279 = vmatpush.bf16.msra.mxu1 %v1200_v46  ;;  %1262 = vmatpush.bf16.msra.mxu2 %v2400_v51  ;;  %v2522_v38 = vor.u32 %v2845_v34, %v2519_v35  ;;  %v2879_v46 = vld [vmem:[%s4287_s8 + $0x1ac] sm:$0xf0]  ;;  %v2581_v33 = vld [vmem:[%s4287_s8 + $0x120] sm:$0xf] }
  0xd7   :  { %1210 = vmatmul.bf16.vlgmr.msrb.gmra.mxu1 %v2296_v47 }
  0xd9   :  { %1221 = vmatpush.bf16.msra.mxu3 %v2388_v48  ;;  %1249 = vmatpush.bf16.msra.mxu0 %v2328_v50  ;;  %v2503_v48 = vld [vmem:[%s4287_s8 + $0x90] sm:$0xf0]  ;;  %v2646_v50 = vor.u32 %v2879_v46, %v2645_v44  ;;  %v2557_v46 = vld [vmem:[%s4287_s8 + $0xe8] sm:$0xf] }
  0xda   :  { %1263 = vmatpush.bf16.msra.mxu2 %v2392_v58  ;;  %1705 = vmatpush.bf16.msrb.mxu1 %v2554_v17  ;;  %v2875_v58 = vld [vmem:[%s4287_s8 + $0x18c] sm:$0xf0]  ;;  %v2618_v17 = vor.u32 %v2869_v13, %v2615_v14  ;;  %v2525_v14 = vld [vmem:[%s4287_s8 + $0xa8] sm:$0xf] }
  0xdd   :  { %1222 = vmatpush.bf16.msra.mxu3 %v2380_v57  ;;  %1250 = vmatpush.bf16.msra.mxu0 %v2320_v56  ;;  %v2629_v57 = vld [vmem:[%s4287_s8 + $0x180] sm:$0xf]  ;;  %v2486_v56 = vor.u32 %v2839_v55, %v2485_v54  ;;  %v2857_v55 = vld [vmem:[%s4287_s8 + $0x104] sm:$0xf] }
  0xde   :  { %1264 = vmatpush.bf16.msra.mxu2 %v2384_v6  ;;  %1706 = vmatpush.bf16.msrb.mxu1 %v2538_v27  ;;  %v2630_v62 = vor.u32 %v2875_v58, %v2629_v57  ;;  %v2613_v6 = vld [vmem:[%s4287_s8 + $0x160] sm:$0xf] }
  0xdf   :  { %v2565_v54 = vld [vmem:[%s4287_s8 + $0x100] sm:$0xf] }
  0xe1   :  { %1223 = vmatpush.bf16.msra.mxu3 %v2372_v2  ;;  %1251 = vmatpush.bf16.msra.mxu0 %v2312_v5  ;;  %v2631_v2 = vld [vmem:[%s4287_s8 + $0x190] sm:$0xf0]  ;;  %v2835_v5 = vld [vmem:[%s4287_s8 + $0x4c] sm:$0xf0] }
  0xe2   :  { %1265 = vmatpush.bf16.msra.mxu2 %v2376_v11  ;;  %1707 = vmatpush.bf16.msrb.mxu1 %v2522_v38  ;;  %v2634_v3 = vor.u32 %v2873_v1, %v2631_v2  ;;  %v2470_v7 = vor.u32 %v2835_v5, %v2469_v4  ;;  %v2614_v11 = vor.u32 %v2871_v8, %v2613_v6  ;;  %v2825_v38 = vld [vmem:[%s4287_s8 + $0x4] sm:$0xf]  ;;  %v2888_v5 = vld [vmem:[%s4287_s8 + $0x1f4] sm:$0xf0]  ;;  %v2850_v6 = vld [vmem:[%s4287_s8 + $0xcc] sm:$0xf] }
  0xe4   :  { %1224 = vmatmul.bf16.vlgmr.msra.gmra.mxu3 %v2300_v9  ;;  %1252 = vmatmul.bf16.vlgmr.msra.gmra.mxu0 %v2296_v47  ;;  %v2841_v47 = vld [vmem:[%s4287_s8 + $0x84] sm:$0xf] }
  0xe5   :  { %1266 = vmatmul.bf16.vlgmr.msra.gmra.mxu2 %v2300_v9  ;;  %1677 = vmatpush.bf16.msrb.mxu3 %v2550_v15  ;;  %v2506_v51 = vor.u32 %v2841_v47, %v2503_v48  ;;  %v2833_v9 = vld [vmem:[%s4287_s8 + $0x44] sm:$0xf]  ;;  %v2856_v47 = vld [vmem:[%s4287_s8 + $0xf4] sm:$0xf0] }
  0xe6   :  { %1691 = vmatpush.bf16.msrb.mxu0 %v2678_v24  ;;  %1719 = vmatpush.bf16.msrb.mxu2 %v2682_v28  ;;  %v2474_v16 = vor.u32 %v2833_v9, %v2471_v12  ;;  %v2829_v24 = vld [vmem:[%s4287_s8 + $0x24] sm:$0xf]  ;;  %v2558_v18 = vor.u32 %v2856_v47, %v2557_v46  ;;  %v2543_v9 = vld [vmem:[%s4287_s8 + $0xd8] sm:$0xf0]  ;;  %v2878_v46 = vld [vmem:[%s4287_s8 + $0x1ac] sm:$0xf] }
  0xe7   :  { %2434 = vmatmul.msk.bf16.vlgmr.msra.gmra.mxu1 %vm259_vm2, %v2304_v42  ;;  %v2501_v42 = vld [vmem:[%s4287_s8 + $0x80] sm:$0xf]  ;;  %v2458_v27 = vor.u32 %v2829_v24, %v2455_v63  ;;  %v2865_v28 = vld [vmem:[%s4287_s8 + $0x144] sm:$0xf] }
  0xe8   :  { %v2502_v45 = vor.u32 %v2843_v43, %v2501_v42  ;;  %1708 = vmatpush.bf16.msrb.mxu1 %v2506_v51  ;;  %v2602_v30 = vor.u32 %v2865_v28, %v2599_v29  ;;  %v2861_v42 = vld [vmem:[%s4287_s8 + $0x124] sm:$0xf]  ;;  %v2583_v43 = vld [vmem:[%s4287_s8 + $0x130] sm:$0xf0]  ;;  %v2854_v51 = vld [vmem:[%s4287_s8 + $0xec] sm:$0xf] }
  0xe9   :  { %1678 = vmatpush.bf16.msrb.mxu3 %v2534_v21  ;;  %v2831_v21 = vld [vmem:[%s4287_s8 + $0x2c] sm:$0xf0]  ;;  %v4082_v47 = vld [vmem:[%s4288_s4] sm:$0xf] }
  0xea   :  { %1692 = vmatpush.bf16.msrb.mxu0 %v2662_v37  ;;  %1720 = vmatpush.bf16.msrb.mxu2 %v2666_v41  ;;  %v2454_v23 = vor.u32 %v2831_v21, %v2453_v20  ;;  %v2863_v37 = vld [vmem:[%s4287_s8 + $0x12c] sm:$0xf0]  ;;  %v2442_v41 = vor.u32 %v2825_v38, %v2439_v39  ;;  %v2669_v21 = vld [vmem:[%s4287_s8 + $0x1c8] sm:$0xf] }
  0xeb   :  { %v2582_v40 = vor.u32 %v2863_v37, %v2581_v33 }
  0xec   :  { %1709 = vmatpush.bf16.msrb.mxu1 %v2490_v0  ;;  %v2685_v0 = vld [vmem:[%s4287_s8 + $0x1e8] sm:$0xf] }
  0xed   :  { %1679 = vmatpush.bf16.msrb.mxu3 %v2518_v32  ;;  %v2827_v32 = vld [vmem:[%s4287_s8 + $0xc] sm:$0xf0]  ;;  %v2686_v8 = vor.u32 %v2888_v5, %v2685_v0 }
  0xee   :  { %1693 = vmatpush.bf16.msrb.mxu0 %v2646_v50  ;;  %1721 = vmatpush.bf16.msrb.mxu2 %v2650_v49  ;;  %v2438_v35 = vor.u32 %v2827_v32, %v2437_v31  ;;  %v2562_v49 = vor.u32 %v2854_v51, %v2559_v52  ;;  %v2671_v31 = vld [vmem:[%s4287_s8 + $0x1d8] sm:$0xf0]  ;;  %v2509_v32 = vld [vmem:[%s4287_s8 + $0x88] sm:$0xf] }
  0xf0   :  { %1710 = vmatpush.bf16.msrb.mxu1 %v2474_v16 }
  0xf1   :  { %1680 = vmatpush.bf16.msrb.mxu3 %v2502_v45  ;;  %v2586_v45 = vor.u32 %v2861_v42, %v2583_v43 }
  0xf2   :  { %1694 = vmatpush.bf16.msrb.mxu0 %v2630_v62  ;;  %1722 = vmatpush.bf16.msrb.mxu2 %v2634_v3  ;;  %v2852_v62 = vld [vmem:[%s4287_s8 + $0xd4] sm:$0xf0] }
  0xf3   :  { %v2542_v4 = vor.u32 %v2852_v62, %v2541_v60  ;;  %v2637_v62 = vld [vmem:[%s4287_s8 + $0x188] sm:$0xf] }
  0xf4   :  { %1711 = vmatpush.bf16.msrb.mxu1 %v2458_v27 }
  0xf5   :  { %1681 = vmatpush.bf16.msrb.mxu3 %v2486_v56  ;;  %v2567_v56 = vld [vmem:[%s4287_s8 + $0x110] sm:$0xf0] }
  0xf6   :  { %1695 = vmatpush.bf16.msrb.mxu0 %v2614_v11  ;;  %1723 = vmatpush.bf16.msrb.mxu2 %v2618_v17  ;;  %v2570_v59 = vor.u32 %v2857_v55, %v2567_v56  ;;  %v2687_v11 = vld [vmem:[%s4287_s8 + $0x1f8] sm:$0xf0]  ;;  %v2546_v17 = vor.u32 %v2850_v6, %v2543_v9  ;;  %v2840_v56 = vld [vmem:[%s4287_s8 + $0x74] sm:$0xf0]  ;;  %v2838_v6 = vld [vmem:[%s4287_s8 + $0x6c] sm:$0xf] }
  0xf8   :  { %1712 = vmatpush.bf16.msrb.mxu1 %v2442_v41  ;;  %v2842_v41 = vld [vmem:[%s4287_s8 + $0x8c] sm:$0xf] }
  0xf9   :  { %1682 = vmatpush.bf16.msrb.mxu3 %v2470_v7 }
  0xfa   :  { %1696 = vmatpush.bf16.msrb.mxu0 %v2598_v26  ;;  %1724 = vmatpush.bf16.msrb.mxu2 %v2602_v30  ;;  %v2527_v26 = vld [vmem:[%s4287_s8 + $0xb8] sm:$0xf0]  ;;  %v2882_v30 = vld [vmem:[%s4287_s8 + $0x1cc] sm:$0xf] }
  0xfb   :  { %v2530_v29 = vor.u32 %v2846_v22, %v2527_v26  ;;  %v2674_v38 = vor.u32 %v2882_v30, %v2671_v31 }
  0xfc   :  { %1761 = vmatpush.bf16.msra.mxu1 %v2562_v49  ;;  %v2655_v49 = vld [vmem:[%s4287_s8 + $0x1b8] sm:$0xf0] }
  0xfd   :  { %1683 = vmatpush.bf16.msrb.mxu3 %v2454_v23  ;;  %v2658_v60 = vor.u32 %v2878_v46, %v2655_v49 }
  0xfe   :  { %1697 = vmatpush.bf16.msrb.mxu0 %v2582_v40  ;;  %1725 = vmatpush.bf16.msrb.mxu2 %v2586_v45  ;;  %v2880_v40 = vld [vmem:[%s4287_s8 + $0x1b4] sm:$0xf0]  ;;  %v2511_v45 = vld [vmem:[%s4287_s8 + $0x98] sm:$0xf0] }
 0x100   :  { %1762 = vmatpush.bf16.msra.mxu1 %v2546_v17  ;;  %v2639_v17 = vld [vmem:[%s4287_s8 + $0x198] sm:$0xf0] }
 0x101   :  { %1684 = vmatpush.bf16.msrb.mxu3 %v2438_v35  ;;  %v2653_v35 = vld [vmem:[%s4287_s8 + $0x1a8] sm:$0xf] }
 0x102   :  { %1726 = vmatpush.bf16.msrb.mxu2 %v2570_v59  ;;  %v2654_v52 = vor.u32 %v2880_v40, %v2653_v35  ;;  %v2870_v35 = vld [vmem:[%s4287_s8 + $0x16c] sm:$0xf] }
 0x104   :  { %1763 = vmatpush.bf16.msra.mxu1 %v2530_v29  ;;  %v2834_v29 = vld [vmem:[%s4287_s8 + $0x4c] sm:$0xf] }
 0x105   :  { %1733 = vmatpush.bf16.msra.mxu3 %v2558_v18  ;;  %v2514_v18 = vor.u32 %v2842_v41, %v2511_v45 }
 0x108   :  { %1764 = vmatpush.bf16.msra.mxu1 %v2514_v18 }
 0x109   :  { %1734 = vmatpush.bf16.msra.mxu3 %v2542_v4 }
 0x130   :  { %v3847_v36 = vpop.f32.mrf.mxu1 }
 0x136   :  { %v3879_v53 = vpop.f32.mrf.mxu2 }
 0x138   :  { %v3899_v61 = vpop.f32.mrf.mxu1 }
 0x13e   :  { %v787_v19 = vpop.f32.mrf.mxu2 }
 0x140   :  { %v3949_v25 = vpop.f32.mrf.mxu1 }
 0x141   :  { %v799_v15 = vpop.f32.mrf.mxu0 }
 0x142   :  { %v800_v48 = vadd.f32 %v799_v15, %v3879_v53  ;;  %v2859_v53 = vld [vmem:[%s4287_s8 + $0x10c] sm:$0xf0]  ;;  %v2848_v15 = vld [vmem:[%s4287_s8 + $0xb4] sm:$0xf0] }
 0x143   :  { %v2566_v58 = vor.u32 %v2859_v53, %v2565_v54  ;;  %v2526_v20 = vor.u32 %v2848_v15, %v2525_v14  ;;  %v912_v14 = vperm.slane %v4082_v47, 3 }
 0x144   :  { %v866_v1 = vrot.slane %v800_v48, 4 }
 0x145   :  { %1698 = vmatpush.bf16.msrb.mxu0 %v2566_v58  ;;  %1735 = vmatpush.bf16.msra.mxu3 %v2526_v20 }
 0x146   :  { %v841_v50 = vpop.f32.mrf.mxu2  ;;  %v867_v23 = vmax.f32 %v800_v48, %v866_v1  ;;  %v910_v1 = vperm.slane %v4082_v47, 1 }
 0x147   :  { %v771_v34 = vpop.f32.mrf.mxu3 }
 0x148   :  { %v772_v2 = vadd.f32 %v771_v34, %v3847_v36  ;;  %v4016_v3 = vpop.f32.mrf.mxu1  ;;  %v2886_v36 = vld [vmem:[%s4287_s8 + $0x1ec] sm:$0xf]  ;;  %v2844_v34 = vld [vmem:[%s4287_s8 + $0x94] sm:$0xf0]  ;;  %v868_v42 = vrot.slane %v867_v23, 2 }
 0x149   :  { %v801_v44 = vpop.f32.mrf.mxu0  ;;  %1747 = vmatpush.bf16.msra.mxu0 %v2686_v8  ;;  %v2510_v39 = vor.u32 %v2844_v34, %v2509_v32  ;;  %v2479_v34 = vld [vmem:[%s4287_s8 + $0x58] sm:$0xf0] }
 0x14a   :  { %v802_v57 = vadd.f32 %v801_v44, %v787_v19  ;;  %v2690_v19 = vor.u32 %v2886_v36, %v2687_v11  ;;  %v860_v10 = vrot.slane %v772_v2, 4  ;;  %v4107_v0 = vmax.f32 %v867_v23, %v868_v42  ;;  %v2495_v11 = vld [vmem:[%s4287_s8 + $0x78] sm:$0xf0]  ;;  %v2836_v23 = vld [vmem:[%s4287_s8 + $0x54] sm:$0xf0] }
 0x14b   :  { %1736 = vmatpush.bf16.msra.mxu3 %v2510_v39  ;;  %v2482_v41 = vor.u32 %v2834_v29, %v2479_v34  ;;  %v2461_v42 = vld [vmem:[%s4287_s8 + $0x28] sm:$0xf] }
 0x14c   :  { %v890_v12 = vrot.slane %v802_v57, 4  ;;  %1775 = vmatpush.bf16.msra.mxu2 %v2690_v19  ;;  %v861_v43 = vmax.f32 %v772_v2, %v860_v10  ;;  %v2477_v19 = vld [vmem:[%s4287_s8 + $0x48] sm:$0xf] }
 0x14d   :  { %v2621_v10 = vld [vmem:[%s4287_s8 + $0x168] sm:$0xf] }
 0x14e   :  { %v843_v63 = vpop.f32.mrf.mxu2  ;;  %v891_v33 = vmax.f32 %v802_v57, %v890_v12  ;;  %v2493_v57 = vld [vmem:[%s4287_s8 + $0x68] sm:$0xf]  ;;  %v862_v2 = vrot.slane %v861_v43, 2  ;;  %v2874_v12 = vld [vmem:[%s4287_s8 + $0x18c] sm:$0xf] }
 0x14f   :  { %v773_v7 = vpop.f32.mrf.mxu3  ;;  %v2494_v36 = vor.u32 %v2840_v56, %v2493_v57  ;;  %v2642_v22 = vor.u32 %v2874_v12, %v2639_v17  ;;  %v2830_v57 = vld [vmem:[%s4287_s8 + $0x2c] sm:$0xf]  ;;  %v2463_v56 = vld [vmem:[%s4287_s8 + $0x38] sm:$0xf0] }
 0x150   :  { %v774_v13 = vadd.f32 %v773_v7, %v3899_v61  ;;  %v2884_v61 = vld [vmem:[%s4287_s8 + $0x1d4] sm:$0xf0]  ;;  %1776 = vmatpush.bf16.msra.mxu2 %v2674_v38  ;;  %v892_v54 = vrot.slane %v891_v33, 2 }
 0x151   :  { %v855_v16 = vpop.f32.mrf.mxu0  ;;  %v2670_v28 = vor.u32 %v2884_v61, %v2669_v21  ;;  %1737 = vmatpush.bf16.msra.mxu3 %v2494_v36  ;;  %v2498_v61 = vor.u32 %v2838_v6, %v2495_v11  ;;  %v2828_v36 = vld [vmem:[%s4287_s8 + $0x14] sm:$0xf0]  ;;  %v2589_v11 = vld [vmem:[%s4287_s8 + $0x128] sm:$0xf] }
 0x152   :  { %v884_v24 = vrot.slane %v774_v13, 4  ;;  %v856_v27 = vadd.f32 %v855_v16, %v841_v50  ;;  %v4087_v50 = vld [vmem:[%s4289_s7] sm:$0x3] }
 0x153   :  { %1748 = vmatpush.bf16.msra.mxu0 %v2670_v28  ;;  %v1009_v8 = vperm.slane %v4087_v50, 0  ;;  %v2872_v28 = vld [vmem:[%s4287_s8 + $0x174] sm:$0xf0]  ;;  %1765 = vmatpush.bf16.msra.mxu1 %v2498_v61 }
 0x154   :  { %v878_v37 = vrot.slane %v856_v27, 4  ;;  %v885_v44 = vmax.f32 %v774_v13, %v884_v24  ;;  %v4092_v53 = vpop.f32.mrf.mxu1  ;;  %1777 = vmatpush.bf16.msra.mxu2 %v2658_v60  ;;  %v4122_v13 = vmax.f32 %v891_v33, %v892_v54  ;;  %v870_v24 = vrot.slane %v4107_v0, 1 }
 0x155   :  { %v2622_v33 = vor.u32 %v2872_v28, %v2621_v10 }
 0x156   :  { %v879_v48 = vmax.f32 %v856_v27, %v878_v37  ;;  %v4110_v5 = vpop.f32.mrf.mxu2  ;;  %v886_v7 = vrot.slane %v885_v44, 2  ;;  %v2478_v27 = vor.u32 %v2836_v23, %v2477_v19  ;;  %v2623_v37 = vld [vmem:[%s4287_s8 + $0x178] sm:$0xf0]  ;;  %v894_v38 = vrot.slane %v4122_v13, 1  ;;  %v2864_v19 = vld [vmem:[%s4287_s8 + $0x134] sm:$0xf0] }
 0x157   :  { %v827_v51 = vpop.f32.mrf.mxu3  ;;  %1749 = vmatpush.bf16.msra.mxu0 %v2654_v52  ;;  %v2626_v46 = vor.u32 %v2870_v35, %v2623_v37  ;;  %1766 = vmatpush.bf16.msra.mxu1 %v2482_v41  ;;  %v871_v61 = vmax.f32 %v4107_v0, %v870_v24  ;;  %v2573_v24 = vld [vmem:[%s4287_s8 + $0x108] sm:$0xf]  ;;  %v2858_v37 = vld [vmem:[%s4287_s8 + $0x10c] sm:$0xf]  ;;  %v1212_v41 = vadd.f32 %v4092_v53, %v1009_v8 }
 0x158   :  { %v828_v55 = vadd.f32 %v827_v51, %v3949_v25  ;;  %v880_v58 = vrot.slane %v879_v48, 2  ;;  %v2876_v25 = vld [vmem:[%s4287_s8 + $0x194] sm:$0xf0]  ;;  %v887_v30 = vmax.f32 %v885_v44, %v886_v7  ;;  %1778 = vmatpush.bf16.msra.mxu2 %v2642_v22  ;;  %1738 = vmatpush.bf16.msra.mxu3 %v2478_v27  ;;  %v2605_v51 = vld [vmem:[%s4287_s8 + $0x148] sm:$0xf] }
 0x159   :  { %v857_v59 = vpop.f32.mrf.mxu0  ;;  %v2638_v16 = vor.u32 %v2876_v25, %v2637_v62  ;;  %v2466_v62 = vor.u32 %v2830_v57, %v2463_v56  ;;  %v2866_v25 = vld [vmem:[%s4287_s8 + $0x14c] sm:$0xf] }
 0x15a   :  { %v872_v4 = vrot.slane %v828_v55, 4  ;;  %v858_v9 = vadd.f32 %v857_v59, %v843_v63  ;;  %v4131_v20 = vmax.f32 %v879_v48, %v880_v58  ;;  %v4140_v63 = vmax.f32 %v861_v43, %v862_v2  ;;  %v2832_v43 = vld [vmem:[%s4287_s8 + $0x34] sm:$0xf0]  ;;  %v2607_v2 = vld [vmem:[%s4287_s8 + $0x158] sm:$0xf0] }
 0x15b   :  { %1750 = vmatpush.bf16.msra.mxu0 %v2638_v16  ;;  %v2462_v48 = vor.u32 %v2832_v43, %v2461_v42  ;;  %v888_v58 = vrot.slane %v887_v30, 1  ;;  %v911_v59 = vperm.slane %v4082_v47, 2  ;;  %v2610_v7 = vor.u32 %v2866_v25, %v2607_v2  ;;  %v2862_v27 = vld [vmem:[%s4287_s8 + $0x12c] sm:$0xf]  ;;  %1767 = vmatpush.bf16.msra.mxu1 %v2466_v62 }
 0x15c   :  { %v873_v15 = vmax.f32 %v828_v55, %v872_v4  ;;  %v902_v21 = vrot.slane %v858_v9, 4  ;;  %v882_v44 = vrot.slane %v4131_v20, 1  ;;  %v4172_v18 = vpop.f32.mrf.mxu1  ;;  %1779 = vmatpush.bf16.msra.mxu2 %v2626_v46  ;;  %v864_v12 = vrot.slane %v4140_v63, 1 }
 0x15d   :  { %1739 = vmatpush.bf16.msra.mxu3 %v2462_v48  ;;  %v889_v28 = vmax.f32 %v887_v30, %v888_v58  ;;  %v1010_v42 = vperm.slane %v4087_v50, 1  ;;  %v1214_v62 = vadd.f32 %v4172_v18, %v1009_v8 }
 0x15e   :  { %v874_v26 = vrot.slane %v873_v15, 2  ;;  %v903_v31 = vmax.f32 %v858_v9, %v902_v21  ;;  %v4174_v54 = vpop.f32.mrf.mxu2  ;;  %v2445_v9 = vld [vmem:[%s4287_s8 + $0x8] sm:$0xf]  ;;  %v2826_v21 = vld [vmem:[%s4287_s8 + $0xc] sm:$0xf]  ;;  %v883_v22 = vmax.f32 %v4131_v20, %v882_v44 }
 0x15f   :  { %v829_v32 = vpop.f32.mrf.mxu3  ;;  %1751 = vmatpush.bf16.msra.mxu0 %v2622_v33  ;;  %v2446_v17 = vor.u32 %v2828_v36, %v2445_v9  ;;  %v2591_v20 = vld [vmem:[%s4287_s8 + $0x138] sm:$0xf0]  ;;  %v909_v33 = vperm.slane %v4082_v47, 0 }
 0x160   :  { %v875_v39 = vmax.f32 %v873_v15, %v874_v26  ;;  %v830_v40 = vadd.f32 %v829_v32, %v4016_v3  ;;  %v904_v45 = vrot.slane %v903_v31, 2  ;;  %v2868_v3 = vld [vmem:[%s4287_s8 + $0x154] sm:$0xf0]  ;;  %v895_v15 = vmax.f32 %v4122_v13, %v894_v38  ;;  %v2447_v13 = vld [vmem:[%s4287_s8 + $0x18] sm:$0xf0]  ;;  %1780 = vmatpush.bf16.msra.mxu2 %v2610_v7 }
 0x161   :  { %v2606_v55 = vor.u32 %v2868_v3, %v2605_v51  ;;  %v1253_v10 = vpop.f32.mrf.mxu0  ;;  %v2590_v26 = vor.u32 %v2864_v19, %v2589_v11  ;;  %v2450_v0 = vor.u32 %v2826_v21, %v2447_v13  ;;  %v2860_v32 = vld [vmem:[%s4287_s8 + $0x114] sm:$0xf0]  ;;  %v2594_v35 = vor.u32 %v2862_v27, %v2591_v20  ;;  %v2575_v38 = vld [vmem:[%s4287_s8 + $0x118] sm:$0xf0]  ;;  %1740 = vmatpush.bf16.msra.mxu3 %v2446_v17 }
 0x162   :  { %v876_v52 = vrot.slane %v875_v39, 1  ;;  %v896_v49 = vrot.slane %v830_v40, 4  ;;  %v905_v60 = vmax.f32 %v903_v31, %v904_v45  ;;  %v920_v43 = vadd.f32 %v912_v14, %v883_v22 }
 0x163   :  { %1752 = vmatpush.bf16.msra.mxu0 %v2606_v55  ;;  %v2574_v46 = vor.u32 %v2860_v32, %v2573_v24  ;;  %v921_v48 = vadd.f32 %v909_v33, %v889_v28  ;;  %1768 = vmatpush.bf16.msra.mxu1 %v2450_v0  ;;  %v2578_v51 = vor.u32 %v2858_v37, %v2575_v38 }
 0x164   :  { %v877_v4 = vmax.f32 %v875_v39, %v876_v52  ;;  %v897_v6 = vmax.f32 %v830_v40, %v896_v49  ;;  %v906_v16 = vrot.slane %v905_v60, 1  ;;  %v865_v39 = vmax.f32 %v4140_v63, %v864_v12  ;;  %1781 = vmatpush.bf16.msra.mxu2 %v2594_v35  ;;  %v1281_v52 = vpop.f32.mrf.mxu1 }
 0x165   :  { %v922_v40 = vadd.f32 %v910_v1, %v895_v15  ;;  %v918_v63 = vadd.f32 %v910_v1, %v871_v61  ;;  %v1254_v58 = vadd.f32 %v1253_v10, %v1010_v42  ;;  %v929_v2 = vmax.f32 %v921_v48, 0.0 }
 0x166   :  { %v898_v23 = vrot.slane %v897_v6, 2  ;;  %v907_v29 = vmax.f32 %v905_v60, %v906_v16  ;;  %v919_v30 = vadd.f32 %v911_v59, %v877_v4  ;;  %v917_v57 = vadd.f32 %v909_v33, %v865_v39 }
 0x167   :  { %v1225_v31 = vpop.f32.mrf.mxu3  ;;  %1753 = vmatpush.bf16.msra.mxu0 %v2590_v26  ;;  %v930_v56 = vmax.f32 %v922_v40, 0.0  ;;  %v928_v60 = vmax.f32 %v920_v43, 0.0  ;;  %v926_v25 = vmax.f32 %v918_v63, 0.0 }
 0x168   :  { %v899_v34 = vmax.f32 %v897_v6, %v898_v23  ;;  %v924_v44 = vadd.f32 %v912_v14, %v907_v29  ;;  %v927_v53 = vmax.f32 %v919_v30, 0.0  ;;  %v1226_v49 = vadd.f32 %v1225_v31, %v1212_v41  ;;  %v1267_v55 = vpop.f32.mrf.mxu2  ;;  %1782 = vmatpush.bf16.msra.mxu2 %v2578_v51 }
 0x169   :  { %v1255_v36 = vpop.f32.mrf.mxu0  ;;  %v925_v12 = vmax.f32 %v917_v57, 0.0  ;;  %v944_v15 = vrot.slane %v930_v56, 6  ;;  %v1268_v50 = vadd.f32 %v1267_v55, %v1254_v58  ;;  %v943_v16 = vrot.slane %v928_v60, 2 }
 0x16a   :  { %v900_v45 = vrot.slane %v899_v34, 1  ;;  %v932_v14 = vmax.f32 %v924_v44, 0.0  ;;  %v942_v6 = vrot.slane %v927_v53, 4  ;;  %v1240_v9 = vadd.f32 %v4110_v5, %v1226_v49 }
 0x16b   :  { %1754 = vmatpush.bf16.msra.mxu0 %v2574_v46  ;;  %v952_v17 = vsel %vm264_vm1, %v929_v2, %v944_v15  ;;  %v1256_v19 = vadd.f32 %v1255_v36, %v1010_v42  ;;  %v1282_v26 = vadd.f32 %v1281_v52, %v1268_v50 }
 0x16c   :  { %v901_v3 = vmax.f32 %v899_v34, %v900_v45  ;;  %v946_v8 = vrot.slane %v932_v14, 2  ;;  %v949_v21 = vsel %vm948_vm3, %v942_v6, %v943_v16  ;;  %v1286_v61 = vmax.f32 %v1240_v9, 0.0  ;;  %v1283_v28 = vpop.f32.mrf.mxu1 }
 0x16d   :  { %v1287_v32 = vmax.f32 %v1282_v26, 0.0 }
 0x16e   :  { %v923_v1 = vadd.f32 %v911_v59, %v901_v3  ;;  %v941_v59 = vrot.slane %v926_v25, 6 }
 0x16f   :  { %v1227_v4 = vpop.f32.mrf.mxu3 }
 0x170   :  { %v931_v7 = vmax.f32 %v923_v1, 0.0  ;;  %v1228_v11 = vadd.f32 %v1227_v4, %v1214_v62  ;;  %v1269_v23 = vpop.f32.mrf.mxu2  ;;  %v947_v27 = vsel %vm264_vm1, %v925_v12, %v941_v59 }
 0x171   :  { %v1270_v13 = vadd.f32 %v1269_v23, %v1256_v19  ;;  %v951_v31 = vsel %vm950_vm4, %v947_v27, %v949_v21  ;;  %v1356_v27 = vld [vmem:[%s4291_s9] sm:$0xf] }
 0x172   :  { %v945_v18 = vrot.slane %v931_v7, 4  ;;  %v1242_v47 = vadd.f32 %v4174_v54, %v1228_v11 }
 0x173   :  { %v1284_v0 = vadd.f32 %v1283_v28, %v1270_v13 }
 0x174   :  { %v953_v5 = vsel %vm948_vm3, %v945_v18, %v946_v8  ;;  %v1288_v22 = vmax.f32 %v1242_v47, 0.0 }
 0x175   :  { %v954_v10 = vsel %vm950_vm4, %v952_v17, %v953_v5  ;;  %v1289_v33 = vmax.f32 %v1284_v0, 0.0  ;;  %v1841_v0 = vperm.slane %v1356_v27, 3 }
 0x176   :  { %v959_v54 = vrot.slane %v954_v10, 7  ;;  %v1290_v29 = vpack.c.bf16 %v1288_v22, %v1286_v61 }
 0x177   :  { %v1291_v35 = vpack.c.bf16 %v1289_v33, %v1287_v32 }
 0x178   :  { %v961_v20 = vsel %vm960_vm5, %v959_v54, %v951_v31  ;;  %1685 = vmatmul.bf16.vlgmr.msrb.gmra.mxu3 %v1290_v29  ;;  %1713 = vmatmul.bf16.vlgmr.msrb.gmra.mxu1 %v1290_v29 }
 0x179   :  { %v963_v24 = vsel %vm962_vm6, %v959_v54, %v961_v20  ;;  %1699 = vmatmul.bf16.vlgmr.msrb.gmra.mxu0 %v1291_v35  ;;  %1727 = vmatmul.bf16.vlgmr.msrb.gmra.mxu2 %v1291_v35 }
 0x17a   :  { %v965_v30 = vsel %vm964_vm7, %v959_v54, %v963_v24 }
 0x17b   :  { %v967_v34 = vsel %vm966_vm8, %v959_v54, %v965_v30 }
 0x17c   :  { %969 = vst [vmem:[%s4290_s10] sm:$0xff] %v967_v34 }
 0x188   :  { %1741 = vmatmul.bf16.vlgmr.msra.gmra.mxu3 %v1290_v29  ;;  %1769 = vmatmul.bf16.vlgmr.msra.gmra.mxu1 %v1290_v29 }
 0x189   :  { %1755 = vmatmul.bf16.vlgmr.msra.gmra.mxu0 %v1291_v35  ;;  %1783 = vmatmul.bf16.vlgmr.msra.gmra.mxu2 %v1291_v35  ;;  %v1839_v35 = vperm.slane %v1356_v27, 1 }
 0x1f5   :  { %v1714_v37 = vpop.f32.mrf.mxu1 }
 0x1f6   :  { %v1700_v38 = vpop.f32.mrf.mxu0 }
 0x1fb   :  { %v1686_v39 = vpop.f32.mrf.mxu3 }
 0x1fc   :  { %v1728_v40 = vpop.f32.mrf.mxu2  ;;  %v1701_v49 = vadd.f32 %v1700_v38, %v1686_v39 }
 0x1fd   :  { %v1716_v43 = vpop.f32.mrf.mxu1  ;;  %v1729_v44 = vadd.f32 %v1728_v40, %v1714_v37  ;;  %v1840_v40 = vperm.slane %v1356_v27, 2 }
 0x1fe   :  { %v1702_v41 = vpop.f32.mrf.mxu0  ;;  %v1789_v1 = vrot.slane %v1701_v49, 4 }
 0x1ff   :  { %v1795_v63 = vrot.slane %v1729_v44, 4 }
 0x200   :  { %v1790_v15 = vmax.f32 %v1701_v49, %v1789_v1 }
 0x201   :  { %v1796_v57 = vmax.f32 %v1729_v44, %v1795_v63 }
 0x202   :  { %v1791_v61 = vrot.slane %v1790_v15, 2 }
 0x203   :  { %v1688_v42 = vpop.f32.mrf.mxu3  ;;  %v1797_v4 = vrot.slane %v1796_v57, 2 }
 0x204   :  { %v1730_v45 = vpop.f32.mrf.mxu2  ;;  %v1703_v51 = vadd.f32 %v1702_v41, %v1688_v42  ;;  %v1792_v24 = vmax.f32 %v1790_v15, %v1791_v61 }
 0x205   :  { %v1731_v46 = vadd.f32 %v1730_v45, %v1716_v43  ;;  %v1770_v56 = vpop.f32.mrf.mxu1  ;;  %v1798_v8 = vmax.f32 %v1796_v57, %v1797_v4 }
 0x206   :  { %v1756_v48 = vpop.f32.mrf.mxu0  ;;  %v1813_v60 = vrot.slane %v1703_v51, 4  ;;  %v1793_v43 = vrot.slane %v1792_v24, 1 }
 0x207   :  { %v1819_v53 = vrot.slane %v1731_v46, 4  ;;  %v1799_v26 = vrot.slane %v1798_v8, 1 }
 0x208   :  { %v1814_v6 = vmax.f32 %v1703_v51, %v1813_v60  ;;  %v1794_v49 = vmax.f32 %v1792_v24, %v1793_v43 }
 0x209   :  { %v1820_v55 = vmax.f32 %v1731_v46, %v1819_v53  ;;  %v1800_v34 = vmax.f32 %v1798_v8, %v1799_v26 }
 0x20a   :  { %v1815_v47 = vrot.slane %v1814_v6, 2 }
 0x20b   :  { %v1742_v3 = vpop.f32.mrf.mxu3  ;;  %v1821_v25 = vrot.slane %v1820_v55, 2  ;;  %v1847_v63 = vadd.f32 %v1839_v35, %v1800_v34 }
 0x20c   :  { %v1757_v52 = vadd.f32 %v1756_v48, %v1742_v3  ;;  %v1784_v62 = vpop.f32.mrf.mxu2  ;;  %v1816_v54 = vmax.f32 %v1814_v6, %v1815_v47 }
 0x20d   :  { %v1785_v2 = vadd.f32 %v1784_v62, %v1770_v56  ;;  %v1822_v50 = vmax.f32 %v1820_v55, %v1821_v25  ;;  %v1772_v19 = vpop.f32.mrf.mxu1 }
 0x20e   :  { %v1801_v58 = vrot.slane %v1757_v52, 4  ;;  %v1758_v36 = vpop.f32.mrf.mxu0  ;;  %v1817_v38 = vrot.slane %v1816_v54, 1 }
 0x20f   :  { %v1807_v9 = vrot.slane %v1785_v2, 4  ;;  %v1823_v22 = vrot.slane %v1822_v50, 1 }
 0x210   :  { %v1802_v14 = vmax.f32 %v1757_v52, %v1801_v58  ;;  %v1818_v48 = vmax.f32 %v1816_v54, %v1817_v38  ;;  %v1838_v52 = vperm.slane %v1356_v27, 0  ;;  %v1855_v58 = vmax.f32 %v1847_v63, 0.0 }
 0x211   :  { %v1808_v16 = vmax.f32 %v1785_v2, %v1807_v9  ;;  %v1824_v32 = vmax.f32 %v1822_v50, %v1823_v22 }
 0x212   :  { %v1803_v7 = vrot.slane %v1802_v14, 2  ;;  %v1850_v60 = vadd.f32 %v1838_v52, %v1818_v48  ;;  %v1846_v25 = vadd.f32 %v1838_v52, %v1794_v49 }
 0x213   :  { %v1744_v11 = vpop.f32.mrf.mxu3  ;;  %v1809_v17 = vrot.slane %v1808_v16, 2  ;;  %v1851_v44 = vadd.f32 %v1839_v35, %v1824_v32 }
 0x214   :  { %v1759_v12 = vadd.f32 %v1758_v36, %v1744_v11  ;;  %v1804_v59 = vmax.f32 %v1802_v14, %v1803_v7  ;;  %v1786_v5 = vpop.f32.mrf.mxu2  ;;  %v1870_v7 = vrot.slane %v1855_v58, 6  ;;  %v1858_v9 = vmax.f32 %v1850_v60, 0.0 }
 0x215   :  { %v1810_v23 = vmax.f32 %v1808_v16, %v1809_v17  ;;  %v1787_v10 = vadd.f32 %v1786_v5, %v1772_v19  ;;  %v1859_v55 = vmax.f32 %v1851_v44, 0.0  ;;  %v1854_v15 = vmax.f32 %v1846_v25, 0.0 }
 0x216   :  { %v1825_v18 = vrot.slane %v1759_v12, 4  ;;  %v1805_v28 = vrot.slane %v1804_v59, 1 }
 0x217   :  { %v1811_v29 = vrot.slane %v1810_v23, 1  ;;  %v1831_v31 = vrot.slane %v1787_v10, 4  ;;  %v1873_v2 = vrot.slane %v1859_v55, 6  ;;  %v1876_v47 = vsel %vm264_vm1, %v1854_v15, %v1870_v7 }
 0x218   :  { %v1826_v21 = vmax.f32 %v1759_v12, %v1825_v18  ;;  %v1806_v39 = vmax.f32 %v1804_v59, %v1805_v28 }
 0x219   :  { %v1812_v33 = vmax.f32 %v1810_v23, %v1811_v29  ;;  %v1832_v30 = vmax.f32 %v1787_v10, %v1831_v31  ;;  %v1879_v50 = vsel %vm264_vm1, %v1858_v9, %v1873_v2 }
 0x21a   :  { %v1827_v13 = vrot.slane %v1826_v21, 2  ;;  %v1848_v51 = vadd.f32 %v1840_v40, %v1806_v39 }
 0x21b   :  { %v1833_v41 = vrot.slane %v1832_v30, 2  ;;  %v1849_v45 = vadd.f32 %v1841_v0, %v1812_v33 }
 0x21c   :  { %v1828_v20 = vmax.f32 %v1826_v21, %v1827_v13  ;;  %v1856_v14 = vmax.f32 %v1848_v51, 0.0 }
 0x21d   :  { %v1834_v46 = vmax.f32 %v1832_v30, %v1833_v41  ;;  %v1857_v57 = vmax.f32 %v1849_v45, 0.0 }
 0x21e   :  { %v1829_v37 = vrot.slane %v1828_v20, 1  ;;  %v1871_v36 = vrot.slane %v1856_v14, 4 }
 0x21f   :  { %v1835_v3 = vrot.slane %v1834_v46, 1  ;;  %v1872_v4 = vrot.slane %v1857_v57, 2 }
 0x220   :  { %v1830_v42 = vmax.f32 %v1828_v20, %v1829_v37 }
 0x221   :  { %v1836_v56 = vmax.f32 %v1834_v46, %v1835_v3  ;;  %v1877_v16 = vsel %vm948_vm3, %v1871_v36, %v1872_v4 }
 0x222   :  { %v1852_v53 = vadd.f32 %v1840_v40, %v1830_v42  ;;  %v1878_v17 = vsel %vm950_vm4, %v1876_v47, %v1877_v16 }
 0x223   :  { %v1853_v1 = vadd.f32 %v1841_v0, %v1836_v56 }
 0x224   :  { %v1860_v62 = vmax.f32 %v1852_v53, 0.0 }
 0x225   :  { %v1861_v6 = vmax.f32 %v1853_v1, 0.0 }
 0x226   :  { %v1874_v11 = vrot.slane %v1860_v62, 4 }
 0x227   :  { %v1875_v12 = vrot.slane %v1861_v6, 2 }
 0x229   :  { %v1880_v8 = vsel %vm948_vm3, %v1874_v11, %v1875_v12 }
 0x22a   :  { %v1881_v18 = vsel %vm950_vm4, %v1879_v50, %v1880_v8 }
 0x22b   :  { %v1884_v59 = vrot.slane %v1881_v18, 7 }
 0x22d   :  { %v1885_v19 = vsel %vm960_vm5, %v1884_v59, %v1878_v17 }
 0x22e   :  { %v1886_v21 = vsel %vm962_vm6, %v1884_v59, %v1885_v19 }
 0x22f   :  { %v1887_v5 = vsel %vm964_vm7, %v1884_v59, %v1886_v21 }
 0x230   :  { %v1888_v61 = vsel %vm966_vm8, %v1884_v59, %v1887_v5 }
 0x231   :  { %1890 = vst [vmem:[%s4290_s10 + $0x8] sm:$0xff] %v1888_v61 }

// kernel: pointnetpp_forward.7
= control target key start
LH: loop header
LB: loop body
LE: loop exit
PB: predicated region body
PF: predicated region fallthrough
CT: control target
= control target key end

     0   :  { %s6540_s0 = inlined_call_operand.vmem [shape: bf16[2,1024], index: 0, kind: input, shape index: {}]   ;;  %s6541_s1 = inlined_call_operand.vmem [shape: bf16[1024,512], index: 1, kind: input, shape index: {}]   ;;  %s6542_s2 = inlined_call_operand.vmem [shape: f32[1,512], index: 2, kind: input, shape index: {}]   ;;  %s6543_s3 = inlined_call_operand.vmem [shape: bf16[512,256], index: 3, kind: input, shape index: {}]   ;;  %s6544_s4 = inlined_call_operand.vmem [shape: f32[1,256], index: 4, kind: input, shape index: {}]   ;;  %s6545_s5 = inlined_call_operand.vmem [shape: bf16[256,10], index: 5, kind: input, shape index: {}]   ;;  %s6546_s6 = inlined_call_operand.vmem [shape: f32[1,10], index: 6, kind: input, shape index: {}]   ;;  %s6547_s7 = inlined_call_operand.hbm [shape: f32[2,10], index: 7, kind: output, shape index: {}]  }
   0x1   :  { %v2817_v0 = vld [vmem:[%s6541_s1 + $0xe0] sm:$0xf]  ;;  %v4077_v1 = vld [vmem:[%s6541_s1 + $0xec] sm:$0xf0] }
   0x2   :  { %v2945_v2 = vld [vmem:[%s6541_s1 + $0x1e0] sm:$0xf]  ;;  %v2818_v3 = vor.u32 %v4077_v1, %v2817_v0  ;;  %v4109_v4 = vld [vmem:[%s6541_s1 + $0x1ec] sm:$0xf0] }
   0x3   :  { %v3073_v5 = vld [vmem:[%s6541_s1 + $0x2e0] sm:$0xf]  ;;  %v4141_v6 = vld [vmem:[%s6541_s1 + $0x2ec] sm:$0xf0]  ;;  %v2946_v7 = vor.u32 %v4109_v4, %v2945_v2 }
   0x4   :  { %v3074_v8 = vor.u32 %v4141_v6, %v3073_v5  ;;  %v3201_v9 = vld [vmem:[%s6541_s1 + $0x3e0] sm:$0xf]  ;;  %v4173_v10 = vld [vmem:[%s6541_s1 + $0x3ec] sm:$0xf0]  ;;  %1592 = vmatpush.bf16.msra.mxu0 %v2818_v3 }
   0x5   :  { %v2801_v11 = vld [vmem:[%s6541_s1 + $0xc0] sm:$0xf]  ;;  %v3202_v12 = vor.u32 %v4173_v10, %v3201_v9  ;;  %v4073_v13 = vld [vmem:[%s6541_s1 + $0xcc] sm:$0xf0]  ;;  %1605 = vmatpush.bf16.msra.mxu1 %v2946_v7 }
   0x6   :  { %v2929_v14 = vld [vmem:[%s6541_s1 + $0x1c0] sm:$0xf]  ;;  %v4105_v15 = vld [vmem:[%s6541_s1 + $0x1cc] sm:$0xf0]  ;;  %1618 = vmatpush.bf16.msra.mxu2 %v3074_v8  ;;  %v2802_v16 = vor.u32 %v4073_v13, %v2801_v11 }
   0x7   :  { %v2930_v17 = vor.u32 %v4105_v15, %v2929_v14  ;;  %v3057_v18 = vld [vmem:[%s6541_s1 + $0x2c0] sm:$0xf]  ;;  %v4137_v19 = vld [vmem:[%s6541_s1 + $0x2cc] sm:$0xf0]  ;;  %1631 = vmatpush.bf16.msra.mxu3 %v3202_v12 }
   0x8   :  { %v3185_v20 = vld [vmem:[%s6541_s1 + $0x3c0] sm:$0xf]  ;;  %v3058_v21 = vor.u32 %v4137_v19, %v3057_v18  ;;  %v4169_v22 = vld [vmem:[%s6541_s1 + $0x3cc] sm:$0xf0]  ;;  %1593 = vmatpush.bf16.msra.mxu0 %v2802_v16 }
   0x9   :  { %v2785_v23 = vld [vmem:[%s6541_s1 + $0xa0] sm:$0xf]  ;;  %v4069_v24 = vld [vmem:[%s6541_s1 + $0xac] sm:$0xf0]  ;;  %v3186_v25 = vor.u32 %v4169_v22, %v3185_v20  ;;  %1606 = vmatpush.bf16.msra.mxu1 %v2930_v17 }
   0xa   :  { %v2913_v26 = vld [vmem:[%s6541_s1 + $0x1a0] sm:$0xf]  ;;  %v4101_v27 = vld [vmem:[%s6541_s1 + $0x1ac] sm:$0xf0]  ;;  %v2786_v29 = vor.u32 %v4069_v24, %v2785_v23  ;;  %1619 = vmatpush.bf16.msra.mxu2 %v3058_v21 }
   0xb   :  { %v3041_v28 = vld [vmem:[%s6541_s1 + $0x2a0] sm:$0xf]  ;;  %v4133_v30 = vld [vmem:[%s6541_s1 + $0x2ac] sm:$0xf0]  ;;  %v2914_v33 = vor.u32 %v4101_v27, %v2913_v26  ;;  %1632 = vmatpush.bf16.msra.mxu3 %v3186_v25 }
   0xc   :  { %v3169_v31 = vld [vmem:[%s6541_s1 + $0x3a0] sm:$0xf]  ;;  %v4165_v32 = vld [vmem:[%s6541_s1 + $0x3ac] sm:$0xf0]  ;;  %v3042_v34 = vor.u32 %v4133_v30, %v3041_v28  ;;  %1594 = vmatpush.bf16.msra.mxu0 %v2786_v29 }
   0xd   :  { %v2769_v35 = vld [vmem:[%s6541_s1 + $0x80] sm:$0xf]  ;;  %v4065_v36 = vld [vmem:[%s6541_s1 + $0x8c] sm:$0xf0]  ;;  %v3170_v38 = vor.u32 %v4165_v32, %v3169_v31  ;;  %1607 = vmatpush.bf16.msra.mxu1 %v2914_v33 }
   0xe   :  { %v2897_v37 = vld [vmem:[%s6541_s1 + $0x180] sm:$0xf]  ;;  %v4097_v39 = vld [vmem:[%s6541_s1 + $0x18c] sm:$0xf0]  ;;  %v2770_v44 = vor.u32 %v4065_v36, %v2769_v35  ;;  %1620 = vmatpush.bf16.msra.mxu2 %v3042_v34 }
   0xf   :  { %v3025_v40 = vld [vmem:[%s6541_s1 + $0x280] sm:$0xf]  ;;  %v4129_v41 = vld [vmem:[%s6541_s1 + $0x28c] sm:$0xf0]  ;;  %v2898_v45 = vor.u32 %v4097_v39, %v2897_v37  ;;  %1633 = vmatpush.bf16.msra.mxu3 %v3170_v38 }
  0x10   :  { %v3153_v42 = vld [vmem:[%s6541_s1 + $0x380] sm:$0xf]  ;;  %v4161_v43 = vld [vmem:[%s6541_s1 + $0x38c] sm:$0xf0]  ;;  %v3026_v46 = vor.u32 %v4129_v41, %v3025_v40  ;;  %1595 = vmatpush.bf16.msra.mxu0 %v2770_v44 }
  0x11   :  { %v2753_v47 = vld [vmem:[%s6541_s1 + $0x60] sm:$0xf]  ;;  %v4061_v48 = vld [vmem:[%s6541_s1 + $0x6c] sm:$0xf0]  ;;  %v3154_v50 = vor.u32 %v4161_v43, %v3153_v42  ;;  %1608 = vmatpush.bf16.msra.mxu1 %v2898_v45 }
  0x12   :  { %v2881_v49 = vld [vmem:[%s6541_s1 + $0x160] sm:$0xf]  ;;  %v4093_v51 = vld [vmem:[%s6541_s1 + $0x16c] sm:$0xf0]  ;;  %v2754_v56 = vor.u32 %v4061_v48, %v2753_v47  ;;  %1621 = vmatpush.bf16.msra.mxu2 %v3026_v46 }
  0x13   :  { %v3009_v52 = vld [vmem:[%s6541_s1 + $0x260] sm:$0xf]  ;;  %v4125_v53 = vld [vmem:[%s6541_s1 + $0x26c] sm:$0xf0]  ;;  %v2882_v57 = vor.u32 %v4093_v51, %v2881_v49  ;;  %1634 = vmatpush.bf16.msra.mxu3 %v3154_v50 }
  0x14   :  { %v3137_v54 = vld [vmem:[%s6541_s1 + $0x360] sm:$0xf]  ;;  %v4157_v55 = vld [vmem:[%s6541_s1 + $0x36c] sm:$0xf0]  ;;  %v3010_v58 = vor.u32 %v4125_v53, %v3009_v52  ;;  %1596 = vmatpush.bf16.msra.mxu0 %v2754_v56 }
  0x15   :  { %v2737_v59 = vld [vmem:[%s6541_s1 + $0x40] sm:$0xf]  ;;  %v4057_v60 = vld [vmem:[%s6541_s1 + $0x4c] sm:$0xf0]  ;;  %v3138_v62 = vor.u32 %v4157_v55, %v3137_v54  ;;  %1609 = vmatpush.bf16.msra.mxu1 %v2882_v57 }
  0x16   :  { %v2865_v61 = vld [vmem:[%s6541_s1 + $0x140] sm:$0xf]  ;;  %v4089_v63 = vld [vmem:[%s6541_s1 + $0x14c] sm:$0xf0]  ;;  %v2738_v4 = vor.u32 %v4057_v60, %v2737_v59  ;;  %1622 = vmatpush.bf16.msra.mxu2 %v3010_v58 }
  0x17   :  { %v2993_v0 = vld [vmem:[%s6541_s1 + $0x240] sm:$0xf]  ;;  %v4121_v1 = vld [vmem:[%s6541_s1 + $0x24c] sm:$0xf0]  ;;  %v2866_v5 = vor.u32 %v4089_v63, %v2865_v61  ;;  %1635 = vmatpush.bf16.msra.mxu3 %v3138_v62 }
  0x18   :  { %v3121_v2 = vld [vmem:[%s6541_s1 + $0x340] sm:$0xf]  ;;  %v4153_v3 = vld [vmem:[%s6541_s1 + $0x34c] sm:$0xf0]  ;;  %v2994_v6 = vor.u32 %v4121_v1, %v2993_v0  ;;  %1597 = vmatpush.bf16.msra.mxu0 %v2738_v4 }
  0x19   :  { %v2721_v7 = vld [vmem:[%s6541_s1 + $0x20] sm:$0xf]  ;;  %v4053_v8 = vld [vmem:[%s6541_s1 + $0x2c] sm:$0xf0]  ;;  %v3122_v10 = vor.u32 %v4153_v3, %v3121_v2  ;;  %1610 = vmatpush.bf16.msra.mxu1 %v2866_v5 }
  0x1a   :  { %v2849_v9 = vld [vmem:[%s6541_s1 + $0x120] sm:$0xf]  ;;  %v4085_v11 = vld [vmem:[%s6541_s1 + $0x12c] sm:$0xf0]  ;;  %v2722_v16 = vor.u32 %v4053_v8, %v2721_v7  ;;  %1623 = vmatpush.bf16.msra.mxu2 %v2994_v6 }
  0x1b   :  { %v2977_v12 = vld [vmem:[%s6541_s1 + $0x220] sm:$0xf]  ;;  %v4117_v13 = vld [vmem:[%s6541_s1 + $0x22c] sm:$0xf0]  ;;  %v2850_v19 = vor.u32 %v4085_v11, %v2849_v9  ;;  %1636 = vmatpush.bf16.msra.mxu3 %v3122_v10 }
  0x1c   :  { %v3105_v14 = vld [vmem:[%s6541_s1 + $0x320] sm:$0xf]  ;;  %v4149_v15 = vld [vmem:[%s6541_s1 + $0x32c] sm:$0xf0]  ;;  %v2978_v20 = vor.u32 %v4117_v13, %v2977_v12  ;;  %1598 = vmatpush.bf16.msra.mxu0 %v2722_v16 }
  0x1d   :  { %v2705_v17 = vld [vmem:[%s6541_s1] sm:$0xf]  ;;  %v4049_v18 = vld [vmem:[%s6541_s1 + $0xc] sm:$0xf0]  ;;  %v3106_v24 = vor.u32 %v4149_v15, %v3105_v14  ;;  %1611 = vmatpush.bf16.msra.mxu1 %v2850_v19 }
  0x1e   :  { %v2833_v21 = vld [vmem:[%s6541_s1 + $0x100] sm:$0xf]  ;;  %v4081_v22 = vld [vmem:[%s6541_s1 + $0x10c] sm:$0xf0]  ;;  %v2706_v31 = vor.u32 %v4049_v18, %v2705_v17  ;;  %1624 = vmatpush.bf16.msra.mxu2 %v2978_v20 }
  0x1f   :  { %v2961_v23 = vld [vmem:[%s6541_s1 + $0x200] sm:$0xf]  ;;  %v4113_v25 = vld [vmem:[%s6541_s1 + $0x20c] sm:$0xf0]  ;;  %v2834_v35 = vor.u32 %v4081_v22, %v2833_v21  ;;  %1637 = vmatpush.bf16.msra.mxu3 %v3106_v24 }
  0x20   :  { %v3089_v26 = vld [vmem:[%s6541_s1 + $0x300] sm:$0xf]  ;;  %v4145_v27 = vld [vmem:[%s6541_s1 + $0x30c] sm:$0xf0]  ;;  %v2962_v36 = vor.u32 %v4113_v25, %v2961_v23  ;;  %1599 = vmatpush.bf16.msra.mxu0 %v2706_v31 }
  0x21   :  { %v3329_v28 = vld [vmem:[%s6541_s1 + $0x4e0] sm:$0xf]  ;;  %v4205_v29 = vld [vmem:[%s6541_s1 + $0x4ec] sm:$0xf0]  ;;  %v3090_v39 = vor.u32 %v4145_v27, %v3089_v26  ;;  %1612 = vmatpush.bf16.msra.mxu1 %v2834_v35 }
  0x22   :  { %v3457_v30 = vld [vmem:[%s6541_s1 + $0x5e0] sm:$0xf]  ;;  %v4237_v32 = vld [vmem:[%s6541_s1 + $0x5ec] sm:$0xf0]  ;;  %v3330_v40 = vor.u32 %v4205_v29, %v3329_v28  ;;  %1625 = vmatpush.bf16.msra.mxu2 %v2962_v36 }
  0x23   :  { %v3585_v33 = vld [vmem:[%s6541_s1 + $0x6e0] sm:$0xf]  ;;  %v4269_v34 = vld [vmem:[%s6541_s1 + $0x6ec] sm:$0xf0]  ;;  %v3458_v41 = vor.u32 %v4237_v32, %v3457_v30  ;;  %1638 = vmatpush.bf16.msra.mxu3 %v3090_v39 }
  0x24   :  { %v3713_v37 = vld [vmem:[%s6541_s1 + $0x7e0] sm:$0xf]  ;;  %v4301_v38 = vld [vmem:[%s6541_s1 + $0x7ec] sm:$0xf0]  ;;  %v3586_v42 = vor.u32 %v4269_v34, %v3585_v33  ;;  %1644 = vmatpush.bf16.msrb.mxu0 %v3330_v40 }
  0x25   :  { %v3313_v43 = vld [vmem:[%s6541_s1 + $0x4c0] sm:$0xf]  ;;  %v4201_v44 = vld [vmem:[%s6541_s1 + $0x4cc] sm:$0xf0]  ;;  %v3714_v46 = vor.u32 %v4301_v38, %v3713_v37  ;;  %1657 = vmatpush.bf16.msrb.mxu1 %v3458_v41 }
  0x26   :  { %v3441_v45 = vld [vmem:[%s6541_s1 + $0x5c0] sm:$0xf]  ;;  %v4233_v47 = vld [vmem:[%s6541_s1 + $0x5cc] sm:$0xf0]  ;;  %v3314_v52 = vor.u32 %v4201_v44, %v3313_v43  ;;  %1670 = vmatpush.bf16.msrb.mxu2 %v3586_v42 }
  0x27   :  { %v3569_v48 = vld [vmem:[%s6541_s1 + $0x6c0] sm:$0xf]  ;;  %v4265_v49 = vld [vmem:[%s6541_s1 + $0x6cc] sm:$0xf0]  ;;  %v3442_v53 = vor.u32 %v4233_v47, %v3441_v45  ;;  %1683 = vmatpush.bf16.msrb.mxu3 %v3714_v46 }
  0x28   :  { %v3697_v50 = vld [vmem:[%s6541_s1 + $0x7c0] sm:$0xf]  ;;  %v4297_v51 = vld [vmem:[%s6541_s1 + $0x7cc] sm:$0xf0]  ;;  %v3570_v54 = vor.u32 %v4265_v49, %v3569_v48  ;;  %1645 = vmatpush.bf16.msrb.mxu0 %v3314_v52 }
  0x29   :  { %v3297_v55 = vld [vmem:[%s6541_s1 + $0x4a0] sm:$0xf]  ;;  %v4197_v56 = vld [vmem:[%s6541_s1 + $0x4ac] sm:$0xf0]  ;;  %v3698_v58 = vor.u32 %v4297_v51, %v3697_v50  ;;  %1658 = vmatpush.bf16.msrb.mxu1 %v3442_v53 }
  0x2a   :  { %v3425_v57 = vld [vmem:[%s6541_s1 + $0x5a0] sm:$0xf]  ;;  %v4229_v59 = vld [vmem:[%s6541_s1 + $0x5ac] sm:$0xf0]  ;;  %v3298_v0 = vor.u32 %v4197_v56, %v3297_v55  ;;  %1671 = vmatpush.bf16.msrb.mxu2 %v3570_v54 }
  0x2b   :  { %v3553_v60 = vld [vmem:[%s6541_s1 + $0x6a0] sm:$0xf]  ;;  %v4261_v61 = vld [vmem:[%s6541_s1 + $0x6ac] sm:$0xf0]  ;;  %v3426_v3 = vor.u32 %v4229_v59, %v3425_v57  ;;  %1684 = vmatpush.bf16.msrb.mxu3 %v3698_v58 }
  0x2c   :  { %v3681_v62 = vld [vmem:[%s6541_s1 + $0x7a0] sm:$0xf]  ;;  %v4293_v63 = vld [vmem:[%s6541_s1 + $0x7ac] sm:$0xf0]  ;;  %v3554_v4 = vor.u32 %v4261_v61, %v3553_v60  ;;  %1646 = vmatpush.bf16.msrb.mxu0 %v3298_v0 }
  0x2d   :  { %v3281_v1 = vld [vmem:[%s6541_s1 + $0x480] sm:$0xf]  ;;  %v4193_v5 = vld [vmem:[%s6541_s1 + $0x48c] sm:$0xf0]  ;;  %v3682_v7 = vor.u32 %v4293_v63, %v3681_v62  ;;  %1659 = vmatpush.bf16.msrb.mxu1 %v3426_v3  ;;  %v4107_v3 = vld [vmem:[%s6541_s1 + $0x1e4] sm:$0xf] }
  0x2e   :  { %v27_v2 = vld [vmem:[%s6540_s0] sm:$0xff]  ;;  %v4225_v8 = vld [vmem:[%s6541_s1 + $0x58c] sm:$0xf0]  ;;  %v3282_v13 = vor.u32 %v4193_v5, %v3281_v1  ;;  %1672 = vmatpush.bf16.msrb.mxu2 %v3554_v4  ;;  %v2947_v5 = vld [vmem:[%s6541_s1 + $0x1f0] sm:$0xf0] }
  0x2f   :  { %v3409_v6 = vld [vmem:[%s6541_s1 + $0x580] sm:$0xf]  ;;  %295 = vst [vmem:[#allocation1] ss:$9 sm:$0xff] %v27_v2  ;;  %v4257_v10 = vld [vmem:[%s6541_s1 + $0x68c] sm:$0xf0]  ;;  %1685 = vmatpush.bf16.msrb.mxu3 %v3682_v7 }
  0x30   :  { %v3537_v9 = vld [vmem:[%s6541_s1 + $0x680] sm:$0xf]  ;;  %v4289_v12 = vld [vmem:[%s6541_s1 + $0x78c] sm:$0xf0]  ;;  %v3410_v14 = vor.u32 %v4225_v8, %v3409_v6  ;;  %1647 = vmatpush.bf16.msrb.mxu0 %v3282_v13  ;;  %v4075_v1 = vld [vmem:[%s6541_s1 + $0xe4] sm:$0xf] }
  0x31   :  { %v3665_v11 = vld [vmem:[%s6541_s1 + $0x780] sm:$0xf]  ;;  %v3538_v15 = vor.u32 %v4257_v10, %v3537_v9  ;;  %v4189_v17 = vld [vmem:[%s6541_s1 + $0x46c] sm:$0xf0]  ;;  %v2819_v2 = vld [vmem:[%s6541_s1 + $0xf0] sm:$0xf0] }
  0x32   :  { %v3265_v16 = vld [vmem:[%s6541_s1 + $0x460] sm:$0xf]  ;;  %v3666_v19 = vor.u32 %v4289_v12, %v3665_v11  ;;  %v4221_v20 = vld [vmem:[%s6541_s1 + $0x56c] sm:$0xf0]  ;;  %1660 = vmatpush.bf16.msrb.mxu1 %v3410_v14  ;;  %v4139_v6 = vld [vmem:[%s6541_s1 + $0x2e4] sm:$0xf]  ;;  %v2822_v13 = vor.u32 %v4075_v1, %v2819_v2  ;;  %v2950_v14 = vor.u32 %v4107_v3, %v2947_v5 }
  0x33   :  { %v3393_v18 = vld [vmem:[%s6541_s1 + $0x560] sm:$0xf]  ;;  %v4253_v22 = vld [vmem:[%s6541_s1 + $0x66c] sm:$0xf0]  ;;  %v3266_v26 = vor.u32 %v4189_v17, %v3265_v16  ;;  %1673 = vmatpush.bf16.msrb.mxu2 %v3538_v15  ;;  %v3075_v7 = vld [vmem:[%s6541_s1 + $0x2f0] sm:$0xf0] }
  0x34   :  { %v3521_v21 = vld [vmem:[%s6541_s1 + $0x660] sm:$0xf]  ;;  %v4285_v24 = vld [vmem:[%s6541_s1 + $0x76c] sm:$0xf0]  ;;  %v3394_v30 = vor.u32 %v4221_v20, %v3393_v18  ;;  %1686 = vmatpush.bf16.msrb.mxu3 %v3666_v19  ;;  %v4171_v10 = vld [vmem:[%s6541_s1 + $0x3e4] sm:$0xf]  ;;  %v3078_v15 = vor.u32 %v4139_v6, %v3075_v7 }
  0x35   :  { %v3649_v23 = vld [vmem:[%s6541_s1 + $0x760] sm:$0xf]  ;;  %v3522_v31 = vor.u32 %v4253_v22, %v3521_v21  ;;  %v4185_v32 = vld [vmem:[%s6541_s1 + $0x44c] sm:$0xf0]  ;;  %1648 = vmatpush.bf16.msrb.mxu0 %v3266_v26  ;;  %v3203_v11 = vld [vmem:[%s6541_s1 + $0x3f0] sm:$0xf0] }
  0x36   :  { %v3249_v25 = vld [vmem:[%s6541_s1 + $0x440] sm:$0xf]  ;;  %v4783_v27 = vld [vmem:[#allocation1 + $0x12] sm:$0xff]  ;;  %v4795_v34 = vld [vmem:[#allocation1 + $0x9] sm:$0xff]  ;;  %v3650_v35 = vor.u32 %v4285_v24, %v3649_v23  ;;  %1661 = vmatpush.bf16.msrb.mxu1 %v3394_v30  ;;  %v3206_v19 = vor.u32 %v4171_v10, %v3203_v11 }
  0x37   :  { %v4785_v28 = vld [vmem:[#allocation1] sm:$0xff]  ;;  %v4217_v36 = vld [vmem:[%s6541_s1 + $0x54c] sm:$0xf0]  ;;  %1626 = vmatmul.bf16.vlgmr.msra.gmra.mxu2 %v4783_v27  ;;  %v3250_v41 = vor.u32 %v4185_v32, %v3249_v25  ;;  %1613 = vmatmul.bf16.vlgmr.msra.gmra.mxu1 %v4795_v34  ;;  %v2803_v17 = vld [vmem:[%s6541_s1 + $0xd0] sm:$0xf0] }
  0x38   :  { %v4787_v29 = vld [vmem:[#allocation1 + $0x1b] sm:$0xff]  ;;  %v4249_v38 = vld [vmem:[%s6541_s1 + $0x64c] sm:$0xf0]  ;;  %1600 = vmatmul.bf16.vlgmr.msra.gmra.mxu0 %v4785_v28  ;;  %1674 = vmatpush.bf16.msrb.mxu2 %v3522_v31  ;;  %v4071_v16 = vld [vmem:[%s6541_s1 + $0xc4] sm:$0xf] }
  0x39   :  { %v3377_v33 = vld [vmem:[%s6541_s1 + $0x540] sm:$0xf]  ;;  %v4281_v40 = vld [vmem:[%s6541_s1 + $0x74c] sm:$0xf0]  ;;  %1639 = vmatmul.bf16.vlgmr.msra.gmra.mxu3 %v4787_v29  ;;  %1649 = vmatpush.bf16.msrb.mxu0 %v3250_v41  ;;  %v4103_v18 = vld [vmem:[%s6541_s1 + $0x1c4] sm:$0xf]  ;;  %v2806_v26 = vor.u32 %v4071_v16, %v2803_v17 }
  0x3a   :  { %v3505_v37 = vld [vmem:[%s6541_s1 + $0x640] sm:$0xf]  ;;  %v3378_v42 = vor.u32 %v4217_v36, %v3377_v33  ;;  %v4181_v45 = vld [vmem:[%s6541_s1 + $0x42c] sm:$0xf0]  ;;  %1687 = vmatpush.bf16.msrb.mxu3 %v3650_v35  ;;  %v2931_v20 = vld [vmem:[%s6541_s1 + $0x1d0] sm:$0xf0] }
  0x3b   :  { %v3633_v39 = vld [vmem:[%s6541_s1 + $0x740] sm:$0xf]  ;;  %v3506_v43 = vor.u32 %v4249_v38, %v3505_v37  ;;  %v4213_v48 = vld [vmem:[%s6541_s1 + $0x52c] sm:$0xf0]  ;;  %v4135_v21 = vld [vmem:[%s6541_s1 + $0x2c4] sm:$0xf]  ;;  %v2934_v33 = vor.u32 %v4103_v18, %v2931_v20 }
  0x3c   :  { %v3233_v44 = vld [vmem:[%s6541_s1 + $0x420] sm:$0xf]  ;;  %v3634_v47 = vor.u32 %v4281_v40, %v3633_v39  ;;  %v4245_v50 = vld [vmem:[%s6541_s1 + $0x62c] sm:$0xf0]  ;;  %1662 = vmatpush.bf16.msrb.mxu1 %v3378_v42  ;;  %v3059_v22 = vld [vmem:[%s6541_s1 + $0x2d0] sm:$0xf0] }
  0x3d   :  { %v3361_v46 = vld [vmem:[%s6541_s1 + $0x520] sm:$0xf]  ;;  %v4277_v52 = vld [vmem:[%s6541_s1 + $0x72c] sm:$0xf0]  ;;  %v3234_v53 = vor.u32 %v4181_v45, %v3233_v44  ;;  %1675 = vmatpush.bf16.msrb.mxu2 %v3506_v43  ;;  %v4167_v23 = vld [vmem:[%s6541_s1 + $0x3c4] sm:$0xf]  ;;  %v3062_v35 = vor.u32 %v4135_v21, %v3059_v22 }
  0x3e   :  { %v3489_v49 = vld [vmem:[%s6541_s1 + $0x620] sm:$0xf]  ;;  %v4177_v55 = vld [vmem:[%s6541_s1 + $0x40c] sm:$0xf0]  ;;  %v3362_v56 = vor.u32 %v4213_v48, %v3361_v46  ;;  %1688 = vmatpush.bf16.msrb.mxu3 %v3634_v47  ;;  %v3187_v24 = vld [vmem:[%s6541_s1 + $0x3d0] sm:$0xf0] }
  0x3f   :  { %v3617_v51 = vld [vmem:[%s6541_s1 + $0x720] sm:$0xf]  ;;  %v3490_v57 = vor.u32 %v4245_v50, %v3489_v49  ;;  %v4209_v59 = vld [vmem:[%s6541_s1 + $0x50c] sm:$0xf0]  ;;  %1650 = vmatpush.bf16.msrb.mxu0 %v3234_v53  ;;  %v4912_v25 = vld [vmem:[#allocation1 + $0x36] sm:$0xff]  ;;  %v3190_v39 = vor.u32 %v4167_v23, %v3187_v24 }
  0x40   :  { %v3217_v54 = vld [vmem:[%s6541_s1 + $0x400] sm:$0xf]  ;;  %v3618_v61 = vor.u32 %v4277_v52, %v3617_v51  ;;  %v4241_v62 = vld [vmem:[%s6541_s1 + $0x60c] sm:$0xf0]  ;;  %1663 = vmatpush.bf16.msrb.mxu1 %v3362_v56  ;;  %v4067_v30 = vld [vmem:[%s6541_s1 + $0xa4] sm:$0xf] }
  0x41   :  { %v3345_v58 = vld [vmem:[%s6541_s1 + $0x500] sm:$0xf]  ;;  %v4273_v0 = vld [vmem:[%s6541_s1 + $0x70c] sm:$0xf0]  ;;  %v3218_v4 = vor.u32 %v4177_v55, %v3217_v54  ;;  %1676 = vmatpush.bf16.msrb.mxu2 %v3490_v57  ;;  %v4917_v31 = vld [vmem:[#allocation1 + $0x24] sm:$0xff] }
  0x42   :  { %v3473_v60 = vld [vmem:[%s6541_s1 + $0x600] sm:$0xf]  ;;  %v3346_v8 = vor.u32 %v4209_v59, %v3345_v58  ;;  %1689 = vmatpush.bf16.msrb.mxu3 %v3618_v61  ;;  %v2787_v36 = vld [vmem:[%s6541_s1 + $0xb0] sm:$0xf0]  ;;  %v4099_v37 = vld [vmem:[%s6541_s1 + $0x1a4] sm:$0xf] }
  0x43   :  { %v3601_v63 = vld [vmem:[%s6541_s1 + $0x700] sm:$0xf]  ;;  %v3474_v9 = vor.u32 %v4241_v62, %v3473_v60  ;;  %1651 = vmatpush.bf16.msrb.mxu0 %v3218_v4  ;;  %v4927_v38 = vld [vmem:[#allocation1 + $0x2d] sm:$0xff]  ;;  %v4131_v41 = vld [vmem:[%s6541_s1 + $0x2a4] sm:$0xf]  ;;  %v2790_v45 = vor.u32 %v4067_v30, %v2787_v36 }
  0x44   :  { %v3602_v12 = vor.u32 %v4273_v0, %v3601_v63  ;;  %1664 = vmatpush.bf16.msrb.mxu1 %v3346_v8  ;;  %v4919_v32 = vld [vmem:[#allocation1 + $0x3f] sm:$0xff]  ;;  %v2915_v40 = vld [vmem:[%s6541_s1 + $0x1b0] sm:$0xf0] }
  0x45   :  { %1677 = vmatpush.bf16.msrb.mxu2 %v3474_v9  ;;  %v3043_v42 = vld [vmem:[%s6541_s1 + $0x2b0] sm:$0xf0]  ;;  %v4163_v43 = vld [vmem:[%s6541_s1 + $0x3a4] sm:$0xf]  ;;  %v2918_v46 = vor.u32 %v4099_v37, %v2915_v40 }
  0x46   :  { %1690 = vmatpush.bf16.msrb.mxu3 %v3602_v12  ;;  %v3171_v44 = vld [vmem:[%s6541_s1 + $0x3b0] sm:$0xf0]  ;;  %v3046_v47 = vor.u32 %v4131_v41, %v3043_v42  ;;  %v4063_v48 = vld [vmem:[%s6541_s1 + $0x84] sm:$0xf] }
  0x47   :  { %1696 = vmatpush.bf16.msra.mxu0 %v2822_v13  ;;  %1665 = vmatmul.bf16.vlgmr.msrb.gmra.mxu1 %v4927_v38  ;;  %v2771_v49 = vld [vmem:[%s6541_s1 + $0x90] sm:$0xf0]  ;;  %v4095_v50 = vld [vmem:[%s6541_s1 + $0x184] sm:$0xf]  ;;  %v3174_v51 = vor.u32 %v4163_v43, %v3171_v44 }
  0x48   :  { %1709 = vmatpush.bf16.msra.mxu1 %v2950_v14  ;;  %1678 = vmatmul.bf16.vlgmr.msrb.gmra.mxu2 %v4912_v25  ;;  %v2899_v52 = vld [vmem:[%s6541_s1 + $0x190] sm:$0xf0]  ;;  %v4127_v53 = vld [vmem:[%s6541_s1 + $0x284] sm:$0xf]  ;;  %v2774_v57 = vor.u32 %v4063_v48, %v2771_v49 }
  0x49   :  { %1722 = vmatpush.bf16.msra.mxu2 %v3078_v15  ;;  %1652 = vmatmul.bf16.vlgmr.msrb.gmra.mxu0 %v4917_v31  ;;  %v3027_v54 = vld [vmem:[%s6541_s1 + $0x290] sm:$0xf0]  ;;  %v4159_v55 = vld [vmem:[%s6541_s1 + $0x384] sm:$0xf]  ;;  %v2902_v58 = vor.u32 %v4095_v50, %v2899_v52 }
  0x4a   :  { %1735 = vmatpush.bf16.msra.mxu3 %v3206_v19  ;;  %v3155_v56 = vld [vmem:[%s6541_s1 + $0x390] sm:$0xf0]  ;;  %v3030_v59 = vor.u32 %v4127_v53, %v3027_v54  ;;  %v4059_v60 = vld [vmem:[%s6541_s1 + $0x64] sm:$0xf] }
  0x4b   :  { %1691 = vmatmul.bf16.vlgmr.msrb.gmra.mxu3 %v4919_v32  ;;  %1697 = vmatpush.bf16.msra.mxu0 %v2806_v26  ;;  %v2755_v61 = vld [vmem:[%s6541_s1 + $0x70] sm:$0xf0]  ;;  %v4091_v62 = vld [vmem:[%s6541_s1 + $0x164] sm:$0xf]  ;;  %v3158_v63 = vor.u32 %v4159_v55, %v3155_v56 }
  0x4c   :  { %1710 = vmatpush.bf16.msra.mxu1 %v2934_v33  ;;  %v2883_v0 = vld [vmem:[%s6541_s1 + $0x170] sm:$0xf0]  ;;  %v4123_v1 = vld [vmem:[%s6541_s1 + $0x264] sm:$0xf]  ;;  %v2758_v5 = vor.u32 %v4059_v60, %v2755_v61 }
  0x4d   :  { %1723 = vmatpush.bf16.msra.mxu2 %v3062_v35  ;;  %v3011_v2 = vld [vmem:[%s6541_s1 + $0x270] sm:$0xf0]  ;;  %v4155_v3 = vld [vmem:[%s6541_s1 + $0x364] sm:$0xf]  ;;  %v2886_v6 = vor.u32 %v4091_v62, %v2883_v0 }
  0x4e   :  { %1736 = vmatpush.bf16.msra.mxu3 %v3190_v39  ;;  %v3139_v4 = vld [vmem:[%s6541_s1 + $0x370] sm:$0xf0]  ;;  %v3014_v7 = vor.u32 %v4123_v1, %v3011_v2  ;;  %v4055_v8 = vld [vmem:[%s6541_s1 + $0x44] sm:$0xf] }
  0x4f   :  { %1698 = vmatpush.bf16.msra.mxu0 %v2790_v45  ;;  %v2739_v9 = vld [vmem:[%s6541_s1 + $0x50] sm:$0xf0]  ;;  %v4087_v10 = vld [vmem:[%s6541_s1 + $0x144] sm:$0xf]  ;;  %v3142_v11 = vor.u32 %v4155_v3, %v3139_v4 }
  0x50   :  { %1711 = vmatpush.bf16.msra.mxu1 %v2918_v46  ;;  %v2867_v12 = vld [vmem:[%s6541_s1 + $0x150] sm:$0xf0]  ;;  %v4119_v13 = vld [vmem:[%s6541_s1 + $0x244] sm:$0xf]  ;;  %v2742_v17 = vor.u32 %v4055_v8, %v2739_v9 }
  0x51   :  { %1724 = vmatpush.bf16.msra.mxu2 %v3046_v47  ;;  %v2995_v14 = vld [vmem:[%s6541_s1 + $0x250] sm:$0xf0]  ;;  %v4151_v15 = vld [vmem:[%s6541_s1 + $0x344] sm:$0xf]  ;;  %v2870_v18 = vor.u32 %v4087_v10, %v2867_v12 }
  0x52   :  { %1737 = vmatpush.bf16.msra.mxu3 %v3174_v51  ;;  %v3123_v16 = vld [vmem:[%s6541_s1 + $0x350] sm:$0xf0]  ;;  %v2998_v19 = vor.u32 %v4119_v13, %v2995_v14  ;;  %v4051_v20 = vld [vmem:[%s6541_s1 + $0x24] sm:$0xf] }
  0x53   :  { %1699 = vmatpush.bf16.msra.mxu0 %v2774_v57  ;;  %v2723_v21 = vld [vmem:[%s6541_s1 + $0x30] sm:$0xf0]  ;;  %v4083_v22 = vld [vmem:[%s6541_s1 + $0x124] sm:$0xf]  ;;  %v3126_v23 = vor.u32 %v4151_v15, %v3123_v16 }
  0x54   :  { %1712 = vmatpush.bf16.msra.mxu1 %v2902_v58  ;;  %v2851_v24 = vld [vmem:[%s6541_s1 + $0x130] sm:$0xf0]  ;;  %v4115_v26 = vld [vmem:[%s6541_s1 + $0x224] sm:$0xf]  ;;  %v2726_v37 = vor.u32 %v4051_v20, %v2723_v21 }
  0x55   :  { %1725 = vmatpush.bf16.msra.mxu2 %v3030_v59  ;;  %v2979_v30 = vld [vmem:[%s6541_s1 + $0x230] sm:$0xf0]  ;;  %v4147_v33 = vld [vmem:[%s6541_s1 + $0x324] sm:$0xf]  ;;  %v2854_v42 = vor.u32 %v4083_v22, %v2851_v24 }
  0x56   :  { %1738 = vmatpush.bf16.msra.mxu3 %v3158_v63  ;;  %v3107_v35 = vld [vmem:[%s6541_s1 + $0x330] sm:$0xf0]  ;;  %v4047_v36 = vld [vmem:[%s6541_s1 + $0x4] sm:$0xf]  ;;  %v2982_v43 = vor.u32 %v4115_v26, %v2979_v30 }
  0x57   :  { %1700 = vmatpush.bf16.msra.mxu0 %v2758_v5  ;;  %v2707_v39 = vld [vmem:[%s6541_s1 + $0x10] sm:$0xf0]  ;;  %v4079_v40 = vld [vmem:[%s6541_s1 + $0x104] sm:$0xf]  ;;  %v3110_v47 = vor.u32 %v4147_v33, %v3107_v35 }
  0x58   :  { %1713 = vmatpush.bf16.msra.mxu1 %v2886_v6  ;;  %v2835_v41 = vld [vmem:[%s6541_s1 + $0x110] sm:$0xf0]  ;;  %v4111_v44 = vld [vmem:[%s6541_s1 + $0x204] sm:$0xf] }
  0x59   :  { %1726 = vmatpush.bf16.msra.mxu2 %v3014_v7  ;;  %v2963_v45 = vld [vmem:[%s6541_s1 + $0x210] sm:$0xf0]  ;;  %v4143_v46 = vld [vmem:[%s6541_s1 + $0x304] sm:$0xf] }
  0x5a   :  { %1739 = vmatpush.bf16.msra.mxu3 %v3142_v11  ;;  %v3091_v48 = vld [vmem:[%s6541_s1 + $0x310] sm:$0xf0]  ;;  %v4203_v49 = vld [vmem:[%s6541_s1 + $0x4e4] sm:$0xf] }
  0x5b   :  { %1701 = vmatpush.bf16.msra.mxu0 %v2742_v17  ;;  %v3331_v50 = vld [vmem:[%s6541_s1 + $0x4f0] sm:$0xf0]  ;;  %v4235_v51 = vld [vmem:[%s6541_s1 + $0x5e4] sm:$0xf] }
  0x5c   :  { %1714 = vmatpush.bf16.msra.mxu1 %v2870_v18 }
  0x5d   :  { %1727 = vmatpush.bf16.msra.mxu2 %v2998_v19 }
  0x5e   :  { %1740 = vmatpush.bf16.msra.mxu3 %v3126_v23 }
  0x5f   :  { %12 = vsyncpa [#allocation3], 0  ;;  %1702 = vmatpush.bf16.msra.mxu0 %v2726_v37  ;;  %v2710_v52 = vor.u32 %v4047_v36, %v2707_v39  ;;  %v3459_v53 = vld [vmem:[%s6541_s1 + $0x5f0] sm:$0xf0]  ;;  %v4267_v54 = vld [vmem:[%s6541_s1 + $0x6e4] sm:$0xf]  ;;  %v2838_v56 = vor.u32 %v4079_v40, %v2835_v41  ;;  %v2966_v57 = vor.u32 %v4111_v44, %v2963_v45  ;;  %v3094_v60 = vor.u32 %v4143_v46, %v3091_v48 }
  0x60   :  { %v3587_v55 = vld [vmem:[%s6541_s1 + $0x6f0] sm:$0xf0]  ;;  %1715 = vmatpush.bf16.msra.mxu1 %v2854_v42  ;;  %v4299_v58 = vld [vmem:[%s6541_s1 + $0x7e4] sm:$0xf]  ;;  %v3334_v61 = vor.u32 %v4203_v49, %v3331_v50  ;;  %v3462_v62 = vor.u32 %v4235_v51, %v3459_v53  ;;  %vm2672_vm0 = vcmask 74752   ;;  %s2694_s15 = sshll.u32 %s6547_s7, 4  ;;  %s2695_s15 = int_to_ptr.hbm [resolvable:$true] %s2694_s15 }
  0x61   :  { %1728 = vmatpush.bf16.msra.mxu2 %v2982_v43  ;;  %v3715_v59 = vld [vmem:[%s6541_s1 + $0x7f0] sm:$0xf0]  ;;  %v3590_v63 = vor.u32 %v4267_v54, %v3587_v55  ;;  %v4199_v0 = vld [vmem:[%s6541_s1 + $0x4c4] sm:$0xf] }
  0x62   :  { %1741 = vmatpush.bf16.msra.mxu3 %v3110_v47  ;;  %v3315_v1 = vld [vmem:[%s6541_s1 + $0x4d0] sm:$0xf0]  ;;  %v4231_v2 = vld [vmem:[%s6541_s1 + $0x5c4] sm:$0xf]  ;;  %v3718_v3 = vor.u32 %v4299_v58, %v3715_v59 }
  0x63   :  { %1703 = vmatpush.bf16.msra.mxu0 %v2710_v52  ;;  %v3443_v4 = vld [vmem:[%s6541_s1 + $0x5d0] sm:$0xf0]  ;;  %v4263_v5 = vld [vmem:[%s6541_s1 + $0x6c4] sm:$0xf]  ;;  %v3318_v9 = vor.u32 %v4199_v0, %v3315_v1 }
  0x64   :  { %v3571_v6 = vld [vmem:[%s6541_s1 + $0x6d0] sm:$0xf0]  ;;  %1716 = vmatpush.bf16.msra.mxu1 %v2838_v56  ;;  %v4295_v7 = vld [vmem:[%s6541_s1 + $0x7c4] sm:$0xf]  ;;  %v3446_v10 = vor.u32 %v4231_v2, %v3443_v4 }
  0x65   :  { %1729 = vmatpush.bf16.msra.mxu2 %v2966_v57  ;;  %v3699_v8 = vld [vmem:[%s6541_s1 + $0x7d0] sm:$0xf0]  ;;  %v3574_v11 = vor.u32 %v4263_v5, %v3571_v6  ;;  %v4195_v12 = vld [vmem:[%s6541_s1 + $0x4a4] sm:$0xf] }
  0x66   :  { %1742 = vmatpush.bf16.msra.mxu3 %v3094_v60  ;;  %v3299_v13 = vld [vmem:[%s6541_s1 + $0x4b0] sm:$0xf0]  ;;  %v4227_v14 = vld [vmem:[%s6541_s1 + $0x5a4] sm:$0xf]  ;;  %v3702_v15 = vor.u32 %v4295_v7, %v3699_v8  ;;  %1704 = vmatmul.bf16.vlgmr.msra.gmra.mxu0 %v4785_v28 }
  0x67   :  { %1748 = vmatpush.bf16.msrb.mxu0 %v3334_v61  ;;  %v3427_v16 = vld [vmem:[%s6541_s1 + $0x5b0] sm:$0xf0]  ;;  %v4259_v17 = vld [vmem:[%s6541_s1 + $0x6a4] sm:$0xf]  ;;  %v3302_v21 = vor.u32 %v4195_v12, %v3299_v13  ;;  %1717 = vmatmul.bf16.vlgmr.msra.gmra.mxu1 %v4795_v34 }
  0x68   :  { %1761 = vmatpush.bf16.msrb.mxu1 %v3462_v62  ;;  %v3555_v18 = vld [vmem:[%s6541_s1 + $0x6b0] sm:$0xf0]  ;;  %1730 = vmatmul.bf16.vlgmr.msra.gmra.mxu2 %v4783_v27  ;;  %v4291_v19 = vld [vmem:[%s6541_s1 + $0x7a4] sm:$0xf]  ;;  %v3430_v22 = vor.u32 %v4227_v14, %v3427_v16 }
  0x69   :  { %1774 = vmatpush.bf16.msrb.mxu2 %v3590_v63  ;;  %v3683_v20 = vld [vmem:[%s6541_s1 + $0x7b0] sm:$0xf0]  ;;  %1743 = vmatmul.bf16.vlgmr.msra.gmra.mxu3 %v4787_v29  ;;  %v3558_v23 = vor.u32 %v4259_v17, %v3555_v18  ;;  %v4191_v24 = vld [vmem:[%s6541_s1 + $0x484] sm:$0xf] }
  0x6a   :  { %1787 = vmatpush.bf16.msrb.mxu3 %v3718_v3  ;;  %v3283_v26 = vld [vmem:[%s6541_s1 + $0x490] sm:$0xf0]  ;;  %v4223_v30 = vld [vmem:[%s6541_s1 + $0x584] sm:$0xf]  ;;  %v3686_v33 = vor.u32 %v4291_v19, %v3683_v20 }
  0x6b   :  { %1749 = vmatpush.bf16.msrb.mxu0 %v3318_v9  ;;  %v3411_v35 = vld [vmem:[%s6541_s1 + $0x590] sm:$0xf0]  ;;  %v4255_v36 = vld [vmem:[%s6541_s1 + $0x684] sm:$0xf]  ;;  %v3286_v41 = vor.u32 %v4191_v24, %v3283_v26  ;;  %v2825_v26 = vld [vmem:[%s6541_s1 + $0xe8] sm:$0xf] }
  0x6c   :  { %1762 = vmatpush.bf16.msrb.mxu1 %v3446_v10  ;;  %v3539_v37 = vld [vmem:[%s6541_s1 + $0x690] sm:$0xf0]  ;;  %v4287_v39 = vld [vmem:[%s6541_s1 + $0x784] sm:$0xf]  ;;  %v3414_v42 = vor.u32 %v4223_v30, %v3411_v35  ;;  %v4078_v30 = vld [vmem:[%s6541_s1 + $0xf4] sm:$0xf0] }
  0x6d   :  { %1775 = vmatpush.bf16.msrb.mxu2 %v3574_v11  ;;  %v3667_v40 = vld [vmem:[%s6541_s1 + $0x790] sm:$0xf0]  ;;  %v3542_v43 = vor.u32 %v4255_v36, %v3539_v37  ;;  %v4187_v44 = vld [vmem:[%s6541_s1 + $0x464] sm:$0xf]  ;;  %v4110_v36 = vld [vmem:[%s6541_s1 + $0x1f4] sm:$0xf0] }
  0x6e   :  { %1788 = vmatpush.bf16.msrb.mxu3 %v3702_v15  ;;  %v3267_v45 = vld [vmem:[%s6541_s1 + $0x470] sm:$0xf0]  ;;  %v4219_v46 = vld [vmem:[%s6541_s1 + $0x564] sm:$0xf]  ;;  %v3670_v47 = vor.u32 %v4287_v39, %v3667_v40  ;;  %v3081_v37 = vld [vmem:[%s6541_s1 + $0x2e8] sm:$0xf] }
  0x6f   :  { %1750 = vmatpush.bf16.msrb.mxu0 %v3302_v21  ;;  %v3395_v48 = vld [vmem:[%s6541_s1 + $0x570] sm:$0xf0]  ;;  %v4251_v49 = vld [vmem:[%s6541_s1 + $0x664] sm:$0xf]  ;;  %v3270_v53 = vor.u32 %v4187_v44, %v3267_v45  ;;  %v4142_v39 = vld [vmem:[%s6541_s1 + $0x2f4] sm:$0xf0]  ;;  %v2826_v45 = vor.u32 %v4078_v30, %v2825_v26 }
  0x70   :  { %1763 = vmatpush.bf16.msrb.mxu1 %v3430_v22  ;;  %v3523_v50 = vld [vmem:[%s6541_s1 + $0x670] sm:$0xf0]  ;;  %v4283_v51 = vld [vmem:[%s6541_s1 + $0x764] sm:$0xf]  ;;  %v3398_v54 = vor.u32 %v4219_v46, %v3395_v48  ;;  %v2809_v48 = vld [vmem:[%s6541_s1 + $0xc8] sm:$0xf] }
  0x71   :  { %1776 = vmatpush.bf16.msrb.mxu2 %v3558_v23  ;;  %v3651_v52 = vld [vmem:[%s6541_s1 + $0x770] sm:$0xf0]  ;;  %v3526_v55 = vor.u32 %v4251_v49, %v3523_v50  ;;  %v4183_v56 = vld [vmem:[%s6541_s1 + $0x444] sm:$0xf]  ;;  %v4074_v49 = vld [vmem:[%s6541_s1 + $0xd4] sm:$0xf0] }
  0x72   :  { %1789 = vmatpush.bf16.msrb.mxu3 %v3686_v33  ;;  %v3251_v57 = vld [vmem:[%s6541_s1 + $0x450] sm:$0xf0]  ;;  %v4215_v58 = vld [vmem:[%s6541_s1 + $0x544] sm:$0xf]  ;;  %v3654_v59 = vor.u32 %v4283_v51, %v3651_v52  ;;  %v2953_v33 = vld [vmem:[%s6541_s1 + $0x1e8] sm:$0xf] }
  0x73   :  { %1751 = vmatpush.bf16.msrb.mxu0 %v3286_v41  ;;  %v3379_v60 = vld [vmem:[%s6541_s1 + $0x550] sm:$0xf0]  ;;  %v4247_v61 = vld [vmem:[%s6541_s1 + $0x644] sm:$0xf]  ;;  %v3254_v1 = vor.u32 %v4183_v56, %v3251_v57  ;;  %v2954_v46 = vor.u32 %v4110_v36, %v2953_v33  ;;  %v2937_v50 = vld [vmem:[%s6541_s1 + $0x1c8] sm:$0xf]  ;;  %v2810_v57 = vor.u32 %v4074_v49, %v2809_v48 }
  0x74   :  { %1764 = vmatpush.bf16.msrb.mxu1 %v3414_v42  ;;  %v3507_v62 = vld [vmem:[%s6541_s1 + $0x650] sm:$0xf0]  ;;  %v4279_v63 = vld [vmem:[%s6541_s1 + $0x744] sm:$0xf]  ;;  %v3382_v2 = vor.u32 %v4215_v58, %v3379_v60  ;;  %v3209_v42 = vld [vmem:[%s6541_s1 + $0x3e8] sm:$0xf] }
  0x75   :  { %1777 = vmatpush.bf16.msrb.mxu2 %v3542_v43  ;;  %v3635_v0 = vld [vmem:[%s6541_s1 + $0x750] sm:$0xf0]  ;;  %v3510_v3 = vor.u32 %v4247_v61, %v3507_v62  ;;  %v4179_v4 = vld [vmem:[%s6541_s1 + $0x424] sm:$0xf]  ;;  %v4174_v43 = vld [vmem:[%s6541_s1 + $0x3f4] sm:$0xf0] }
  0x76   :  { %1790 = vmatpush.bf16.msrb.mxu3 %v3670_v47  ;;  %v3235_v5 = vld [vmem:[%s6541_s1 + $0x430] sm:$0xf0]  ;;  %v4211_v6 = vld [vmem:[%s6541_s1 + $0x524] sm:$0xf]  ;;  %v3638_v7 = vor.u32 %v4279_v63, %v3635_v0  ;;  %v3082_v47 = vor.u32 %v4142_v39, %v3081_v37  ;;  %v3210_v51 = vor.u32 %v4174_v43, %v3209_v42  ;;  %v4106_v52 = vld [vmem:[%s6541_s1 + $0x1d4] sm:$0xf0] }
  0x77   :  { %1752 = vmatpush.bf16.msrb.mxu0 %v3270_v53  ;;  %v3363_v8 = vld [vmem:[%s6541_s1 + $0x530] sm:$0xf0]  ;;  %v4243_v9 = vld [vmem:[%s6541_s1 + $0x624] sm:$0xf]  ;;  %v3238_v13 = vor.u32 %v4179_v4, %v3235_v5  ;;  %v3065_v53 = vld [vmem:[%s6541_s1 + $0x2c8] sm:$0xf]  ;;  %v2938_v58 = vor.u32 %v4106_v52, %v2937_v50 }
  0x78   :  { %1765 = vmatpush.bf16.msrb.mxu1 %v3398_v54  ;;  %v3491_v10 = vld [vmem:[%s6541_s1 + $0x630] sm:$0xf0]  ;;  %v4275_v11 = vld [vmem:[%s6541_s1 + $0x724] sm:$0xf]  ;;  %v3366_v16 = vor.u32 %v4211_v6, %v3363_v8  ;;  %v4138_v54 = vld [vmem:[%s6541_s1 + $0x2d4] sm:$0xf0] }
  0x79   :  { %1778 = vmatpush.bf16.msrb.mxu2 %v3526_v55  ;;  %v3619_v12 = vld [vmem:[%s6541_s1 + $0x730] sm:$0xf0]  ;;  %v4175_v14 = vld [vmem:[%s6541_s1 + $0x404] sm:$0xf]  ;;  %v3494_v17 = vor.u32 %v4243_v9, %v3491_v10  ;;  %v3193_v55 = vld [vmem:[%s6541_s1 + $0x3c8] sm:$0xf] }
  0x7a   :  { %1791 = vmatpush.bf16.msrb.mxu3 %v3654_v59  ;;  %v3219_v15 = vld [vmem:[%s6541_s1 + $0x410] sm:$0xf0]  ;;  %v4207_v18 = vld [vmem:[%s6541_s1 + $0x504] sm:$0xf]  ;;  %v3622_v21 = vor.u32 %v4275_v11, %v3619_v12  ;;  %v4170_v56 = vld [vmem:[%s6541_s1 + $0x3d4] sm:$0xf0]  ;;  %v3066_v59 = vor.u32 %v4138_v54, %v3065_v53 }
  0x7b   :  { %1753 = vmatpush.bf16.msrb.mxu0 %v3254_v1  ;;  %v3347_v19 = vld [vmem:[%s6541_s1 + $0x510] sm:$0xf0]  ;;  %v4239_v20 = vld [vmem:[%s6541_s1 + $0x604] sm:$0xf]  ;;  %v3222_v35 = vor.u32 %v4175_v14, %v3219_v15  ;;  %v2793_v60 = vld [vmem:[%s6541_s1 + $0xa8] sm:$0xf]  ;;  %v3194_v63 = vor.u32 %v4170_v56, %v3193_v55 }
  0x7c   :  { %1766 = vmatpush.bf16.msrb.mxu1 %v3382_v2  ;;  %v3475_v22 = vld [vmem:[%s6541_s1 + $0x610] sm:$0xf0]  ;;  %v4271_v23 = vld [vmem:[%s6541_s1 + $0x704] sm:$0xf]  ;;  %v3350_v40 = vor.u32 %v4207_v18, %v3347_v19  ;;  %v4070_v61 = vld [vmem:[%s6541_s1 + $0xb4] sm:$0xf0] }
  0x7d   :  { %1779 = vmatpush.bf16.msrb.mxu2 %v3510_v3  ;;  %v3603_v24 = vld [vmem:[%s6541_s1 + $0x710] sm:$0xf0]  ;;  %v3478_v41 = vor.u32 %v4239_v20, %v3475_v22  ;;  %v2921_v62 = vld [vmem:[%s6541_s1 + $0x1a8] sm:$0xf]  ;;  %v4102_v0 = vld [vmem:[%s6541_s1 + $0x1b4] sm:$0xf0]  ;;  %v2794_v4 = vor.u32 %v4070_v61, %v2793_v60 }
  0x7e   :  { %1792 = vmatpush.bf16.msrb.mxu3 %v3638_v7  ;;  %v3606_v44 = vor.u32 %v4271_v23, %v3603_v24  ;;  %v3049_v1 = vld [vmem:[%s6541_s1 + $0x2a8] sm:$0xf]  ;;  %v4134_v2 = vld [vmem:[%s6541_s1 + $0x2b4] sm:$0xf0]  ;;  %v2922_v5 = vor.u32 %v4102_v0, %v2921_v62 }
  0x7f   :  { %1754 = vmatpush.bf16.msrb.mxu0 %v3238_v13  ;;  %v3177_v3 = vld [vmem:[%s6541_s1 + $0x3a8] sm:$0xf]  ;;  %v3050_v6 = vor.u32 %v4134_v2, %v3049_v1  ;;  %v4066_v8 = vld [vmem:[%s6541_s1 + $0x94] sm:$0xf0] }
  0x80   :  { %1767 = vmatpush.bf16.msrb.mxu1 %v3366_v16  ;;  %v2777_v7 = vld [vmem:[%s6541_s1 + $0x88] sm:$0xf]  ;;  %v4130_v10 = vld [vmem:[%s6541_s1 + $0x294] sm:$0xf0] }
  0x81   :  { %1780 = vmatpush.bf16.msrb.mxu2 %v3494_v17  ;;  %v3033_v9 = vld [vmem:[%s6541_s1 + $0x288] sm:$0xf]  ;;  %v4162_v12 = vld [vmem:[%s6541_s1 + $0x394] sm:$0xf0]  ;;  %v2778_v13 = vor.u32 %v4066_v8, %v2777_v7 }
  0x82   :  { %1793 = vmatpush.bf16.msrb.mxu3 %v3622_v21  ;;  %v3161_v11 = vld [vmem:[%s6541_s1 + $0x388] sm:$0xf]  ;;  %v3034_v15 = vor.u32 %v4130_v10, %v3033_v9  ;;  %v4062_v17 = vld [vmem:[%s6541_s1 + $0x74] sm:$0xf0] }
  0x83   :  { %1755 = vmatpush.bf16.msrb.mxu0 %v3222_v35  ;;  %v2761_v16 = vld [vmem:[%s6541_s1 + $0x68] sm:$0xf]  ;;  %v3162_v19 = vor.u32 %v4162_v12, %v3161_v11  ;;  %v4094_v20 = vld [vmem:[%s6541_s1 + $0x174] sm:$0xf0] }
  0x84   :  { %1768 = vmatpush.bf16.msrb.mxu1 %v3350_v40  ;;  %v2889_v18 = vld [vmem:[%s6541_s1 + $0x168] sm:$0xf]  ;;  %v4126_v22 = vld [vmem:[%s6541_s1 + $0x274] sm:$0xf0]  ;;  %v2762_v26 = vor.u32 %v4062_v17, %v2761_v16 }
  0x85   :  { %1781 = vmatpush.bf16.msrb.mxu2 %v3478_v41  ;;  %v3017_v21 = vld [vmem:[%s6541_s1 + $0x268] sm:$0xf]  ;;  %v4158_v24 = vld [vmem:[%s6541_s1 + $0x374] sm:$0xf0]  ;;  %v2890_v30 = vor.u32 %v4094_v20, %v2889_v18 }
  0x86   :  { %1794 = vmatpush.bf16.msrb.mxu3 %v3606_v44  ;;  %1756 = vmatmul.bf16.vlgmr.msrb.gmra.mxu0 %v4917_v31  ;;  %v2905_v31 = vld [vmem:[%s6541_s1 + $0x188] sm:$0xf]  ;;  %v3018_v33 = vor.u32 %v4126_v22, %v3017_v21  ;;  %v4058_v36 = vld [vmem:[%s6541_s1 + $0x54] sm:$0xf0] }
  0x87   :  { %1800 = vmatpush.bf16.msra.mxu0 %v2826_v45  ;;  %1769 = vmatmul.bf16.vlgmr.msrb.gmra.mxu1 %v4927_v38  ;;  %v4098_v38 = vld [vmem:[%s6541_s1 + $0x194] sm:$0xf0]  ;;  %v3145_v23 = vld [vmem:[%s6541_s1 + $0x368] sm:$0xf] }
  0x88   :  { %1813 = vmatpush.bf16.msra.mxu1 %v2954_v46  ;;  %1782 = vmatmul.bf16.vlgmr.msrb.gmra.mxu2 %v4912_v25  ;;  %v4166_v25 = vld [vmem:[%s6541_s1 + $0x3b4] sm:$0xf0]  ;;  %v2906_v14 = vor.u32 %v4098_v38, %v2905_v31  ;;  %v2745_v35 = vld [vmem:[%s6541_s1 + $0x48] sm:$0xf]  ;;  %v3146_v39 = vor.u32 %v4158_v24, %v3145_v23 }
  0x89   :  { %1826 = vmatpush.bf16.msra.mxu2 %v3082_v47  ;;  %1795 = vmatmul.bf16.vlgmr.msrb.gmra.mxu3 %v4919_v32  ;;  %v3178_v32 = vor.u32 %v4166_v25, %v3177_v3  ;;  %v2873_v37 = vld [vmem:[%s6541_s1 + $0x148] sm:$0xf]  ;;  %v4090_v40 = vld [vmem:[%s6541_s1 + $0x154] sm:$0xf0]  ;;  %v2746_v45 = vor.u32 %v4058_v36, %v2745_v35 }
  0x8a   :  { %1839 = vmatpush.bf16.msra.mxu3 %v3210_v51  ;;  %v3001_v41 = vld [vmem:[%s6541_s1 + $0x248] sm:$0xf]  ;;  %v4122_v42 = vld [vmem:[%s6541_s1 + $0x254] sm:$0xf0]  ;;  %v2874_v46 = vor.u32 %v4090_v40, %v2873_v37 }
  0x8b   :  { %1801 = vmatpush.bf16.msra.mxu0 %v2810_v57  ;;  %v3129_v43 = vld [vmem:[%s6541_s1 + $0x348] sm:$0xf]  ;;  %v4154_v44 = vld [vmem:[%s6541_s1 + $0x354] sm:$0xf0]  ;;  %v3002_v47 = vor.u32 %v4122_v42, %v3001_v41 }
  0x8c   :  { %1814 = vmatpush.bf16.msra.mxu1 %v2938_v58  ;;  %v2729_v48 = vld [vmem:[%s6541_s1 + $0x28] sm:$0xf]  ;;  %v4054_v49 = vld [vmem:[%s6541_s1 + $0x34] sm:$0xf0]  ;;  %v3130_v51 = vor.u32 %v4154_v44, %v3129_v43 }
  0x8d   :  { %1827 = vmatpush.bf16.msra.mxu2 %v3066_v59  ;;  %v2857_v50 = vld [vmem:[%s6541_s1 + $0x128] sm:$0xf]  ;;  %v4086_v52 = vld [vmem:[%s6541_s1 + $0x134] sm:$0xf0]  ;;  %v2730_v57 = vor.u32 %v4054_v49, %v2729_v48 }
  0x8e   :  { %1840 = vmatpush.bf16.msra.mxu3 %v3194_v63  ;;  %v2985_v53 = vld [vmem:[%s6541_s1 + $0x228] sm:$0xf]  ;;  %v4118_v54 = vld [vmem:[%s6541_s1 + $0x234] sm:$0xf0]  ;;  %v2858_v60 = vor.u32 %v4086_v52, %v2857_v50 }
  0x8f   :  { %1802 = vmatpush.bf16.msra.mxu0 %v2794_v4  ;;  %v3113_v55 = vld [vmem:[%s6541_s1 + $0x328] sm:$0xf]  ;;  %v4150_v56 = vld [vmem:[%s6541_s1 + $0x334] sm:$0xf0]  ;;  %v2986_v61 = vor.u32 %v4118_v54, %v2985_v53 }
  0x90   :  { %1815 = vmatpush.bf16.msra.mxu1 %v2922_v5  ;;  %v2713_v58 = vld [vmem:[%s6541_s1 + $0x8] sm:$0xf]  ;;  %v4050_v59 = vld [vmem:[%s6541_s1 + $0x14] sm:$0xf0]  ;;  %v3114_v1 = vor.u32 %v4150_v56, %v3113_v55 }
  0x91   :  { %1828 = vmatpush.bf16.msra.mxu2 %v3050_v6  ;;  %v2841_v62 = vld [vmem:[%s6541_s1 + $0x108] sm:$0xf]  ;;  %v4082_v63 = vld [vmem:[%s6541_s1 + $0x114] sm:$0xf0]  ;;  %v2714_v7 = vor.u32 %v4050_v59, %v2713_v58 }
  0x92   :  { %1841 = vmatpush.bf16.msra.mxu3 %v3178_v32  ;;  %v2969_v0 = vld [vmem:[%s6541_s1 + $0x208] sm:$0xf]  ;;  %v4114_v2 = vld [vmem:[%s6541_s1 + $0x214] sm:$0xf0]  ;;  %v2842_v38 = vor.u32 %v4082_v63, %v2841_v62 }
  0x93   :  { %1803 = vmatpush.bf16.msra.mxu0 %v2778_v13  ;;  %v3097_v3 = vld [vmem:[%s6541_s1 + $0x308] sm:$0xf]  ;;  %v4146_v25 = vld [vmem:[%s6541_s1 + $0x314] sm:$0xf0]  ;;  %v2970_v9 = vor.u32 %v4114_v2, %v2969_v0 }
  0x94   :  { %1816 = vmatpush.bf16.msra.mxu1 %v2906_v14  ;;  %v3337_v4 = vld [vmem:[%s6541_s1 + $0x4e8] sm:$0xf]  ;;  %v4206_v5 = vld [vmem:[%s6541_s1 + $0x4f4] sm:$0xf0]  ;;  %v3098_v12 = vor.u32 %v4146_v25, %v3097_v3 }
  0x95   :  { %1829 = vmatpush.bf16.msra.mxu2 %v3034_v15  ;;  %v3465_v6 = vld [vmem:[%s6541_s1 + $0x5e8] sm:$0xf]  ;;  %v4238_v8 = vld [vmem:[%s6541_s1 + $0x5f4] sm:$0xf0]  ;;  %v3338_v13 = vor.u32 %v4206_v5, %v3337_v4 }
  0x96   :  { %1842 = vmatpush.bf16.msra.mxu3 %v3162_v19  ;;  %v3593_v31 = vld [vmem:[%s6541_s1 + $0x6e8] sm:$0xf]  ;;  %v4270_v32 = vld [vmem:[%s6541_s1 + $0x6f4] sm:$0xf0]  ;;  %v3466_v14 = vor.u32 %v4238_v8, %v3465_v6 }
  0x97   :  { %1804 = vmatpush.bf16.msra.mxu0 %v2762_v26  ;;  %v3721_v10 = vld [vmem:[%s6541_s1 + $0x7e8] sm:$0xf]  ;;  %v4302_v11 = vld [vmem:[%s6541_s1 + $0x7f4] sm:$0xf0]  ;;  %v3594_v15 = vor.u32 %v4270_v32, %v3593_v31  ;;  %v5605_v32 = vld [vmem:[%s6542_s2] sm:$0xf] }
  0x98   :  { %1817 = vmatpush.bf16.msra.mxu1 %v2890_v30  ;;  %v3321_v16 = vld [vmem:[%s6541_s1 + $0x4c8] sm:$0xf]  ;;  %v4202_v17 = vld [vmem:[%s6541_s1 + $0x4d4] sm:$0xf0]  ;;  %v3722_v19 = vor.u32 %v4302_v11, %v3721_v10 }
  0x99   :  { %1830 = vmatpush.bf16.msra.mxu2 %v3018_v33  ;;  %v3449_v18 = vld [vmem:[%s6541_s1 + $0x5c8] sm:$0xf]  ;;  %v4234_v20 = vld [vmem:[%s6541_s1 + $0x5d4] sm:$0xf0]  ;;  %v3322_v26 = vor.u32 %v4202_v17, %v3321_v16  ;;  %v286_v16 = vperm.slane %v5605_v32, 0 }
  0x9a   :  { %1843 = vmatpush.bf16.msra.mxu3 %v3146_v39  ;;  %v3577_v21 = vld [vmem:[%s6541_s1 + $0x6c8] sm:$0xf]  ;;  %v4266_v22 = vld [vmem:[%s6541_s1 + $0x6d4] sm:$0xf0]  ;;  %v3450_v30 = vor.u32 %v4234_v20, %v3449_v18 }
  0x9b   :  { %1805 = vmatpush.bf16.msra.mxu0 %v2746_v45  ;;  %v3705_v23 = vld [vmem:[%s6541_s1 + $0x7c8] sm:$0xf]  ;;  %v4298_v24 = vld [vmem:[%s6541_s1 + $0x7d4] sm:$0xf0]  ;;  %v3578_v33 = vor.u32 %v4266_v22, %v3577_v21 }
  0x9c   :  { %1818 = vmatpush.bf16.msra.mxu1 %v2874_v46  ;;  %v3305_v35 = vld [vmem:[%s6541_s1 + $0x4a8] sm:$0xf]  ;;  %v4198_v36 = vld [vmem:[%s6541_s1 + $0x4b4] sm:$0xf0]  ;;  %v3706_v39 = vor.u32 %v4298_v24, %v3705_v23 }
  0x9d   :  { %1831 = vmatpush.bf16.msra.mxu2 %v3002_v47  ;;  %v3433_v37 = vld [vmem:[%s6541_s1 + $0x5a8] sm:$0xf]  ;;  %v4230_v40 = vld [vmem:[%s6541_s1 + $0x5b4] sm:$0xf0]  ;;  %v3306_v45 = vor.u32 %v4198_v36, %v3305_v35 }
  0x9e   :  { %1844 = vmatpush.bf16.msra.mxu3 %v3130_v51  ;;  %v3561_v41 = vld [vmem:[%s6541_s1 + $0x6a8] sm:$0xf]  ;;  %v4262_v42 = vld [vmem:[%s6541_s1 + $0x6b4] sm:$0xf0]  ;;  %v3434_v46 = vor.u32 %v4230_v40, %v3433_v37 }
  0x9f   :  { %1806 = vmatpush.bf16.msra.mxu0 %v2730_v57  ;;  %v3689_v43 = vld [vmem:[%s6541_s1 + $0x7a8] sm:$0xf]  ;;  %v4294_v44 = vld [vmem:[%s6541_s1 + $0x7b4] sm:$0xf0] }
  0xa0   :  { %1819 = vmatpush.bf16.msra.mxu1 %v2858_v60  ;;  %v3289_v47 = vld [vmem:[%s6541_s1 + $0x488] sm:$0xf]  ;;  %v4194_v48 = vld [vmem:[%s6541_s1 + $0x494] sm:$0xf0] }
  0xa1   :  { %1832 = vmatpush.bf16.msra.mxu2 %v2986_v61  ;;  %v3545_v49 = vld [vmem:[%s6541_s1 + $0x688] sm:$0xf]  ;;  %v4258_v50 = vld [vmem:[%s6541_s1 + $0x694] sm:$0xf0]  ;;  %v3290_v53 = vor.u32 %v4194_v48, %v3289_v47  ;;  %v4108_v47 = vld [vmem:[%s6541_s1 + $0x1ec] sm:$0xf] }
  0xa2   :  { %1845 = vmatpush.bf16.msra.mxu3 %v3114_v1  ;;  %v3673_v51 = vld [vmem:[%s6541_s1 + $0x788] sm:$0xf]  ;;  %v4290_v52 = vld [vmem:[%s6541_s1 + $0x794] sm:$0xf0]  ;;  %v3546_v55 = vor.u32 %v4258_v50, %v3545_v49  ;;  %v3083_v49 = vld [vmem:[%s6541_s1 + $0x2f8] sm:$0xf0] }
  0xa3   :  { %1807 = vmatpush.bf16.msra.mxu0 %v2714_v7  ;;  %v3273_v56 = vld [vmem:[%s6541_s1 + $0x468] sm:$0xf]  ;;  %v4190_v57 = vld [vmem:[%s6541_s1 + $0x474] sm:$0xf0]  ;;  %v3674_v59 = vor.u32 %v4290_v52, %v3673_v51  ;;  %v4172_v52 = vld [vmem:[%s6541_s1 + $0x3ec] sm:$0xf] }
  0xa4   :  { %1820 = vmatpush.bf16.msra.mxu1 %v2842_v38  ;;  %v3401_v58 = vld [vmem:[%s6541_s1 + $0x568] sm:$0xf]  ;;  %v4222_v60 = vld [vmem:[%s6541_s1 + $0x574] sm:$0xf0]  ;;  %v3274_v1 = vor.u32 %v4190_v57, %v3273_v56 }
  0xa5   :  { %1833 = vmatpush.bf16.msra.mxu2 %v2970_v9  ;;  %v3529_v61 = vld [vmem:[%s6541_s1 + $0x668] sm:$0xf]  ;;  %v4254_v62 = vld [vmem:[%s6541_s1 + $0x674] sm:$0xf0]  ;;  %v3402_v3 = vor.u32 %v4222_v60, %v3401_v58 }
  0xa6   :  { %1846 = vmatpush.bf16.msra.mxu3 %v3098_v12  ;;  %1808 = vmatmul.bf16.vlgmr.msra.gmra.mxu0 %v4785_v28  ;;  %v3417_v28 = vld [vmem:[%s6541_s1 + $0x588] sm:$0xf]  ;;  %v4286_v0 = vld [vmem:[%s6541_s1 + $0x774] sm:$0xf0]  ;;  %v3530_v25 = vor.u32 %v4254_v62, %v3529_v61  ;;  %v4072_v61 = vld [vmem:[%s6541_s1 + $0xcc] sm:$0xf] }
  0xa7   :  { %1852 = vmatpush.bf16.msrb.mxu0 %v3338_v13  ;;  %1821 = vmatmul.bf16.vlgmr.msra.gmra.mxu1 %v4795_v34  ;;  %v4226_v34 = vld [vmem:[%s6541_s1 + $0x594] sm:$0xf0]  ;;  %v3657_v63 = vld [vmem:[%s6541_s1 + $0x768] sm:$0xf]  ;;  %v2811_v62 = vld [vmem:[%s6541_s1 + $0xd8] sm:$0xf0] }
  0xa8   :  { %1865 = vmatpush.bf16.msrb.mxu1 %v3466_v14  ;;  %1834 = vmatmul.bf16.vlgmr.msra.gmra.mxu2 %v4783_v27  ;;  %v3562_v27 = vor.u32 %v4262_v42, %v3561_v41  ;;  %v3418_v54 = vor.u32 %v4226_v34, %v3417_v28  ;;  %v3257_v2 = vld [vmem:[%s6541_s1 + $0x448] sm:$0xf]  ;;  %v4186_v4 = vld [vmem:[%s6541_s1 + $0x454] sm:$0xf0]  ;;  %v3658_v7 = vor.u32 %v4286_v0, %v3657_v63  ;;  %v4140_v34 = vld [vmem:[%s6541_s1 + $0x2ec] sm:$0xf] }
  0xa9   :  { %1878 = vmatpush.bf16.msrb.mxu2 %v3594_v15  ;;  %1847 = vmatmul.bf16.vlgmr.msra.gmra.mxu3 %v4787_v29  ;;  %v3690_v29 = vor.u32 %v4294_v44, %v3689_v43  ;;  %v3385_v5 = vld [vmem:[%s6541_s1 + $0x548] sm:$0xf]  ;;  %v4218_v6 = vld [vmem:[%s6541_s1 + $0x554] sm:$0xf0]  ;;  %v3258_v10 = vor.u32 %v4186_v4, %v3257_v2  ;;  %v3086_v60 = vor.u32 %v4140_v34, %v3083_v49  ;;  %v4104_v63 = vld [vmem:[%s6541_s1 + $0x1cc] sm:$0xf] }
  0xaa   :  { %1891 = vmatpush.bf16.msrb.mxu3 %v3722_v19  ;;  %v3513_v8 = vld [vmem:[%s6541_s1 + $0x648] sm:$0xf]  ;;  %v4250_v31 = vld [vmem:[%s6541_s1 + $0x654] sm:$0xf0]  ;;  %v3386_v12 = vor.u32 %v4218_v6, %v3385_v5  ;;  %v4136_v2 = vld [vmem:[%s6541_s1 + $0x2cc] sm:$0xf] }
  0xab   :  { %1853 = vmatpush.bf16.msrb.mxu0 %v3322_v26  ;;  %v3641_v38 = vld [vmem:[%s6541_s1 + $0x748] sm:$0xf]  ;;  %v4282_v9 = vld [vmem:[%s6541_s1 + $0x754] sm:$0xf0]  ;;  %v3514_v13 = vor.u32 %v4250_v31, %v3513_v8  ;;  %v4168_v5 = vld [vmem:[%s6541_s1 + $0x3cc] sm:$0xf]  ;;  %v2814_v8 = vor.u32 %v4072_v61, %v2811_v62 }
  0xac   :  { %1866 = vmatpush.bf16.msrb.mxu1 %v3450_v30  ;;  %v3241_v11 = vld [vmem:[%s6541_s1 + $0x428] sm:$0xf]  ;;  %v4182_v14 = vld [vmem:[%s6541_s1 + $0x434] sm:$0xf0]  ;;  %v3642_v17 = vor.u32 %v4282_v9, %v3641_v38  ;;  %v3195_v6 = vld [vmem:[%s6541_s1 + $0x3d8] sm:$0xf0] }
  0xad   :  { %1879 = vmatpush.bf16.msrb.mxu2 %v3578_v33  ;;  %v3369_v15 = vld [vmem:[%s6541_s1 + $0x528] sm:$0xf]  ;;  %v4214_v18 = vld [vmem:[%s6541_s1 + $0x534] sm:$0xf0]  ;;  %v3242_v23 = vor.u32 %v4182_v14, %v3241_v11  ;;  %v4068_v9 = vld [vmem:[%s6541_s1 + $0xac] sm:$0xf] }
  0xae   :  { %1892 = vmatpush.bf16.msrb.mxu3 %v3706_v39  ;;  %v3497_v19 = vld [vmem:[%s6541_s1 + $0x628] sm:$0xf]  ;;  %v4246_v20 = vld [vmem:[%s6541_s1 + $0x634] sm:$0xf0]  ;;  %v3370_v33 = vor.u32 %v4214_v18, %v3369_v15  ;;  %v4100_v11 = vld [vmem:[%s6541_s1 + $0x1ac] sm:$0xf] }
  0xaf   :  { %1854 = vmatpush.bf16.msrb.mxu0 %v3306_v45  ;;  %v3625_v21 = vld [vmem:[%s6541_s1 + $0x728] sm:$0xf]  ;;  %v4278_v22 = vld [vmem:[%s6541_s1 + $0x734] sm:$0xf0]  ;;  %v3498_v35 = vor.u32 %v4246_v20, %v3497_v19  ;;  %v2923_v14 = vld [vmem:[%s6541_s1 + $0x1b8] sm:$0xf0] }
  0xb0   :  { %1867 = vmatpush.bf16.msrb.mxu1 %v3434_v46  ;;  %v3225_v24 = vld [vmem:[%s6541_s1 + $0x408] sm:$0xf]  ;;  %v4178_v26 = vld [vmem:[%s6541_s1 + $0x414] sm:$0xf0]  ;;  %v3626_v42 = vor.u32 %v4278_v22, %v3625_v21  ;;  %v4076_v46 = vld [vmem:[%s6541_s1 + $0xec] sm:$0xf] }
  0xb1   :  { %1880 = vmatpush.bf16.msrb.mxu2 %v3562_v27  ;;  %v3353_v36 = vld [vmem:[%s6541_s1 + $0x508] sm:$0xf]  ;;  %v4210_v37 = vld [vmem:[%s6541_s1 + $0x514] sm:$0xf0]  ;;  %v2827_v27 = vld [vmem:[%s6541_s1 + $0xf8] sm:$0xf0]  ;;  %v3226_v28 = vor.u32 %v4178_v26, %v3225_v24  ;;  %v2926_v26 = vor.u32 %v4100_v11, %v2923_v14 }
  0xb2   :  { %1893 = vmatpush.bf16.msrb.mxu3 %v3690_v29  ;;  %v3481_v39 = vld [vmem:[%s6541_s1 + $0x608] sm:$0xf]  ;;  %v4242_v43 = vld [vmem:[%s6541_s1 + $0x614] sm:$0xf0]  ;;  %v2955_v29 = vld [vmem:[%s6541_s1 + $0x1f8] sm:$0xf0]  ;;  %v3354_v50 = vor.u32 %v4210_v37, %v3353_v36  ;;  %v2830_v56 = vor.u32 %v4076_v46, %v2827_v27 }
  0xb3   :  { %1855 = vmatpush.bf16.msrb.mxu0 %v3290_v53  ;;  %v3609_v44 = vld [vmem:[%s6541_s1 + $0x708] sm:$0xf]  ;;  %v4274_v45 = vld [vmem:[%s6541_s1 + $0x714] sm:$0xf0]  ;;  %v3482_v51 = vor.u32 %v4242_v43, %v3481_v39  ;;  %v3211_v53 = vld [vmem:[%s6541_s1 + $0x3f8] sm:$0xf0] }
  0xb4   :  { %1868 = vmatpush.bf16.msrb.mxu1 %v3418_v54  ;;  %v1614_v41 = vpop.f32.mrf.mxu1  ;;  %v3214_v0 = vor.u32 %v4172_v52, %v3211_v53  ;;  %v4132_v15 = vld [vmem:[%s6541_s1 + $0x2ac] sm:$0xf]  ;;  %v5734_v18 = vld [vmem:[#allocation1 + $0x3f] sm:$0xff] }
  0xb5   :  { %1881 = vmatpush.bf16.msrb.mxu2 %v3546_v55  ;;  %v1601_v30 = vpop.f32.mrf.mxu0  ;;  %v3610_v55 = vor.u32 %v4274_v45, %v3609_v44  ;;  %v4164_v19 = vld [vmem:[%s6541_s1 + $0x3ac] sm:$0xf]  ;;  %v3179_v20 = vld [vmem:[%s6541_s1 + $0x3b8] sm:$0xf0] }
  0xb6   :  { %1894 = vmatpush.bf16.msrb.mxu3 %v3674_v59  ;;  %v1602_v40 = vadd.f32 %v1601_v30, %v286_v16  ;;  %v2958_v59 = vor.u32 %v4108_v47, %v2955_v29  ;;  %v3051_v16 = vld [vmem:[%s6541_s1 + $0x2b8] sm:$0xf0]  ;;  %v5743_v22 = vld [vmem:[#allocation1 + $0x2d] sm:$0xff]  ;;  %v3182_v37 = vor.u32 %v4164_v19, %v3179_v20 }
  0xb7   :  { %1856 = vmatpush.bf16.msrb.mxu0 %v3274_v1  ;;  %v2939_v1 = vld [vmem:[%s6541_s1 + $0x1d8] sm:$0xf0]  ;;  %v3054_v30 = vor.u32 %v4132_v15, %v3051_v16  ;;  %v4096_v36 = vld [vmem:[%s6541_s1 + $0x18c] sm:$0xf] }
  0xb8   :  { %1869 = vmatpush.bf16.msrb.mxu1 %v3402_v3  ;;  %v1615_v48 = vadd.f32 %v1614_v41, %v1602_v40  ;;  %v3067_v3 = vld [vmem:[%s6541_s1 + $0x2d8] sm:$0xf0]  ;;  %v2942_v31 = vor.u32 %v4104_v63, %v2939_v1  ;;  %v4128_v40 = vld [vmem:[%s6541_s1 + $0x28c] sm:$0xf] }
  0xb9   :  { %1882 = vmatpush.bf16.msrb.mxu2 %v3530_v25  ;;  %v3070_v38 = vor.u32 %v4136_v2, %v3067_v3  ;;  %v2907_v39 = vld [vmem:[%s6541_s1 + $0x198] sm:$0xf0]  ;;  %v4060_v47 = vld [vmem:[%s6541_s1 + $0x6c] sm:$0xf] }
  0xba   :  { %1895 = vmatpush.bf16.msrb.mxu3 %v3658_v7  ;;  %v1627_v54 = vpop.f32.mrf.mxu2  ;;  %v3035_v41 = vld [vmem:[%s6541_s1 + $0x298] sm:$0xf0]  ;;  %v2910_v46 = vor.u32 %v4096_v36, %v2907_v39  ;;  %v4156_v53 = vld [vmem:[%s6541_s1 + $0x36c] sm:$0xf] }
  0xbb   :  { %1857 = vmatpush.bf16.msrb.mxu0 %v3258_v10  ;;  %v1628_v57 = vadd.f32 %v1627_v54, %v1615_v48  ;;  %v2795_v10 = vld [vmem:[%s6541_s1 + $0xb8] sm:$0xf0]  ;;  %v3038_v27 = vor.u32 %v4128_v40, %v3035_v41  ;;  %v4088_v61 = vld [vmem:[%s6541_s1 + $0x14c] sm:$0xf] }
  0xbc   :  { %1870 = vmatpush.bf16.msrb.mxu1 %v3386_v12  ;;  %v1640_v58 = vpop.f32.mrf.mxu3  ;;  %v1616_v7 = vpop.f32.mrf.mxu1  ;;  %v5719_v12 = vld [vmem:[#allocation1 + $0x36] sm:$0xff]  ;;  %v4120_v1 = vld [vmem:[%s6541_s1 + $0x24c] sm:$0xf] }
  0xbd   :  { %1883 = vmatpush.bf16.msrb.mxu2 %v3514_v13  ;;  %v1641_v25 = vadd.f32 %v1640_v58, %v1628_v57  ;;  %v1603_v4 = vpop.f32.mrf.mxu0  ;;  %v3198_v13 = vor.u32 %v4168_v5, %v3195_v6  ;;  %v3163_v43 = vld [vmem:[%s6541_s1 + $0x398] sm:$0xf0]  ;;  %v4084_v11 = vld [vmem:[%s6541_s1 + $0x12c] sm:$0xf] }
  0xbe   :  { %1896 = vmatpush.bf16.msrb.mxu3 %v3642_v17  ;;  %v5731_v17 = vld [vmem:[#allocation1 + $0x24] sm:$0xff]  ;;  %v2763_v48 = vld [vmem:[%s6541_s1 + $0x78] sm:$0xf0]  ;;  %v4152_v4 = vld [vmem:[%s6541_s1 + $0x34c] sm:$0xf] }
  0xbf   :  { %1858 = vmatpush.bf16.msrb.mxu0 %v3242_v23  ;;  %v2798_v23 = vor.u32 %v4068_v9, %v2795_v10  ;;  %v3019_v52 = vld [vmem:[%s6541_s1 + $0x278] sm:$0xf0]  ;;  %v4052_v9 = vld [vmem:[%s6541_s1 + $0x2c] sm:$0xf] }
  0xc0   :  { %1871 = vmatpush.bf16.msrb.mxu1 %v3370_v33  ;;  %v4064_v33 = vld [vmem:[%s6541_s1 + $0x8c] sm:$0xf]  ;;  %v3147_v54 = vld [vmem:[%s6541_s1 + $0x378] sm:$0xf0] }
  0xc1   :  { %1884 = vmatpush.bf16.msrb.mxu2 %v3498_v35  ;;  %v2779_v35 = vld [vmem:[%s6541_s1 + $0x98] sm:$0xf0]  ;;  %v3150_v63 = vor.u32 %v4156_v53, %v3147_v54  ;;  %v4116_v16 = vld [vmem:[%s6541_s1 + $0x22c] sm:$0xf] }
  0xc2   :  { %1897 = vmatpush.bf16.msrb.mxu3 %v3626_v42  ;;  %v1629_v21 = vpop.f32.mrf.mxu2  ;;  %v4160_v42 = vld [vmem:[%s6541_s1 + $0x38c] sm:$0xf]  ;;  %v2782_v44 = vor.u32 %v4064_v33, %v2779_v35  ;;  %v3003_v2 = vld [vmem:[%s6541_s1 + $0x258] sm:$0xf0] }
  0xc3   :  { %1859 = vmatpush.bf16.msrb.mxu0 %v3226_v28  ;;  %v4092_v28 = vld [vmem:[%s6541_s1 + $0x16c] sm:$0xf]  ;;  %v3166_v49 = vor.u32 %v4160_v42, %v3163_v43  ;;  %v3131_v5 = vld [vmem:[%s6541_s1 + $0x358] sm:$0xf0] }
  0xc4   :  { %1872 = vmatpush.bf16.msrb.mxu1 %v3354_v50  ;;  %v1642_v24 = vpop.f32.mrf.mxu3  ;;  %v1666_v34 = vpop.f32.mrf.mxu1  ;;  %v2891_v50 = vld [vmem:[%s6541_s1 + $0x178] sm:$0xf0]  ;;  %v3134_v14 = vor.u32 %v4152_v4, %v3131_v5  ;;  %v4148_v20 = vld [vmem:[%s6541_s1 + $0x32c] sm:$0xf] }
  0xc5   :  { %1885 = vmatpush.bf16.msrb.mxu2 %v3482_v51  ;;  %v4124_v51 = vld [vmem:[%s6541_s1 + $0x26c] sm:$0xf]  ;;  %v2894_v57 = vor.u32 %v4092_v28, %v2891_v50  ;;  %v2731_v10 = vld [vmem:[%s6541_s1 + $0x38] sm:$0xf0] }
  0xc6   :  { %1898 = vmatpush.bf16.msrb.mxu3 %v3610_v55  ;;  %1860 = vmatmul.bf16.vlgmr.msrb.gmra.mxu0 %v5731_v17  ;;  %v1653_v45 = vpop.f32.mrf.mxu0  ;;  %v3022_v58 = vor.u32 %v4124_v51, %v3019_v52  ;;  %v2859_v15 = vld [vmem:[%s6541_s1 + $0x138] sm:$0xf0]  ;;  %v4048_v24 = vld [vmem:[%s6541_s1 + $0xc] sm:$0xf] }
  0xc7   :  { %1904 = vmatpush.bf16.msra.mxu0 %v2830_v56  ;;  %1873 = vmatmul.bf16.vlgmr.msrb.gmra.mxu1 %v5743_v22  ;;  %v1654_v29 = vadd.f32 %v1653_v45, %v1641_v25  ;;  %v2766_v56 = vor.u32 %v4060_v47, %v2763_v48  ;;  %v2987_v19 = vld [vmem:[%s6541_s1 + $0x238] sm:$0xf0]  ;;  %v4080_v35 = vld [vmem:[%s6541_s1 + $0x10c] sm:$0xf] }
  0xc8   :  { %1917 = vmatpush.bf16.msra.mxu1 %v2958_v59  ;;  %1886 = vmatmul.bf16.vlgmr.msrb.gmra.mxu2 %v5719_v12  ;;  %v4056_v59 = vld [vmem:[%s6541_s1 + $0x4c] sm:$0xf]  ;;  %v3115_v21 = vld [vmem:[%s6541_s1 + $0x338] sm:$0xf0]  ;;  %v2990_v33 = vor.u32 %v4116_v16, %v2987_v19 }
  0xc9   :  { %1930 = vmatpush.bf16.msra.mxu2 %v3086_v60  ;;  %1899 = vmatmul.bf16.vlgmr.msrb.gmra.mxu3 %v5734_v18  ;;  %v1667_v55 = vadd.f32 %v1666_v34, %v1654_v29  ;;  %v2747_v60 = vld [vmem:[%s6541_s1 + $0x58] sm:$0xf0]  ;;  %v3118_v40 = vor.u32 %v4148_v20, %v3115_v21  ;;  %v4144_v42 = vld [vmem:[%s6541_s1 + $0x30c] sm:$0xf] }
  0xca   :  { %1943 = vmatpush.bf16.msra.mxu3 %v3214_v0  ;;  %v2875_v0 = vld [vmem:[%s6541_s1 + $0x158] sm:$0xf0]  ;;  %v2750_v6 = vor.u32 %v4056_v59, %v2747_v60  ;;  %v4204_v45 = vld [vmem:[%s6541_s1 + $0x4ec] sm:$0xf] }
  0xcb   :  { %1905 = vmatpush.bf16.msra.mxu0 %v2814_v8  ;;  %v1679_v62 = vpop.f32.mrf.mxu2  ;;  %v2843_v36 = vld [vmem:[%s6541_s1 + $0x118] sm:$0xf0]  ;;  %v4268_v28 = vld [vmem:[%s6541_s1 + $0x6ec] sm:$0xf] }
  0xcc   :  { %1918 = vmatpush.bf16.msra.mxu1 %v2942_v31  ;;  %v1680_v3 = vadd.f32 %v1679_v62, %v1667_v55  ;;  %v2878_v31 = vor.u32 %v4088_v61, %v2875_v0  ;;  %v2971_v41 = vld [vmem:[%s6541_s1 + $0x218] sm:$0xf0]  ;;  %v2846_v34 = vor.u32 %v4080_v35, %v2843_v36  ;;  %v4300_v50 = vld [vmem:[%s6541_s1 + $0x7ec] sm:$0xf] }
  0xcd   :  { %1931 = vmatpush.bf16.msra.mxu2 %v3070_v38  ;;  %v3006_v38 = vor.u32 %v4120_v1, %v3003_v2  ;;  %v3099_v43 = vld [vmem:[%s6541_s1 + $0x318] sm:$0xf0]  ;;  %v4264_v61 = vld [vmem:[%s6541_s1 + $0x6cc] sm:$0xf] }
  0xce   :  { %1944 = vmatpush.bf16.msra.mxu3 %v3198_v13  ;;  %v1692_v25 = vpop.f32.mrf.mxu3  ;;  %v1655_v8 = vpop.f32.mrf.mxu0  ;;  %v3467_v48 = vld [vmem:[%s6541_s1 + $0x5f8] sm:$0xf0]  ;;  %v3102_v52 = vor.u32 %v4144_v42, %v3099_v43  ;;  %v4228_v5 = vld [vmem:[%s6541_s1 + $0x5ac] sm:$0xf] }
  0xcf   :  { %1906 = vmatpush.bf16.msra.mxu0 %v2798_v23  ;;  %v5818_v7 = vadd.f32 %v1692_v25, %v1680_v3  ;;  %v1668_v13 = vpop.f32.mrf.mxu1  ;;  %v2734_v23 = vor.u32 %v4052_v9, %v2731_v10  ;;  %v3595_v29 = vld [vmem:[%s6541_s1 + $0x6f8] sm:$0xf0]  ;;  %v4196_v25 = vld [vmem:[%s6541_s1 + $0x4ac] sm:$0xf]  ;;  %v4393_v8 = vld [vmem:[#allocation1 + $0x12] sm:$0xff] }
  0xd0   :  { %1919 = vmatpush.bf16.msra.mxu1 %v2926_v26  ;;  %v2715_v26 = vld [vmem:[%s6541_s1 + $0x18] sm:$0xf0]  ;;  %v3598_v55 = vor.u32 %v4268_v28, %v3595_v29  ;;  %v4292_v10 = vld [vmem:[%s6541_s1 + $0x7ac] sm:$0xf]  ;;  %v4394_v13 = vld [vmem:[#allocation1] sm:$0xff] }
  0xd1   :  { %1932 = vmatpush.bf16.msra.mxu2 %v3054_v30  ;;  %v2862_v30 = vor.u32 %v4084_v11, %v2859_v15  ;;  %v2718_v47 = vor.u32 %v4048_v24, %v2715_v26  ;;  %v3723_v51 = vld [vmem:[%s6541_s1 + $0x7f8] sm:$0xf0]  ;;  %v4396_v16 = vld [vmem:[#allocation1 + $0x9] sm:$0xff] }
  0xd2   :  { %1945 = vmatpush.bf16.msra.mxu3 %v3182_v37  ;;  %v4112_v37 = vld [vmem:[%s6541_s1 + $0x20c] sm:$0xf]  ;;  %v3726_v59 = vor.u32 %v4300_v50, %v3723_v51  ;;  %v3451_v60 = vld [vmem:[%s6541_s1 + $0x5d8] sm:$0xf0] }
  0xd3   :  { %1907 = vmatpush.bf16.msra.mxu0 %v2782_v44  ;;  %v1681_v39 = vpop.f32.mrf.mxu2  ;;  %v3579_v62 = vld [vmem:[%s6541_s1 + $0x6d8] sm:$0xf0]  ;;  %v4192_v21 = vld [vmem:[%s6541_s1 + $0x48c] sm:$0xf] }
  0xd4   :  { %1920 = vmatpush.bf16.msra.mxu1 %v2910_v46  ;;  %v3339_v46 = vld [vmem:[%s6541_s1 + $0x4f8] sm:$0xf0]  ;;  %v3582_v3 = vor.u32 %v4264_v61, %v3579_v62  ;;  %v4224_v24 = vld [vmem:[%s6541_s1 + $0x58c] sm:$0xf] }
  0xd5   :  { %1933 = vmatpush.bf16.msra.mxu2 %v3038_v27  ;;  %v4236_v27 = vld [vmem:[%s6541_s1 + $0x5ec] sm:$0xf]  ;;  %v3342_v53 = vor.u32 %v4204_v45, %v3339_v46  ;;  %v3707_v0 = vld [vmem:[%s6541_s1 + $0x7d8] sm:$0xf0] }
  0xd6   :  { %1946 = vmatpush.bf16.msra.mxu3 %v3166_v49  ;;  %v1694_v44 = vpop.f32.mrf.mxu3  ;;  %v2974_v49 = vor.u32 %v4112_v37, %v2971_v41  ;;  %v3470_v54 = vor.u32 %v4236_v27, %v3467_v48  ;;  %v3307_v4 = vld [vmem:[%s6541_s1 + $0x4b8] sm:$0xf0]  ;;  %v4288_v36 = vld [vmem:[%s6541_s1 + $0x78c] sm:$0xf] }
  0xd7   :  { %1908 = vmatpush.bf16.msra.mxu0 %v2766_v56  ;;  %v4200_v56 = vld [vmem:[%s6541_s1 + $0x4cc] sm:$0xf]  ;;  %v3563_v9 = vld [vmem:[%s6541_s1 + $0x6b8] sm:$0xf0]  ;;  %v3310_v15 = vor.u32 %v4196_v25, %v3307_v4 }
  0xd8   :  { %1921 = vmatpush.bf16.msra.mxu1 %v2894_v57  ;;  %v3323_v57 = vld [vmem:[%s6541_s1 + $0x4d8] sm:$0xf0]  ;;  %v4188_v43 = vld [vmem:[%s6541_s1 + $0x46c] sm:$0xf] }
  0xd9   :  { %1934 = vmatpush.bf16.msra.mxu2 %v3022_v58  ;;  %v4232_v58 = vld [vmem:[%s6541_s1 + $0x5cc] sm:$0xf]  ;;  %v3326_v1 = vor.u32 %v4200_v56, %v3323_v57  ;;  %v3691_v11 = vld [vmem:[%s6541_s1 + $0x7b8] sm:$0xf0] }
  0xda   :  { %1947 = vmatpush.bf16.msra.mxu3 %v3150_v63  ;;  %v4296_v63 = vld [vmem:[%s6541_s1 + $0x7cc] sm:$0xf]  ;;  %v3454_v2 = vor.u32 %v4232_v58, %v3451_v60  ;;  %v3694_v26 = vor.u32 %v4292_v10, %v3691_v11  ;;  %v3547_v35 = vld [vmem:[%s6541_s1 + $0x698] sm:$0xf0]  ;;  %v287_v11 = vperm.slane %v5605_v32, 1 }
  0xdb   :  { %1909 = vmatpush.bf16.msra.mxu0 %v2750_v6  ;;  %v3710_v6 = vor.u32 %v4296_v63, %v3707_v0  ;;  %v3675_v37 = vld [vmem:[%s6541_s1 + $0x798] sm:$0xf0]  ;;  %v4220_v45 = vld [vmem:[%s6541_s1 + $0x56c] sm:$0xf] }
  0xdc   :  { %1922 = vmatpush.bf16.msra.mxu1 %v2878_v31  ;;  %v3435_v31 = vld [vmem:[%s6541_s1 + $0x5b8] sm:$0xf0]  ;;  %v3678_v27 = vor.u32 %v4288_v36, %v3675_v37  ;;  %v4252_v48 = vld [vmem:[%s6541_s1 + $0x66c] sm:$0xf]  ;;  %v3785_v36 = vld [vmem:[%s6543_s3 + $0x70] sm:$0xf] }
  0xdd   :  { %1935 = vmatpush.bf16.msra.mxu2 %v3006_v38  ;;  %v4260_v38 = vld [vmem:[%s6541_s1 + $0x6ac] sm:$0xf]  ;;  %v3438_v19 = vor.u32 %v4228_v5, %v3435_v31  ;;  %v3275_v44 = vld [vmem:[%s6541_s1 + $0x478] sm:$0xf0]  ;;  %v4318_v37 = vld [vmem:[%s6543_s3 + $0x74] sm:$0xf0] }
  0xde   :  { %1948 = vmatpush.bf16.msra.mxu3 %v3134_v14  ;;  %v4395_v14 = vld [vmem:[#allocation1 + $0x1b] sm:$0xff]  ;;  %v3566_v20 = vor.u32 %v4260_v38, %v3563_v9  ;;  %v4284_v29 = vld [vmem:[%s6541_s1 + $0x76c] sm:$0xf] }
  0xdf   :  { %1910 = vmatpush.bf16.msra.mxu0 %v2734_v23  ;;  %v3291_v23 = vld [vmem:[%s6541_s1 + $0x498] sm:$0xf0]  ;;  %v4248_v58 = vld [vmem:[%s6541_s1 + $0x64c] sm:$0xf] }
  0xe0   :  { %1923 = vmatpush.bf16.msra.mxu1 %v2862_v30  ;;  %v3419_v30 = vld [vmem:[%s6541_s1 + $0x598] sm:$0xf0]  ;;  %v3294_v39 = vor.u32 %v4192_v21, %v3291_v23  ;;  %v4280_v61 = vld [vmem:[%s6541_s1 + $0x74c] sm:$0xf] }
  0xe1   :  { %1936 = vmatpush.bf16.msra.mxu2 %v2990_v33  ;;  %v4256_v33 = vld [vmem:[%s6541_s1 + $0x68c] sm:$0xf]  ;;  %v3422_v41 = vor.u32 %v4224_v24, %v3419_v30  ;;  %v3531_v28 = vld [vmem:[%s6541_s1 + $0x678] sm:$0xf0] }
  0xe2   :  { %1949 = vmatpush.bf16.msra.mxu3 %v3118_v40  ;;  %v3550_v42 = vor.u32 %v4256_v33, %v3547_v35  ;;  %v3534_v51 = vor.u32 %v4252_v48, %v3531_v28  ;;  %v3387_v57 = vld [vmem:[%s6541_s1 + $0x558] sm:$0xf0]  ;;  %v4212_v4 = vld [vmem:[%s6541_s1 + $0x52c] sm:$0xf]  ;;  %v3777_v28 = vld [vmem:[%s6543_s3 + $0x60] sm:$0xf] }
  0xe3   :  { %1911 = vmatpush.bf16.msra.mxu0 %v2718_v47  ;;  %v5964_v40 = vpop.f32.mrf.mxu0  ;;  %v3403_v47 = vld [vmem:[%s6541_s1 + $0x578] sm:$0xf0]  ;;  %v4244_v31 = vld [vmem:[%s6541_s1 + $0x62c] sm:$0xf] }
  0xe4   :  { %1924 = vmatpush.bf16.msra.mxu1 %v2846_v34  ;;  %v5975_v46 = vpop.f32.mrf.mxu1  ;;  %v3659_v34 = vld [vmem:[%s6541_s1 + $0x778] sm:$0xf0]  ;;  %v3406_v50 = vor.u32 %v4220_v45, %v3403_v47  ;;  %v4276_v9 = vld [vmem:[%s6541_s1 + $0x72c] sm:$0xf]  ;;  %v3786_v47 = vor.u32 %v4318_v37, %v3785_v36  ;;  %v3801_v36 = vld [vmem:[%s6543_s3 + $0x90] sm:$0xf] }
  0xe5   :  { %1937 = vmatpush.bf16.msra.mxu2 %v2974_v49  ;;  %v3278_v49 = vor.u32 %v4188_v43, %v3275_v44  ;;  %v3662_v56 = vor.u32 %v4284_v29, %v3659_v34  ;;  %v3643_v62 = vld [vmem:[%s6541_s1 + $0x758] sm:$0xf0]  ;;  %v4240_v24 = vld [vmem:[%s6541_s1 + $0x60c] sm:$0xf]  ;;  %v4334_v43 = vld [vmem:[%s6543_s3 + $0xf4] sm:$0xf0] }
  0xe6   :  { %1950 = vmatpush.bf16.msra.mxu3 %v3102_v52  ;;  %1912 = vmatmul.bf16.vlgmr.msra.gmra.mxu0 %v4394_v13  ;;  %v4184_v52 = vld [vmem:[%s6541_s1 + $0x44c] sm:$0xf]  ;;  %v3243_v25 = vld [vmem:[%s6541_s1 + $0x438] sm:$0xf0]  ;;  %v4316_v29 = vld [vmem:[%s6543_s3 + $0x64] sm:$0xf0] }
  0xe7   :  { %1956 = vmatpush.bf16.msrb.mxu0 %v3342_v53  ;;  %1925 = vmatmul.bf16.vlgmr.msra.gmra.mxu1 %v4396_v16  ;;  %v3259_v53 = vld [vmem:[%s6541_s1 + $0x458] sm:$0xf0]  ;;  %v4272_v30 = vld [vmem:[%s6541_s1 + $0x70c] sm:$0xf]  ;;  %v3841_v34 = vld [vmem:[%s6543_s3 + $0xe0] sm:$0xf] }
  0xe8   :  { %1969 = vmatpush.bf16.msrb.mxu1 %v3470_v54  ;;  %1938 = vmatmul.bf16.vlgmr.msra.gmra.mxu2 %v4393_v8  ;;  %v4216_v54 = vld [vmem:[%s6541_s1 + $0x54c] sm:$0xf]  ;;  %v3262_v63 = vor.u32 %v4184_v52, %v3259_v53  ;;  %v3371_v8 = vld [vmem:[%s6541_s1 + $0x538] sm:$0xf0]  ;;  %v3769_v52 = vld [vmem:[%s6543_s3 + $0x50] sm:$0xf] }
  0xe9   :  { %1982 = vmatpush.bf16.msrb.mxu2 %v3598_v55  ;;  %1951 = vmatmul.bf16.vlgmr.msra.gmra.mxu3 %v4395_v14  ;;  %v3499_v38 = vld [vmem:[%s6541_s1 + $0x638] sm:$0xf0]  ;;  %v4176_v14 = vld [vmem:[%s6541_s1 + $0x40c] sm:$0xf]  ;;  %v4314_v53 = vld [vmem:[%s6543_s3 + $0x54] sm:$0xf0] }
  0xea   :  { %1995 = vmatpush.bf16.msrb.mxu3 %v3726_v59  ;;  %v3515_v59 = vld [vmem:[%s6541_s1 + $0x658] sm:$0xf0]  ;;  %v3502_v16 = vor.u32 %v4244_v31, %v3499_v38 }
  0xeb   :  { %1957 = vmatpush.bf16.msrb.mxu0 %v3326_v1  ;;  %v6001_v55 = vpop.f32.mrf.mxu2  ;;  %v1707_v0 = vpop.f32.mrf.mxu0  ;;  %v3390_v1 = vor.u32 %v4216_v54, %v3387_v57  ;;  %v3627_v10 = vld [vmem:[%s6541_s1 + $0x738] sm:$0xf0]  ;;  %v3833_v54 = vld [vmem:[%s6543_s3 + $0xd0] sm:$0xf] }
  0xec   :  { %1970 = vmatpush.bf16.msrb.mxu1 %v3454_v2  ;;  %v6012_v60 = vpop.f32.mrf.mxu3  ;;  %v3518_v2 = vor.u32 %v4248_v58, %v3515_v59  ;;  %v1720_v5 = vpop.f32.mrf.mxu1  ;;  %v3355_v32 = vld [vmem:[%s6541_s1 + $0x518] sm:$0xf0]  ;;  %v3630_v23 = vor.u32 %v4276_v9, %v3627_v10  ;;  %v3825_v58 = vld [vmem:[%s6543_s3 + $0xc0] sm:$0xf]  ;;  %v3913_v59 = vld [vmem:[%s6543_s3 + $0x170] sm:$0xf] }
  0xed   :  { %1983 = vmatpush.bf16.msrb.mxu2 %v3582_v3  ;;  %v4180_v3 = vld [vmem:[%s6541_s1 + $0x42c] sm:$0xf]  ;;  %v3611_v35 = vld [vmem:[%s6541_s1 + $0x718] sm:$0xf0]  ;;  %v4326_v5 = vld [vmem:[%s6543_s3 + $0xb4] sm:$0xf0] }
  0xee   :  { %1996 = vmatpush.bf16.msrb.mxu3 %v3710_v6  ;;  %v3646_v6 = vor.u32 %v4280_v61, %v3643_v62  ;;  %v3246_v13 = vor.u32 %v4180_v3, %v3243_v25  ;;  %v3817_v3 = vld [vmem:[%s6543_s3 + $0xb0] sm:$0xf] }
  0xef   :  { %1958 = vmatpush.bf16.msrb.mxu0 %v3310_v15  ;;  %v3374_v15 = vor.u32 %v4212_v4, %v3371_v8  ;;  %v4348_v8 = vld [vmem:[%s6543_s3 + $0x164] sm:$0xf0]  ;;  %v3818_v10 = vor.u32 %v4326_v5, %v3817_v3  ;;  %v4338_v3 = vld [vmem:[%s6543_s3 + $0x114] sm:$0xf0]  ;;  %v3771_v5 = vld [vmem:[%s6543_s3 + $0x58] sm:$0xf0] }
  0xf0   :  { %1971 = vmatpush.bf16.msrb.mxu1 %v3438_v19  ;;  %v3227_v19 = vld [vmem:[%s6541_s1 + $0x418] sm:$0xf0] }
  0xf1   :  { %1984 = vmatpush.bf16.msrb.mxu2 %v3566_v20  ;;  %v4208_v20 = vld [vmem:[%s6541_s1 + $0x50c] sm:$0xf] }
  0xf2   :  { %1997 = vmatpush.bf16.msrb.mxu3 %v3694_v26  ;;  %v3483_v26 = vld [vmem:[%s6541_s1 + $0x618] sm:$0xf0]  ;;  %v3358_v44 = vor.u32 %v4208_v20, %v3355_v32  ;;  %v3897_v20 = vld [vmem:[%s6543_s3 + $0x150] sm:$0xf]  ;;  %v4346_v32 = vld [vmem:[%s6543_s3 + $0x154] sm:$0xf0] }
  0xf3   :  { %1959 = vmatpush.bf16.msrb.mxu0 %v3294_v39  ;;  %v1733_v21 = vpop.f32.mrf.mxu2  ;;  %v1706_v39 = vadd.f32 %v5964_v40, %v287_v11  ;;  %v3486_v45 = vor.u32 %v4240_v24, %v3483_v26  ;;  %v3745_v11 = vld [vmem:[%s6543_s3 + $0x20] sm:$0xf] }
  0xf4   :  { %1972 = vmatpush.bf16.msrb.mxu1 %v3422_v41  ;;  %v1746_v33 = vpop.f32.mrf.mxu3  ;;  %v3230_v41 = vor.u32 %v4176_v14, %v3227_v19  ;;  %v3809_v14 = vld [vmem:[%s6543_s3 + $0xa0] sm:$0xf]  ;;  %v3898_v21 = vor.u32 %v4346_v32, %v3897_v20  ;;  %v4327_v20 = vld [vmem:[%s6543_s3 + $0xc4] sm:$0xf]  ;;  %v3827_v32 = vld [vmem:[%s6543_s3 + $0xc8] sm:$0xf0] }
  0xf5   :  { %1985 = vmatpush.bf16.msrb.mxu2 %v3550_v42  ;;  %v3849_v42 = vld [vmem:[%s6543_s3 + $0xf0] sm:$0xf]  ;;  %v1719_v40 = vadd.f32 %v5975_v46, %v1706_v39  ;;  %v3778_v46 = vor.u32 %v4316_v29, %v3777_v28  ;;  %v4322_v39 = vld [vmem:[%s6543_s3 + $0x94] sm:$0xf0]  ;;  %v4320_v28 = vld [vmem:[%s6543_s3 + $0x84] sm:$0xf0] }
  0xf6   :  { %1998 = vmatpush.bf16.msrb.mxu3 %v3678_v27  ;;  %v3614_v27 = vor.u32 %v4272_v30, %v3611_v35  ;;  %v3850_v48 = vor.u32 %v4334_v43, %v3849_v42  ;;  %v3737_v33 = vld [vmem:[%s6543_s3 + $0x10] sm:$0xf]  ;;  %v4306_v35 = vld [vmem:[%s6543_s3 + $0x14] sm:$0xf0]  ;;  %v4344_v42 = vld [vmem:[%s6543_s3 + $0x144] sm:$0xf0] }
  0xf7   :  { %1960 = vmatpush.bf16.msrb.mxu0 %v3278_v49  ;;  %v4332_v49 = vld [vmem:[%s6543_s3 + $0xe4] sm:$0xf0]  ;;  %v4317_v29 = vld [vmem:[%s6543_s3 + $0x74] sm:$0xf] }
  0xf8   :  { %1973 = vmatpush.bf16.msrb.mxu1 %v3406_v50  ;;  %v3842_v50 = vor.u32 %v4332_v49, %v3841_v34  ;;  %v3787_v49 = vld [vmem:[%s6543_s3 + $0x78] sm:$0xf0] }
  0xf9   :  { %1986 = vmatpush.bf16.msrb.mxu2 %v3534_v51  ;;  %v1732_v51 = vadd.f32 %v6001_v55, %v1719_v40  ;;  %v3770_v55 = vor.u32 %v4314_v53, %v3769_v52  ;;  %v3793_v40 = vld [vmem:[%s6543_s3 + $0x80] sm:$0xf]  ;;  %v4333_v52 = vld [vmem:[%s6543_s3 + $0xf4] sm:$0xf]  ;;  %v3851_v53 = vld [vmem:[%s6543_s3 + $0xf8] sm:$0xf0] }
  0xfa   :  { %1999 = vmatpush.bf16.msrb.mxu3 %v3662_v56 }
  0xfb   :  { %1961 = vmatpush.bf16.msrb.mxu0 %v3262_v63  ;;  %v1745_v56 = vadd.f32 %v6012_v60, %v1732_v51  ;;  %v4350_v60 = vld [vmem:[%s6543_s3 + $0x174] sm:$0xf0] }
  0xfc   :  { %1974 = vmatpush.bf16.msrb.mxu1 %v3390_v1  ;;  %v3914_v61 = vor.u32 %v4350_v60, %v3913_v59  ;;  %v3753_v1 = vld [vmem:[%s6543_s3 + $0x30] sm:$0xf]  ;;  %v4342_v51 = vld [vmem:[%s6543_s3 + $0x134] sm:$0xf0]  ;;  %v3873_v59 = vld [vmem:[%s6543_s3 + $0x120] sm:$0xf] }
  0xfd   :  { %1987 = vmatpush.bf16.msrb.mxu2 %v3518_v2  ;;  %v4310_v2 = vld [vmem:[%s6543_s3 + $0x34] sm:$0xf0]  ;;  %v4331_v60 = vld [vmem:[%s6543_s3 + $0xe4] sm:$0xf] }
  0xfe   :  { %2000 = vmatpush.bf16.msrb.mxu3 %v3646_v6  ;;  %v3905_v6 = vld [vmem:[%s6543_s3 + $0x160] sm:$0xf]  ;;  %v3754_v38 = vor.u32 %v4310_v2, %v3753_v1  ;;  %v3865_v2 = vld [vmem:[%s6543_s3 + $0x110] sm:$0xf] }
  0xff   :  { %1962 = vmatpush.bf16.msrb.mxu0 %v3246_v13  ;;  %v3906_v31 = vor.u32 %v4348_v8, %v3905_v6  ;;  %v4308_v13 = vld [vmem:[%s6543_s3 + $0x24] sm:$0xf0]  ;;  %v4329_v6 = vld [vmem:[%s6543_s3 + $0xd4] sm:$0xf]  ;;  %v3866_v8 = vor.u32 %v4338_v3, %v3865_v2  ;;  %v3795_v2 = vld [vmem:[%s6543_s3 + $0x88] sm:$0xf0] }
 0x100   :  { %1975 = vmatpush.bf16.msrb.mxu1 %v3374_v15 }
 0x101   :  { %1988 = vmatpush.bf16.msrb.mxu2 %v3502_v16  ;;  %v4324_v16 = vld [vmem:[%s6543_s3 + $0xa4] sm:$0xf0] }
 0x102   :  { %2001 = vmatpush.bf16.msrb.mxu3 %v3630_v23  ;;  %v3746_v23 = vor.u32 %v4308_v13, %v3745_v11  ;;  %v3810_v30 = vor.u32 %v4324_v16, %v3809_v14  ;;  %v3915_v11 = vld [vmem:[%s6543_s3 + $0x178] sm:$0xf0]  ;;  %v3763_v16 = vld [vmem:[%s6543_s3 + $0x48] sm:$0xf0] }
 0x103   :  { %1963 = vmatpush.bf16.msrb.mxu0 %v3230_v41  ;;  %v1757_v63 = vpop.f32.mrf.mxu0  ;;  %v3889_v41 = vld [vmem:[%s6543_s3 + $0x140] sm:$0xf] }
 0x104   :  { %1976 = vmatpush.bf16.msrb.mxu1 %v3358_v44  ;;  %v1758_v25 = vadd.f32 %v1757_v63, %v1745_v56  ;;  %v1770_v4 = vpop.f32.mrf.mxu1  ;;  %v3890_v43 = vor.u32 %v4344_v42, %v3889_v41  ;;  %v2008_v56 = vmax.f32 %v5818_v7, 0.0  ;;  %v4340_v7 = vld [vmem:[%s6543_s3 + $0x124] sm:$0xf0]  ;;  %v3907_v41 = vld [vmem:[%s6543_s3 + $0x168] sm:$0xf0] }
 0x105   :  { %1989 = vmatpush.bf16.msrb.mxu2 %v3486_v45  ;;  %v3738_v45 = vor.u32 %v4306_v35, %v3737_v33  ;;  %v4325_v33 = vld [vmem:[%s6543_s3 + $0xb4] sm:$0xf] }
 0x106   :  { %2002 = vmatpush.bf16.msrb.mxu3 %v3614_v27  ;;  %1964 = vmatmul.bf16.vlgmr.msrb.gmra.mxu0 %v5731_v17  ;;  %v4330_v17 = vld [vmem:[%s6543_s3 + $0xd4] sm:$0xf0]  ;;  %v1771_v9 = vadd.f32 %v1770_v4, %v1758_v25  ;;  %v3729_v27 = vld [vmem:[%s6543_s3] sm:$0xf]  ;;  %v4313_v4 = vld [vmem:[%s6543_s3 + $0x54] sm:$0xf] }
 0x107   :  { %2406 = vmatpush.bf16.msra.mxu0 %v3786_v47  ;;  %1977 = vmatmul.bf16.vlgmr.msrb.gmra.mxu1 %v5743_v22  ;;  %v3834_v57 = vor.u32 %v4330_v17, %v3833_v54  ;;  %v4312_v22 = vld [vmem:[%s6543_s3 + $0x44] sm:$0xf0]  ;;  %v3774_v13 = vor.u32 %v4313_v4, %v3771_v5  ;;  %v4339_v5 = vld [vmem:[%s6543_s3 + $0x124] sm:$0xf] }
 0x108   :  { %2419 = vmatpush.bf16.msra.mxu1 %v3850_v48  ;;  %1990 = vmatmul.bf16.vlgmr.msrb.gmra.mxu2 %v5719_v12  ;;  %v3761_v12 = vld [vmem:[%s6543_s3 + $0x40] sm:$0xf]  ;;  %v4304_v47 = vld [vmem:[%s6543_s3 + $0x4] sm:$0xf0]  ;;  %v3802_v48 = vor.u32 %v4322_v39, %v3801_v36  ;;  %v3819_v36 = vld [vmem:[%s6543_s3 + $0xb8] sm:$0xf0] }
 0x109   :  { %2003 = vmatmul.bf16.vlgmr.msrb.gmra.mxu3 %v5734_v18  ;;  %v4328_v18 = vld [vmem:[%s6543_s3 + $0xc4] sm:$0xf0]  ;;  %v3762_v62 = vor.u32 %v4312_v22, %v3761_v12  ;;  %2432 = vmatpush.bf16.msra.mxu2 %v3914_v61  ;;  %v3790_v12 = vor.u32 %v4317_v29, %v3787_v49  ;;  %v4315_v22 = vld [vmem:[%s6543_s3 + $0x64] sm:$0xf]  ;;  %v3843_v61 = vld [vmem:[%s6543_s3 + $0xe8] sm:$0xf0] }
 0x10a   :  { %v3826_v0 = vor.u32 %v4328_v18, %v3825_v58  ;;  %v3854_v58 = vor.u32 %v4333_v52, %v3851_v53  ;;  %v3779_v18 = vld [vmem:[%s6543_s3 + $0x68] sm:$0xf0]  ;;  %v3846_v25 = vor.u32 %v4331_v60, %v3843_v61  ;;  %v4347_v39 = vld [vmem:[%s6543_s3 + $0x164] sm:$0xf]  ;;  %v3899_v29 = vld [vmem:[%s6543_s3 + $0x158] sm:$0xf0] }
 0x10b   :  { %2407 = vmatpush.bf16.msra.mxu0 %v3778_v46  ;;  %v1783_v15 = vpop.f32.mrf.mxu2  ;;  %v1759_v26 = vpop.f32.mrf.mxu0  ;;  %v3782_v1 = vor.u32 %v4315_v22, %v3779_v18  ;;  %v3910_v42 = vor.u32 %v4347_v39, %v3907_v41  ;;  %v3739_v52 = vld [vmem:[%s6543_s3 + $0x18] sm:$0xf0]  ;;  %v4321_v53 = vld [vmem:[%s6543_s3 + $0x94] sm:$0xf]  ;;  %v3731_v60 = vld [vmem:[%s6543_s3 + $0x8] sm:$0xf0] }
 0x10c   :  { %2420 = vmatpush.bf16.msra.mxu1 %v3842_v50  ;;  %v1796_v19 = vpop.f32.mrf.mxu3  ;;  %v1784_v24 = vadd.f32 %v1783_v15, %v1771_v9  ;;  %v1772_v37 = vpop.f32.mrf.mxu1  ;;  %v3881_v50 = vld [vmem:[%s6543_s3 + $0x130] sm:$0xf]  ;;  %v4336_v9 = vld [vmem:[%s6543_s3 + $0x104] sm:$0xf0]  ;;  %v4311_v15 = vld [vmem:[%s6543_s3 + $0x44] sm:$0xf] }
 0x10d   :  { %2433 = vmatpush.bf16.msra.mxu2 %v3906_v31  ;;  %v3882_v54 = vor.u32 %v4342_v51, %v3881_v50  ;;  %v3835_v31 = vld [vmem:[%s6543_s3 + $0xd8] sm:$0xf0]  ;;  %v4309_v26 = vld [vmem:[%s6543_s3 + $0x34] sm:$0xf] }
 0x10e   :  { %v1797_v44 = vadd.f32 %v1796_v19, %v1784_v24  ;;  %v3838_v14 = vor.u32 %v4329_v6, %v3835_v31  ;;  %v3830_v24 = vor.u32 %v4327_v20, %v3827_v32  ;;  %v4305_v51 = vld [vmem:[%s6543_s3 + $0x14] sm:$0xf]  ;;  %v3875_v6 = vld [vmem:[%s6543_s3 + $0x128] sm:$0xf0]  ;;  %v4335_v20 = vld [vmem:[%s6543_s3 + $0x104] sm:$0xf] }
 0x10f   :  { %2408 = vmatpush.bf16.msra.mxu0 %v3770_v55  ;;  %v3730_v55 = vor.u32 %v4304_v47, %v3729_v27  ;;  %v3747_v27 = vld [vmem:[%s6543_s3 + $0x28] sm:$0xf0]  ;;  %v4323_v47 = vld [vmem:[%s6543_s3 + $0xa4] sm:$0xf]  ;;  %v3742_v22 = vor.u32 %v4305_v51, %v3739_v52  ;;  %v4341_v61 = vld [vmem:[%s6543_s3 + $0x134] sm:$0xf] }
 0x110   :  { %2421 = vmatpush.bf16.msra.mxu1 %v3834_v57  ;;  %v2009_v17 = vmax.f32 %v1797_v44, 0.0  ;;  %v3794_v57 = vor.u32 %v4320_v28, %v3793_v40  ;;  %v3822_v44 = vor.u32 %v4325_v33, %v3819_v36  ;;  %v4345_v28 = vld [vmem:[%s6543_s3 + $0x154] sm:$0xf]  ;;  %v3859_v32 = vld [vmem:[%s6543_s3 + $0x108] sm:$0xf0] }
 0x111   :  { %2434 = vmatpush.bf16.msra.mxu2 %v3898_v21  ;;  %v3902_v49 = vor.u32 %v4345_v28, %v3899_v29  ;;  %v3961_v33 = vld [vmem:[%s6543_s3 + $0x1d0] sm:$0xf]  ;;  %v4356_v51 = vld [vmem:[%s6543_s3 + $0x1a4] sm:$0xf0] }
 0x112   :  { %v6234_v63 = vpack.c.bf16 %v2009_v17, %v2009_v17  ;;  %v3803_v17 = vld [vmem:[%s6543_s3 + $0x98] sm:$0xf0] }
 0x113   :  { %2409 = vmatpush.bf16.msra.mxu0 %v3762_v62  ;;  %v1785_v34 = vpop.f32.mrf.mxu2  ;;  %v3874_v62 = vor.u32 %v4340_v7, %v3873_v59  ;;  %v4303_v59 = vld [vmem:[%s6543_s3 + $0x4] sm:$0xf]  ;;  %v3806_v7 = vor.u32 %v4321_v53, %v3803_v17 }
 0x114   :  { %2422 = vmatpush.bf16.msra.mxu1 %v3826_v0  ;;  %v1798_v46 = vpop.f32.mrf.mxu3  ;;  %v6236_v0 = vpack.c.bf16 %v2008_v56, %v2008_v56  ;;  %v4343_v56 = vld [vmem:[%s6543_s3 + $0x144] sm:$0xf] }
 0x115   :  { %2435 = vmatpush.bf16.msra.mxu2 %v3890_v43 }
 0x117   :  { %2410 = vmatpush.bf16.msra.mxu0 %v3754_v38  ;;  %v3857_v38 = vld [vmem:[%s6543_s3 + $0x100] sm:$0xf] }
 0x118   :  { %2423 = vmatpush.bf16.msra.mxu1 %v3818_v10  ;;  %v4349_v10 = vld [vmem:[%s6543_s3 + $0x174] sm:$0xf]  ;;  %v3858_v19 = vor.u32 %v4336_v9, %v3857_v38  ;;  %v3734_v38 = vor.u32 %v4303_v59, %v3731_v60  ;;  %v4366_v9 = vld [vmem:[%s6543_s3 + $0x1f4] sm:$0xf0] }
 0x119   :  { %2436 = vmatpush.bf16.msra.mxu2 %v3882_v54  ;;  %v3918_v21 = vor.u32 %v4349_v10, %v3915_v11  ;;  %v4365_v59 = vld [vmem:[%s6543_s3 + $0x1f4] sm:$0xf] }
 0x11b   :  { %2411 = vmatpush.bf16.msra.mxu0 %v3746_v23  ;;  %v3766_v23 = vor.u32 %v4311_v15, %v3763_v16  ;;  %v3867_v15 = vld [vmem:[%s6543_s3 + $0x118] sm:$0xf0] }
 0x11c   :  { %2424 = vmatpush.bf16.msra.mxu1 %v3810_v30  ;;  %v3755_v30 = vld [vmem:[%s6543_s3 + $0x38] sm:$0xf0] }
 0x11d   :  { %2437 = vmatpush.bf16.msra.mxu2 %v3874_v62  ;;  %v3758_v43 = vor.u32 %v4309_v26, %v3755_v30  ;;  %v3883_v62 = vld [vmem:[%s6543_s3 + $0x138] sm:$0xf0]  ;;  %v3969_v26 = vld [vmem:[%s6543_s3 + $0x1e0] sm:$0xf] }
 0x11f   :  { %2412 = vmatpush.bf16.msra.mxu0 %v3738_v45  ;;  %v4307_v45 = vld [vmem:[%s6543_s3 + $0x24] sm:$0xf] }
 0x120   :  { %2425 = vmatpush.bf16.msra.mxu1 %v3802_v48  ;;  %v3811_v48 = vld [vmem:[%s6543_s3 + $0xa8] sm:$0xf0]  ;;  %v3750_v46 = vor.u32 %v4307_v45, %v3747_v27 }
 0x121   :  { %2438 = vmatpush.bf16.msra.mxu2 %v3866_v8  ;;  %v3814_v50 = vor.u32 %v4323_v47, %v3811_v48  ;;  %v3977_v8 = vld [vmem:[%s6543_s3 + $0x1f0] sm:$0xf] }
 0x122   :  { %v3978_v11 = vor.u32 %v4366_v9, %v3977_v8  ;;  %v3945_v48 = vld [vmem:[%s6543_s3 + $0x1b0] sm:$0xf] }
 0x123   :  { %2413 = vmatpush.bf16.msra.mxu0 %v3730_v55  ;;  %v1809_v35 = vpop.f32.mrf.mxu0 }
 0x124   :  { %2426 = vmatpush.bf16.msra.mxu1 %v3794_v57  ;;  %v6294_v37 = vpop.f32.mrf.mxu1  ;;  %v3891_v57 = vld [vmem:[%s6543_s3 + $0x148] sm:$0xf0]  ;;  %2445 = vmatpush.bf16.msra.mxu3 %v3978_v11 }
 0x125   :  { %2439 = vmatpush.bf16.msra.mxu2 %v3858_v19 }
 0x126   :  { %2414 = vmatmul.bf16.vlgmr.msra.gmra.mxu0 %v6236_v0 }
 0x127   :  { %2458 = vmatpush.bf16.msrb.mxu0 %v3790_v12  ;;  %2427 = vmatmul.bf16.vlgmr.msra.gmra.mxu1 %v6234_v63  ;;  %v3894_v12 = vor.u32 %v4343_v56, %v3891_v57  ;;  %v4354_v56 = vld [vmem:[%s6543_s3 + $0x194] sm:$0xf0] }
 0x128   :  { %2471 = vmatpush.bf16.msrb.mxu1 %v3854_v58  ;;  %v6341_v58 = vld [vmem:[%s6542_s2] sm:$0xf] }
 0x129   :  { %2484 = vmatpush.bf16.msrb.mxu2 %v3918_v21  ;;  %v288_v18 = vperm.slane %v6341_v58, 2 }
 0x12b   :  { %2459 = vmatpush.bf16.msrb.mxu0 %v3782_v1  ;;  %v1835_v40 = vpop.f32.mrf.mxu2  ;;  %v1811_v54 = vpop.f32.mrf.mxu0  ;;  %v4319_v1 = vld [vmem:[%s6543_s3 + $0x84] sm:$0xf]  ;;  %v1810_v31 = vadd.f32 %v1809_v35, %v288_v18 }
 0x12c   :  { %2472 = vmatpush.bf16.msrb.mxu1 %v3846_v25  ;;  %v1848_v34 = vpop.f32.mrf.mxu3  ;;  %v1824_v55 = vpop.f32.mrf.mxu1  ;;  %v3886_v25 = vor.u32 %v4341_v61, %v3883_v62  ;;  %v3798_v10 = vor.u32 %v4319_v1, %v3795_v2  ;;  %v4363_v61 = vld [vmem:[%s6543_s3 + $0x1e4] sm:$0xf]  ;;  %v3971_v62 = vld [vmem:[%s6543_s3 + $0x1e8] sm:$0xf0] }
 0x12d   :  { %2485 = vmatpush.bf16.msrb.mxu2 %v3910_v42  ;;  %v1823_v16 = vadd.f32 %v6294_v37, %v1810_v31  ;;  %v3953_v42 = vld [vmem:[%s6543_s3 + $0x1c0] sm:$0xf]  ;;  %v3929_v55 = vld [vmem:[%s6543_s3 + $0x190] sm:$0xf]  ;;  %v3974_v2 = vor.u32 %v4363_v61, %v3971_v62  ;;  %v4359_v31 = vld [vmem:[%s6543_s3 + $0x1c4] sm:$0xf] }
 0x12e   :  { %v3930_v57 = vor.u32 %v4354_v56, %v3929_v55  ;;  %v4382_v61 = vld [vmem:[%s6545_s5 + $0x78] sm:$0xff]  ;;  %v4373_v62 = vld [vmem:[%s6545_s5 + $0x30] sm:$0xff] }
 0x12f   :  { %2460 = vmatpush.bf16.msrb.mxu0 %v3774_v13  ;;  %v3878_v13 = vor.u32 %v4339_v5, %v3875_v6  ;;  %v1836_v21 = vadd.f32 %v1835_v40, %v1823_v16  ;;  %v4358_v40 = vld [vmem:[%s6543_s3 + $0x1b4] sm:$0xf0] }
 0x130   :  { %2473 = vmatpush.bf16.msrb.mxu1 %v3838_v14  ;;  %v4337_v14 = vld [vmem:[%s6543_s3 + $0x114] sm:$0xf] }
 0x131   :  { %2486 = vmatpush.bf16.msrb.mxu2 %v3902_v49  ;;  %v3870_v19 = vor.u32 %v4337_v14, %v3867_v15  ;;  %v3946_v49 = vor.u32 %v4358_v40, %v3945_v48  ;;  %v3947_v14 = vld [vmem:[%s6543_s3 + $0x1b8] sm:$0xf0]  ;;  %v289_v15 = vperm.slane %v6341_v58, 3 }
 0x132   :  { %v3931_v58 = vld [vmem:[%s6543_s3 + $0x198] sm:$0xf0] }
 0x133   :  { %2461 = vmatpush.bf16.msrb.mxu0 %v3766_v23  ;;  %v1837_v3 = vpop.f32.mrf.mxu2  ;;  %v3862_v23 = vor.u32 %v4335_v20, %v3859_v32  ;;  %v3939_v20 = vld [vmem:[%s6543_s3 + $0x1a8] sm:$0xf0] }
 0x134   :  { %2474 = vmatpush.bf16.msrb.mxu1 %v3830_v24  ;;  %v1850_v4 = vpop.f32.mrf.mxu3  ;;  %v1849_v24 = vadd.f32 %v1848_v34, %v1836_v21 }
 0x135   :  { %2487 = vmatpush.bf16.msrb.mxu2 %v3894_v12  ;;  %v3921_v12 = vld [vmem:[%s6543_s3 + $0x180] sm:$0xf]  ;;  %v3963_v4 = vld [vmem:[%s6543_s3 + $0x1d8] sm:$0xf0] }
 0x137   :  { %2462 = vmatpush.bf16.msrb.mxu0 %v3758_v43  ;;  %v4360_v43 = vld [vmem:[%s6543_s3 + $0x1c4] sm:$0xf0] }
 0x138   :  { %2475 = vmatpush.bf16.msrb.mxu1 %v3822_v44  ;;  %v3954_v45 = vor.u32 %v4360_v43, %v3953_v42 }
 0x139   :  { %2488 = vmatpush.bf16.msrb.mxu2 %v3886_v25  ;;  %v4361_v25 = vld [vmem:[%s6543_s3 + $0x1d4] sm:$0xf] }
 0x13a   :  { %v3966_v5 = vor.u32 %v4361_v25, %v3963_v4  ;;  %v4371_v25 = vld [vmem:[%s6545_s5 + $0x20] sm:$0xff]  ;;  %v4370_v4 = vld [vmem:[%s6545_s5 + $0x18] sm:$0xff] }
 0x13b   :  { %2463 = vmatpush.bf16.msrb.mxu0 %v3750_v46 }
 0x13c   :  { %2476 = vmatpush.bf16.msrb.mxu1 %v3814_v50  ;;  %v3937_v50 = vld [vmem:[%s6543_s3 + $0x1a0] sm:$0xf] }
 0x13d   :  { %2489 = vmatpush.bf16.msrb.mxu2 %v3878_v13  ;;  %v3938_v54 = vor.u32 %v4356_v51, %v3937_v50  ;;  %v4357_v13 = vld [vmem:[%s6543_s3 + $0x1b4] sm:$0xf] }
 0x13e   :  { %v3950_v16 = vor.u32 %v4357_v13, %v3947_v14  ;;  %v4378_v13 = vld [vmem:[%s6545_s5 + $0x58] sm:$0xff]  ;;  %v4377_v14 = vld [vmem:[%s6545_s5 + $0x50] sm:$0xff] }
 0x13f   :  { %2464 = vmatpush.bf16.msrb.mxu0 %v3742_v22  ;;  %v4352_v22 = vld [vmem:[%s6543_s3 + $0x184] sm:$0xf0] }
 0x140   :  { %2477 = vmatpush.bf16.msrb.mxu1 %v3806_v7  ;;  %v3922_v18 = vor.u32 %v4352_v22, %v3921_v12  ;;  %v3979_v7 = vld [vmem:[%s6543_s3 + $0x1f8] sm:$0xf0] }
 0x141   :  { %2490 = vmatpush.bf16.msrb.mxu2 %v3870_v19  ;;  %v3982_v60 = vor.u32 %v4365_v59, %v3979_v7  ;;  %v4355_v19 = vld [vmem:[%s6543_s3 + $0x1a4] sm:$0xf] }
 0x143   :  { %2465 = vmatpush.bf16.msrb.mxu0 %v3734_v38  ;;  %v1861_v35 = vpop.f32.mrf.mxu0  ;;  %v3955_v38 = vld [vmem:[%s6543_s3 + $0x1c8] sm:$0xf0] }
 0x144   :  { %2478 = vmatpush.bf16.msrb.mxu1 %v3798_v10  ;;  %v1862_v36 = vadd.f32 %v1861_v35, %v1849_v24  ;;  %v1874_v37 = vpop.f32.mrf.mxu1  ;;  %v3958_v10 = vor.u32 %v4359_v31, %v3955_v38  ;;  %v4353_v24 = vld [vmem:[%s6543_s3 + $0x194] sm:$0xf]  ;;  %v4368_v38 = vld [vmem:[%s6545_s5 + $0x8] sm:$0xff] }
 0x145   :  { %2491 = vmatpush.bf16.msrb.mxu2 %v3862_v23  ;;  %v3942_v23 = vor.u32 %v4355_v19, %v3939_v20 }
 0x146   :  { %2466 = vmatmul.bf16.vlgmr.msrb.gmra.mxu0 %v6236_v0  ;;  %v4364_v0 = vld [vmem:[%s6543_s3 + $0x1e4] sm:$0xf0]  ;;  %v1875_v41 = vadd.f32 %v1874_v37, %v1862_v36 }
 0x147   :  { %2479 = vmatmul.bf16.vlgmr.msrb.gmra.mxu1 %v6234_v63  ;;  %v3970_v30 = vor.u32 %v4364_v0, %v3969_v26  ;;  %v4362_v63 = vld [vmem:[%s6543_s3 + $0x1d4] sm:$0xf0]  ;;  %v3934_v0 = vor.u32 %v4353_v24, %v3931_v58 }
 0x148   :  { %v3962_v39 = vor.u32 %v4362_v63, %v3961_v33  ;;  %v3923_v33 = vld [vmem:[%s6543_s3 + $0x188] sm:$0xf0]  ;;  %2659 = vmatpush.bf16.msra.mxu1 %v4382_v61 }
 0x149   :  { %2446 = vmatpush.bf16.msra.mxu3 %v3970_v30  ;;  %v4351_v30 = vld [vmem:[%s6543_s3 + $0x184] sm:$0xf] }
 0x14a   :  { %v3926_v35 = vor.u32 %v4351_v30, %v3923_v33 }
 0x14b   :  { %v1887_v44 = vpop.f32.mrf.mxu2  ;;  %v1863_v29 = vpop.f32.mrf.mxu0 }
 0x14c   :  { %v1888_v27 = vadd.f32 %v1887_v44, %v1875_v41  ;;  %v1900_v47 = vpop.f32.mrf.mxu3  ;;  %v1876_v34 = vpop.f32.mrf.mxu1 }
 0x14d   :  { %2447 = vmatpush.bf16.msra.mxu3 %v3962_v39 }
 0x14e   :  { %v1901_v28 = vadd.f32 %v1900_v47, %v1888_v27 }
 0x150   :  { %v2010_v46 = vmax.f32 %v1901_v28, 0.0 }
 0x151   :  { %2448 = vmatpush.bf16.msra.mxu3 %v3954_v45 }
 0x152   :  { %v2014_v52 = vpack.c.bf16 %v2010_v46, %v2010_v46  ;;  %v2080_v46 = vld [vmem:[%s6544_s4] sm:$0x3] }
 0x153   :  { %v1889_v53 = vpop.f32.mrf.mxu2  ;;  %v2082_v50 = vperm.slane %v2080_v46, 0  ;;  %v2083_v56 = vperm.slane %v2080_v46, 1 }
 0x154   :  { %2440 = vmatmul.bf16.vlgmr.msra.gmra.mxu2 %v2014_v52  ;;  %v1902_v17 = vpop.f32.mrf.mxu3 }
 0x155   :  { %2449 = vmatpush.bf16.msra.mxu3 %v3946_v49 }
 0x159   :  { %2450 = vmatpush.bf16.msra.mxu3 %v3938_v54 }
 0x15d   :  { %2451 = vmatpush.bf16.msra.mxu3 %v3930_v57 }
 0x161   :  { %2452 = vmatpush.bf16.msra.mxu3 %v3922_v18 }
 0x163   :  { %v1913_v1 = vpop.f32.mrf.mxu0 }
 0x164   :  { %2492 = vmatmul.bf16.vlgmr.msrb.gmra.mxu2 %v2014_v52  ;;  %v1926_v3 = vpop.f32.mrf.mxu1  ;;  %v1914_v26 = vadd.f32 %v1913_v1, %v289_v15  ;;  %v4381_v1 = vld [vmem:[%s6545_s5 + $0x70] sm:$0xff]  ;;  %v4376_v15 = vld [vmem:[%s6545_s5 + $0x48] sm:$0xff] }
 0x165   :  { %2497 = vmatpush.bf16.msrb.mxu3 %v3982_v60  ;;  %v4374_v60 = vld [vmem:[%s6545_s5 + $0x38] sm:$0xff]  ;;  %2660 = vmatpush.bf16.msra.mxu1 %v4381_v1 }
 0x166   :  { %v1927_v63 = vadd.f32 %v1926_v3, %v1914_v26  ;;  %2646 = vmatpush.bf16.msra.mxu0 %v4374_v60 }
 0x169   :  { %2498 = vmatpush.bf16.msrb.mxu3 %v3974_v2  ;;  %v4372_v2 = vld [vmem:[%s6545_s5 + $0x28] sm:$0xff] }
 0x16a   :  { %2647 = vmatpush.bf16.msra.mxu0 %v4373_v62 }
 0x16b   :  { %v1939_v6 = vpop.f32.mrf.mxu2  ;;  %v1915_v9 = vpop.f32.mrf.mxu0 }
 0x16c   :  { %v1952_v8 = vpop.f32.mrf.mxu3  ;;  %v1928_v11 = vpop.f32.mrf.mxu1  ;;  %v1940_v36 = vadd.f32 %v1939_v6, %v1927_v63  ;;  %v4369_v6 = vld [vmem:[%s6545_s5 + $0x10] sm:$0xff]  ;;  %v4380_v9 = vld [vmem:[%s6545_s5 + $0x68] sm:$0xff] }
 0x16d   :  { %2499 = vmatpush.bf16.msrb.mxu3 %v3966_v5  ;;  %2661 = vmatpush.bf16.msra.mxu1 %v4380_v9  ;;  %v4379_v11 = vld [vmem:[%s6545_s5 + $0x60] sm:$0xff] }
 0x16e   :  { %v1953_v37 = vadd.f32 %v1952_v8, %v1940_v36  ;;  %2648 = vmatpush.bf16.msra.mxu0 %v4372_v2 }
 0x171   :  { %2500 = vmatpush.bf16.msrb.mxu3 %v3958_v10  ;;  %v4367_v10 = vld [vmem:[%s6545_s5] sm:$0xff]  ;;  %2662 = vmatpush.bf16.msra.mxu1 %v4379_v11 }
 0x172   :  { %2649 = vmatpush.bf16.msra.mxu0 %v4371_v25 }
 0x173   :  { %v1941_v32 = vpop.f32.mrf.mxu2 }
 0x174   :  { %v1954_v21 = vpop.f32.mrf.mxu3 }
 0x175   :  { %2501 = vmatpush.bf16.msrb.mxu3 %v3950_v16  ;;  %2663 = vmatpush.bf16.msra.mxu1 %v4378_v13  ;;  %v4375_v16 = vld [vmem:[%s6545_s5 + $0x40] sm:$0xff]  ;;  %s4424_s5 = smov [#allocation2]  }
 0x176   :  { %2650 = vmatpush.bf16.msra.mxu0 %v4370_v4 }
 0x179   :  { %2502 = vmatpush.bf16.msrb.mxu3 %v3942_v23  ;;  %2664 = vmatpush.bf16.msra.mxu1 %v4377_v14 }
 0x17a   :  { %2651 = vmatpush.bf16.msra.mxu0 %v4369_v6 }
 0x17d   :  { %2503 = vmatpush.bf16.msrb.mxu3 %v3934_v0  ;;  %2665 = vmatpush.bf16.msra.mxu1 %v4376_v15 }
 0x17e   :  { %2652 = vmatpush.bf16.msra.mxu0 %v4368_v38 }
 0x181   :  { %2504 = vmatpush.bf16.msrb.mxu3 %v3926_v35  ;;  %2666 = vmatpush.bf16.msra.mxu1 %v4375_v16 }
 0x182   :  { %2653 = vmatpush.bf16.msra.mxu0 %v4367_v10 }
 0x183   :  { %v1965_v39 = vpop.f32.mrf.mxu0 }
 0x184   :  { %v1978_v41 = vpop.f32.mrf.mxu1  ;;  %v1966_v42 = vadd.f32 %v1965_v39, %v1953_v37  ;;  %v4384_v37 = vld [vmem:[%s6546_s6] ss:$0 sm:$0xff]  ;;  %s2692_s6 = sshll.u32 %s4424_s5, 4  ;;  %s2693_s6 = int_to_ptr.vmem [resolvable:$true] %s2692_s6 }
 0x186   :  { %v1979_v43 = vadd.f32 %v1978_v41, %v1966_v42 }
 0x18b   :  { %v1991_v44 = vpop.f32.mrf.mxu2  ;;  %v1967_v47 = vpop.f32.mrf.mxu0 }
 0x18c   :  { %v1992_v45 = vadd.f32 %v1991_v44, %v1979_v43  ;;  %v2004_v27 = vpop.f32.mrf.mxu3  ;;  %v1980_v48 = vpop.f32.mrf.mxu1 }
 0x18e   :  { %v2005_v40 = vadd.f32 %v2004_v27, %v1992_v45 }
 0x190   :  { %v2011_v28 = vmax.f32 %v2005_v40, 0.0 }
 0x192   :  { %v2015_v29 = vpack.c.bf16 %v2011_v28, %v2011_v28 }
 0x193   :  { %v1993_v34 = vpop.f32.mrf.mxu2 }
 0x194   :  { %v2006_v49 = vpop.f32.mrf.mxu3  ;;  %2453 = vmatmul.bf16.vlgmr.msra.gmra.mxu3 %v2015_v29 }
 0x1a3   :  { %v2415_v51 = vpop.f32.mrf.mxu0 }
 0x1a4   :  { %v2416_v52 = vadd.f32 %v2415_v51, %v2082_v50  ;;  %v2428_v53 = vpop.f32.mrf.mxu1  ;;  %2505 = vmatmul.bf16.vlgmr.msrb.gmra.mxu3 %v2015_v29 }
 0x1a6   :  { %v2429_v54 = vadd.f32 %v2428_v53, %v2416_v52 }
 0x1ab   :  { %v2417_v17 = vpop.f32.mrf.mxu0 }
 0x1ac   :  { %v2430_v55 = vpop.f32.mrf.mxu1 }
 0x1c3   :  { %v2467_v57 = vpop.f32.mrf.mxu0 }
 0x1c4   :  { %v2468_v12 = vadd.f32 %v2467_v57, %v2083_v56  ;;  %v2480_v22 = vpop.f32.mrf.mxu1 }
 0x1c6   :  { %v2481_v18 = vadd.f32 %v2480_v22, %v2468_v12 }
 0x1cb   :  { %v2469_v59 = vpop.f32.mrf.mxu0 }
 0x1cc   :  { %v2482_v7 = vpop.f32.mrf.mxu1 }
 0x1d7   :  { %v2441_v3 = vpop.f32.mrf.mxu2 }
 0x1d8   :  { %v2442_v19 = vadd.f32 %v2441_v3, %v2429_v54 }
 0x1df   :  { %v2443_v5 = vpop.f32.mrf.mxu2 }
 0x1e7   :  { %v2493_v8 = vpop.f32.mrf.mxu2 }
 0x1e8   :  { %v2494_v58 = vadd.f32 %v2493_v8, %v2481_v18 }
 0x1ef   :  { %v2495_v31 = vpop.f32.mrf.mxu2 }
 0x217   :  { %v2454_v20 = vpop.f32.mrf.mxu3 }
 0x218   :  { %v2455_v32 = vadd.f32 %v2454_v20, %v2442_v19 }
 0x21a   :  { %v2510_v21 = vmax.f32 %v2455_v32, 0.0 }
 0x21c   :  { %v2512_v23 = vpack.c.bf16 %v2510_v21, %v2510_v21 }
 0x21e   :  { %2654 = vmatmul.bf16.vlgmr.msra.gmra.mxu0 %v2512_v23 }
 0x21f   :  { %v2456_v24 = vpop.f32.mrf.mxu3 }
 0x227   :  { %v2506_v26 = vpop.f32.mrf.mxu3 }
 0x228   :  { %v2507_v0 = vadd.f32 %v2506_v26, %v2494_v58 }
 0x22a   :  { %v2511_v30 = vmax.f32 %v2507_v0, 0.0 }
 0x22c   :  { %v2513_v33 = vpack.c.bf16 %v2511_v30, %v2511_v30 }
 0x22e   :  { %2667 = vmatmul.bf16.vlgmr.msra.gmra.mxu1 %v2513_v33 }
 0x22f   :  { %v2508_v63 = vpop.f32.mrf.mxu3 }
 0x29b   :  { %v2655_v35 = vpop.f32.mrf.mxu0 }
 0x29c   :  { %v2656_v39 = vadd.f32 %v4384_v37, %v2655_v35 }
 0x2a3   :  { %v2657_v36 = vpop.f32.mrf.mxu0 }
 0x2ab   :  { %v2668_v41 = vpop.f32.mrf.mxu1 }
 0x2ac   :  { %v2669_v42 = vadd.f32 %v2668_v41, %v2656_v39 }
 0x2ae   :  { %v2673_v43 = vsel %vm2672_vm0, %v2669_v42, -inf }
 0x2af   :  { %2674 = vmax.xlane.f32.xlu0 %v2673_v43 }
 0x2b3   :  { %v2670_v44 = vpop.f32.mrf.mxu1 }
 0x322   :  { %v2675_v45 = vpop.xlane.xlu0 %2674 }
 0x323   :  { %v2676_v27 = vsub.f32 %v2669_v42, %v2675_v45 }
 0x325   :  { %v2677_v47 = vmul.f32 1.442695, %v2676_v27 }
 0x327   :  { %4385 = vpow2.f32 %v2677_v47 }
 0x32d   :  { %v4386_v48 = vpop.eup %4385 }
 0x32e   :  { %v2679_v40 = vsel %vm2672_vm0, %v4386_v48, 0.0 }
 0x32f   :  { %2680 = vadd.xlane.f32.xlu0 %v2679_v40 }
 0x3a2   :  { %v2681_v28 = vpop.xlane.xlu0 %2680 }
 0x3a3   :  { %4387 = vlog2.f32 %v2681_v28 }
 0x3a9   :  { %v4388_v29 = vpop.eup %4387 }
 0x3aa   :  { %v2683_v34 = vmul.f32 0.6931472, %v4388_v29 }
 0x3ac   :  { %v2684_v49 = vadd.f32 %v2683_v34, %v2675_v45 }
 0x3ae   :  { %v2685_v46 = vsub.f32 %v2669_v42, %v2684_v49 }
 0x3b0   :  { %2686 = vst.msk [vmem:[#allocation2] sm:$0x3] %vm2672_vm0, %v2685_v46 }
 0x3b1   :  { %2697 = dma.vmem_to_hbm [thread:$0]  %s2693_s6, 32, %s2695_s15, [#allocation3]  }
 0x3b2   :  { %4422 = dma.done.wait [#allocation3], 32  }
 0x3b3   :  { %4423 = vsyncadd [#allocation3], 4294967264 }
 0x3b4   :  { %2702 = vsyncpa [#allocation3], 1 }

</bundles_post_ra>
